<compile_context>
chip_gen: v6e
topology: v6e:2x2x1
jax: 0.10.0
libtpu: 0.0.40
codegen_flags: <defaults>
</compile_context>

<pallas_src>
import functools

import jax
import jax.numpy as jnp
from jax import lax
from jax.experimental import pallas as pl
from jax.experimental.pallas import tpu as pltpu

EPS = 1e-5                      # nn.LayerNorm default eps

# MXU operand dtype. f32 matches PyTorch closely and is the right choice on
# v5e (no bf16 VPU/EUP path). Set to jnp.bfloat16 on v6e/v7x for ~2x MXU
# throughput; weights are pre-cast ONCE in prepare_layer_params, accumulation,
# LayerNorm stats, softmax and the LSTM c-state stay f32.
MATMUL_DTYPE = jnp.float32

# Softmax denominator via the EUP reciprocal (approx, ~1e-3 rel error).
# Set False for bit-closeness to the PyTorch reference.
SOFTMAX_APPROX_RECIP = True


def _default_vmem_limit():
    # Per-generation VMEM budget: ~3/4 of physical, capped at 100 MiB.
    # (v5e/v6e: 128 MiB physical -> 96..100 MiB; v7x: 64 MiB -> 48 MiB.)
    try:
        cap = int(pltpu.get_tpu_info().vmem_capacity_bytes)
    except Exception:
        cap = 64 * 1024 * 1024
    return int(min(cap * 3 // 4, 100 * 1024 * 1024))


VMEM_LIMIT_BYTES = _default_vmem_limit()


def _mm(a, b):
    """MXU matmul, f32 accumulation. Weights are pre-cast in the wrapper."""
    return jnp.dot(a.astype(MATMUL_DTYPE), b, preferred_element_type=jnp.float32)


def _layernorm(x, w, b):
    mu = jnp.mean(x, axis=-1, keepdims=True)
    var = jnp.mean((x - mu) ** 2, axis=-1, keepdims=True)
    return (x - mu) * lax.rsqrt(var + EPS) * w + b


# --------------------------------------------------------------------------
# Fused per-layer kernel (one batch item per grid step):
#   norm1 + MHA + res1  ->  norm2 + LSTM + res2  ->  FFN + res3
# --------------------------------------------------------------------------
def _decoder_layer_kernel(tgt_ref, mem_ref, h0_ref, c0_ref,
                          ln1w_ref, ln1b_ref,
                          wq_ref, bq_ref, wk_ref, bk_ref, wv_ref, bv_ref,
                          wo_ref, bo_ref,
                          ln2w_ref, ln2b_ref,
                          wih_ref, whh_ref, bg_ref,
                          w1_ref, b1_ref, w2_ref, b2_ref,
                          out_ref, hn_ref, cn_ref,
                          gx_sc, hseq_sc, *, n_heads):
    S, D = tgt_ref.shape
    Dh = D // n_heads
    scale = 1.0 / (Dh ** 0.5)

    x = tgt_ref[...]                                   # (S, D)
    mem = mem_ref[...]                                 # (M, D)

    # ---------------- norm1 + MultiheadAttention + res1 ----------------
    xn = _layernorm(x, ln1w_ref[...], ln1b_ref[...])
    q = _mm(xn, wq_ref[...]) + bq_ref[...]             # (S, D)
    k = _mm(mem, wk_ref[...]) + bk_ref[...]            # (M, D)  (K and V split:
    v = _mm(mem, wv_ref[...]) + bv_ref[...]            #  no fused-lane slicing)

    # TODO(synk): at production head dims (Dh >= 128) use a head-major batched
    # einsum or put heads on the grid; at Dh=8 a static per-head loop avoids
    # lane-splitting relayouts and the matmuls are tiny either way.
    ctxs = []
    for h in range(n_heads):
        sl = slice(h * Dh, (h + 1) * Dh)
        s = lax.dot_general(q[:, sl], k[:, sl], (((1,), (1,)), ((), ())),
                            preferred_element_type=jnp.float32) * scale
        s = s - jnp.max(s, axis=-1, keepdims=True)
        p = jnp.exp(s)
        denom = jnp.sum(p, axis=-1, keepdims=True)
        if SOFTMAX_APPROX_RECIP:
            p = p * pl.reciprocal(denom, approx=True)
        else:
            p = p / denom
        ctxs.append(_mm(p, v[:, sl]))
    ctx = jnp.concatenate(ctxs, axis=-1)               # (S, D)
    y1 = _mm(ctx, wo_ref[...]) + bo_ref[...] + x       # MHA out + res1

    # ---------------- norm2 + LSTM + res2 ----------------
    xn2 = _layernorm(y1, ln2w_ref[...], ln2b_ref[...])

    # Hoisted input projection: one (S,D)x(D,D) matmul per gate, stored along
    # the scratch's LEADING axis so the serial loop never lane-slices.
    for g in range(4):
        gx_sc[g] = _mm(xn2, wih_ref[g]) + bg_ref[g]    # (S, D)

    whh_i = whh_ref[0]                                 # (D, D) each, loaded once
    whh_f = whh_ref[1]
    whh_g = whh_ref[2]
    whh_o = whh_ref[3]

    # TODO(synk): batch the recurrence over a whole (B, D) batch slice per core
    # (carry h as (B, D)) for better MXU/EUP occupancy at production sizes; it
    # needs a (B,S,D)<->(S,B,D) relayout that isn't worth it at these shapes.
    # TODO(synk): at real D (>=256) pin W_hh in MXU staging across the loop
    # with pltpu.matmul_push_rhs / matmul_acc_lhs / matmul_pop.
    def step(t, carry):
        h, c = carry
        i_g = jax.nn.sigmoid(gx_sc[0, pl.ds(t, 1), :] + _mm(h, whh_i))
        f_g = jax.nn.sigmoid(gx_sc[1, pl.ds(t, 1), :] + _mm(h, whh_f))
        g_g = jnp.tanh(gx_sc[2, pl.ds(t, 1), :] + _mm(h, whh_g))
        o_g = jax.nn.sigmoid(gx_sc[3, pl.ds(t, 1), :] + _mm(h, whh_o))
        c_new = f_g * c + i_g * g_g
        h_new = o_g * jnp.tanh(c_new)
        hseq_sc[pl.ds(t, 1), :] = h_new                # stash h_t; bulk use later
        return (h_new, c_new)

    h_fin, c_fin = lax.fori_loop(0, S, step, (h0_ref[...], c0_ref[...]),
                                 unroll=True)          # fully unrolled (static S)
    hn_ref[...] = h_fin
    cn_ref[...] = c_fin

    y2 = hseq_sc[...] + y1                             # LSTM out + res2 (bulk)

    # ---------------- FFN: Linear -> exact GELU -> Linear, + res3 ----------
    h1 = _mm(y2, w1_ref[...]) + b1_ref[...]            # (S, F)
    h1 = 0.5 * h1 * (1.0 + lax.erf(h1 * 0.7071067811865476))
    z = _mm(h1, w2_ref[...]) + b2_ref[...]             # (S, D)
    out_ref[...] = (z + y2).astype(out_ref.dtype)
    # norm3 exists in the PyTorch module but is never applied in forward().


# --------------------------------------------------------------------------
# pallas_call wrapper: ONE fused call per layer, grid=(B,)
# --------------------------------------------------------------------------
_WEIGHT_ORDER = ('ln1_w', 'ln1_b', 'wq', 'bq', 'wk', 'bk', 'wv', 'bv',
                 'wo', 'bo', 'ln2_w', 'ln2_b', 'wih', 'whh', 'bg',
                 'w1', 'b1', 'w2', 'b2')


def _weight_spec(w):
    # Constant index_map -> weight stays VMEM-resident across grid steps.
    # TODO(synk): at production sizes add pipeline_mode=pl.Buffered(1) (and
    # tile S / bf16 scratch) to fit v7x's 64 MiB VMEM.
    zeros = (0,) * w.ndim
    return pl.BlockSpec(w.shape, lambda b: zeros)


def decoder_layer(tgt, memory, h0, c0, kp, n_heads):
    B, S, D = tgt.shape
    M = memory.shape[1]
    weights = [kp[name] for name in _WEIGHT_ORDER]
    state_spec = pl.BlockSpec((None, 1, D), lambda b: (b, 0, 0))
    out, hn, cn = pl.pallas_call(
        functools.partial(_decoder_layer_kernel, n_heads=n_heads),
        grid=(B,),
        out_shape=(jax.ShapeDtypeStruct((B, S, D), tgt.dtype),
                   jax.ShapeDtypeStruct((B, 1, D), jnp.float32),
                   jax.ShapeDtypeStruct((B, 1, D), jnp.float32)),
        in_specs=[pl.BlockSpec((None, S, D), lambda b: (b, 0, 0)),
                  pl.BlockSpec((None, M, D), lambda b: (b, 0, 0)),
                  state_spec, state_spec]
                 + [_weight_spec(w) for w in weights],
        out_specs=(pl.BlockSpec((None, S, D), lambda b: (b, 0, 0)),
                   state_spec, state_spec),
        scratch_shapes=[pltpu.VMEM((4, S, D), jnp.float32),   # per-gate x-proj
                        pltpu.VMEM((S, D), jnp.float32)],     # h sequence
        compiler_params=pltpu.CompilerParams(
            dimension_semantics=("parallel",),
            vmem_limit_bytes=VMEM_LIMIT_BYTES),
    )(tgt, memory, h0, c0, *weights)
    return out, hn, cn


# --------------------------------------------------------------------------
# One-time weight re-layout (OUTSIDE the jitted forward):
#   PyTorch [out, in] -> kernel [in, out]; Q/K/V split; LSTM gates stacked on
#   a leading axis; b_ih + b_hh fused; optional bf16 pre-cast.
# --------------------------------------------------------------------------
def prepare_layer_params(p, matmul_dtype=MATMUL_DTYPE):
    D = p['ln1_w'].shape[-1]
    wd = matmul_dtype
    in_w, in_b = p['in_proj_w'], p['in_proj_b']        # (3D, D), (1, 3D)
    b_lstm = p['b_ih'] + p['b_hh']                     # (1, 4D)
    wih = jnp.stack([p['w_ih'][g * D:(g + 1) * D, :].T for g in range(4)])
    whh = jnp.stack([p['w_hh'][g * D:(g + 1) * D, :].T for g in range(4)])
    bg = jnp.stack([b_lstm[:, g * D:(g + 1) * D] for g in range(4)])
    return dict(
        ln1_w=p['ln1_w'], ln1_b=p['ln1_b'],
        ln2_w=p['ln2_w'], ln2_b=p['ln2_b'],
        wq=in_w[0:D, :].T.astype(wd),          bq=in_b[:, 0:D],
        wk=in_w[D:2 * D, :].T.astype(wd),      bk=in_b[:, D:2 * D],
        wv=in_w[2 * D:3 * D, :].T.astype(wd),  bv=in_b[:, 2 * D:3 * D],
        wo=p['out_proj_w'].T.astype(wd),       bo=p['out_proj_b'],
        wih=wih.astype(wd), whh=whh.astype(wd), bg=bg.astype(jnp.float32),
        w1=p['w1'].T.astype(wd), b1=p['b1'],
        w2=p['w2'].T.astype(wd), b2=p['b2'],
    )


# --------------------------------------------------------------------------
# Decoder orchestration
# --------------------------------------------------------------------------
@functools.partial(jax.jit, static_argnums=(4,))
def decoder_forward(tgt, memory, state, kernel_params, n_heads):
    B, S, D = tgt.shape
    out_states = []
    for i, kp in enumerate(kernel_params):
        st = state[i]
        if st is None:
            h0 = jnp.zeros((B, 1, D), jnp.float32)
            c0 = jnp.zeros((B, 1, D), jnp.float32)
        else:
            h0 = jnp.swapaxes(st[0], 0, 1).astype(jnp.float32)  # (1,B,D)->(B,1,D)
            c0 = jnp.swapaxes(st[1], 0, 1).astype(jnp.float32)
        tgt, hn, cn = decoder_layer(tgt, memory, h0, c0, kp, n_heads)
        out_states.append((jnp.swapaxes(hn, 0, 1), jnp.swapaxes(cn, 0, 1)))
    return tgt, out_states


# --------------------------------------------------------------------------
# Deterministic parameter construction (PyTorch nn.Linear/LSTM convention)
# --------------------------------------------------------------------------
def init_layer_params(key, d_model, d_ff):
    D, F = d_model, d_ff
    ks = jax.random.split(key, 10)

    def w(k, shape, scale=0.05):
        return (scale * jax.random.normal(k, shape)).astype(jnp.float32)

    return dict(
        ln1_w=jnp.ones((1, D), jnp.float32), ln1_b=jnp.zeros((1, D), jnp.float32),
        ln2_w=jnp.ones((1, D), jnp.float32), ln2_b=jnp.zeros((1, D), jnp.float32),
        in_proj_w=w(ks[0], (3 * D, D)), in_proj_b=w(ks[1], (1, 3 * D)),
        out_proj_w=w(ks[2], (D, D)),    out_proj_b=w(ks[3], (1, D)),
        w_ih=w(ks[4], (4 * D, D)),      w_hh=w(ks[5], (4 * D, D)),
        b_ih=w(ks[6], (1, 4 * D)),      b_hh=w(ks[7], (1, 4 * D)),
        w1=w(ks[8], (F, D)),            b1=jnp.zeros((1, F), jnp.float32),
        w2=w(ks[9], (D, F)),            b2=jnp.zeros((1, D), jnp.float32),
    )


if __name__ == "__main__":
    B, S, M = 2, 8, 8          # batch, target seq, memory seq
    D, H, F = 32, 4, 64        # d_model, n_heads, d_ff
    L = 2                      # num_layers
    # TODO(synk): if D < 128 is a real (non-toy) config, pad D / pack heads so
    # the output's last dim is lane-dense (multiple of 128).

    key = jax.random.PRNGKey(0)
    k_tgt, k_mem, k_par = jax.random.split(key, 3)
    tgt = jax.random.normal(k_tgt, (B, S, D), jnp.float32)
    memory = jax.random.normal(k_mem, (B, M, D), jnp.float32)
    layer_params = [init_layer_params(k, D, F) for k in jax.random.split(k_par, L)]

    # Weight re-layout / fusion / pre-cast done ONCE, outside the jitted forward.
    kernel_params = [prepare_layer_params(p) for p in layer_params]

    state = [None] * L         # same as passing state=[None, None] to the PyTorch Decoder
    out, out_states = decoder_forward(tgt, memory, state, kernel_params, H)

    out = jax.block_until_ready(out)
    for hn, cn in out_states:
        jax.block_until_ready(hn)
        jax.block_until_ready(cn)

    assert out.shape == (B, S, D)
    assert all(hn.shape == (1, B, D) and cn.shape == (1, B, D) for hn, cn in out_states)
    assert bool(jnp.all(jnp.isfinite(out)))
    print("KERNEL_OK")
</pallas_src>

<mosaic_0001>
module attributes {stable_mosaic.version = 11 : i64} {
  func.func @_decoder_layer_kernel(%arg0: i32, %arg1: memref<1x8x32xf32, #tpu.memory_space<vmem>>, %arg2: memref<1x8x32xf32, #tpu.memory_space<vmem>>, %arg3: memref<1x1x32xf32, #tpu.memory_space<vmem>>, %arg4: memref<1x1x32xf32, #tpu.memory_space<vmem>>, %arg5: memref<1x32xf32, #tpu.memory_space<vmem>>, %arg6: memref<1x32xf32, #tpu.memory_space<vmem>>, %arg7: memref<32x32xf32, #tpu.memory_space<vmem>>, %arg8: memref<1x32xf32, #tpu.memory_space<vmem>>, %arg9: memref<32x32xf32, #tpu.memory_space<vmem>>, %arg10: memref<1x32xf32, #tpu.memory_space<vmem>>, %arg11: memref<32x32xf32, #tpu.memory_space<vmem>>, %arg12: memref<1x32xf32, #tpu.memory_space<vmem>>, %arg13: memref<32x32xf32, #tpu.memory_space<vmem>>, %arg14: memref<1x32xf32, #tpu.memory_space<vmem>>, %arg15: memref<1x32xf32, #tpu.memory_space<vmem>>, %arg16: memref<1x32xf32, #tpu.memory_space<vmem>>, %arg17: memref<4x32x32xf32, #tpu.memory_space<vmem>>, %arg18: memref<4x32x32xf32, #tpu.memory_space<vmem>>, %arg19: memref<4x1x32xf32, #tpu.memory_space<vmem>>, %arg20: memref<32x64xf32, #tpu.memory_space<vmem>>, %arg21: memref<1x64xf32, #tpu.memory_space<vmem>>, %arg22: memref<64x32xf32, #tpu.memory_space<vmem>>, %arg23: memref<1x32xf32, #tpu.memory_space<vmem>>, %arg24: memref<1x8x32xf32, #tpu.memory_space<vmem>>, %arg25: memref<1x1x32xf32, #tpu.memory_space<vmem>>, %arg26: memref<1x1x32xf32, #tpu.memory_space<vmem>>, %arg27: memref<4x8x32xf32, #tpu.memory_space<vmem>>, %arg28: memref<8x32xf32, #tpu.memory_space<vmem>>) attributes {dimension_semantics = [#tpu.dimension_semantics<parallel>], iteration_bounds = array<i64: 2>, scalar_prefetch = 0 : i64, scratch_operands = 2 : i64, tpu.core_type = #tpu.core_type<tc>, window_params = [{transform_indices = @transform_0, window_bounds = array<i64: 1, 8, 32>}, {transform_indices = @transform_1, window_bounds = array<i64: 1, 8, 32>}, {transform_indices = @transform_2, window_bounds = array<i64: 1, 1, 32>}, {transform_indices = @transform_3, window_bounds = array<i64: 1, 1, 32>}, {pipeline_mode = #tpu.pipeline_mode<synchronous>, transform_indices = @transform_4, window_bounds = array<i64: 1, 32>}, {pipeline_mode = #tpu.pipeline_mode<synchronous>, transform_indices = @transform_5, window_bounds = array<i64: 1, 32>}, {pipeline_mode = #tpu.pipeline_mode<synchronous>, transform_indices = @transform_6, window_bounds = array<i64: 32, 32>}, {pipeline_mode = #tpu.pipeline_mode<synchronous>, transform_indices = @transform_7, window_bounds = array<i64: 1, 32>}, {pipeline_mode = #tpu.pipeline_mode<synchronous>, transform_indices = @transform_8, window_bounds = array<i64: 32, 32>}, {pipeline_mode = #tpu.pipeline_mode<synchronous>, transform_indices = @transform_9, window_bounds = array<i64: 1, 32>}, {pipeline_mode = #tpu.pipeline_mode<synchronous>, transform_indices = @transform_10, window_bounds = array<i64: 32, 32>}, {pipeline_mode = #tpu.pipeline_mode<synchronous>, transform_indices = @transform_11, window_bounds = array<i64: 1, 32>}, {pipeline_mode = #tpu.pipeline_mode<synchronous>, transform_indices = @transform_12, window_bounds = array<i64: 32, 32>}, {pipeline_mode = #tpu.pipeline_mode<synchronous>, transform_indices = @transform_13, window_bounds = array<i64: 1, 32>}, {pipeline_mode = #tpu.pipeline_mode<synchronous>, transform_indices = @transform_14, window_bounds = array<i64: 1, 32>}, {pipeline_mode = #tpu.pipeline_mode<synchronous>, transform_indices = @transform_15, window_bounds = array<i64: 1, 32>}, {pipeline_mode = #tpu.pipeline_mode<synchronous>, transform_indices = @transform_16, window_bounds = array<i64: 4, 32, 32>}, {pipeline_mode = #tpu.pipeline_mode<synchronous>, transform_indices = @transform_17, window_bounds = array<i64: 4, 32, 32>}, {pipeline_mode = #tpu.pipeline_mode<synchronous>, transform_indices = @transform_18, window_bounds = array<i64: 4, 1, 32>}, {pipeline_mode = #tpu.pipeline_mode<synchronous>, transform_indices = @transform_19, window_bounds = array<i64: 32, 64>}, {pipeline_mode = #tpu.pipeline_mode<synchronous>, transform_indices = @transform_20, window_bounds = array<i64: 1, 64>}, {pipeline_mode = #tpu.pipeline_mode<synchronous>, transform_indices = @transform_21, window_bounds = array<i64: 64, 32>}, {pipeline_mode = #tpu.pipeline_mode<synchronous>, transform_indices = @transform_22, window_bounds = array<i64: 1, 32>}, {transform_indices = @transform_23, window_bounds = array<i64: 1, 8, 32>}, {transform_indices = @transform_24, window_bounds = array<i64: 1, 1, 32>}, {transform_indices = @transform_25, window_bounds = array<i64: 1, 1, 32>}]} {
    %c0 = arith.constant 0 : index
    %c0_0 = arith.constant 0 : index
    %c0_1 = arith.constant 0 : index
    %0 = vector.load %arg1[%c0, %c0_0, %c0_1] : memref<1x8x32xf32, #tpu.memory_space<vmem>>, vector<1x8x32xf32>
    %1 = vector.shape_cast %0 : vector<1x8x32xf32> to vector<8x32xf32>
    %c0_2 = arith.constant 0 : index
    %c0_3 = arith.constant 0 : index
    %c0_4 = arith.constant 0 : index
    %2 = vector.load %arg2[%c0_2, %c0_3, %c0_4] : memref<1x8x32xf32, #tpu.memory_space<vmem>>, vector<1x8x32xf32>
    %3 = vector.shape_cast %2 : vector<1x8x32xf32> to vector<8x32xf32>
    %c0_5 = arith.constant 0 : index
    %c0_6 = arith.constant 0 : index
    %4 = vector.load %arg5[%c0_5, %c0_6] : memref<1x32xf32, #tpu.memory_space<vmem>>, vector<1x32xf32>
    %c0_7 = arith.constant 0 : index
    %c0_8 = arith.constant 0 : index
    %5 = vector.load %arg6[%c0_7, %c0_8] : memref<1x32xf32, #tpu.memory_space<vmem>>, vector<1x32xf32>
    %cst = arith.constant dense<0.000000e+00> : vector<8xf32>
    %6 = vector.multi_reduction <add>, %1, %cst [1] : vector<8x32xf32> to vector<8xf32>
    %7 = vector.shape_cast %6 : vector<8xf32> to vector<8x1xf32>
    %cst_9 = arith.constant 3.200000e+01 : f32
    %8 = vector.broadcast %cst_9 : f32 to vector<8x1xf32>
    %9 = arith.divf %7, %8 : vector<8x1xf32>
    %10 = vector.broadcast %9 : vector<8x1xf32> to vector<8x32xf32>
    %11 = arith.subf %1, %10 : vector<8x32xf32>
    %12 = arith.mulf %11, %11 : vector<8x32xf32>
    %cst_10 = arith.constant dense<0.000000e+00> : vector<8xf32>
    %13 = vector.multi_reduction <add>, %12, %cst_10 [1] : vector<8x32xf32> to vector<8xf32>
    %14 = vector.shape_cast %13 : vector<8xf32> to vector<8x1xf32>
    %cst_11 = arith.constant 3.200000e+01 : f32
    %15 = vector.broadcast %cst_11 : f32 to vector<8x1xf32>
    %16 = arith.divf %14, %15 : vector<8x1xf32>
    %17 = vector.broadcast %9 : vector<8x1xf32> to vector<8x32xf32>
    %18 = arith.subf %1, %17 : vector<8x32xf32>
    %cst_12 = arith.constant 9.99999974E-6 : f32
    %19 = vector.broadcast %cst_12 : f32 to vector<8x1xf32>
    %20 = arith.addf %16, %19 : vector<8x1xf32>
    %21 = math.rsqrt %20 : vector<8x1xf32>
    %22 = vector.broadcast %21 : vector<8x1xf32> to vector<8x32xf32>
    %23 = arith.mulf %18, %22 : vector<8x32xf32>
    %24 = vector.broadcast %4 : vector<1x32xf32> to vector<8x32xf32>
    %25 = arith.mulf %23, %24 : vector<8x32xf32>
    %26 = vector.broadcast %5 : vector<1x32xf32> to vector<8x32xf32>
    %27 = arith.addf %25, %26 : vector<8x32xf32>
    %c0_13 = arith.constant 0 : index
    %c0_14 = arith.constant 0 : index
    %28 = vector.load %arg7[%c0_13, %c0_14] : memref<32x32xf32, #tpu.memory_space<vmem>>, vector<32x32xf32>
    %cst_15 = arith.constant dense<0.000000e+00> : vector<8x32xf32>
    %29 = tpu.matmul %27, %28, %cst_15 {dimension_numbers = #tpu.dot_dimension_numbers<[1], [0], [0], [1], [0, 0, 1, 1], [], []>} : vector<8x32xf32>, vector<32x32xf32>, vector<8x32xf32> -> vector<8x32xf32>
    %c0_16 = arith.constant 0 : index
    %c0_17 = arith.constant 0 : index
    %30 = vector.load %arg8[%c0_16, %c0_17] : memref<1x32xf32, #tpu.memory_space<vmem>>, vector<1x32xf32>
    %31 = vector.broadcast %30 : vector<1x32xf32> to vector<8x32xf32>
    %32 = arith.addf %29, %31 : vector<8x32xf32>
    %c0_18 = arith.constant 0 : index
    %c0_19 = arith.constant 0 : index
    %33 = vector.load %arg9[%c0_18, %c0_19] : memref<32x32xf32, #tpu.memory_space<vmem>>, vector<32x32xf32>
    %cst_20 = arith.constant dense<0.000000e+00> : vector<8x32xf32>
    %34 = tpu.matmul %3, %33, %cst_20 {dimension_numbers = #tpu.dot_dimension_numbers<[1], [0], [0], [1], [0, 0, 1, 1], [], []>} : vector<8x32xf32>, vector<32x32xf32>, vector<8x32xf32> -> vector<8x32xf32>
    %c0_21 = arith.constant 0 : index
    %c0_22 = arith.constant 0 : index
    %35 = vector.load %arg10[%c0_21, %c0_22] : memref<1x32xf32, #tpu.memory_space<vmem>>, vector<1x32xf32>
    %36 = vector.broadcast %35 : vector<1x32xf32> to vector<8x32xf32>
    %37 = arith.addf %34, %36 : vector<8x32xf32>
    %c0_23 = arith.constant 0 : index
    %c0_24 = arith.constant 0 : index
    %38 = vector.load %arg11[%c0_23, %c0_24] : memref<32x32xf32, #tpu.memory_space<vmem>>, vector<32x32xf32>
    %cst_25 = arith.constant dense<0.000000e+00> : vector<8x32xf32>
    %39 = tpu.matmul %3, %38, %cst_25 {dimension_numbers = #tpu.dot_dimension_numbers<[1], [0], [0], [1], [0, 0, 1, 1], [], []>} : vector<8x32xf32>, vector<32x32xf32>, vector<8x32xf32> -> vector<8x32xf32>
    %c0_26 = arith.constant 0 : index
    %c0_27 = arith.constant 0 : index
    %40 = vector.load %arg12[%c0_26, %c0_27] : memref<1x32xf32, #tpu.memory_space<vmem>>, vector<1x32xf32>
    %41 = vector.broadcast %40 : vector<1x32xf32> to vector<8x32xf32>
    %42 = arith.addf %39, %41 : vector<8x32xf32>
    %43 = vector.extract_strided_slice %32 {offsets = [0, 0], sizes = [8, 8], strides = [1, 1]} : vector<8x32xf32> to vector<8x8xf32>
    %44 = vector.extract_strided_slice %37 {offsets = [0, 0], sizes = [8, 8], strides = [1, 1]} : vector<8x32xf32> to vector<8x8xf32>
    %cst_28 = arith.constant dense<0.000000e+00> : vector<8x8xf32>
    %45 = tpu.matmul %43, %44, %cst_28 {dimension_numbers = #tpu.dot_dimension_numbers<[1], [1], [0], [0], [0, 0, 1, 0], [], []>} : vector<8x8xf32>, vector<8x8xf32>, vector<8x8xf32> -> vector<8x8xf32>
    %cst_29 = arith.constant 0.353553385 : f32
    %46 = vector.broadcast %cst_29 : f32 to vector<8x8xf32>
    %47 = arith.mulf %45, %46 : vector<8x8xf32>
    %cst_30 = arith.constant dense<0xFF800000> : vector<8xf32>
    %48 = vector.multi_reduction <maximumf>, %47, %cst_30 [1] : vector<8x8xf32> to vector<8xf32>
    %49 = vector.shape_cast %48 : vector<8xf32> to vector<8x1xf32>
    %50 = vector.broadcast %49 : vector<8x1xf32> to vector<8x8xf32>
    %51 = arith.subf %47, %50 : vector<8x8xf32>
    %52 = math.exp %51 : vector<8x8xf32>
    %cst_31 = arith.constant dense<0.000000e+00> : vector<8xf32>
    %53 = vector.multi_reduction <add>, %52, %cst_31 [1] : vector<8x8xf32> to vector<8xf32>
    %54 = vector.shape_cast %53 : vector<8xf32> to vector<8x1xf32>
    %55 = tpu.reciprocal %54 {approx = true} : vector<8x1xf32> -> vector<8x1xf32>
    %56 = vector.broadcast %55 : vector<8x1xf32> to vector<8x8xf32>
    %57 = arith.mulf %52, %56 : vector<8x8xf32>
    %58 = vector.extract_strided_slice %42 {offsets = [0, 0], sizes = [8, 8], strides = [1, 1]} : vector<8x32xf32> to vector<8x8xf32>
    %cst_32 = arith.constant dense<0.000000e+00> : vector<8x8xf32>
    %59 = tpu.matmul %57, %58, %cst_32 {dimension_numbers = #tpu.dot_dimension_numbers<[1], [0], [0], [1], [0, 0, 1, 1], [], []>} : vector<8x8xf32>, vector<8x8xf32>, vector<8x8xf32> -> vector<8x8xf32>
    %60 = vector.extract_strided_slice %32 {offsets = [0, 8], sizes = [8, 8], strides = [1, 1]} : vector<8x32xf32> to vector<8x8xf32>
    %61 = vector.extract_strided_slice %37 {offsets = [0, 8], sizes = [8, 8], strides = [1, 1]} : vector<8x32xf32> to vector<8x8xf32>
    %cst_33 = arith.constant dense<0.000000e+00> : vector<8x8xf32>
    %62 = tpu.matmul %60, %61, %cst_33 {dimension_numbers = #tpu.dot_dimension_numbers<[1], [1], [0], [0], [0, 0, 1, 0], [], []>} : vector<8x8xf32>, vector<8x8xf32>, vector<8x8xf32> -> vector<8x8xf32>
    %cst_34 = arith.constant 0.353553385 : f32
    %63 = vector.broadcast %cst_34 : f32 to vector<8x8xf32>
    %64 = arith.mulf %62, %63 : vector<8x8xf32>
    %cst_35 = arith.constant dense<0xFF800000> : vector<8xf32>
    %65 = vector.multi_reduction <maximumf>, %64, %cst_35 [1] : vector<8x8xf32> to vector<8xf32>
    %66 = vector.shape_cast %65 : vector<8xf32> to vector<8x1xf32>
    %67 = vector.broadcast %66 : vector<8x1xf32> to vector<8x8xf32>
    %68 = arith.subf %64, %67 : vector<8x8xf32>
    %69 = math.exp %68 : vector<8x8xf32>
    %cst_36 = arith.constant dense<0.000000e+00> : vector<8xf32>
    %70 = vector.multi_reduction <add>, %69, %cst_36 [1] : vector<8x8xf32> to vector<8xf32>
    %71 = vector.shape_cast %70 : vector<8xf32> to vector<8x1xf32>
    %72 = tpu.reciprocal %71 {approx = true} : vector<8x1xf32> -> vector<8x1xf32>
    %73 = vector.broadcast %72 : vector<8x1xf32> to vector<8x8xf32>
    %74 = arith.mulf %69, %73 : vector<8x8xf32>
    %75 = vector.extract_strided_slice %42 {offsets = [0, 8], sizes = [8, 8], strides = [1, 1]} : vector<8x32xf32> to vector<8x8xf32>
    %cst_37 = arith.constant dense<0.000000e+00> : vector<8x8xf32>
    %76 = tpu.matmul %74, %75, %cst_37 {dimension_numbers = #tpu.dot_dimension_numbers<[1], [0], [0], [1], [0, 0, 1, 1], [], []>} : vector<8x8xf32>, vector<8x8xf32>, vector<8x8xf32> -> vector<8x8xf32>
    %77 = vector.extract_strided_slice %32 {offsets = [0, 16], sizes = [8, 8], strides = [1, 1]} : vector<8x32xf32> to vector<8x8xf32>
    %78 = vector.extract_strided_slice %37 {offsets = [0, 16], sizes = [8, 8], strides = [1, 1]} : vector<8x32xf32> to vector<8x8xf32>
    %cst_38 = arith.constant dense<0.000000e+00> : vector<8x8xf32>
    %79 = tpu.matmul %77, %78, %cst_38 {dimension_numbers = #tpu.dot_dimension_numbers<[1], [1], [0], [0], [0, 0, 1, 0], [], []>} : vector<8x8xf32>, vector<8x8xf32>, vector<8x8xf32> -> vector<8x8xf32>
    %cst_39 = arith.constant 0.353553385 : f32
    %80 = vector.broadcast %cst_39 : f32 to vector<8x8xf32>
    %81 = arith.mulf %79, %80 : vector<8x8xf32>
    %cst_40 = arith.constant dense<0xFF800000> : vector<8xf32>
    %82 = vector.multi_reduction <maximumf>, %81, %cst_40 [1] : vector<8x8xf32> to vector<8xf32>
    %83 = vector.shape_cast %82 : vector<8xf32> to vector<8x1xf32>
    %84 = vector.broadcast %83 : vector<8x1xf32> to vector<8x8xf32>
    %85 = arith.subf %81, %84 : vector<8x8xf32>
    %86 = math.exp %85 : vector<8x8xf32>
    %cst_41 = arith.constant dense<0.000000e+00> : vector<8xf32>
    %87 = vector.multi_reduction <add>, %86, %cst_41 [1] : vector<8x8xf32> to vector<8xf32>
    %88 = vector.shape_cast %87 : vector<8xf32> to vector<8x1xf32>
    %89 = tpu.reciprocal %88 {approx = true} : vector<8x1xf32> -> vector<8x1xf32>
    %90 = vector.broadcast %89 : vector<8x1xf32> to vector<8x8xf32>
    %91 = arith.mulf %86, %90 : vector<8x8xf32>
    %92 = vector.extract_strided_slice %42 {offsets = [0, 16], sizes = [8, 8], strides = [1, 1]} : vector<8x32xf32> to vector<8x8xf32>
    %cst_42 = arith.constant dense<0.000000e+00> : vector<8x8xf32>
    %93 = tpu.matmul %91, %92, %cst_42 {dimension_numbers = #tpu.dot_dimension_numbers<[1], [0], [0], [1], [0, 0, 1, 1], [], []>} : vector<8x8xf32>, vector<8x8xf32>, vector<8x8xf32> -> vector<8x8xf32>
    %94 = vector.extract_strided_slice %32 {offsets = [0, 24], sizes = [8, 8], strides = [1, 1]} : vector<8x32xf32> to vector<8x8xf32>
    %95 = vector.extract_strided_slice %37 {offsets = [0, 24], sizes = [8, 8], strides = [1, 1]} : vector<8x32xf32> to vector<8x8xf32>
    %cst_43 = arith.constant dense<0.000000e+00> : vector<8x8xf32>
    %96 = tpu.matmul %94, %95, %cst_43 {dimension_numbers = #tpu.dot_dimension_numbers<[1], [1], [0], [0], [0, 0, 1, 0], [], []>} : vector<8x8xf32>, vector<8x8xf32>, vector<8x8xf32> -> vector<8x8xf32>
    %cst_44 = arith.constant 0.353553385 : f32
    %97 = vector.broadcast %cst_44 : f32 to vector<8x8xf32>
    %98 = arith.mulf %96, %97 : vector<8x8xf32>
    %cst_45 = arith.constant dense<0xFF800000> : vector<8xf32>
    %99 = vector.multi_reduction <maximumf>, %98, %cst_45 [1] : vector<8x8xf32> to vector<8xf32>
    %100 = vector.shape_cast %99 : vector<8xf32> to vector<8x1xf32>
    %101 = vector.broadcast %100 : vector<8x1xf32> to vector<8x8xf32>
    %102 = arith.subf %98, %101 : vector<8x8xf32>
    %103 = math.exp %102 : vector<8x8xf32>
    %cst_46 = arith.constant dense<0.000000e+00> : vector<8xf32>
    %104 = vector.multi_reduction <add>, %103, %cst_46 [1] : vector<8x8xf32> to vector<8xf32>
    %105 = vector.shape_cast %104 : vector<8xf32> to vector<8x1xf32>
    %106 = tpu.reciprocal %105 {approx = true} : vector<8x1xf32> -> vector<8x1xf32>
    %107 = vector.broadcast %106 : vector<8x1xf32> to vector<8x8xf32>
    %108 = arith.mulf %103, %107 : vector<8x8xf32>
    %109 = vector.extract_strided_slice %42 {offsets = [0, 24], sizes = [8, 8], strides = [1, 1]} : vector<8x32xf32> to vector<8x8xf32>
    %cst_47 = arith.constant dense<0.000000e+00> : vector<8x8xf32>
    %110 = tpu.matmul %108, %109, %cst_47 {dimension_numbers = #tpu.dot_dimension_numbers<[1], [0], [0], [1], [0, 0, 1, 1], [], []>} : vector<8x8xf32>, vector<8x8xf32>, vector<8x8xf32> -> vector<8x8xf32>
    %111 = tpu.concatenate %59, %76, %93, %110 in 1 : vector<8x8xf32>, vector<8x8xf32>, vector<8x8xf32>, vector<8x8xf32> -> vector<8x32xf32>
    %c0_48 = arith.constant 0 : index
    %c0_49 = arith.constant 0 : index
    %112 = vector.load %arg13[%c0_48, %c0_49] : memref<32x32xf32, #tpu.memory_space<vmem>>, vector<32x32xf32>
    %cst_50 = arith.constant dense<0.000000e+00> : vector<8x32xf32>
    %113 = tpu.matmul %111, %112, %cst_50 {dimension_numbers = #tpu.dot_dimension_numbers<[1], [0], [0], [1], [0, 0, 1, 1], [], []>} : vector<8x32xf32>, vector<32x32xf32>, vector<8x32xf32> -> vector<8x32xf32>
    %c0_51 = arith.constant 0 : index
    %c0_52 = arith.constant 0 : index
    %114 = vector.load %arg14[%c0_51, %c0_52] : memref<1x32xf32, #tpu.memory_space<vmem>>, vector<1x32xf32>
    %115 = vector.broadcast %114 : vector<1x32xf32> to vector<8x32xf32>
    %116 = arith.addf %113, %115 : vector<8x32xf32>
    %117 = arith.addf %116, %1 : vector<8x32xf32>
    %c0_53 = arith.constant 0 : index
    %c0_54 = arith.constant 0 : index
    %118 = vector.load %arg15[%c0_53, %c0_54] : memref<1x32xf32, #tpu.memory_space<vmem>>, vector<1x32xf32>
    %c0_55 = arith.constant 0 : index
    %c0_56 = arith.constant 0 : index
    %119 = vector.load %arg16[%c0_55, %c0_56] : memref<1x32xf32, #tpu.memory_space<vmem>>, vector<1x32xf32>
    %cst_57 = arith.constant dense<0.000000e+00> : vector<8xf32>
    %120 = vector.multi_reduction <add>, %117, %cst_57 [1] : vector<8x32xf32> to vector<8xf32>
    %121 = vector.shape_cast %120 : vector<8xf32> to vector<8x1xf32>
    %cst_58 = arith.constant 3.200000e+01 : f32
    %122 = vector.broadcast %cst_58 : f32 to vector<8x1xf32>
    %123 = arith.divf %121, %122 : vector<8x1xf32>
    %124 = vector.broadcast %123 : vector<8x1xf32> to vector<8x32xf32>
    %125 = arith.subf %117, %124 : vector<8x32xf32>
    %126 = arith.mulf %125, %125 : vector<8x32xf32>
    %cst_59 = arith.constant dense<0.000000e+00> : vector<8xf32>
    %127 = vector.multi_reduction <add>, %126, %cst_59 [1] : vector<8x32xf32> to vector<8xf32>
    %128 = vector.shape_cast %127 : vector<8xf32> to vector<8x1xf32>
    %cst_60 = arith.constant 3.200000e+01 : f32
    %129 = vector.broadcast %cst_60 : f32 to vector<8x1xf32>
    %130 = arith.divf %128, %129 : vector<8x1xf32>
    %131 = vector.broadcast %123 : vector<8x1xf32> to vector<8x32xf32>
    %132 = arith.subf %117, %131 : vector<8x32xf32>
    %cst_61 = arith.constant 9.99999974E-6 : f32
    %133 = vector.broadcast %cst_61 : f32 to vector<8x1xf32>
    %134 = arith.addf %130, %133 : vector<8x1xf32>
    %135 = math.rsqrt %134 : vector<8x1xf32>
    %136 = vector.broadcast %135 : vector<8x1xf32> to vector<8x32xf32>
    %137 = arith.mulf %132, %136 : vector<8x32xf32>
    %138 = vector.broadcast %118 : vector<1x32xf32> to vector<8x32xf32>
    %139 = arith.mulf %137, %138 : vector<8x32xf32>
    %140 = vector.broadcast %119 : vector<1x32xf32> to vector<8x32xf32>
    %141 = arith.addf %139, %140 : vector<8x32xf32>
    %c0_62 = arith.constant 0 : index
    %c0_63 = arith.constant 0 : index
    %c0_64 = arith.constant 0 : index
    %142 = vector.load %arg17[%c0_62, %c0_63, %c0_64] : memref<4x32x32xf32, #tpu.memory_space<vmem>>, vector<1x32x32xf32>
    %143 = vector.shape_cast %142 : vector<1x32x32xf32> to vector<32x32xf32>
    %cst_65 = arith.constant dense<0.000000e+00> : vector<8x32xf32>
    %144 = tpu.matmul %141, %143, %cst_65 {dimension_numbers = #tpu.dot_dimension_numbers<[1], [0], [0], [1], [0, 0, 1, 1], [], []>} : vector<8x32xf32>, vector<32x32xf32>, vector<8x32xf32> -> vector<8x32xf32>
    %c0_66 = arith.constant 0 : index
    %c0_67 = arith.constant 0 : index
    %c0_68 = arith.constant 0 : index
    %145 = vector.load %arg19[%c0_66, %c0_67, %c0_68] : memref<4x1x32xf32, #tpu.memory_space<vmem>>, vector<1x1x32xf32>
    %146 = vector.shape_cast %145 : vector<1x1x32xf32> to vector<1x32xf32>
    %147 = vector.broadcast %146 : vector<1x32xf32> to vector<8x32xf32>
    %148 = arith.addf %144, %147 : vector<8x32xf32>
    %c0_69 = arith.constant 0 : index
    %c0_70 = arith.constant 0 : index
    %c0_71 = arith.constant 0 : index
    %149 = vector.load %arg27[%c0_69, %c0_70, %c0_71] : memref<4x8x32xf32, #tpu.memory_space<vmem>>, vector<1x8x32xf32>
    %150 = vector.shape_cast %149 : vector<1x8x32xf32> to vector<8x32xf32>
    %151 = vector.shape_cast %148 : vector<8x32xf32> to vector<1x8x32xf32>
    tpu.vector_store %arg27[%c0_69, %c0_70, %c0_71], %151 {strides = array<i32>} : memref<4x8x32xf32, #tpu.memory_space<vmem>>, vector<1x8x32xf32>,
    %c1 = arith.constant 1 : index
    %c0_72 = arith.constant 0 : index
    %c0_73 = arith.constant 0 : index
    %152 = vector.load %arg17[%c1, %c0_72, %c0_73] : memref<4x32x32xf32, #tpu.memory_space<vmem>>, vector<1x32x32xf32>
    %153 = vector.shape_cast %152 : vector<1x32x32xf32> to vector<32x32xf32>
    %cst_74 = arith.constant dense<0.000000e+00> : vector<8x32xf32>
    %154 = tpu.matmul %141, %153, %cst_74 {dimension_numbers = #tpu.dot_dimension_numbers<[1], [0], [0], [1], [0, 0, 1, 1], [], []>} : vector<8x32xf32>, vector<32x32xf32>, vector<8x32xf32> -> vector<8x32xf32>
    %c1_75 = arith.constant 1 : index
    %c0_76 = arith.constant 0 : index
    %c0_77 = arith.constant 0 : index
    %155 = vector.load %arg19[%c1_75, %c0_76, %c0_77] : memref<4x1x32xf32, #tpu.memory_space<vmem>>, vector<1x1x32xf32>
    %156 = vector.shape_cast %155 : vector<1x1x32xf32> to vector<1x32xf32>
    %157 = vector.broadcast %156 : vector<1x32xf32> to vector<8x32xf32>
    %158 = arith.addf %154, %157 : vector<8x32xf32>
    %c1_78 = arith.constant 1 : index
    %c0_79 = arith.constant 0 : index
    %c0_80 = arith.constant 0 : index
    %159 = vector.load %arg27[%c1_78, %c0_79, %c0_80] : memref<4x8x32xf32, #tpu.memory_space<vmem>>, vector<1x8x32xf32>
    %160 = vector.shape_cast %159 : vector<1x8x32xf32> to vector<8x32xf32>
    %161 = vector.shape_cast %158 : vector<8x32xf32> to vector<1x8x32xf32>
    tpu.vector_store %arg27[%c1_78, %c0_79, %c0_80], %161 {strides = array<i32>} : memref<4x8x32xf32, #tpu.memory_space<vmem>>, vector<1x8x32xf32>,
    %c2 = arith.constant 2 : index
    %c0_81 = arith.constant 0 : index
    %c0_82 = arith.constant 0 : index
    %162 = vector.load %arg17[%c2, %c0_81, %c0_82] : memref<4x32x32xf32, #tpu.memory_space<vmem>>, vector<1x32x32xf32>
    %163 = vector.shape_cast %162 : vector<1x32x32xf32> to vector<32x32xf32>
    %cst_83 = arith.constant dense<0.000000e+00> : vector<8x32xf32>
    %164 = tpu.matmul %141, %163, %cst_83 {dimension_numbers = #tpu.dot_dimension_numbers<[1], [0], [0], [1], [0, 0, 1, 1], [], []>} : vector<8x32xf32>, vector<32x32xf32>, vector<8x32xf32> -> vector<8x32xf32>
    %c2_84 = arith.constant 2 : index
    %c0_85 = arith.constant 0 : index
    %c0_86 = arith.constant 0 : index
    %165 = vector.load %arg19[%c2_84, %c0_85, %c0_86] : memref<4x1x32xf32, #tpu.memory_space<vmem>>, vector<1x1x32xf32>
    %166 = vector.shape_cast %165 : vector<1x1x32xf32> to vector<1x32xf32>
    %167 = vector.broadcast %166 : vector<1x32xf32> to vector<8x32xf32>
    %168 = arith.addf %164, %167 : vector<8x32xf32>
    %c2_87 = arith.constant 2 : index
    %c0_88 = arith.constant 0 : index
    %c0_89 = arith.constant 0 : index
    %169 = vector.load %arg27[%c2_87, %c0_88, %c0_89] : memref<4x8x32xf32, #tpu.memory_space<vmem>>, vector<1x8x32xf32>
    %170 = vector.shape_cast %169 : vector<1x8x32xf32> to vector<8x32xf32>
    %171 = vector.shape_cast %168 : vector<8x32xf32> to vector<1x8x32xf32>
    tpu.vector_store %arg27[%c2_87, %c0_88, %c0_89], %171 {strides = array<i32>} : memref<4x8x32xf32, #tpu.memory_space<vmem>>, vector<1x8x32xf32>,
    %c3 = arith.constant 3 : index
    %c0_90 = arith.constant 0 : index
    %c0_91 = arith.constant 0 : index
    %172 = vector.load %arg17[%c3, %c0_90, %c0_91] : memref<4x32x32xf32, #tpu.memory_space<vmem>>, vector<1x32x32xf32>
    %173 = vector.shape_cast %172 : vector<1x32x32xf32> to vector<32x32xf32>
    %cst_92 = arith.constant dense<0.000000e+00> : vector<8x32xf32>
    %174 = tpu.matmul %141, %173, %cst_92 {dimension_numbers = #tpu.dot_dimension_numbers<[1], [0], [0], [1], [0, 0, 1, 1], [], []>} : vector<8x32xf32>, vector<32x32xf32>, vector<8x32xf32> -> vector<8x32xf32>
    %c3_93 = arith.constant 3 : index
    %c0_94 = arith.constant 0 : index
    %c0_95 = arith.constant 0 : index
    %175 = vector.load %arg19[%c3_93, %c0_94, %c0_95] : memref<4x1x32xf32, #tpu.memory_space<vmem>>, vector<1x1x32xf32>
    %176 = vector.shape_cast %175 : vector<1x1x32xf32> to vector<1x32xf32>
    %177 = vector.broadcast %176 : vector<1x32xf32> to vector<8x32xf32>
    %178 = arith.addf %174, %177 : vector<8x32xf32>
    %c3_96 = arith.constant 3 : index
    %c0_97 = arith.constant 0 : index
    %c0_98 = arith.constant 0 : index
    %179 = vector.load %arg27[%c3_96, %c0_97, %c0_98] : memref<4x8x32xf32, #tpu.memory_space<vmem>>, vector<1x8x32xf32>
    %180 = vector.shape_cast %179 : vector<1x8x32xf32> to vector<8x32xf32>
    %181 = vector.shape_cast %178 : vector<8x32xf32> to vector<1x8x32xf32>
    tpu.vector_store %arg27[%c3_96, %c0_97, %c0_98], %181 {strides = array<i32>} : memref<4x8x32xf32, #tpu.memory_space<vmem>>, vector<1x8x32xf32>,
    %c0_99 = arith.constant 0 : index
    %c0_100 = arith.constant 0 : index
    %c0_101 = arith.constant 0 : index
    %182 = vector.load %arg18[%c0_99, %c0_100, %c0_101] : memref<4x32x32xf32, #tpu.memory_space<vmem>>, vector<1x32x32xf32>
    %183 = vector.shape_cast %182 : vector<1x32x32xf32> to vector<32x32xf32>
    %c1_102 = arith.constant 1 : index
    %c0_103 = arith.constant 0 : index
    %c0_104 = arith.constant 0 : index
    %184 = vector.load %arg18[%c1_102, %c0_103, %c0_104] : memref<4x32x32xf32, #tpu.memory_space<vmem>>, vector<1x32x32xf32>
    %185 = vector.shape_cast %184 : vector<1x32x32xf32> to vector<32x32xf32>
    %c2_105 = arith.constant 2 : index
    %c0_106 = arith.constant 0 : index
    %c0_107 = arith.constant 0 : index
    %186 = vector.load %arg18[%c2_105, %c0_106, %c0_107] : memref<4x32x32xf32, #tpu.memory_space<vmem>>, vector<1x32x32xf32>
    %187 = vector.shape_cast %186 : vector<1x32x32xf32> to vector<32x32xf32>
    %c3_108 = arith.constant 3 : index
    %c0_109 = arith.constant 0 : index
    %c0_110 = arith.constant 0 : index
    %188 = vector.load %arg18[%c3_108, %c0_109, %c0_110] : memref<4x32x32xf32, #tpu.memory_space<vmem>>, vector<1x32x32xf32>
    %189 = vector.shape_cast %188 : vector<1x32x32xf32> to vector<32x32xf32>
    %c0_111 = arith.constant 0 : index
    %c0_112 = arith.constant 0 : index
    %c0_113 = arith.constant 0 : index
    %190 = vector.load %arg3[%c0_111, %c0_112, %c0_113] : memref<1x1x32xf32, #tpu.memory_space<vmem>>, vector<1x1x32xf32>
    %191 = vector.shape_cast %190 : vector<1x1x32xf32> to vector<1x32xf32>
    %c0_114 = arith.constant 0 : index
    %c0_115 = arith.constant 0 : index
    %c0_116 = arith.constant 0 : index
    %192 = vector.load %arg4[%c0_114, %c0_115, %c0_116] : memref<1x1x32xf32, #tpu.memory_space<vmem>>, vector<1x1x32xf32>
    %193 = vector.shape_cast %192 : vector<1x1x32xf32> to vector<1x32xf32>
    %c0_i32 = arith.constant 0 : i32
    %c0_117 = arith.constant 0 : index
    %194 = arith.index_cast %c0_i32 : i32 to index
    %c0_118 = arith.constant 0 : index
    %195 = vector.load %arg27[%c0_117, %194, %c0_118] : memref<4x8x32xf32, #tpu.memory_space<vmem>>, vector<1x1x32xf32>
    %196 = vector.shape_cast %195 : vector<1x1x32xf32> to vector<1x32xf32>
    %cst_119 = arith.constant dense<0.000000e+00> : vector<1x32xf32>
    %197 = tpu.matmul %191, %183, %cst_119 {dimension_numbers = #tpu.dot_dimension_numbers<[1], [0], [0], [1], [0, 0, 1, 1], [], []>} : vector<1x32xf32>, vector<32x32xf32>, vector<1x32xf32> -> vector<1x32xf32>
    %198 = arith.addf %196, %197 : vector<1x32xf32>
    %199 = arith.negf %198 : vector<1x32xf32>
    %200 = math.exp %199 : vector<1x32xf32>
    %cst_120 = arith.constant 1.000000e+00 : f32
    %201 = vector.broadcast %cst_120 : f32 to vector<1x32xf32>
    %202 = arith.addf %201, %200 : vector<1x32xf32>
    %203 = arith.divf %201, %202 : vector<1x32xf32>
    %c1_121 = arith.constant 1 : index
    %204 = arith.index_cast %c0_i32 : i32 to index
    %c0_122 = arith.constant 0 : index
    %205 = vector.load %arg27[%c1_121, %204, %c0_122] : memref<4x8x32xf32, #tpu.memory_space<vmem>>, vector<1x1x32xf32>
    %206 = vector.shape_cast %205 : vector<1x1x32xf32> to vector<1x32xf32>
    %cst_123 = arith.constant dense<0.000000e+00> : vector<1x32xf32>
    %207 = tpu.matmul %191, %185, %cst_123 {dimension_numbers = #tpu.dot_dimension_numbers<[1], [0], [0], [1], [0, 0, 1, 1], [], []>} : vector<1x32xf32>, vector<32x32xf32>, vector<1x32xf32> -> vector<1x32xf32>
    %208 = arith.addf %206, %207 : vector<1x32xf32>
    %209 = arith.negf %208 : vector<1x32xf32>
    %210 = math.exp %209 : vector<1x32xf32>
    %cst_124 = arith.constant 1.000000e+00 : f32
    %211 = vector.broadcast %cst_124 : f32 to vector<1x32xf32>
    %212 = arith.addf %211, %210 : vector<1x32xf32>
    %213 = arith.divf %211, %212 : vector<1x32xf32>
    %c2_125 = arith.constant 2 : index
    %214 = arith.index_cast %c0_i32 : i32 to index
    %c0_126 = arith.constant 0 : index
    %215 = vector.load %arg27[%c2_125, %214, %c0_126] : memref<4x8x32xf32, #tpu.memory_space<vmem>>, vector<1x1x32xf32>
    %216 = vector.shape_cast %215 : vector<1x1x32xf32> to vector<1x32xf32>
    %cst_127 = arith.constant dense<0.000000e+00> : vector<1x32xf32>
    %217 = tpu.matmul %191, %187, %cst_127 {dimension_numbers = #tpu.dot_dimension_numbers<[1], [0], [0], [1], [0, 0, 1, 1], [], []>} : vector<1x32xf32>, vector<32x32xf32>, vector<1x32xf32> -> vector<1x32xf32>
    %218 = arith.addf %216, %217 : vector<1x32xf32>
    %219 = math.tanh %218 : vector<1x32xf32>
    %c3_128 = arith.constant 3 : index
    %220 = arith.index_cast %c0_i32 : i32 to index
    %c0_129 = arith.constant 0 : index
    %221 = vector.load %arg27[%c3_128, %220, %c0_129] : memref<4x8x32xf32, #tpu.memory_space<vmem>>, vector<1x1x32xf32>
    %222 = vector.shape_cast %221 : vector<1x1x32xf32> to vector<1x32xf32>
    %cst_130 = arith.constant dense<0.000000e+00> : vector<1x32xf32>
    %223 = tpu.matmul %191, %189, %cst_130 {dimension_numbers = #tpu.dot_dimension_numbers<[1], [0], [0], [1], [0, 0, 1, 1], [], []>} : vector<1x32xf32>, vector<32x32xf32>, vector<1x32xf32> -> vector<1x32xf32>
    %224 = arith.addf %222, %223 : vector<1x32xf32>
    %225 = arith.negf %224 : vector<1x32xf32>
    %226 = math.exp %225 : vector<1x32xf32>
    %cst_131 = arith.constant 1.000000e+00 : f32
    %227 = vector.broadcast %cst_131 : f32 to vector<1x32xf32>
    %228 = arith.addf %227, %226 : vector<1x32xf32>
    %229 = arith.divf %227, %228 : vector<1x32xf32>
    %230 = arith.mulf %213, %193 : vector<1x32xf32>
    %231 = arith.mulf %203, %219 : vector<1x32xf32>
    %232 = arith.addf %230, %231 : vector<1x32xf32>
    %233 = math.tanh %232 : vector<1x32xf32>
    %234 = arith.mulf %229, %233 : vector<1x32xf32>
    %235 = arith.index_cast %c0_i32 : i32 to index
    %c0_132 = arith.constant 0 : index
    %236 = vector.load %arg28[%235, %c0_132] : memref<8x32xf32, #tpu.memory_space<vmem>>, vector<1x32xf32>
    tpu.vector_store %arg28[%235, %c0_132], %234 {strides = array<i32>} : memref<8x32xf32, #tpu.memory_space<vmem>>, vector<1x32xf32>,
    %c1_i32 = arith.constant 1 : i32
    %c0_133 = arith.constant 0 : index
    %237 = arith.index_cast %c1_i32 : i32 to index
    %c0_134 = arith.constant 0 : index
    %238 = vector.load %arg27[%c0_133, %237, %c0_134] : memref<4x8x32xf32, #tpu.memory_space<vmem>>, vector<1x1x32xf32>
    %239 = vector.shape_cast %238 : vector<1x1x32xf32> to vector<1x32xf32>
    %cst_135 = arith.constant dense<0.000000e+00> : vector<1x32xf32>
    %240 = tpu.matmul %234, %183, %cst_135 {dimension_numbers = #tpu.dot_dimension_numbers<[1], [0], [0], [1], [0, 0, 1, 1], [], []>} : vector<1x32xf32>, vector<32x32xf32>, vector<1x32xf32> -> vector<1x32xf32>
    %241 = arith.addf %239, %240 : vector<1x32xf32>
    %242 = arith.negf %241 : vector<1x32xf32>
    %243 = math.exp %242 : vector<1x32xf32>
    %cst_136 = arith.constant 1.000000e+00 : f32
    %244 = vector.broadcast %cst_136 : f32 to vector<1x32xf32>
    %245 = arith.addf %244, %243 : vector<1x32xf32>
    %246 = arith.divf %244, %245 : vector<1x32xf32>
    %c1_137 = arith.constant 1 : index
    %247 = arith.index_cast %c1_i32 : i32 to index
    %c0_138 = arith.constant 0 : index
    %248 = vector.load %arg27[%c1_137, %247, %c0_138] : memref<4x8x32xf32, #tpu.memory_space<vmem>>, vector<1x1x32xf32>
    %249 = vector.shape_cast %248 : vector<1x1x32xf32> to vector<1x32xf32>
    %cst_139 = arith.constant dense<0.000000e+00> : vector<1x32xf32>
    %250 = tpu.matmul %234, %185, %cst_139 {dimension_numbers = #tpu.dot_dimension_numbers<[1], [0], [0], [1], [0, 0, 1, 1], [], []>} : vector<1x32xf32>, vector<32x32xf32>, vector<1x32xf32> -> vector<1x32xf32>
    %251 = arith.addf %249, %250 : vector<1x32xf32>
    %252 = arith.negf %251 : vector<1x32xf32>
    %253 = math.exp %252 : vector<1x32xf32>
    %cst_140 = arith.constant 1.000000e+00 : f32
    %254 = vector.broadcast %cst_140 : f32 to vector<1x32xf32>
    %255 = arith.addf %254, %253 : vector<1x32xf32>
    %256 = arith.divf %254, %255 : vector<1x32xf32>
    %c2_141 = arith.constant 2 : index
    %257 = arith.index_cast %c1_i32 : i32 to index
    %c0_142 = arith.constant 0 : index
    %258 = vector.load %arg27[%c2_141, %257, %c0_142] : memref<4x8x32xf32, #tpu.memory_space<vmem>>, vector<1x1x32xf32>
    %259 = vector.shape_cast %258 : vector<1x1x32xf32> to vector<1x32xf32>
    %cst_143 = arith.constant dense<0.000000e+00> : vector<1x32xf32>
    %260 = tpu.matmul %234, %187, %cst_143 {dimension_numbers = #tpu.dot_dimension_numbers<[1], [0], [0], [1], [0, 0, 1, 1], [], []>} : vector<1x32xf32>, vector<32x32xf32>, vector<1x32xf32> -> vector<1x32xf32>
    %261 = arith.addf %259, %260 : vector<1x32xf32>
    %262 = math.tanh %261 : vector<1x32xf32>
    %c3_144 = arith.constant 3 : index
    %263 = arith.index_cast %c1_i32 : i32 to index
    %c0_145 = arith.constant 0 : index
    %264 = vector.load %arg27[%c3_144, %263, %c0_145] : memref<4x8x32xf32, #tpu.memory_space<vmem>>, vector<1x1x32xf32>
    %265 = vector.shape_cast %264 : vector<1x1x32xf32> to vector<1x32xf32>
    %cst_146 = arith.constant dense<0.000000e+00> : vector<1x32xf32>
    %266 = tpu.matmul %234, %189, %cst_146 {dimension_numbers = #tpu.dot_dimension_numbers<[1], [0], [0], [1], [0, 0, 1, 1], [], []>} : vector<1x32xf32>, vector<32x32xf32>, vector<1x32xf32> -> vector<1x32xf32>
    %267 = arith.addf %265, %266 : vector<1x32xf32>
    %268 = arith.negf %267 : vector<1x32xf32>
    %269 = math.exp %268 : vector<1x32xf32>
    %cst_147 = arith.constant 1.000000e+00 : f32
    %270 = vector.broadcast %cst_147 : f32 to vector<1x32xf32>
    %271 = arith.addf %270, %269 : vector<1x32xf32>
    %272 = arith.divf %270, %271 : vector<1x32xf32>
    %273 = arith.mulf %256, %232 : vector<1x32xf32>
    %274 = arith.mulf %246, %262 : vector<1x32xf32>
    %275 = arith.addf %273, %274 : vector<1x32xf32>
    %276 = math.tanh %275 : vector<1x32xf32>
    %277 = arith.mulf %272, %276 : vector<1x32xf32>
    %278 = arith.index_cast %c1_i32 : i32 to index
    %c0_148 = arith.constant 0 : index
    %279 = vector.load %arg28[%278, %c0_148] : memref<8x32xf32, #tpu.memory_space<vmem>>, vector<1x32xf32>
    tpu.vector_store %arg28[%278, %c0_148], %277 {strides = array<i32>} : memref<8x32xf32, #tpu.memory_space<vmem>>, vector<1x32xf32>,
    %c2_i32 = arith.constant 2 : i32
    %c0_149 = arith.constant 0 : index
    %280 = arith.index_cast %c2_i32 : i32 to index
    %c0_150 = arith.constant 0 : index
    %281 = vector.load %arg27[%c0_149, %280, %c0_150] : memref<4x8x32xf32, #tpu.memory_space<vmem>>, vector<1x1x32xf32>
    %282 = vector.shape_cast %281 : vector<1x1x32xf32> to vector<1x32xf32>
    %cst_151 = arith.constant dense<0.000000e+00> : vector<1x32xf32>
    %283 = tpu.matmul %277, %183, %cst_151 {dimension_numbers = #tpu.dot_dimension_numbers<[1], [0], [0], [1], [0, 0, 1, 1], [], []>} : vector<1x32xf32>, vector<32x32xf32>, vector<1x32xf32> -> vector<1x32xf32>
    %284 = arith.addf %282, %283 : vector<1x32xf32>
    %285 = arith.negf %284 : vector<1x32xf32>
    %286 = math.exp %285 : vector<1x32xf32>
    %cst_152 = arith.constant 1.000000e+00 : f32
    %287 = vector.broadcast %cst_152 : f32 to vector<1x32xf32>
    %288 = arith.addf %287, %286 : vector<1x32xf32>
    %289 = arith.divf %287, %288 : vector<1x32xf32>
    %c1_153 = arith.constant 1 : index
    %290 = arith.index_cast %c2_i32 : i32 to index
    %c0_154 = arith.constant 0 : index
    %291 = vector.load %arg27[%c1_153, %290, %c0_154] : memref<4x8x32xf32, #tpu.memory_space<vmem>>, vector<1x1x32xf32>
    %292 = vector.shape_cast %291 : vector<1x1x32xf32> to vector<1x32xf32>
    %cst_155 = arith.constant dense<0.000000e+00> : vector<1x32xf32>
    %293 = tpu.matmul %277, %185, %cst_155 {dimension_numbers = #tpu.dot_dimension_numbers<[1], [0], [0], [1], [0, 0, 1, 1], [], []>} : vector<1x32xf32>, vector<32x32xf32>, vector<1x32xf32> -> vector<1x32xf32>
    %294 = arith.addf %292, %293 : vector<1x32xf32>
    %295 = arith.negf %294 : vector<1x32xf32>
    %296 = math.exp %295 : vector<1x32xf32>
    %cst_156 = arith.constant 1.000000e+00 : f32
    %297 = vector.broadcast %cst_156 : f32 to vector<1x32xf32>
    %298 = arith.addf %297, %296 : vector<1x32xf32>
    %299 = arith.divf %297, %298 : vector<1x32xf32>
    %c2_157 = arith.constant 2 : index
    %300 = arith.index_cast %c2_i32 : i32 to index
    %c0_158 = arith.constant 0 : index
    %301 = vector.load %arg27[%c2_157, %300, %c0_158] : memref<4x8x32xf32, #tpu.memory_space<vmem>>, vector<1x1x32xf32>
    %302 = vector.shape_cast %301 : vector<1x1x32xf32> to vector<1x32xf32>
    %cst_159 = arith.constant dense<0.000000e+00> : vector<1x32xf32>
    %303 = tpu.matmul %277, %187, %cst_159 {dimension_numbers = #tpu.dot_dimension_numbers<[1], [0], [0], [1], [0, 0, 1, 1], [], []>} : vector<1x32xf32>, vector<32x32xf32>, vector<1x32xf32> -> vector<1x32xf32>
    %304 = arith.addf %302, %303 : vector<1x32xf32>
    %305 = math.tanh %304 : vector<1x32xf32>
    %c3_160 = arith.constant 3 : index
    %306 = arith.index_cast %c2_i32 : i32 to index
    %c0_161 = arith.constant 0 : index
    %307 = vector.load %arg27[%c3_160, %306, %c0_161] : memref<4x8x32xf32, #tpu.memory_space<vmem>>, vector<1x1x32xf32>
    %308 = vector.shape_cast %307 : vector<1x1x32xf32> to vector<1x32xf32>
    %cst_162 = arith.constant dense<0.000000e+00> : vector<1x32xf32>
    %309 = tpu.matmul %277, %189, %cst_162 {dimension_numbers = #tpu.dot_dimension_numbers<[1], [0], [0], [1], [0, 0, 1, 1], [], []>} : vector<1x32xf32>, vector<32x32xf32>, vector<1x32xf32> -> vector<1x32xf32>
    %310 = arith.addf %308, %309 : vector<1x32xf32>
    %311 = arith.negf %310 : vector<1x32xf32>
    %312 = math.exp %311 : vector<1x32xf32>
    %cst_163 = arith.constant 1.000000e+00 : f32
    %313 = vector.broadcast %cst_163 : f32 to vector<1x32xf32>
    %314 = arith.addf %313, %312 : vector<1x32xf32>
    %315 = arith.divf %313, %314 : vector<1x32xf32>
    %316 = arith.mulf %299, %275 : vector<1x32xf32>
    %317 = arith.mulf %289, %305 : vector<1x32xf32>
    %318 = arith.addf %316, %317 : vector<1x32xf32>
    %319 = math.tanh %318 : vector<1x32xf32>
    %320 = arith.mulf %315, %319 : vector<1x32xf32>
    %321 = arith.index_cast %c2_i32 : i32 to index
    %c0_164 = arith.constant 0 : index
    %322 = vector.load %arg28[%321, %c0_164] : memref<8x32xf32, #tpu.memory_space<vmem>>, vector<1x32xf32>
    tpu.vector_store %arg28[%321, %c0_164], %320 {strides = array<i32>} : memref<8x32xf32, #tpu.memory_space<vmem>>, vector<1x32xf32>,
    %c3_i32 = arith.constant 3 : i32
    %c0_165 = arith.constant 0 : index
    %323 = arith.index_cast %c3_i32 : i32 to index
    %c0_166 = arith.constant 0 : index
    %324 = vector.load %arg27[%c0_165, %323, %c0_166] : memref<4x8x32xf32, #tpu.memory_space<vmem>>, vector<1x1x32xf32>
    %325 = vector.shape_cast %324 : vector<1x1x32xf32> to vector<1x32xf32>
    %cst_167 = arith.constant dense<0.000000e+00> : vector<1x32xf32>
    %326 = tpu.matmul %320, %183, %cst_167 {dimension_numbers = #tpu.dot_dimension_numbers<[1], [0], [0], [1], [0, 0, 1, 1], [], []>} : vector<1x32xf32>, vector<32x32xf32>, vector<1x32xf32> -> vector<1x32xf32>
    %327 = arith.addf %325, %326 : vector<1x32xf32>
    %328 = arith.negf %327 : vector<1x32xf32>
    %329 = math.exp %328 : vector<1x32xf32>
    %cst_168 = arith.constant 1.000000e+00 : f32
    %330 = vector.broadcast %cst_168 : f32 to vector<1x32xf32>
    %331 = arith.addf %330, %329 : vector<1x32xf32>
    %332 = arith.divf %330, %331 : vector<1x32xf32>
    %c1_169 = arith.constant 1 : index
    %333 = arith.index_cast %c3_i32 : i32 to index
    %c0_170 = arith.constant 0 : index
    %334 = vector.load %arg27[%c1_169, %333, %c0_170] : memref<4x8x32xf32, #tpu.memory_space<vmem>>, vector<1x1x32xf32>
    %335 = vector.shape_cast %334 : vector<1x1x32xf32> to vector<1x32xf32>
    %cst_171 = arith.constant dense<0.000000e+00> : vector<1x32xf32>
    %336 = tpu.matmul %320, %185, %cst_171 {dimension_numbers = #tpu.dot_dimension_numbers<[1], [0], [0], [1], [0, 0, 1, 1], [], []>} : vector<1x32xf32>, vector<32x32xf32>, vector<1x32xf32> -> vector<1x32xf32>
    %337 = arith.addf %335, %336 : vector<1x32xf32>
    %338 = arith.negf %337 : vector<1x32xf32>
    %339 = math.exp %338 : vector<1x32xf32>
    %cst_172 = arith.constant 1.000000e+00 : f32
    %340 = vector.broadcast %cst_172 : f32 to vector<1x32xf32>
    %341 = arith.addf %340, %339 : vector<1x32xf32>
    %342 = arith.divf %340, %341 : vector<1x32xf32>
    %c2_173 = arith.constant 2 : index
    %343 = arith.index_cast %c3_i32 : i32 to index
    %c0_174 = arith.constant 0 : index
    %344 = vector.load %arg27[%c2_173, %343, %c0_174] : memref<4x8x32xf32, #tpu.memory_space<vmem>>, vector<1x1x32xf32>
    %345 = vector.shape_cast %344 : vector<1x1x32xf32> to vector<1x32xf32>
    %cst_175 = arith.constant dense<0.000000e+00> : vector<1x32xf32>
    %346 = tpu.matmul %320, %187, %cst_175 {dimension_numbers = #tpu.dot_dimension_numbers<[1], [0], [0], [1], [0, 0, 1, 1], [], []>} : vector<1x32xf32>, vector<32x32xf32>, vector<1x32xf32> -> vector<1x32xf32>
    %347 = arith.addf %345, %346 : vector<1x32xf32>
    %348 = math.tanh %347 : vector<1x32xf32>
    %c3_176 = arith.constant 3 : index
    %349 = arith.index_cast %c3_i32 : i32 to index
    %c0_177 = arith.constant 0 : index
    %350 = vector.load %arg27[%c3_176, %349, %c0_177] : memref<4x8x32xf32, #tpu.memory_space<vmem>>, vector<1x1x32xf32>
    %351 = vector.shape_cast %350 : vector<1x1x32xf32> to vector<1x32xf32>
    %cst_178 = arith.constant dense<0.000000e+00> : vector<1x32xf32>
    %352 = tpu.matmul %320, %189, %cst_178 {dimension_numbers = #tpu.dot_dimension_numbers<[1], [0], [0], [1], [0, 0, 1, 1], [], []>} : vector<1x32xf32>, vector<32x32xf32>, vector<1x32xf32> -> vector<1x32xf32>
    %353 = arith.addf %351, %352 : vector<1x32xf32>
    %354 = arith.negf %353 : vector<1x32xf32>
    %355 = math.exp %354 : vector<1x32xf32>
    %cst_179 = arith.constant 1.000000e+00 : f32
    %356 = vector.broadcast %cst_179 : f32 to vector<1x32xf32>
    %357 = arith.addf %356, %355 : vector<1x32xf32>
    %358 = arith.divf %356, %357 : vector<1x32xf32>
    %359 = arith.mulf %342, %318 : vector<1x32xf32>
    %360 = arith.mulf %332, %348 : vector<1x32xf32>
    %361 = arith.addf %359, %360 : vector<1x32xf32>
    %362 = math.tanh %361 : vector<1x32xf32>
    %363 = arith.mulf %358, %362 : vector<1x32xf32>
    %364 = arith.index_cast %c3_i32 : i32 to index
    %c0_180 = arith.constant 0 : index
    %365 = vector.load %arg28[%364, %c0_180] : memref<8x32xf32, #tpu.memory_space<vmem>>, vector<1x32xf32>
    tpu.vector_store %arg28[%364, %c0_180], %363 {strides = array<i32>} : memref<8x32xf32, #tpu.memory_space<vmem>>, vector<1x32xf32>,
    %c4_i32 = arith.constant 4 : i32
    %c0_181 = arith.constant 0 : index
    %366 = arith.index_cast %c4_i32 : i32 to index
    %c0_182 = arith.constant 0 : index
    %367 = vector.load %arg27[%c0_181, %366, %c0_182] : memref<4x8x32xf32, #tpu.memory_space<vmem>>, vector<1x1x32xf32>
    %368 = vector.shape_cast %367 : vector<1x1x32xf32> to vector<1x32xf32>
    %cst_183 = arith.constant dense<0.000000e+00> : vector<1x32xf32>
    %369 = tpu.matmul %363, %183, %cst_183 {dimension_numbers = #tpu.dot_dimension_numbers<[1], [0], [0], [1], [0, 0, 1, 1], [], []>} : vector<1x32xf32>, vector<32x32xf32>, vector<1x32xf32> -> vector<1x32xf32>
    %370 = arith.addf %368, %369 : vector<1x32xf32>
    %371 = arith.negf %370 : vector<1x32xf32>
    %372 = math.exp %371 : vector<1x32xf32>
    %cst_184 = arith.constant 1.000000e+00 : f32
    %373 = vector.broadcast %cst_184 : f32 to vector<1x32xf32>
    %374 = arith.addf %373, %372 : vector<1x32xf32>
    %375 = arith.divf %373, %374 : vector<1x32xf32>
    %c1_185 = arith.constant 1 : index
    %376 = arith.index_cast %c4_i32 : i32 to index
    %c0_186 = arith.constant 0 : index
    %377 = vector.load %arg27[%c1_185, %376, %c0_186] : memref<4x8x32xf32, #tpu.memory_space<vmem>>, vector<1x1x32xf32>
    %378 = vector.shape_cast %377 : vector<1x1x32xf32> to vector<1x32xf32>
    %cst_187 = arith.constant dense<0.000000e+00> : vector<1x32xf32>
    %379 = tpu.matmul %363, %185, %cst_187 {dimension_numbers = #tpu.dot_dimension_numbers<[1], [0], [0], [1], [0, 0, 1, 1], [], []>} : vector<1x32xf32>, vector<32x32xf32>, vector<1x32xf32> -> vector<1x32xf32>
    %380 = arith.addf %378, %379 : vector<1x32xf32>
    %381 = arith.negf %380 : vector<1x32xf32>
    %382 = math.exp %381 : vector<1x32xf32>
    %cst_188 = arith.constant 1.000000e+00 : f32
    %383 = vector.broadcast %cst_188 : f32 to vector<1x32xf32>
    %384 = arith.addf %383, %382 : vector<1x32xf32>
    %385 = arith.divf %383, %384 : vector<1x32xf32>
    %c2_189 = arith.constant 2 : index
    %386 = arith.index_cast %c4_i32 : i32 to index
    %c0_190 = arith.constant 0 : index
    %387 = vector.load %arg27[%c2_189, %386, %c0_190] : memref<4x8x32xf32, #tpu.memory_space<vmem>>, vector<1x1x32xf32>
    %388 = vector.shape_cast %387 : vector<1x1x32xf32> to vector<1x32xf32>
    %cst_191 = arith.constant dense<0.000000e+00> : vector<1x32xf32>
    %389 = tpu.matmul %363, %187, %cst_191 {dimension_numbers = #tpu.dot_dimension_numbers<[1], [0], [0], [1], [0, 0, 1, 1], [], []>} : vector<1x32xf32>, vector<32x32xf32>, vector<1x32xf32> -> vector<1x32xf32>
    %390 = arith.addf %388, %389 : vector<1x32xf32>
    %391 = math.tanh %390 : vector<1x32xf32>
    %c3_192 = arith.constant 3 : index
    %392 = arith.index_cast %c4_i32 : i32 to index
    %c0_193 = arith.constant 0 : index
    %393 = vector.load %arg27[%c3_192, %392, %c0_193] : memref<4x8x32xf32, #tpu.memory_space<vmem>>, vector<1x1x32xf32>
    %394 = vector.shape_cast %393 : vector<1x1x32xf32> to vector<1x32xf32>
    %cst_194 = arith.constant dense<0.000000e+00> : vector<1x32xf32>
    %395 = tpu.matmul %363, %189, %cst_194 {dimension_numbers = #tpu.dot_dimension_numbers<[1], [0], [0], [1], [0, 0, 1, 1], [], []>} : vector<1x32xf32>, vector<32x32xf32>, vector<1x32xf32> -> vector<1x32xf32>
    %396 = arith.addf %394, %395 : vector<1x32xf32>
    %397 = arith.negf %396 : vector<1x32xf32>
    %398 = math.exp %397 : vector<1x32xf32>
    %cst_195 = arith.constant 1.000000e+00 : f32
    %399 = vector.broadcast %cst_195 : f32 to vector<1x32xf32>
    %400 = arith.addf %399, %398 : vector<1x32xf32>
    %401 = arith.divf %399, %400 : vector<1x32xf32>
    %402 = arith.mulf %385, %361 : vector<1x32xf32>
    %403 = arith.mulf %375, %391 : vector<1x32xf32>
    %404 = arith.addf %402, %403 : vector<1x32xf32>
    %405 = math.tanh %404 : vector<1x32xf32>
    %406 = arith.mulf %401, %405 : vector<1x32xf32>
    %407 = arith.index_cast %c4_i32 : i32 to index
    %c0_196 = arith.constant 0 : index
    %408 = vector.load %arg28[%407, %c0_196] : memref<8x32xf32, #tpu.memory_space<vmem>>, vector<1x32xf32>
    tpu.vector_store %arg28[%407, %c0_196], %406 {strides = array<i32>} : memref<8x32xf32, #tpu.memory_space<vmem>>, vector<1x32xf32>,
    %c5_i32 = arith.constant 5 : i32
    %c0_197 = arith.constant 0 : index
    %409 = arith.index_cast %c5_i32 : i32 to index
    %c0_198 = arith.constant 0 : index
    %410 = vector.load %arg27[%c0_197, %409, %c0_198] : memref<4x8x32xf32, #tpu.memory_space<vmem>>, vector<1x1x32xf32>
    %411 = vector.shape_cast %410 : vector<1x1x32xf32> to vector<1x32xf32>
    %cst_199 = arith.constant dense<0.000000e+00> : vector<1x32xf32>
    %412 = tpu.matmul %406, %183, %cst_199 {dimension_numbers = #tpu.dot_dimension_numbers<[1], [0], [0], [1], [0, 0, 1, 1], [], []>} : vector<1x32xf32>, vector<32x32xf32>, vector<1x32xf32> -> vector<1x32xf32>
    %413 = arith.addf %411, %412 : vector<1x32xf32>
    %414 = arith.negf %413 : vector<1x32xf32>
    %415 = math.exp %414 : vector<1x32xf32>
    %cst_200 = arith.constant 1.000000e+00 : f32
    %416 = vector.broadcast %cst_200 : f32 to vector<1x32xf32>
    %417 = arith.addf %416, %415 : vector<1x32xf32>
    %418 = arith.divf %416, %417 : vector<1x32xf32>
    %c1_201 = arith.constant 1 : index
    %419 = arith.index_cast %c5_i32 : i32 to index
    %c0_202 = arith.constant 0 : index
    %420 = vector.load %arg27[%c1_201, %419, %c0_202] : memref<4x8x32xf32, #tpu.memory_space<vmem>>, vector<1x1x32xf32>
    %421 = vector.shape_cast %420 : vector<1x1x32xf32> to vector<1x32xf32>
    %cst_203 = arith.constant dense<0.000000e+00> : vector<1x32xf32>
    %422 = tpu.matmul %406, %185, %cst_203 {dimension_numbers = #tpu.dot_dimension_numbers<[1], [0], [0], [1], [0, 0, 1, 1], [], []>} : vector<1x32xf32>, vector<32x32xf32>, vector<1x32xf32> -> vector<1x32xf32>
    %423 = arith.addf %421, %422 : vector<1x32xf32>
    %424 = arith.negf %423 : vector<1x32xf32>
    %425 = math.exp %424 : vector<1x32xf32>
    %cst_204 = arith.constant 1.000000e+00 : f32
    %426 = vector.broadcast %cst_204 : f32 to vector<1x32xf32>
    %427 = arith.addf %426, %425 : vector<1x32xf32>
    %428 = arith.divf %426, %427 : vector<1x32xf32>
    %c2_205 = arith.constant 2 : index
    %429 = arith.index_cast %c5_i32 : i32 to index
    %c0_206 = arith.constant 0 : index
    %430 = vector.load %arg27[%c2_205, %429, %c0_206] : memref<4x8x32xf32, #tpu.memory_space<vmem>>, vector<1x1x32xf32>
    %431 = vector.shape_cast %430 : vector<1x1x32xf32> to vector<1x32xf32>
    %cst_207 = arith.constant dense<0.000000e+00> : vector<1x32xf32>
    %432 = tpu.matmul %406, %187, %cst_207 {dimension_numbers = #tpu.dot_dimension_numbers<[1], [0], [0], [1], [0, 0, 1, 1], [], []>} : vector<1x32xf32>, vector<32x32xf32>, vector<1x32xf32> -> vector<1x32xf32>
    %433 = arith.addf %431, %432 : vector<1x32xf32>
    %434 = math.tanh %433 : vector<1x32xf32>
    %c3_208 = arith.constant 3 : index
    %435 = arith.index_cast %c5_i32 : i32 to index
    %c0_209 = arith.constant 0 : index
    %436 = vector.load %arg27[%c3_208, %435, %c0_209] : memref<4x8x32xf32, #tpu.memory_space<vmem>>, vector<1x1x32xf32>
    %437 = vector.shape_cast %436 : vector<1x1x32xf32> to vector<1x32xf32>
    %cst_210 = arith.constant dense<0.000000e+00> : vector<1x32xf32>
    %438 = tpu.matmul %406, %189, %cst_210 {dimension_numbers = #tpu.dot_dimension_numbers<[1], [0], [0], [1], [0, 0, 1, 1], [], []>} : vector<1x32xf32>, vector<32x32xf32>, vector<1x32xf32> -> vector<1x32xf32>
    %439 = arith.addf %437, %438 : vector<1x32xf32>
    %440 = arith.negf %439 : vector<1x32xf32>
    %441 = math.exp %440 : vector<1x32xf32>
    %cst_211 = arith.constant 1.000000e+00 : f32
    %442 = vector.broadcast %cst_211 : f32 to vector<1x32xf32>
    %443 = arith.addf %442, %441 : vector<1x32xf32>
    %444 = arith.divf %442, %443 : vector<1x32xf32>
    %445 = arith.mulf %428, %404 : vector<1x32xf32>
    %446 = arith.mulf %418, %434 : vector<1x32xf32>
    %447 = arith.addf %445, %446 : vector<1x32xf32>
    %448 = math.tanh %447 : vector<1x32xf32>
    %449 = arith.mulf %444, %448 : vector<1x32xf32>
    %450 = arith.index_cast %c5_i32 : i32 to index
    %c0_212 = arith.constant 0 : index
    %451 = vector.load %arg28[%450, %c0_212] : memref<8x32xf32, #tpu.memory_space<vmem>>, vector<1x32xf32>
    tpu.vector_store %arg28[%450, %c0_212], %449 {strides = array<i32>} : memref<8x32xf32, #tpu.memory_space<vmem>>, vector<1x32xf32>,
    %c6_i32 = arith.constant 6 : i32
    %c0_213 = arith.constant 0 : index
    %452 = arith.index_cast %c6_i32 : i32 to index
    %c0_214 = arith.constant 0 : index
    %453 = vector.load %arg27[%c0_213, %452, %c0_214] : memref<4x8x32xf32, #tpu.memory_space<vmem>>, vector<1x1x32xf32>
    %454 = vector.shape_cast %453 : vector<1x1x32xf32> to vector<1x32xf32>
    %cst_215 = arith.constant dense<0.000000e+00> : vector<1x32xf32>
    %455 = tpu.matmul %449, %183, %cst_215 {dimension_numbers = #tpu.dot_dimension_numbers<[1], [0], [0], [1], [0, 0, 1, 1], [], []>} : vector<1x32xf32>, vector<32x32xf32>, vector<1x32xf32> -> vector<1x32xf32>
    %456 = arith.addf %454, %455 : vector<1x32xf32>
    %457 = arith.negf %456 : vector<1x32xf32>
    %458 = math.exp %457 : vector<1x32xf32>
    %cst_216 = arith.constant 1.000000e+00 : f32
    %459 = vector.broadcast %cst_216 : f32 to vector<1x32xf32>
    %460 = arith.addf %459, %458 : vector<1x32xf32>
    %461 = arith.divf %459, %460 : vector<1x32xf32>
    %c1_217 = arith.constant 1 : index
    %462 = arith.index_cast %c6_i32 : i32 to index
    %c0_218 = arith.constant 0 : index
    %463 = vector.load %arg27[%c1_217, %462, %c0_218] : memref<4x8x32xf32, #tpu.memory_space<vmem>>, vector<1x1x32xf32>
    %464 = vector.shape_cast %463 : vector<1x1x32xf32> to vector<1x32xf32>
    %cst_219 = arith.constant dense<0.000000e+00> : vector<1x32xf32>
    %465 = tpu.matmul %449, %185, %cst_219 {dimension_numbers = #tpu.dot_dimension_numbers<[1], [0], [0], [1], [0, 0, 1, 1], [], []>} : vector<1x32xf32>, vector<32x32xf32>, vector<1x32xf32> -> vector<1x32xf32>
    %466 = arith.addf %464, %465 : vector<1x32xf32>
    %467 = arith.negf %466 : vector<1x32xf32>
    %468 = math.exp %467 : vector<1x32xf32>
    %cst_220 = arith.constant 1.000000e+00 : f32
    %469 = vector.broadcast %cst_220 : f32 to vector<1x32xf32>
    %470 = arith.addf %469, %468 : vector<1x32xf32>
    %471 = arith.divf %469, %470 : vector<1x32xf32>
    %c2_221 = arith.constant 2 : index
    %472 = arith.index_cast %c6_i32 : i32 to index
    %c0_222 = arith.constant 0 : index
    %473 = vector.load %arg27[%c2_221, %472, %c0_222] : memref<4x8x32xf32, #tpu.memory_space<vmem>>, vector<1x1x32xf32>
    %474 = vector.shape_cast %473 : vector<1x1x32xf32> to vector<1x32xf32>
    %cst_223 = arith.constant dense<0.000000e+00> : vector<1x32xf32>
    %475 = tpu.matmul %449, %187, %cst_223 {dimension_numbers = #tpu.dot_dimension_numbers<[1], [0], [0], [1], [0, 0, 1, 1], [], []>} : vector<1x32xf32>, vector<32x32xf32>, vector<1x32xf32> -> vector<1x32xf32>
    %476 = arith.addf %474, %475 : vector<1x32xf32>
    %477 = math.tanh %476 : vector<1x32xf32>
    %c3_224 = arith.constant 3 : index
    %478 = arith.index_cast %c6_i32 : i32 to index
    %c0_225 = arith.constant 0 : index
    %479 = vector.load %arg27[%c3_224, %478, %c0_225] : memref<4x8x32xf32, #tpu.memory_space<vmem>>, vector<1x1x32xf32>
    %480 = vector.shape_cast %479 : vector<1x1x32xf32> to vector<1x32xf32>
    %cst_226 = arith.constant dense<0.000000e+00> : vector<1x32xf32>
    %481 = tpu.matmul %449, %189, %cst_226 {dimension_numbers = #tpu.dot_dimension_numbers<[1], [0], [0], [1], [0, 0, 1, 1], [], []>} : vector<1x32xf32>, vector<32x32xf32>, vector<1x32xf32> -> vector<1x32xf32>
    %482 = arith.addf %480, %481 : vector<1x32xf32>
    %483 = arith.negf %482 : vector<1x32xf32>
    %484 = math.exp %483 : vector<1x32xf32>
    %cst_227 = arith.constant 1.000000e+00 : f32
    %485 = vector.broadcast %cst_227 : f32 to vector<1x32xf32>
    %486 = arith.addf %485, %484 : vector<1x32xf32>
    %487 = arith.divf %485, %486 : vector<1x32xf32>
    %488 = arith.mulf %471, %447 : vector<1x32xf32>
    %489 = arith.mulf %461, %477 : vector<1x32xf32>
    %490 = arith.addf %488, %489 : vector<1x32xf32>
    %491 = math.tanh %490 : vector<1x32xf32>
    %492 = arith.mulf %487, %491 : vector<1x32xf32>
    %493 = arith.index_cast %c6_i32 : i32 to index
    %c0_228 = arith.constant 0 : index
    %494 = vector.load %arg28[%493, %c0_228] : memref<8x32xf32, #tpu.memory_space<vmem>>, vector<1x32xf32>
    tpu.vector_store %arg28[%493, %c0_228], %492 {strides = array<i32>} : memref<8x32xf32, #tpu.memory_space<vmem>>, vector<1x32xf32>,
    %c7_i32 = arith.constant 7 : i32
    %c0_229 = arith.constant 0 : index
    %495 = arith.index_cast %c7_i32 : i32 to index
    %c0_230 = arith.constant 0 : index
    %496 = vector.load %arg27[%c0_229, %495, %c0_230] : memref<4x8x32xf32, #tpu.memory_space<vmem>>, vector<1x1x32xf32>
    %497 = vector.shape_cast %496 : vector<1x1x32xf32> to vector<1x32xf32>
    %cst_231 = arith.constant dense<0.000000e+00> : vector<1x32xf32>
    %498 = tpu.matmul %492, %183, %cst_231 {dimension_numbers = #tpu.dot_dimension_numbers<[1], [0], [0], [1], [0, 0, 1, 1], [], []>} : vector<1x32xf32>, vector<32x32xf32>, vector<1x32xf32> -> vector<1x32xf32>
    %499 = arith.addf %497, %498 : vector<1x32xf32>
    %500 = arith.negf %499 : vector<1x32xf32>
    %501 = math.exp %500 : vector<1x32xf32>
    %cst_232 = arith.constant 1.000000e+00 : f32
    %502 = vector.broadcast %cst_232 : f32 to vector<1x32xf32>
    %503 = arith.addf %502, %501 : vector<1x32xf32>
    %504 = arith.divf %502, %503 : vector<1x32xf32>
    %c1_233 = arith.constant 1 : index
    %505 = arith.index_cast %c7_i32 : i32 to index
    %c0_234 = arith.constant 0 : index
    %506 = vector.load %arg27[%c1_233, %505, %c0_234] : memref<4x8x32xf32, #tpu.memory_space<vmem>>, vector<1x1x32xf32>
    %507 = vector.shape_cast %506 : vector<1x1x32xf32> to vector<1x32xf32>
    %cst_235 = arith.constant dense<0.000000e+00> : vector<1x32xf32>
    %508 = tpu.matmul %492, %185, %cst_235 {dimension_numbers = #tpu.dot_dimension_numbers<[1], [0], [0], [1], [0, 0, 1, 1], [], []>} : vector<1x32xf32>, vector<32x32xf32>, vector<1x32xf32> -> vector<1x32xf32>
    %509 = arith.addf %507, %508 : vector<1x32xf32>
    %510 = arith.negf %509 : vector<1x32xf32>
    %511 = math.exp %510 : vector<1x32xf32>
    %cst_236 = arith.constant 1.000000e+00 : f32
    %512 = vector.broadcast %cst_236 : f32 to vector<1x32xf32>
    %513 = arith.addf %512, %511 : vector<1x32xf32>
    %514 = arith.divf %512, %513 : vector<1x32xf32>
    %c2_237 = arith.constant 2 : index
    %515 = arith.index_cast %c7_i32 : i32 to index
    %c0_238 = arith.constant 0 : index
    %516 = vector.load %arg27[%c2_237, %515, %c0_238] : memref<4x8x32xf32, #tpu.memory_space<vmem>>, vector<1x1x32xf32>
    %517 = vector.shape_cast %516 : vector<1x1x32xf32> to vector<1x32xf32>
    %cst_239 = arith.constant dense<0.000000e+00> : vector<1x32xf32>
    %518 = tpu.matmul %492, %187, %cst_239 {dimension_numbers = #tpu.dot_dimension_numbers<[1], [0], [0], [1], [0, 0, 1, 1], [], []>} : vector<1x32xf32>, vector<32x32xf32>, vector<1x32xf32> -> vector<1x32xf32>
    %519 = arith.addf %517, %518 : vector<1x32xf32>
    %520 = math.tanh %519 : vector<1x32xf32>
    %c3_240 = arith.constant 3 : index
    %521 = arith.index_cast %c7_i32 : i32 to index
    %c0_241 = arith.constant 0 : index
    %522 = vector.load %arg27[%c3_240, %521, %c0_241] : memref<4x8x32xf32, #tpu.memory_space<vmem>>, vector<1x1x32xf32>
    %523 = vector.shape_cast %522 : vector<1x1x32xf32> to vector<1x32xf32>
    %cst_242 = arith.constant dense<0.000000e+00> : vector<1x32xf32>
    %524 = tpu.matmul %492, %189, %cst_242 {dimension_numbers = #tpu.dot_dimension_numbers<[1], [0], [0], [1], [0, 0, 1, 1], [], []>} : vector<1x32xf32>, vector<32x32xf32>, vector<1x32xf32> -> vector<1x32xf32>
    %525 = arith.addf %523, %524 : vector<1x32xf32>
    %526 = arith.negf %525 : vector<1x32xf32>
    %527 = math.exp %526 : vector<1x32xf32>
    %cst_243 = arith.constant 1.000000e+00 : f32
    %528 = vector.broadcast %cst_243 : f32 to vector<1x32xf32>
    %529 = arith.addf %528, %527 : vector<1x32xf32>
    %530 = arith.divf %528, %529 : vector<1x32xf32>
    %531 = arith.mulf %514, %490 : vector<1x32xf32>
    %532 = arith.mulf %504, %520 : vector<1x32xf32>
    %533 = arith.addf %531, %532 : vector<1x32xf32>
    %534 = math.tanh %533 : vector<1x32xf32>
    %535 = arith.mulf %530, %534 : vector<1x32xf32>
    %536 = arith.index_cast %c7_i32 : i32 to index
    %c0_244 = arith.constant 0 : index
    %537 = vector.load %arg28[%536, %c0_244] : memref<8x32xf32, #tpu.memory_space<vmem>>, vector<1x32xf32>
    tpu.vector_store %arg28[%536, %c0_244], %535 {strides = array<i32>} : memref<8x32xf32, #tpu.memory_space<vmem>>, vector<1x32xf32>,
    %c8_i32 = arith.constant 8 : i32
    %c0_245 = arith.constant 0 : index
    %c0_246 = arith.constant 0 : index
    %c0_247 = arith.constant 0 : index
    %538 = vector.load %arg25[%c0_245, %c0_246, %c0_247] : memref<1x1x32xf32, #tpu.memory_space<vmem>>, vector<1x1x32xf32>
    %539 = vector.shape_cast %538 : vector<1x1x32xf32> to vector<1x32xf32>
    %540 = vector.shape_cast %535 : vector<1x32xf32> to vector<1x1x32xf32>
    tpu.vector_store %arg25[%c0_245, %c0_246, %c0_247], %540 {strides = array<i32>} : memref<1x1x32xf32, #tpu.memory_space<vmem>>, vector<1x1x32xf32>,
    %c0_248 = arith.constant 0 : index
    %c0_249 = arith.constant 0 : index
    %c0_250 = arith.constant 0 : index
    %541 = vector.load %arg26[%c0_248, %c0_249, %c0_250] : memref<1x1x32xf32, #tpu.memory_space<vmem>>, vector<1x1x32xf32>
    %542 = vector.shape_cast %541 : vector<1x1x32xf32> to vector<1x32xf32>
    %543 = vector.shape_cast %533 : vector<1x32xf32> to vector<1x1x32xf32>
    tpu.vector_store %arg26[%c0_248, %c0_249, %c0_250], %543 {strides = array<i32>} : memref<1x1x32xf32, #tpu.memory_space<vmem>>, vector<1x1x32xf32>,
    %c0_251 = arith.constant 0 : index
    %c0_252 = arith.constant 0 : index
    %544 = vector.load %arg28[%c0_251, %c0_252] : memref<8x32xf32, #tpu.memory_space<vmem>>, vector<8x32xf32>
    %545 = arith.addf %544, %117 : vector<8x32xf32>
    %c0_253 = arith.constant 0 : index
    %c0_254 = arith.constant 0 : index
    %546 = vector.load %arg20[%c0_253, %c0_254] : memref<32x64xf32, #tpu.memory_space<vmem>>, vector<32x64xf32>
    %cst_255 = arith.constant dense<0.000000e+00> : vector<8x64xf32>
    %547 = tpu.matmul %545, %546, %cst_255 {dimension_numbers = #tpu.dot_dimension_numbers<[1], [0], [0], [1], [0, 0, 1, 1], [], []>} : vector<8x32xf32>, vector<32x64xf32>, vector<8x64xf32> -> vector<8x64xf32>
    %c0_256 = arith.constant 0 : index
    %c0_257 = arith.constant 0 : index
    %548 = vector.load %arg21[%c0_256, %c0_257] : memref<1x64xf32, #tpu.memory_space<vmem>>, vector<1x64xf32>
    %549 = vector.broadcast %548 : vector<1x64xf32> to vector<8x64xf32>
    %550 = arith.addf %547, %549 : vector<8x64xf32>
    %cst_258 = arith.constant 5.000000e-01 : f32
    %551 = vector.broadcast %cst_258 : f32 to vector<8x64xf32>
    %552 = arith.mulf %551, %550 : vector<8x64xf32>
    %cst_259 = arith.constant 0.707106769 : f32
    %553 = vector.broadcast %cst_259 : f32 to vector<8x64xf32>
    %554 = arith.mulf %550, %553 : vector<8x64xf32>
    %555 = math.erf %554 : vector<8x64xf32>
    %cst_260 = arith.constant 1.000000e+00 : f32
    %556 = vector.broadcast %cst_260 : f32 to vector<8x64xf32>
    %557 = arith.addf %556, %555 : vector<8x64xf32>
    %558 = arith.mulf %552, %557 : vector<8x64xf32>
    %c0_261 = arith.constant 0 : index
    %c0_262 = arith.constant 0 : index
    %559 = vector.load %arg22[%c0_261, %c0_262] : memref<64x32xf32, #tpu.memory_space<vmem>>, vector<64x32xf32>
    %cst_263 = arith.constant dense<0.000000e+00> : vector<8x32xf32>
    %560 = tpu.matmul %558, %559, %cst_263 {dimension_numbers = #tpu.dot_dimension_numbers<[1], [0], [0], [1], [0, 0, 1, 1], [], []>} : vector<8x64xf32>, vector<64x32xf32>, vector<8x32xf32> -> vector<8x32xf32>
    %c0_264 = arith.constant 0 : index
    %c0_265 = arith.constant 0 : index
    %561 = vector.load %arg23[%c0_264, %c0_265] : memref<1x32xf32, #tpu.memory_space<vmem>>, vector<1x32xf32>
    %562 = vector.broadcast %561 : vector<1x32xf32> to vector<8x32xf32>
    %563 = arith.addf %560, %562 : vector<8x32xf32>
    %564 = arith.addf %563, %545 : vector<8x32xf32>
    %c0_266 = arith.constant 0 : index
    %c0_267 = arith.constant 0 : index
    %c0_268 = arith.constant 0 : index
    %565 = vector.load %arg24[%c0_266, %c0_267, %c0_268] : memref<1x8x32xf32, #tpu.memory_space<vmem>>, vector<1x8x32xf32>
    %566 = vector.shape_cast %565 : vector<1x8x32xf32> to vector<8x32xf32>
    %567 = vector.shape_cast %564 : vector<8x32xf32> to vector<1x8x32xf32>
    tpu.vector_store %arg24[%c0_266, %c0_267, %c0_268], %567 {strides = array<i32>} : memref<1x8x32xf32, #tpu.memory_space<vmem>>, vector<1x8x32xf32>,
    return
  }
  func.func @transform_0(%arg0: i32) -> (i32, i32, i32) {
    %c0_i32 = arith.constant 0 : i32
    %c0_i32_0 = arith.constant 0 : i32
    %c0_i32_1 = arith.constant 0 : i32
    return %arg0, %c0_i32, %c0_i32_0 : i32, i32, i32
  }
  func.func @transform_1(%arg0: i32) -> (i32, i32, i32) {
    %c0_i32 = arith.constant 0 : i32
    %c0_i32_0 = arith.constant 0 : i32
    %c0_i32_1 = arith.constant 0 : i32
    return %arg0, %c0_i32, %c0_i32_0 : i32, i32, i32
  }
  func.func @transform_2(%arg0: i32) -> (i32, i32, i32) {
    %c0_i32 = arith.constant 0 : i32
    %c0_i32_0 = arith.constant 0 : i32
    %c0_i32_1 = arith.constant 0 : i32
    return %arg0, %c0_i32, %c0_i32_0 : i32, i32, i32
  }
  func.func @transform_3(%arg0: i32) -> (i32, i32, i32) {
    %c0_i32 = arith.constant 0 : i32
    %c0_i32_0 = arith.constant 0 : i32
    %c0_i32_1 = arith.constant 0 : i32
    return %arg0, %c0_i32, %c0_i32_0 : i32, i32, i32
  }
  func.func @transform_4(%arg0: i32) -> (i32, i32) {
    %c0_i32 = arith.constant 0 : i32
    %c0_i32_0 = arith.constant 0 : i32
    %c0_i32_1 = arith.constant 0 : i32
    return %c0_i32, %c0_i32_0 : i32, i32
  }
  func.func @transform_5(%arg0: i32) -> (i32, i32) {
    %c0_i32 = arith.constant 0 : i32
    %c0_i32_0 = arith.constant 0 : i32
    %c0_i32_1 = arith.constant 0 : i32
    return %c0_i32, %c0_i32_0 : i32, i32
  }
  func.func @transform_6(%arg0: i32) -> (i32, i32) {
    %c0_i32 = arith.constant 0 : i32
    %c0_i32_0 = arith.constant 0 : i32
    %c0_i32_1 = arith.constant 0 : i32
    return %c0_i32, %c0_i32_0 : i32, i32
  }
  func.func @transform_7(%arg0: i32) -> (i32, i32) {
    %c0_i32 = arith.constant 0 : i32
    %c0_i32_0 = arith.constant 0 : i32
    %c0_i32_1 = arith.constant 0 : i32
    return %c0_i32, %c0_i32_0 : i32, i32
  }
  func.func @transform_8(%arg0: i32) -> (i32, i32) {
    %c0_i32 = arith.constant 0 : i32
    %c0_i32_0 = arith.constant 0 : i32
    %c0_i32_1 = arith.constant 0 : i32
    return %c0_i32, %c0_i32_0 : i32, i32
  }
  func.func @transform_9(%arg0: i32) -> (i32, i32) {
    %c0_i32 = arith.constant 0 : i32
    %c0_i32_0 = arith.constant 0 : i32
    %c0_i32_1 = arith.constant 0 : i32
    return %c0_i32, %c0_i32_0 : i32, i32
  }
  func.func @transform_10(%arg0: i32) -> (i32, i32) {
    %c0_i32 = arith.constant 0 : i32
    %c0_i32_0 = arith.constant 0 : i32
    %c0_i32_1 = arith.constant 0 : i32
    return %c0_i32, %c0_i32_0 : i32, i32
  }
  func.func @transform_11(%arg0: i32) -> (i32, i32) {
    %c0_i32 = arith.constant 0 : i32
    %c0_i32_0 = arith.constant 0 : i32
    %c0_i32_1 = arith.constant 0 : i32
    return %c0_i32, %c0_i32_0 : i32, i32
  }
  func.func @transform_12(%arg0: i32) -> (i32, i32) {
    %c0_i32 = arith.constant 0 : i32
    %c0_i32_0 = arith.constant 0 : i32
    %c0_i32_1 = arith.constant 0 : i32
    return %c0_i32, %c0_i32_0 : i32, i32
  }
  func.func @transform_13(%arg0: i32) -> (i32, i32) {
    %c0_i32 = arith.constant 0 : i32
    %c0_i32_0 = arith.constant 0 : i32
    %c0_i32_1 = arith.constant 0 : i32
    return %c0_i32, %c0_i32_0 : i32, i32
  }
  func.func @transform_14(%arg0: i32) -> (i32, i32) {
    %c0_i32 = arith.constant 0 : i32
    %c0_i32_0 = arith.constant 0 : i32
    %c0_i32_1 = arith.constant 0 : i32
    return %c0_i32, %c0_i32_0 : i32, i32
  }
  func.func @transform_15(%arg0: i32) -> (i32, i32) {
    %c0_i32 = arith.constant 0 : i32
    %c0_i32_0 = arith.constant 0 : i32
    %c0_i32_1 = arith.constant 0 : i32
    return %c0_i32, %c0_i32_0 : i32, i32
  }
  func.func @transform_16(%arg0: i32) -> (i32, i32, i32) {
    %c0_i32 = arith.constant 0 : i32
    %c0_i32_0 = arith.constant 0 : i32
    %c0_i32_1 = arith.constant 0 : i32
    %c0_i32_2 = arith.constant 0 : i32
    return %c0_i32, %c0_i32_0, %c0_i32_1 : i32, i32, i32
  }
  func.func @transform_17(%arg0: i32) -> (i32, i32, i32) {
    %c0_i32 = arith.constant 0 : i32
    %c0_i32_0 = arith.constant 0 : i32
    %c0_i32_1 = arith.constant 0 : i32
    %c0_i32_2 = arith.constant 0 : i32
    return %c0_i32, %c0_i32_0, %c0_i32_1 : i32, i32, i32
  }
  func.func @transform_18(%arg0: i32) -> (i32, i32, i32) {
    %c0_i32 = arith.constant 0 : i32
    %c0_i32_0 = arith.constant 0 : i32
    %c0_i32_1 = arith.constant 0 : i32
    %c0_i32_2 = arith.constant 0 : i32
    return %c0_i32, %c0_i32_0, %c0_i32_1 : i32, i32, i32
  }
  func.func @transform_19(%arg0: i32) -> (i32, i32) {
    %c0_i32 = arith.constant 0 : i32
    %c0_i32_0 = arith.constant 0 : i32
    %c0_i32_1 = arith.constant 0 : i32
    return %c0_i32, %c0_i32_0 : i32, i32
  }
  func.func @transform_20(%arg0: i32) -> (i32, i32) {
    %c0_i32 = arith.constant 0 : i32
    %c0_i32_0 = arith.constant 0 : i32
    %c0_i32_1 = arith.constant 0 : i32
    return %c0_i32, %c0_i32_0 : i32, i32
  }
  func.func @transform_21(%arg0: i32) -> (i32, i32) {
    %c0_i32 = arith.constant 0 : i32
    %c0_i32_0 = arith.constant 0 : i32
    %c0_i32_1 = arith.constant 0 : i32
    return %c0_i32, %c0_i32_0 : i32, i32
  }
  func.func @transform_22(%arg0: i32) -> (i32, i32) {
    %c0_i32 = arith.constant 0 : i32
    %c0_i32_0 = arith.constant 0 : i32
    %c0_i32_1 = arith.constant 0 : i32
    return %c0_i32, %c0_i32_0 : i32, i32
  }
  func.func @transform_23(%arg0: i32) -> (i32, i32, i32) {
    %c0_i32 = arith.constant 0 : i32
    %c0_i32_0 = arith.constant 0 : i32
    %c0_i32_1 = arith.constant 0 : i32
    return %arg0, %c0_i32, %c0_i32_0 : i32, i32, i32
  }
  func.func @transform_24(%arg0: i32) -> (i32, i32, i32) {
    %c0_i32 = arith.constant 0 : i32
    %c0_i32_0 = arith.constant 0 : i32
    %c0_i32_1 = arith.constant 0 : i32
    return %arg0, %c0_i32, %c0_i32_0 : i32, i32, i32
  }
  func.func @transform_25(%arg0: i32) -> (i32, i32, i32) {
    %c0_i32 = arith.constant 0 : i32
    %c0_i32_0 = arith.constant 0 : i32
    %c0_i32_1 = arith.constant 0 : i32
    return %arg0, %c0_i32, %c0_i32_0 : i32, i32, i32
  }
}

module attributes {stable_mosaic.version = 11 : i64} {
  func.func @_decoder_layer_kernel(%arg0: i32, %arg1: memref<1x8x32xf32, #tpu.memory_space<vmem>>, %arg2: memref<1x8x32xf32, #tpu.memory_space<vmem>>, %arg3: memref<1x1x32xf32, #tpu.memory_space<vmem>>, %arg4: memref<1x1x32xf32, #tpu.memory_space<vmem>>, %arg5: memref<1x32xf32, #tpu.memory_space<vmem>>, %arg6: memref<1x32xf32, #tpu.memory_space<vmem>>, %arg7: memref<32x32xf32, #tpu.memory_space<vmem>>, %arg8: memref<1x32xf32, #tpu.memory_space<vmem>>, %arg9: memref<32x32xf32, #tpu.memory_space<vmem>>, %arg10: memref<1x32xf32, #tpu.memory_space<vmem>>, %arg11: memref<32x32xf32, #tpu.memory_space<vmem>>, %arg12: memref<1x32xf32, #tpu.memory_space<vmem>>, %arg13: memref<32x32xf32, #tpu.memory_space<vmem>>, %arg14: memref<1x32xf32, #tpu.memory_space<vmem>>, %arg15: memref<1x32xf32, #tpu.memory_space<vmem>>, %arg16: memref<1x32xf32, #tpu.memory_space<vmem>>, %arg17: memref<4x32x32xf32, #tpu.memory_space<vmem>>, %arg18: memref<4x32x32xf32, #tpu.memory_space<vmem>>, %arg19: memref<4x1x32xf32, #tpu.memory_space<vmem>>, %arg20: memref<32x64xf32, #tpu.memory_space<vmem>>, %arg21: memref<1x64xf32, #tpu.memory_space<vmem>>, %arg22: memref<64x32xf32, #tpu.memory_space<vmem>>, %arg23: memref<1x32xf32, #tpu.memory_space<vmem>>, %arg24: memref<1x8x32xf32, #tpu.memory_space<vmem>>, %arg25: memref<1x1x32xf32, #tpu.memory_space<vmem>>, %arg26: memref<1x1x32xf32, #tpu.memory_space<vmem>>, %arg27: memref<4x8x32xf32, #tpu.memory_space<vmem>>, %arg28: memref<8x32xf32, #tpu.memory_space<vmem>>) attributes {dimension_semantics = [#tpu.dimension_semantics<parallel>], iteration_bounds = array<i64: 2>, scalar_prefetch = 0 : i64, scratch_operands = 2 : i64, tpu.core_type = #tpu.core_type<tc>, window_params = [{transform_indices = @transform_0, window_bounds = array<i64: 1, 8, 32>}, {transform_indices = @transform_1, window_bounds = array<i64: 1, 8, 32>}, {transform_indices = @transform_2, window_bounds = array<i64: 1, 1, 32>}, {transform_indices = @transform_3, window_bounds = array<i64: 1, 1, 32>}, {pipeline_mode = #tpu.pipeline_mode<synchronous>, transform_indices = @transform_4, window_bounds = array<i64: 1, 32>}, {pipeline_mode = #tpu.pipeline_mode<synchronous>, transform_indices = @transform_5, window_bounds = array<i64: 1, 32>}, {pipeline_mode = #tpu.pipeline_mode<synchronous>, transform_indices = @transform_6, window_bounds = array<i64: 32, 32>}, {pipeline_mode = #tpu.pipeline_mode<synchronous>, transform_indices = @transform_7, window_bounds = array<i64: 1, 32>}, {pipeline_mode = #tpu.pipeline_mode<synchronous>, transform_indices = @transform_8, window_bounds = array<i64: 32, 32>}, {pipeline_mode = #tpu.pipeline_mode<synchronous>, transform_indices = @transform_9, window_bounds = array<i64: 1, 32>}, {pipeline_mode = #tpu.pipeline_mode<synchronous>, transform_indices = @transform_10, window_bounds = array<i64: 32, 32>}, {pipeline_mode = #tpu.pipeline_mode<synchronous>, transform_indices = @transform_11, window_bounds = array<i64: 1, 32>}, {pipeline_mode = #tpu.pipeline_mode<synchronous>, transform_indices = @transform_12, window_bounds = array<i64: 32, 32>}, {pipeline_mode = #tpu.pipeline_mode<synchronous>, transform_indices = @transform_13, window_bounds = array<i64: 1, 32>}, {pipeline_mode = #tpu.pipeline_mode<synchronous>, transform_indices = @transform_14, window_bounds = array<i64: 1, 32>}, {pipeline_mode = #tpu.pipeline_mode<synchronous>, transform_indices = @transform_15, window_bounds = array<i64: 1, 32>}, {pipeline_mode = #tpu.pipeline_mode<synchronous>, transform_indices = @transform_16, window_bounds = array<i64: 4, 32, 32>}, {pipeline_mode = #tpu.pipeline_mode<synchronous>, transform_indices = @transform_17, window_bounds = array<i64: 4, 32, 32>}, {pipeline_mode = #tpu.pipeline_mode<synchronous>, transform_indices = @transform_18, window_bounds = array<i64: 4, 1, 32>}, {pipeline_mode = #tpu.pipeline_mode<synchronous>, transform_indices = @transform_19, window_bounds = array<i64: 32, 64>}, {pipeline_mode = #tpu.pipeline_mode<synchronous>, transform_indices = @transform_20, window_bounds = array<i64: 1, 64>}, {pipeline_mode = #tpu.pipeline_mode<synchronous>, transform_indices = @transform_21, window_bounds = array<i64: 64, 32>}, {pipeline_mode = #tpu.pipeline_mode<synchronous>, transform_indices = @transform_22, window_bounds = array<i64: 1, 32>}, {transform_indices = @transform_23, window_bounds = array<i64: 1, 8, 32>}, {transform_indices = @transform_24, window_bounds = array<i64: 1, 1, 32>}, {transform_indices = @transform_25, window_bounds = array<i64: 1, 1, 32>}]} {
    %c0 = arith.constant 0 : index
    %c0_0 = arith.constant 0 : index
    %c0_1 = arith.constant 0 : index
    %0 = vector.load %arg1[%c0, %c0_0, %c0_1] : memref<1x8x32xf32, #tpu.memory_space<vmem>>, vector<1x8x32xf32>
    %1 = vector.shape_cast %0 : vector<1x8x32xf32> to vector<8x32xf32>
    %c0_2 = arith.constant 0 : index
    %c0_3 = arith.constant 0 : index
    %c0_4 = arith.constant 0 : index
    %2 = vector.load %arg2[%c0_2, %c0_3, %c0_4] : memref<1x8x32xf32, #tpu.memory_space<vmem>>, vector<1x8x32xf32>
    %3 = vector.shape_cast %2 : vector<1x8x32xf32> to vector<8x32xf32>
    %c0_5 = arith.constant 0 : index
    %c0_6 = arith.constant 0 : index
    %4 = vector.load %arg5[%c0_5, %c0_6] : memref<1x32xf32, #tpu.memory_space<vmem>>, vector<1x32xf32>
    %c0_7 = arith.constant 0 : index
    %c0_8 = arith.constant 0 : index
    %5 = vector.load %arg6[%c0_7, %c0_8] : memref<1x32xf32, #tpu.memory_space<vmem>>, vector<1x32xf32>
    %cst = arith.constant dense<0.000000e+00> : vector<8xf32>
    %6 = vector.multi_reduction <add>, %1, %cst [1] : vector<8x32xf32> to vector<8xf32>
    %7 = vector.shape_cast %6 : vector<8xf32> to vector<8x1xf32>
    %cst_9 = arith.constant 3.200000e+01 : f32
    %8 = vector.broadcast %cst_9 : f32 to vector<8x1xf32>
    %9 = arith.divf %7, %8 : vector<8x1xf32>
    %10 = vector.broadcast %9 : vector<8x1xf32> to vector<8x32xf32>
    %11 = arith.subf %1, %10 : vector<8x32xf32>
    %12 = arith.mulf %11, %11 : vector<8x32xf32>
    %cst_10 = arith.constant dense<0.000000e+00> : vector<8xf32>
    %13 = vector.multi_reduction <add>, %12, %cst_10 [1] : vector<8x32xf32> to vector<8xf32>
    %14 = vector.shape_cast %13 : vector<8xf32> to vector<8x1xf32>
    %cst_11 = arith.constant 3.200000e+01 : f32
    %15 = vector.broadcast %cst_11 : f32 to vector<8x1xf32>
    %16 = arith.divf %14, %15 : vector<8x1xf32>
    %17 = vector.broadcast %9 : vector<8x1xf32> to vector<8x32xf32>
    %18 = arith.subf %1, %17 : vector<8x32xf32>
    %cst_12 = arith.constant 9.99999974E-6 : f32
    %19 = vector.broadcast %cst_12 : f32 to vector<8x1xf32>
    %20 = arith.addf %16, %19 : vector<8x1xf32>
    %21 = math.rsqrt %20 : vector<8x1xf32>
    %22 = vector.broadcast %21 : vector<8x1xf32> to vector<8x32xf32>
    %23 = arith.mulf %18, %22 : vector<8x32xf32>
    %24 = vector.broadcast %4 : vector<1x32xf32> to vector<8x32xf32>
    %25 = arith.mulf %23, %24 : vector<8x32xf32>
    %26 = vector.broadcast %5 : vector<1x32xf32> to vector<8x32xf32>
    %27 = arith.addf %25, %26 : vector<8x32xf32>
    %c0_13 = arith.constant 0 : index
    %c0_14 = arith.constant 0 : index
    %28 = vector.load %arg7[%c0_13, %c0_14] : memref<32x32xf32, #tpu.memory_space<vmem>>, vector<32x32xf32>
    %cst_15 = arith.constant dense<0.000000e+00> : vector<8x32xf32>
    %29 = tpu.matmul %27, %28, %cst_15 {dimension_numbers = #tpu.dot_dimension_numbers<[1], [0], [0], [1], [0, 0, 1, 1], [], []>} : vector<8x32xf32>, vector<32x32xf32>, vector<8x32xf32> -> vector<8x32xf32>
    %c0_16 = arith.constant 0 : index
    %c0_17 = arith.constant 0 : index
    %30 = vector.load %arg8[%c0_16, %c0_17] : memref<1x32xf32, #tpu.memory_space<vmem>>, vector<1x32xf32>
    %31 = vector.broadcast %30 : vector<1x32xf32> to vector<8x32xf32>
    %32 = arith.addf %29, %31 : vector<8x32xf32>
    %c0_18 = arith.constant 0 : index
    %c0_19 = arith.constant 0 : index
    %33 = vector.load %arg9[%c0_18, %c0_19] : memref<32x32xf32, #tpu.memory_space<vmem>>, vector<32x32xf32>
    %cst_20 = arith.constant dense<0.000000e+00> : vector<8x32xf32>
    %34 = tpu.matmul %3, %33, %cst_20 {dimension_numbers = #tpu.dot_dimension_numbers<[1], [0], [0], [1], [0, 0, 1, 1], [], []>} : vector<8x32xf32>, vector<32x32xf32>, vector<8x32xf32> -> vector<8x32xf32>
    %c0_21 = arith.constant 0 : index
    %c0_22 = arith.constant 0 : index
    %35 = vector.load %arg10[%c0_21, %c0_22] : memref<1x32xf32, #tpu.memory_space<vmem>>, vector<1x32xf32>
    %36 = vector.broadcast %35 : vector<1x32xf32> to vector<8x32xf32>
    %37 = arith.addf %34, %36 : vector<8x32xf32>
    %c0_23 = arith.constant 0 : index
    %c0_24 = arith.constant 0 : index
    %38 = vector.load %arg11[%c0_23, %c0_24] : memref<32x32xf32, #tpu.memory_space<vmem>>, vector<32x32xf32>
    %cst_25 = arith.constant dense<0.000000e+00> : vector<8x32xf32>
    %39 = tpu.matmul %3, %38, %cst_25 {dimension_numbers = #tpu.dot_dimension_numbers<[1], [0], [0], [1], [0, 0, 1, 1], [], []>} : vector<8x32xf32>, vector<32x32xf32>, vector<8x32xf32> -> vector<8x32xf32>
    %c0_26 = arith.constant 0 : index
    %c0_27 = arith.constant 0 : index
    %40 = vector.load %arg12[%c0_26, %c0_27] : memref<1x32xf32, #tpu.memory_space<vmem>>, vector<1x32xf32>
    %41 = vector.broadcast %40 : vector<1x32xf32> to vector<8x32xf32>
    %42 = arith.addf %39, %41 : vector<8x32xf32>
    %43 = vector.extract_strided_slice %32 {offsets = [0, 0], sizes = [8, 8], strides = [1, 1]} : vector<8x32xf32> to vector<8x8xf32>
    %44 = vector.extract_strided_slice %37 {offsets = [0, 0], sizes = [8, 8], strides = [1, 1]} : vector<8x32xf32> to vector<8x8xf32>
    %cst_28 = arith.constant dense<0.000000e+00> : vector<8x8xf32>
    %45 = tpu.matmul %43, %44, %cst_28 {dimension_numbers = #tpu.dot_dimension_numbers<[1], [1], [0], [0], [0, 0, 1, 0], [], []>} : vector<8x8xf32>, vector<8x8xf32>, vector<8x8xf32> -> vector<8x8xf32>
    %cst_29 = arith.constant 0.353553385 : f32
    %46 = vector.broadcast %cst_29 : f32 to vector<8x8xf32>
    %47 = arith.mulf %45, %46 : vector<8x8xf32>
    %cst_30 = arith.constant dense<0xFF800000> : vector<8xf32>
    %48 = vector.multi_reduction <maximumf>, %47, %cst_30 [1] : vector<8x8xf32> to vector<8xf32>
    %49 = vector.shape_cast %48 : vector<8xf32> to vector<8x1xf32>
    %50 = vector.broadcast %49 : vector<8x1xf32> to vector<8x8xf32>
    %51 = arith.subf %47, %50 : vector<8x8xf32>
    %52 = math.exp %51 : vector<8x8xf32>
    %cst_31 = arith.constant dense<0.000000e+00> : vector<8xf32>
    %53 = vector.multi_reduction <add>, %52, %cst_31 [1] : vector<8x8xf32> to vector<8xf32>
    %54 = vector.shape_cast %53 : vector<8xf32> to vector<8x1xf32>
    %55 = tpu.reciprocal %54 {approx = true} : vector<8x1xf32> -> vector<8x1xf32>
    %56 = vector.broadcast %55 : vector<8x1xf32> to vector<8x8xf32>
    %57 = arith.mulf %52, %56 : vector<8x8xf32>
    %58 = vector.extract_strided_slice %42 {offsets = [0, 0], sizes = [8, 8], strides = [1, 1]} : vector<8x32xf32> to vector<8x8xf32>
    %cst_32 = arith.constant dense<0.000000e+00> : vector<8x8xf32>
    %59 = tpu.matmul %57, %58, %cst_32 {dimension_numbers = #tpu.dot_dimension_numbers<[1], [0], [0], [1], [0, 0, 1, 1], [], []>} : vector<8x8xf32>, vector<8x8xf32>, vector<8x8xf32> -> vector<8x8xf32>
    %60 = vector.extract_strided_slice %32 {offsets = [0, 8], sizes = [8, 8], strides = [1, 1]} : vector<8x32xf32> to vector<8x8xf32>
    %61 = vector.extract_strided_slice %37 {offsets = [0, 8], sizes = [8, 8], strides = [1, 1]} : vector<8x32xf32> to vector<8x8xf32>
    %cst_33 = arith.constant dense<0.000000e+00> : vector<8x8xf32>
    %62 = tpu.matmul %60, %61, %cst_33 {dimension_numbers = #tpu.dot_dimension_numbers<[1], [1], [0], [0], [0, 0, 1, 0], [], []>} : vector<8x8xf32>, vector<8x8xf32>, vector<8x8xf32> -> vector<8x8xf32>
    %cst_34 = arith.constant 0.353553385 : f32
    %63 = vector.broadcast %cst_34 : f32 to vector<8x8xf32>
    %64 = arith.mulf %62, %63 : vector<8x8xf32>
    %cst_35 = arith.constant dense<0xFF800000> : vector<8xf32>
    %65 = vector.multi_reduction <maximumf>, %64, %cst_35 [1] : vector<8x8xf32> to vector<8xf32>
    %66 = vector.shape_cast %65 : vector<8xf32> to vector<8x1xf32>
    %67 = vector.broadcast %66 : vector<8x1xf32> to vector<8x8xf32>
    %68 = arith.subf %64, %67 : vector<8x8xf32>
    %69 = math.exp %68 : vector<8x8xf32>
    %cst_36 = arith.constant dense<0.000000e+00> : vector<8xf32>
    %70 = vector.multi_reduction <add>, %69, %cst_36 [1] : vector<8x8xf32> to vector<8xf32>
    %71 = vector.shape_cast %70 : vector<8xf32> to vector<8x1xf32>
    %72 = tpu.reciprocal %71 {approx = true} : vector<8x1xf32> -> vector<8x1xf32>
    %73 = vector.broadcast %72 : vector<8x1xf32> to vector<8x8xf32>
    %74 = arith.mulf %69, %73 : vector<8x8xf32>
    %75 = vector.extract_strided_slice %42 {offsets = [0, 8], sizes = [8, 8], strides = [1, 1]} : vector<8x32xf32> to vector<8x8xf32>
    %cst_37 = arith.constant dense<0.000000e+00> : vector<8x8xf32>
    %76 = tpu.matmul %74, %75, %cst_37 {dimension_numbers = #tpu.dot_dimension_numbers<[1], [0], [0], [1], [0, 0, 1, 1], [], []>} : vector<8x8xf32>, vector<8x8xf32>, vector<8x8xf32> -> vector<8x8xf32>
    %77 = vector.extract_strided_slice %32 {offsets = [0, 16], sizes = [8, 8], strides = [1, 1]} : vector<8x32xf32> to vector<8x8xf32>
    %78 = vector.extract_strided_slice %37 {offsets = [0, 16], sizes = [8, 8], strides = [1, 1]} : vector<8x32xf32> to vector<8x8xf32>
    %cst_38 = arith.constant dense<0.000000e+00> : vector<8x8xf32>
    %79 = tpu.matmul %77, %78, %cst_38 {dimension_numbers = #tpu.dot_dimension_numbers<[1], [1], [0], [0], [0, 0, 1, 0], [], []>} : vector<8x8xf32>, vector<8x8xf32>, vector<8x8xf32> -> vector<8x8xf32>
    %cst_39 = arith.constant 0.353553385 : f32
    %80 = vector.broadcast %cst_39 : f32 to vector<8x8xf32>
    %81 = arith.mulf %79, %80 : vector<8x8xf32>
    %cst_40 = arith.constant dense<0xFF800000> : vector<8xf32>
    %82 = vector.multi_reduction <maximumf>, %81, %cst_40 [1] : vector<8x8xf32> to vector<8xf32>
    %83 = vector.shape_cast %82 : vector<8xf32> to vector<8x1xf32>
    %84 = vector.broadcast %83 : vector<8x1xf32> to vector<8x8xf32>
    %85 = arith.subf %81, %84 : vector<8x8xf32>
    %86 = math.exp %85 : vector<8x8xf32>
    %cst_41 = arith.constant dense<0.000000e+00> : vector<8xf32>
    %87 = vector.multi_reduction <add>, %86, %cst_41 [1] : vector<8x8xf32> to vector<8xf32>
    %88 = vector.shape_cast %87 : vector<8xf32> to vector<8x1xf32>
    %89 = tpu.reciprocal %88 {approx = true} : vector<8x1xf32> -> vector<8x1xf32>
    %90 = vector.broadcast %89 : vector<8x1xf32> to vector<8x8xf32>
    %91 = arith.mulf %86, %90 : vector<8x8xf32>
    %92 = vector.extract_strided_slice %42 {offsets = [0, 16], sizes = [8, 8], strides = [1, 1]} : vector<8x32xf32> to vector<8x8xf32>
    %cst_42 = arith.constant dense<0.000000e+00> : vector<8x8xf32>
    %93 = tpu.matmul %91, %92, %cst_42 {dimension_numbers = #tpu.dot_dimension_numbers<[1], [0], [0], [1], [0, 0, 1, 1], [], []>} : vector<8x8xf32>, vector<8x8xf32>, vector<8x8xf32> -> vector<8x8xf32>
    %94 = vector.extract_strided_slice %32 {offsets = [0, 24], sizes = [8, 8], strides = [1, 1]} : vector<8x32xf32> to vector<8x8xf32>
    %95 = vector.extract_strided_slice %37 {offsets = [0, 24], sizes = [8, 8], strides = [1, 1]} : vector<8x32xf32> to vector<8x8xf32>
    %cst_43 = arith.constant dense<0.000000e+00> : vector<8x8xf32>
    %96 = tpu.matmul %94, %95, %cst_43 {dimension_numbers = #tpu.dot_dimension_numbers<[1], [1], [0], [0], [0, 0, 1, 0], [], []>} : vector<8x8xf32>, vector<8x8xf32>, vector<8x8xf32> -> vector<8x8xf32>
    %cst_44 = arith.constant 0.353553385 : f32
    %97 = vector.broadcast %cst_44 : f32 to vector<8x8xf32>
    %98 = arith.mulf %96, %97 : vector<8x8xf32>
    %cst_45 = arith.constant dense<0xFF800000> : vector<8xf32>
    %99 = vector.multi_reduction <maximumf>, %98, %cst_45 [1] : vector<8x8xf32> to vector<8xf32>
    %100 = vector.shape_cast %99 : vector<8xf32> to vector<8x1xf32>
    %101 = vector.broadcast %100 : vector<8x1xf32> to vector<8x8xf32>
    %102 = arith.subf %98, %101 : vector<8x8xf32>
    %103 = math.exp %102 : vector<8x8xf32>
    %cst_46 = arith.constant dense<0.000000e+00> : vector<8xf32>
    %104 = vector.multi_reduction <add>, %103, %cst_46 [1] : vector<8x8xf32> to vector<8xf32>
    %105 = vector.shape_cast %104 : vector<8xf32> to vector<8x1xf32>
    %106 = tpu.reciprocal %105 {approx = true} : vector<8x1xf32> -> vector<8x1xf32>
    %107 = vector.broadcast %106 : vector<8x1xf32> to vector<8x8xf32>
    %108 = arith.mulf %103, %107 : vector<8x8xf32>
    %109 = vector.extract_strided_slice %42 {offsets = [0, 24], sizes = [8, 8], strides = [1, 1]} : vector<8x32xf32> to vector<8x8xf32>
    %cst_47 = arith.constant dense<0.000000e+00> : vector<8x8xf32>
    %110 = tpu.matmul %108, %109, %cst_47 {dimension_numbers = #tpu.dot_dimension_numbers<[1], [0], [0], [1], [0, 0, 1, 1], [], []>} : vector<8x8xf32>, vector<8x8xf32>, vector<8x8xf32> -> vector<8x8xf32>
    %111 = tpu.concatenate %59, %76, %93, %110 in 1 : vector<8x8xf32>, vector<8x8xf32>, vector<8x8xf32>, vector<8x8xf32> -> vector<8x32xf32>
    %c0_48 = arith.constant 0 : index
    %c0_49 = arith.constant 0 : index
    %112 = vector.load %arg13[%c0_48, %c0_49] : memref<32x32xf32, #tpu.memory_space<vmem>>, vector<32x32xf32>
    %cst_50 = arith.constant dense<0.000000e+00> : vector<8x32xf32>
    %113 = tpu.matmul %111, %112, %cst_50 {dimension_numbers = #tpu.dot_dimension_numbers<[1], [0], [0], [1], [0, 0, 1, 1], [], []>} : vector<8x32xf32>, vector<32x32xf32>, vector<8x32xf32> -> vector<8x32xf32>
    %c0_51 = arith.constant 0 : index
    %c0_52 = arith.constant 0 : index
    %114 = vector.load %arg14[%c0_51, %c0_52] : memref<1x32xf32, #tpu.memory_space<vmem>>, vector<1x32xf32>
    %115 = vector.broadcast %114 : vector<1x32xf32> to vector<8x32xf32>
    %116 = arith.addf %113, %115 : vector<8x32xf32>
    %117 = arith.addf %116, %1 : vector<8x32xf32>
    %c0_53 = arith.constant 0 : index
    %c0_54 = arith.constant 0 : index
    %118 = vector.load %arg15[%c0_53, %c0_54] : memref<1x32xf32, #tpu.memory_space<vmem>>, vector<1x32xf32>
    %c0_55 = arith.constant 0 : index
    %c0_56 = arith.constant 0 : index
    %119 = vector.load %arg16[%c0_55, %c0_56] : memref<1x32xf32, #tpu.memory_space<vmem>>, vector<1x32xf32>
    %cst_57 = arith.constant dense<0.000000e+00> : vector<8xf32>
    %120 = vector.multi_reduction <add>, %117, %cst_57 [1] : vector<8x32xf32> to vector<8xf32>
    %121 = vector.shape_cast %120 : vector<8xf32> to vector<8x1xf32>
    %cst_58 = arith.constant 3.200000e+01 : f32
    %122 = vector.broadcast %cst_58 : f32 to vector<8x1xf32>
    %123 = arith.divf %121, %122 : vector<8x1xf32>
    %124 = vector.broadcast %123 : vector<8x1xf32> to vector<8x32xf32>
    %125 = arith.subf %117, %124 : vector<8x32xf32>
    %126 = arith.mulf %125, %125 : vector<8x32xf32>
    %cst_59 = arith.constant dense<0.000000e+00> : vector<8xf32>
    %127 = vector.multi_reduction <add>, %126, %cst_59 [1] : vector<8x32xf32> to vector<8xf32>
    %128 = vector.shape_cast %127 : vector<8xf32> to vector<8x1xf32>
    %cst_60 = arith.constant 3.200000e+01 : f32
    %129 = vector.broadcast %cst_60 : f32 to vector<8x1xf32>
    %130 = arith.divf %128, %129 : vector<8x1xf32>
    %131 = vector.broadcast %123 : vector<8x1xf32> to vector<8x32xf32>
    %132 = arith.subf %117, %131 : vector<8x32xf32>
    %cst_61 = arith.constant 9.99999974E-6 : f32
    %133 = vector.broadcast %cst_61 : f32 to vector<8x1xf32>
    %134 = arith.addf %130, %133 : vector<8x1xf32>
    %135 = math.rsqrt %134 : vector<8x1xf32>
    %136 = vector.broadcast %135 : vector<8x1xf32> to vector<8x32xf32>
    %137 = arith.mulf %132, %136 : vector<8x32xf32>
    %138 = vector.broadcast %118 : vector<1x32xf32> to vector<8x32xf32>
    %139 = arith.mulf %137, %138 : vector<8x32xf32>
    %140 = vector.broadcast %119 : vector<1x32xf32> to vector<8x32xf32>
    %141 = arith.addf %139, %140 : vector<8x32xf32>
    %c0_62 = arith.constant 0 : index
    %c0_63 = arith.constant 0 : index
    %c0_64 = arith.constant 0 : index
    %142 = vector.load %arg17[%c0_62, %c0_63, %c0_64] : memref<4x32x32xf32, #tpu.memory_space<vmem>>, vector<1x32x32xf32>
    %143 = vector.shape_cast %142 : vector<1x32x32xf32> to vector<32x32xf32>
    %cst_65 = arith.constant dense<0.000000e+00> : vector<8x32xf32>
    %144 = tpu.matmul %141, %143, %cst_65 {dimension_numbers = #tpu.dot_dimension_numbers<[1], [0], [0], [1], [0, 0, 1, 1], [], []>} : vector<8x32xf32>, vector<32x32xf32>, vector<8x32xf32> -> vector<8x32xf32>
    %c0_66 = arith.constant 0 : index
    %c0_67 = arith.constant 0 : index
    %c0_68 = arith.constant 0 : index
    %145 = vector.load %arg19[%c0_66, %c0_67, %c0_68] : memref<4x1x32xf32, #tpu.memory_space<vmem>>, vector<1x1x32xf32>
    %146 = vector.shape_cast %145 : vector<1x1x32xf32> to vector<1x32xf32>
    %147 = vector.broadcast %146 : vector<1x32xf32> to vector<8x32xf32>
    %148 = arith.addf %144, %147 : vector<8x32xf32>
    %c0_69 = arith.constant 0 : index
    %c0_70 = arith.constant 0 : index
    %c0_71 = arith.constant 0 : index
    %149 = vector.load %arg27[%c0_69, %c0_70, %c0_71] : memref<4x8x32xf32, #tpu.memory_space<vmem>>, vector<1x8x32xf32>
    %150 = vector.shape_cast %149 : vector<1x8x32xf32> to vector<8x32xf32>
    %151 = vector.shape_cast %148 : vector<8x32xf32> to vector<1x8x32xf32>
    tpu.vector_store %arg27[%c0_69, %c0_70, %c0_71], %151 {strides = array<i32>} : memref<4x8x32xf32, #tpu.memory_space<vmem>>, vector<1x8x32xf32>,
    %c1 = arith.constant 1 : index
    %c0_72 = arith.constant 0 : index
    %c0_73 = arith.constant 0 : index
    %152 = vector.load %arg17[%c1, %c0_72, %c0_73] : memref<4x32x32xf32, #tpu.memory_space<vmem>>, vector<1x32x32xf32>
    %153 = vector.shape_cast %152 : vector<1x32x32xf32> to vector<32x32xf32>
    %cst_74 = arith.constant dense<0.000000e+00> : vector<8x32xf32>
    %154 = tpu.matmul %141, %153, %cst_74 {dimension_numbers = #tpu.dot_dimension_numbers<[1], [0], [0], [1], [0, 0, 1, 1], [], []>} : vector<8x32xf32>, vector<32x32xf32>, vector<8x32xf32> -> vector<8x32xf32>
    %c1_75 = arith.constant 1 : index
    %c0_76 = arith.constant 0 : index
    %c0_77 = arith.constant 0 : index
    %155 = vector.load %arg19[%c1_75, %c0_76, %c0_77] : memref<4x1x32xf32, #tpu.memory_space<vmem>>, vector<1x1x32xf32>
    %156 = vector.shape_cast %155 : vector<1x1x32xf32> to vector<1x32xf32>
    %157 = vector.broadcast %156 : vector<1x32xf32> to vector<8x32xf32>
    %158 = arith.addf %154, %157 : vector<8x32xf32>
    %c1_78 = arith.constant 1 : index
    %c0_79 = arith.constant 0 : index
    %c0_80 = arith.constant 0 : index
    %159 = vector.load %arg27[%c1_78, %c0_79, %c0_80] : memref<4x8x32xf32, #tpu.memory_space<vmem>>, vector<1x8x32xf32>
    %160 = vector.shape_cast %159 : vector<1x8x32xf32> to vector<8x32xf32>
    %161 = vector.shape_cast %158 : vector<8x32xf32> to vector<1x8x32xf32>
    tpu.vector_store %arg27[%c1_78, %c0_79, %c0_80], %161 {strides = array<i32>} : memref<4x8x32xf32, #tpu.memory_space<vmem>>, vector<1x8x32xf32>,
    %c2 = arith.constant 2 : index
    %c0_81 = arith.constant 0 : index
    %c0_82 = arith.constant 0 : index
    %162 = vector.load %arg17[%c2, %c0_81, %c0_82] : memref<4x32x32xf32, #tpu.memory_space<vmem>>, vector<1x32x32xf32>
    %163 = vector.shape_cast %162 : vector<1x32x32xf32> to vector<32x32xf32>
    %cst_83 = arith.constant dense<0.000000e+00> : vector<8x32xf32>
    %164 = tpu.matmul %141, %163, %cst_83 {dimension_numbers = #tpu.dot_dimension_numbers<[1], [0], [0], [1], [0, 0, 1, 1], [], []>} : vector<8x32xf32>, vector<32x32xf32>, vector<8x32xf32> -> vector<8x32xf32>
    %c2_84 = arith.constant 2 : index
    %c0_85 = arith.constant 0 : index
    %c0_86 = arith.constant 0 : index
    %165 = vector.load %arg19[%c2_84, %c0_85, %c0_86] : memref<4x1x32xf32, #tpu.memory_space<vmem>>, vector<1x1x32xf32>
    %166 = vector.shape_cast %165 : vector<1x1x32xf32> to vector<1x32xf32>
    %167 = vector.broadcast %166 : vector<1x32xf32> to vector<8x32xf32>
    %168 = arith.addf %164, %167 : vector<8x32xf32>
    %c2_87 = arith.constant 2 : index
    %c0_88 = arith.constant 0 : index
    %c0_89 = arith.constant 0 : index
    %169 = vector.load %arg27[%c2_87, %c0_88, %c0_89] : memref<4x8x32xf32, #tpu.memory_space<vmem>>, vector<1x8x32xf32>
    %170 = vector.shape_cast %169 : vector<1x8x32xf32> to vector<8x32xf32>
    %171 = vector.shape_cast %168 : vector<8x32xf32> to vector<1x8x32xf32>
    tpu.vector_store %arg27[%c2_87, %c0_88, %c0_89], %171 {strides = array<i32>} : memref<4x8x32xf32, #tpu.memory_space<vmem>>, vector<1x8x32xf32>,
    %c3 = arith.constant 3 : index
    %c0_90 = arith.constant 0 : index
    %c0_91 = arith.constant 0 : index
    %172 = vector.load %arg17[%c3, %c0_90, %c0_91] : memref<4x32x32xf32, #tpu.memory_space<vmem>>, vector<1x32x32xf32>
    %173 = vector.shape_cast %172 : vector<1x32x32xf32> to vector<32x32xf32>
    %cst_92 = arith.constant dense<0.000000e+00> : vector<8x32xf32>
    %174 = tpu.matmul %141, %173, %cst_92 {dimension_numbers = #tpu.dot_dimension_numbers<[1], [0], [0], [1], [0, 0, 1, 1], [], []>} : vector<8x32xf32>, vector<32x32xf32>, vector<8x32xf32> -> vector<8x32xf32>
    %c3_93 = arith.constant 3 : index
    %c0_94 = arith.constant 0 : index
    %c0_95 = arith.constant 0 : index
    %175 = vector.load %arg19[%c3_93, %c0_94, %c0_95] : memref<4x1x32xf32, #tpu.memory_space<vmem>>, vector<1x1x32xf32>
    %176 = vector.shape_cast %175 : vector<1x1x32xf32> to vector<1x32xf32>
    %177 = vector.broadcast %176 : vector<1x32xf32> to vector<8x32xf32>
    %178 = arith.addf %174, %177 : vector<8x32xf32>
    %c3_96 = arith.constant 3 : index
    %c0_97 = arith.constant 0 : index
    %c0_98 = arith.constant 0 : index
    %179 = vector.load %arg27[%c3_96, %c0_97, %c0_98] : memref<4x8x32xf32, #tpu.memory_space<vmem>>, vector<1x8x32xf32>
    %180 = vector.shape_cast %179 : vector<1x8x32xf32> to vector<8x32xf32>
    %181 = vector.shape_cast %178 : vector<8x32xf32> to vector<1x8x32xf32>
    tpu.vector_store %arg27[%c3_96, %c0_97, %c0_98], %181 {strides = array<i32>} : memref<4x8x32xf32, #tpu.memory_space<vmem>>, vector<1x8x32xf32>,
    %c0_99 = arith.constant 0 : index
    %c0_100 = arith.constant 0 : index
    %c0_101 = arith.constant 0 : index
    %182 = vector.load %arg18[%c0_99, %c0_100, %c0_101] : memref<4x32x32xf32, #tpu.memory_space<vmem>>, vector<1x32x32xf32>
    %183 = vector.shape_cast %182 : vector<1x32x32xf32> to vector<32x32xf32>
    %c1_102 = arith.constant 1 : index
    %c0_103 = arith.constant 0 : index
    %c0_104 = arith.constant 0 : index
    %184 = vector.load %arg18[%c1_102, %c0_103, %c0_104] : memref<4x32x32xf32, #tpu.memory_space<vmem>>, vector<1x32x32xf32>
    %185 = vector.shape_cast %184 : vector<1x32x32xf32> to vector<32x32xf32>
    %c2_105 = arith.constant 2 : index
    %c0_106 = arith.constant 0 : index
    %c0_107 = arith.constant 0 : index
    %186 = vector.load %arg18[%c2_105, %c0_106, %c0_107] : memref<4x32x32xf32, #tpu.memory_space<vmem>>, vector<1x32x32xf32>
    %187 = vector.shape_cast %186 : vector<1x32x32xf32> to vector<32x32xf32>
    %c3_108 = arith.constant 3 : index
    %c0_109 = arith.constant 0 : index
    %c0_110 = arith.constant 0 : index
    %188 = vector.load %arg18[%c3_108, %c0_109, %c0_110] : memref<4x32x32xf32, #tpu.memory_space<vmem>>, vector<1x32x32xf32>
    %189 = vector.shape_cast %188 : vector<1x32x32xf32> to vector<32x32xf32>
    %c0_111 = arith.constant 0 : index
    %c0_112 = arith.constant 0 : index
    %c0_113 = arith.constant 0 : index
    %190 = vector.load %arg3[%c0_111, %c0_112, %c0_113] : memref<1x1x32xf32, #tpu.memory_space<vmem>>, vector<1x1x32xf32>
    %191 = vector.shape_cast %190 : vector<1x1x32xf32> to vector<1x32xf32>
    %c0_114 = arith.constant 0 : index
    %c0_115 = arith.constant 0 : index
    %c0_116 = arith.constant 0 : index
    %192 = vector.load %arg4[%c0_114, %c0_115, %c0_116] : memref<1x1x32xf32, #tpu.memory_space<vmem>>, vector<1x1x32xf32>
    %193 = vector.shape_cast %192 : vector<1x1x32xf32> to vector<1x32xf32>
    %c0_i32 = arith.constant 0 : i32
    %c0_117 = arith.constant 0 : index
    %194 = arith.index_cast %c0_i32 : i32 to index
    %c0_118 = arith.constant 0 : index
    %195 = vector.load %arg27[%c0_117, %194, %c0_118] : memref<4x8x32xf32, #tpu.memory_space<vmem>>, vector<1x1x32xf32>
    %196 = vector.shape_cast %195 : vector<1x1x32xf32> to vector<1x32xf32>
    %cst_119 = arith.constant dense<0.000000e+00> : vector<1x32xf32>
    %197 = tpu.matmul %191, %183, %cst_119 {dimension_numbers = #tpu.dot_dimension_numbers<[1], [0], [0], [1], [0, 0, 1, 1], [], []>} : vector<1x32xf32>, vector<32x32xf32>, vector<1x32xf32> -> vector<1x32xf32>
    %198 = arith.addf %196, %197 : vector<1x32xf32>
    %199 = arith.negf %198 : vector<1x32xf32>
    %200 = math.exp %199 : vector<1x32xf32>
    %cst_120 = arith.constant 1.000000e+00 : f32
    %201 = vector.broadcast %cst_120 : f32 to vector<1x32xf32>
    %202 = arith.addf %201, %200 : vector<1x32xf32>
    %203 = arith.divf %201, %202 : vector<1x32xf32>
    %c1_121 = arith.constant 1 : index
    %204 = arith.index_cast %c0_i32 : i32 to index
    %c0_122 = arith.constant 0 : index
    %205 = vector.load %arg27[%c1_121, %204, %c0_122] : memref<4x8x32xf32, #tpu.memory_space<vmem>>, vector<1x1x32xf32>
    %206 = vector.shape_cast %205 : vector<1x1x32xf32> to vector<1x32xf32>
    %cst_123 = arith.constant dense<0.000000e+00> : vector<1x32xf32>
    %207 = tpu.matmul %191, %185, %cst_123 {dimension_numbers = #tpu.dot_dimension_numbers<[1], [0], [0], [1], [0, 0, 1, 1], [], []>} : vector<1x32xf32>, vector<32x32xf32>, vector<1x32xf32> -> vector<1x32xf32>
    %208 = arith.addf %206, %207 : vector<1x32xf32>
    %209 = arith.negf %208 : vector<1x32xf32>
    %210 = math.exp %209 : vector<1x32xf32>
    %cst_124 = arith.constant 1.000000e+00 : f32
    %211 = vector.broadcast %cst_124 : f32 to vector<1x32xf32>
    %212 = arith.addf %211, %210 : vector<1x32xf32>
    %213 = arith.divf %211, %212 : vector<1x32xf32>
    %c2_125 = arith.constant 2 : index
    %214 = arith.index_cast %c0_i32 : i32 to index
    %c0_126 = arith.constant 0 : index
    %215 = vector.load %arg27[%c2_125, %214, %c0_126] : memref<4x8x32xf32, #tpu.memory_space<vmem>>, vector<1x1x32xf32>
    %216 = vector.shape_cast %215 : vector<1x1x32xf32> to vector<1x32xf32>
    %cst_127 = arith.constant dense<0.000000e+00> : vector<1x32xf32>
    %217 = tpu.matmul %191, %187, %cst_127 {dimension_numbers = #tpu.dot_dimension_numbers<[1], [0], [0], [1], [0, 0, 1, 1], [], []>} : vector<1x32xf32>, vector<32x32xf32>, vector<1x32xf32> -> vector<1x32xf32>
    %218 = arith.addf %216, %217 : vector<1x32xf32>
    %219 = math.tanh %218 : vector<1x32xf32>
    %c3_128 = arith.constant 3 : index
    %220 = arith.index_cast %c0_i32 : i32 to index
    %c0_129 = arith.constant 0 : index
    %221 = vector.load %arg27[%c3_128, %220, %c0_129] : memref<4x8x32xf32, #tpu.memory_space<vmem>>, vector<1x1x32xf32>
    %222 = vector.shape_cast %221 : vector<1x1x32xf32> to vector<1x32xf32>
    %cst_130 = arith.constant dense<0.000000e+00> : vector<1x32xf32>
    %223 = tpu.matmul %191, %189, %cst_130 {dimension_numbers = #tpu.dot_dimension_numbers<[1], [0], [0], [1], [0, 0, 1, 1], [], []>} : vector<1x32xf32>, vector<32x32xf32>, vector<1x32xf32> -> vector<1x32xf32>
    %224 = arith.addf %222, %223 : vector<1x32xf32>
    %225 = arith.negf %224 : vector<1x32xf32>
    %226 = math.exp %225 : vector<1x32xf32>
    %cst_131 = arith.constant 1.000000e+00 : f32
    %227 = vector.broadcast %cst_131 : f32 to vector<1x32xf32>
    %228 = arith.addf %227, %226 : vector<1x32xf32>
    %229 = arith.divf %227, %228 : vector<1x32xf32>
    %230 = arith.mulf %213, %193 : vector<1x32xf32>
    %231 = arith.mulf %203, %219 : vector<1x32xf32>
    %232 = arith.addf %230, %231 : vector<1x32xf32>
    %233 = math.tanh %232 : vector<1x32xf32>
    %234 = arith.mulf %229, %233 : vector<1x32xf32>
    %235 = arith.index_cast %c0_i32 : i32 to index
    %c0_132 = arith.constant 0 : index
    %236 = vector.load %arg28[%235, %c0_132] : memref<8x32xf32, #tpu.memory_space<vmem>>, vector<1x32xf32>
    tpu.vector_store %arg28[%235, %c0_132], %234 {strides = array<i32>} : memref<8x32xf32, #tpu.memory_space<vmem>>, vector<1x32xf32>,
    %c1_i32 = arith.constant 1 : i32
    %c0_133 = arith.constant 0 : index
    %237 = arith.index_cast %c1_i32 : i32 to index
    %c0_134 = arith.constant 0 : index
    %238 = vector.load %arg27[%c0_133, %237, %c0_134] : memref<4x8x32xf32, #tpu.memory_space<vmem>>, vector<1x1x32xf32>
    %239 = vector.shape_cast %238 : vector<1x1x32xf32> to vector<1x32xf32>
    %cst_135 = arith.constant dense<0.000000e+00> : vector<1x32xf32>
    %240 = tpu.matmul %234, %183, %cst_135 {dimension_numbers = #tpu.dot_dimension_numbers<[1], [0], [0], [1], [0, 0, 1, 1], [], []>} : vector<1x32xf32>, vector<32x32xf32>, vector<1x32xf32> -> vector<1x32xf32>
    %241 = arith.addf %239, %240 : vector<1x32xf32>
    %242 = arith.negf %241 : vector<1x32xf32>
    %243 = math.exp %242 : vector<1x32xf32>
    %cst_136 = arith.constant 1.000000e+00 : f32
    %244 = vector.broadcast %cst_136 : f32 to vector<1x32xf32>
    %245 = arith.addf %244, %243 : vector<1x32xf32>
    %246 = arith.divf %244, %245 : vector<1x32xf32>
    %c1_137 = arith.constant 1 : index
    %247 = arith.index_cast %c1_i32 : i32 to index
    %c0_138 = arith.constant 0 : index
    %248 = vector.load %arg27[%c1_137, %247, %c0_138] : memref<4x8x32xf32, #tpu.memory_space<vmem>>, vector<1x1x32xf32>
    %249 = vector.shape_cast %248 : vector<1x1x32xf32> to vector<1x32xf32>
    %cst_139 = arith.constant dense<0.000000e+00> : vector<1x32xf32>
    %250 = tpu.matmul %234, %185, %cst_139 {dimension_numbers = #tpu.dot_dimension_numbers<[1], [0], [0], [1], [0, 0, 1, 1], [], []>} : vector<1x32xf32>, vector<32x32xf32>, vector<1x32xf32> -> vector<1x32xf32>
    %251 = arith.addf %249, %250 : vector<1x32xf32>
    %252 = arith.negf %251 : vector<1x32xf32>
    %253 = math.exp %252 : vector<1x32xf32>
    %cst_140 = arith.constant 1.000000e+00 : f32
    %254 = vector.broadcast %cst_140 : f32 to vector<1x32xf32>
    %255 = arith.addf %254, %253 : vector<1x32xf32>
    %256 = arith.divf %254, %255 : vector<1x32xf32>
    %c2_141 = arith.constant 2 : index
    %257 = arith.index_cast %c1_i32 : i32 to index
    %c0_142 = arith.constant 0 : index
    %258 = vector.load %arg27[%c2_141, %257, %c0_142] : memref<4x8x32xf32, #tpu.memory_space<vmem>>, vector<1x1x32xf32>
    %259 = vector.shape_cast %258 : vector<1x1x32xf32> to vector<1x32xf32>
    %cst_143 = arith.constant dense<0.000000e+00> : vector<1x32xf32>
    %260 = tpu.matmul %234, %187, %cst_143 {dimension_numbers = #tpu.dot_dimension_numbers<[1], [0], [0], [1], [0, 0, 1, 1], [], []>} : vector<1x32xf32>, vector<32x32xf32>, vector<1x32xf32> -> vector<1x32xf32>
    %261 = arith.addf %259, %260 : vector<1x32xf32>
    %262 = math.tanh %261 : vector<1x32xf32>
    %c3_144 = arith.constant 3 : index
    %263 = arith.index_cast %c1_i32 : i32 to index
    %c0_145 = arith.constant 0 : index
    %264 = vector.load %arg27[%c3_144, %263, %c0_145] : memref<4x8x32xf32, #tpu.memory_space<vmem>>, vector<1x1x32xf32>
    %265 = vector.shape_cast %264 : vector<1x1x32xf32> to vector<1x32xf32>
    %cst_146 = arith.constant dense<0.000000e+00> : vector<1x32xf32>
    %266 = tpu.matmul %234, %189, %cst_146 {dimension_numbers = #tpu.dot_dimension_numbers<[1], [0], [0], [1], [0, 0, 1, 1], [], []>} : vector<1x32xf32>, vector<32x32xf32>, vector<1x32xf32> -> vector<1x32xf32>
    %267 = arith.addf %265, %266 : vector<1x32xf32>
    %268 = arith.negf %267 : vector<1x32xf32>
    %269 = math.exp %268 : vector<1x32xf32>
    %cst_147 = arith.constant 1.000000e+00 : f32
    %270 = vector.broadcast %cst_147 : f32 to vector<1x32xf32>
    %271 = arith.addf %270, %269 : vector<1x32xf32>
    %272 = arith.divf %270, %271 : vector<1x32xf32>
    %273 = arith.mulf %256, %232 : vector<1x32xf32>
    %274 = arith.mulf %246, %262 : vector<1x32xf32>
    %275 = arith.addf %273, %274 : vector<1x32xf32>
    %276 = math.tanh %275 : vector<1x32xf32>
    %277 = arith.mulf %272, %276 : vector<1x32xf32>
    %278 = arith.index_cast %c1_i32 : i32 to index
    %c0_148 = arith.constant 0 : index
    %279 = vector.load %arg28[%278, %c0_148] : memref<8x32xf32, #tpu.memory_space<vmem>>, vector<1x32xf32>
    tpu.vector_store %arg28[%278, %c0_148], %277 {strides = array<i32>} : memref<8x32xf32, #tpu.memory_space<vmem>>, vector<1x32xf32>,
    %c2_i32 = arith.constant 2 : i32
    %c0_149 = arith.constant 0 : index
    %280 = arith.index_cast %c2_i32 : i32 to index
    %c0_150 = arith.constant 0 : index
    %281 = vector.load %arg27[%c0_149, %280, %c0_150] : memref<4x8x32xf32, #tpu.memory_space<vmem>>, vector<1x1x32xf32>
    %282 = vector.shape_cast %281 : vector<1x1x32xf32> to vector<1x32xf32>
    %cst_151 = arith.constant dense<0.000000e+00> : vector<1x32xf32>
    %283 = tpu.matmul %277, %183, %cst_151 {dimension_numbers = #tpu.dot_dimension_numbers<[1], [0], [0], [1], [0, 0, 1, 1], [], []>} : vector<1x32xf32>, vector<32x32xf32>, vector<1x32xf32> -> vector<1x32xf32>
    %284 = arith.addf %282, %283 : vector<1x32xf32>
    %285 = arith.negf %284 : vector<1x32xf32>
    %286 = math.exp %285 : vector<1x32xf32>
    %cst_152 = arith.constant 1.000000e+00 : f32
    %287 = vector.broadcast %cst_152 : f32 to vector<1x32xf32>
    %288 = arith.addf %287, %286 : vector<1x32xf32>
    %289 = arith.divf %287, %288 : vector<1x32xf32>
    %c1_153 = arith.constant 1 : index
    %290 = arith.index_cast %c2_i32 : i32 to index
    %c0_154 = arith.constant 0 : index
    %291 = vector.load %arg27[%c1_153, %290, %c0_154] : memref<4x8x32xf32, #tpu.memory_space<vmem>>, vector<1x1x32xf32>
    %292 = vector.shape_cast %291 : vector<1x1x32xf32> to vector<1x32xf32>
    %cst_155 = arith.constant dense<0.000000e+00> : vector<1x32xf32>
    %293 = tpu.matmul %277, %185, %cst_155 {dimension_numbers = #tpu.dot_dimension_numbers<[1], [0], [0], [1], [0, 0, 1, 1], [], []>} : vector<1x32xf32>, vector<32x32xf32>, vector<1x32xf32> -> vector<1x32xf32>
    %294 = arith.addf %292, %293 : vector<1x32xf32>
    %295 = arith.negf %294 : vector<1x32xf32>
    %296 = math.exp %295 : vector<1x32xf32>
    %cst_156 = arith.constant 1.000000e+00 : f32
    %297 = vector.broadcast %cst_156 : f32 to vector<1x32xf32>
    %298 = arith.addf %297, %296 : vector<1x32xf32>
    %299 = arith.divf %297, %298 : vector<1x32xf32>
    %c2_157 = arith.constant 2 : index
    %300 = arith.index_cast %c2_i32 : i32 to index
    %c0_158 = arith.constant 0 : index
    %301 = vector.load %arg27[%c2_157, %300, %c0_158] : memref<4x8x32xf32, #tpu.memory_space<vmem>>, vector<1x1x32xf32>
    %302 = vector.shape_cast %301 : vector<1x1x32xf32> to vector<1x32xf32>
    %cst_159 = arith.constant dense<0.000000e+00> : vector<1x32xf32>
    %303 = tpu.matmul %277, %187, %cst_159 {dimension_numbers = #tpu.dot_dimension_numbers<[1], [0], [0], [1], [0, 0, 1, 1], [], []>} : vector<1x32xf32>, vector<32x32xf32>, vector<1x32xf32> -> vector<1x32xf32>
    %304 = arith.addf %302, %303 : vector<1x32xf32>
    %305 = math.tanh %304 : vector<1x32xf32>
    %c3_160 = arith.constant 3 : index
    %306 = arith.index_cast %c2_i32 : i32 to index
    %c0_161 = arith.constant 0 : index
    %307 = vector.load %arg27[%c3_160, %306, %c0_161] : memref<4x8x32xf32, #tpu.memory_space<vmem>>, vector<1x1x32xf32>
    %308 = vector.shape_cast %307 : vector<1x1x32xf32> to vector<1x32xf32>
    %cst_162 = arith.constant dense<0.000000e+00> : vector<1x32xf32>
    %309 = tpu.matmul %277, %189, %cst_162 {dimension_numbers = #tpu.dot_dimension_numbers<[1], [0], [0], [1], [0, 0, 1, 1], [], []>} : vector<1x32xf32>, vector<32x32xf32>, vector<1x32xf32> -> vector<1x32xf32>
    %310 = arith.addf %308, %309 : vector<1x32xf32>
    %311 = arith.negf %310 : vector<1x32xf32>
    %312 = math.exp %311 : vector<1x32xf32>
    %cst_163 = arith.constant 1.000000e+00 : f32
    %313 = vector.broadcast %cst_163 : f32 to vector<1x32xf32>
    %314 = arith.addf %313, %312 : vector<1x32xf32>
    %315 = arith.divf %313, %314 : vector<1x32xf32>
    %316 = arith.mulf %299, %275 : vector<1x32xf32>
    %317 = arith.mulf %289, %305 : vector<1x32xf32>
    %318 = arith.addf %316, %317 : vector<1x32xf32>
    %319 = math.tanh %318 : vector<1x32xf32>
    %320 = arith.mulf %315, %319 : vector<1x32xf32>
    %321 = arith.index_cast %c2_i32 : i32 to index
    %c0_164 = arith.constant 0 : index
    %322 = vector.load %arg28[%321, %c0_164] : memref<8x32xf32, #tpu.memory_space<vmem>>, vector<1x32xf32>
    tpu.vector_store %arg28[%321, %c0_164], %320 {strides = array<i32>} : memref<8x32xf32, #tpu.memory_space<vmem>>, vector<1x32xf32>,
    %c3_i32 = arith.constant 3 : i32
    %c0_165 = arith.constant 0 : index
    %323 = arith.index_cast %c3_i32 : i32 to index
    %c0_166 = arith.constant 0 : index
    %324 = vector.load %arg27[%c0_165, %323, %c0_166] : memref<4x8x32xf32, #tpu.memory_space<vmem>>, vector<1x1x32xf32>
    %325 = vector.shape_cast %324 : vector<1x1x32xf32> to vector<1x32xf32>
    %cst_167 = arith.constant dense<0.000000e+00> : vector<1x32xf32>
    %326 = tpu.matmul %320, %183, %cst_167 {dimension_numbers = #tpu.dot_dimension_numbers<[1], [0], [0], [1], [0, 0, 1, 1], [], []>} : vector<1x32xf32>, vector<32x32xf32>, vector<1x32xf32> -> vector<1x32xf32>
    %327 = arith.addf %325, %326 : vector<1x32xf32>
    %328 = arith.negf %327 : vector<1x32xf32>
    %329 = math.exp %328 : vector<1x32xf32>
    %cst_168 = arith.constant 1.000000e+00 : f32
    %330 = vector.broadcast %cst_168 : f32 to vector<1x32xf32>
    %331 = arith.addf %330, %329 : vector<1x32xf32>
    %332 = arith.divf %330, %331 : vector<1x32xf32>
    %c1_169 = arith.constant 1 : index
    %333 = arith.index_cast %c3_i32 : i32 to index
    %c0_170 = arith.constant 0 : index
    %334 = vector.load %arg27[%c1_169, %333, %c0_170] : memref<4x8x32xf32, #tpu.memory_space<vmem>>, vector<1x1x32xf32>
    %335 = vector.shape_cast %334 : vector<1x1x32xf32> to vector<1x32xf32>
    %cst_171 = arith.constant dense<0.000000e+00> : vector<1x32xf32>
    %336 = tpu.matmul %320, %185, %cst_171 {dimension_numbers = #tpu.dot_dimension_numbers<[1], [0], [0], [1], [0, 0, 1, 1], [], []>} : vector<1x32xf32>, vector<32x32xf32>, vector<1x32xf32> -> vector<1x32xf32>
    %337 = arith.addf %335, %336 : vector<1x32xf32>
    %338 = arith.negf %337 : vector<1x32xf32>
    %339 = math.exp %338 : vector<1x32xf32>
    %cst_172 = arith.constant 1.000000e+00 : f32
    %340 = vector.broadcast %cst_172 : f32 to vector<1x32xf32>
    %341 = arith.addf %340, %339 : vector<1x32xf32>
    %342 = arith.divf %340, %341 : vector<1x32xf32>
    %c2_173 = arith.constant 2 : index
    %343 = arith.index_cast %c3_i32 : i32 to index
    %c0_174 = arith.constant 0 : index
    %344 = vector.load %arg27[%c2_173, %343, %c0_174] : memref<4x8x32xf32, #tpu.memory_space<vmem>>, vector<1x1x32xf32>
    %345 = vector.shape_cast %344 : vector<1x1x32xf32> to vector<1x32xf32>
    %cst_175 = arith.constant dense<0.000000e+00> : vector<1x32xf32>
    %346 = tpu.matmul %320, %187, %cst_175 {dimension_numbers = #tpu.dot_dimension_numbers<[1], [0], [0], [1], [0, 0, 1, 1], [], []>} : vector<1x32xf32>, vector<32x32xf32>, vector<1x32xf32> -> vector<1x32xf32>
    %347 = arith.addf %345, %346 : vector<1x32xf32>
    %348 = math.tanh %347 : vector<1x32xf32>
    %c3_176 = arith.constant 3 : index
    %349 = arith.index_cast %c3_i32 : i32 to index
    %c0_177 = arith.constant 0 : index
    %350 = vector.load %arg27[%c3_176, %349, %c0_177] : memref<4x8x32xf32, #tpu.memory_space<vmem>>, vector<1x1x32xf32>
    %351 = vector.shape_cast %350 : vector<1x1x32xf32> to vector<1x32xf32>
    %cst_178 = arith.constant dense<0.000000e+00> : vector<1x32xf32>
    %352 = tpu.matmul %320, %189, %cst_178 {dimension_numbers = #tpu.dot_dimension_numbers<[1], [0], [0], [1], [0, 0, 1, 1], [], []>} : vector<1x32xf32>, vector<32x32xf32>, vector<1x32xf32> -> vector<1x32xf32>
    %353 = arith.addf %351, %352 : vector<1x32xf32>
    %354 = arith.negf %353 : vector<1x32xf32>
    %355 = math.exp %354 : vector<1x32xf32>
    %cst_179 = arith.constant 1.000000e+00 : f32
    %356 = vector.broadcast %cst_179 : f32 to vector<1x32xf32>
    %357 = arith.addf %356, %355 : vector<1x32xf32>
    %358 = arith.divf %356, %357 : vector<1x32xf32>
    %359 = arith.mulf %342, %318 : vector<1x32xf32>
    %360 = arith.mulf %332, %348 : vector<1x32xf32>
    %361 = arith.addf %359, %360 : vector<1x32xf32>
    %362 = math.tanh %361 : vector<1x32xf32>
    %363 = arith.mulf %358, %362 : vector<1x32xf32>
    %364 = arith.index_cast %c3_i32 : i32 to index
    %c0_180 = arith.constant 0 : index
    %365 = vector.load %arg28[%364, %c0_180] : memref<8x32xf32, #tpu.memory_space<vmem>>, vector<1x32xf32>
    tpu.vector_store %arg28[%364, %c0_180], %363 {strides = array<i32>} : memref<8x32xf32, #tpu.memory_space<vmem>>, vector<1x32xf32>,
    %c4_i32 = arith.constant 4 : i32
    %c0_181 = arith.constant 0 : index
    %366 = arith.index_cast %c4_i32 : i32 to index
    %c0_182 = arith.constant 0 : index
    %367 = vector.load %arg27[%c0_181, %366, %c0_182] : memref<4x8x32xf32, #tpu.memory_space<vmem>>, vector<1x1x32xf32>
    %368 = vector.shape_cast %367 : vector<1x1x32xf32> to vector<1x32xf32>
    %cst_183 = arith.constant dense<0.000000e+00> : vector<1x32xf32>
    %369 = tpu.matmul %363, %183, %cst_183 {dimension_numbers = #tpu.dot_dimension_numbers<[1], [0], [0], [1], [0, 0, 1, 1], [], []>} : vector<1x32xf32>, vector<32x32xf32>, vector<1x32xf32> -> vector<1x32xf32>
    %370 = arith.addf %368, %369 : vector<1x32xf32>
    %371 = arith.negf %370 : vector<1x32xf32>
    %372 = math.exp %371 : vector<1x32xf32>
    %cst_184 = arith.constant 1.000000e+00 : f32
    %373 = vector.broadcast %cst_184 : f32 to vector<1x32xf32>
    %374 = arith.addf %373, %372 : vector<1x32xf32>
    %375 = arith.divf %373, %374 : vector<1x32xf32>
    %c1_185 = arith.constant 1 : index
    %376 = arith.index_cast %c4_i32 : i32 to index
    %c0_186 = arith.constant 0 : index
    %377 = vector.load %arg27[%c1_185, %376, %c0_186] : memref<4x8x32xf32, #tpu.memory_space<vmem>>, vector<1x1x32xf32>
    %378 = vector.shape_cast %377 : vector<1x1x32xf32> to vector<1x32xf32>
    %cst_187 = arith.constant dense<0.000000e+00> : vector<1x32xf32>
    %379 = tpu.matmul %363, %185, %cst_187 {dimension_numbers = #tpu.dot_dimension_numbers<[1], [0], [0], [1], [0, 0, 1, 1], [], []>} : vector<1x32xf32>, vector<32x32xf32>, vector<1x32xf32> -> vector<1x32xf32>
    %380 = arith.addf %378, %379 : vector<1x32xf32>
    %381 = arith.negf %380 : vector<1x32xf32>
    %382 = math.exp %381 : vector<1x32xf32>
    %cst_188 = arith.constant 1.000000e+00 : f32
    %383 = vector.broadcast %cst_188 : f32 to vector<1x32xf32>
    %384 = arith.addf %383, %382 : vector<1x32xf32>
    %385 = arith.divf %383, %384 : vector<1x32xf32>
    %c2_189 = arith.constant 2 : index
    %386 = arith.index_cast %c4_i32 : i32 to index
    %c0_190 = arith.constant 0 : index
    %387 = vector.load %arg27[%c2_189, %386, %c0_190] : memref<4x8x32xf32, #tpu.memory_space<vmem>>, vector<1x1x32xf32>
    %388 = vector.shape_cast %387 : vector<1x1x32xf32> to vector<1x32xf32>
    %cst_191 = arith.constant dense<0.000000e+00> : vector<1x32xf32>
    %389 = tpu.matmul %363, %187, %cst_191 {dimension_numbers = #tpu.dot_dimension_numbers<[1], [0], [0], [1], [0, 0, 1, 1], [], []>} : vector<1x32xf32>, vector<32x32xf32>, vector<1x32xf32> -> vector<1x32xf32>
    %390 = arith.addf %388, %389 : vector<1x32xf32>
    %391 = math.tanh %390 : vector<1x32xf32>
    %c3_192 = arith.constant 3 : index
    %392 = arith.index_cast %c4_i32 : i32 to index
    %c0_193 = arith.constant 0 : index
    %393 = vector.load %arg27[%c3_192, %392, %c0_193] : memref<4x8x32xf32, #tpu.memory_space<vmem>>, vector<1x1x32xf32>
    %394 = vector.shape_cast %393 : vector<1x1x32xf32> to vector<1x32xf32>
    %cst_194 = arith.constant dense<0.000000e+00> : vector<1x32xf32>
    %395 = tpu.matmul %363, %189, %cst_194 {dimension_numbers = #tpu.dot_dimension_numbers<[1], [0], [0], [1], [0, 0, 1, 1], [], []>} : vector<1x32xf32>, vector<32x32xf32>, vector<1x32xf32> -> vector<1x32xf32>
    %396 = arith.addf %394, %395 : vector<1x32xf32>
    %397 = arith.negf %396 : vector<1x32xf32>
    %398 = math.exp %397 : vector<1x32xf32>
    %cst_195 = arith.constant 1.000000e+00 : f32
    %399 = vector.broadcast %cst_195 : f32 to vector<1x32xf32>
    %400 = arith.addf %399, %398 : vector<1x32xf32>
    %401 = arith.divf %399, %400 : vector<1x32xf32>
    %402 = arith.mulf %385, %361 : vector<1x32xf32>
    %403 = arith.mulf %375, %391 : vector<1x32xf32>
    %404 = arith.addf %402, %403 : vector<1x32xf32>
    %405 = math.tanh %404 : vector<1x32xf32>
    %406 = arith.mulf %401, %405 : vector<1x32xf32>
    %407 = arith.index_cast %c4_i32 : i32 to index
    %c0_196 = arith.constant 0 : index
    %408 = vector.load %arg28[%407, %c0_196] : memref<8x32xf32, #tpu.memory_space<vmem>>, vector<1x32xf32>
    tpu.vector_store %arg28[%407, %c0_196], %406 {strides = array<i32>} : memref<8x32xf32, #tpu.memory_space<vmem>>, vector<1x32xf32>,
    %c5_i32 = arith.constant 5 : i32
    %c0_197 = arith.constant 0 : index
    %409 = arith.index_cast %c5_i32 : i32 to index
    %c0_198 = arith.constant 0 : index
    %410 = vector.load %arg27[%c0_197, %409, %c0_198] : memref<4x8x32xf32, #tpu.memory_space<vmem>>, vector<1x1x32xf32>
    %411 = vector.shape_cast %410 : vector<1x1x32xf32> to vector<1x32xf32>
    %cst_199 = arith.constant dense<0.000000e+00> : vector<1x32xf32>
    %412 = tpu.matmul %406, %183, %cst_199 {dimension_numbers = #tpu.dot_dimension_numbers<[1], [0], [0], [1], [0, 0, 1, 1], [], []>} : vector<1x32xf32>, vector<32x32xf32>, vector<1x32xf32> -> vector<1x32xf32>
    %413 = arith.addf %411, %412 : vector<1x32xf32>
    %414 = arith.negf %413 : vector<1x32xf32>
    %415 = math.exp %414 : vector<1x32xf32>
    %cst_200 = arith.constant 1.000000e+00 : f32
    %416 = vector.broadcast %cst_200 : f32 to vector<1x32xf32>
    %417 = arith.addf %416, %415 : vector<1x32xf32>
    %418 = arith.divf %416, %417 : vector<1x32xf32>
    %c1_201 = arith.constant 1 : index
    %419 = arith.index_cast %c5_i32 : i32 to index
    %c0_202 = arith.constant 0 : index
    %420 = vector.load %arg27[%c1_201, %419, %c0_202] : memref<4x8x32xf32, #tpu.memory_space<vmem>>, vector<1x1x32xf32>
    %421 = vector.shape_cast %420 : vector<1x1x32xf32> to vector<1x32xf32>
    %cst_203 = arith.constant dense<0.000000e+00> : vector<1x32xf32>
    %422 = tpu.matmul %406, %185, %cst_203 {dimension_numbers = #tpu.dot_dimension_numbers<[1], [0], [0], [1], [0, 0, 1, 1], [], []>} : vector<1x32xf32>, vector<32x32xf32>, vector<1x32xf32> -> vector<1x32xf32>
    %423 = arith.addf %421, %422 : vector<1x32xf32>
    %424 = arith.negf %423 : vector<1x32xf32>
    %425 = math.exp %424 : vector<1x32xf32>
    %cst_204 = arith.constant 1.000000e+00 : f32
    %426 = vector.broadcast %cst_204 : f32 to vector<1x32xf32>
    %427 = arith.addf %426, %425 : vector<1x32xf32>
    %428 = arith.divf %426, %427 : vector<1x32xf32>
    %c2_205 = arith.constant 2 : index
    %429 = arith.index_cast %c5_i32 : i32 to index
    %c0_206 = arith.constant 0 : index
    %430 = vector.load %arg27[%c2_205, %429, %c0_206] : memref<4x8x32xf32, #tpu.memory_space<vmem>>, vector<1x1x32xf32>
    %431 = vector.shape_cast %430 : vector<1x1x32xf32> to vector<1x32xf32>
    %cst_207 = arith.constant dense<0.000000e+00> : vector<1x32xf32>
    %432 = tpu.matmul %406, %187, %cst_207 {dimension_numbers = #tpu.dot_dimension_numbers<[1], [0], [0], [1], [0, 0, 1, 1], [], []>} : vector<1x32xf32>, vector<32x32xf32>, vector<1x32xf32> -> vector<1x32xf32>
    %433 = arith.addf %431, %432 : vector<1x32xf32>
    %434 = math.tanh %433 : vector<1x32xf32>
    %c3_208 = arith.constant 3 : index
    %435 = arith.index_cast %c5_i32 : i32 to index
    %c0_209 = arith.constant 0 : index
    %436 = vector.load %arg27[%c3_208, %435, %c0_209] : memref<4x8x32xf32, #tpu.memory_space<vmem>>, vector<1x1x32xf32>
    %437 = vector.shape_cast %436 : vector<1x1x32xf32> to vector<1x32xf32>
    %cst_210 = arith.constant dense<0.000000e+00> : vector<1x32xf32>
    %438 = tpu.matmul %406, %189, %cst_210 {dimension_numbers = #tpu.dot_dimension_numbers<[1], [0], [0], [1], [0, 0, 1, 1], [], []>} : vector<1x32xf32>, vector<32x32xf32>, vector<1x32xf32> -> vector<1x32xf32>
    %439 = arith.addf %437, %438 : vector<1x32xf32>
    %440 = arith.negf %439 : vector<1x32xf32>
    %441 = math.exp %440 : vector<1x32xf32>
    %cst_211 = arith.constant 1.000000e+00 : f32
    %442 = vector.broadcast %cst_211 : f32 to vector<1x32xf32>
    %443 = arith.addf %442, %441 : vector<1x32xf32>
    %444 = arith.divf %442, %443 : vector<1x32xf32>
    %445 = arith.mulf %428, %404 : vector<1x32xf32>
    %446 = arith.mulf %418, %434 : vector<1x32xf32>
    %447 = arith.addf %445, %446 : vector<1x32xf32>
    %448 = math.tanh %447 : vector<1x32xf32>
    %449 = arith.mulf %444, %448 : vector<1x32xf32>
    %450 = arith.index_cast %c5_i32 : i32 to index
    %c0_212 = arith.constant 0 : index
    %451 = vector.load %arg28[%450, %c0_212] : memref<8x32xf32, #tpu.memory_space<vmem>>, vector<1x32xf32>
    tpu.vector_store %arg28[%450, %c0_212], %449 {strides = array<i32>} : memref<8x32xf32, #tpu.memory_space<vmem>>, vector<1x32xf32>,
    %c6_i32 = arith.constant 6 : i32
    %c0_213 = arith.constant 0 : index
    %452 = arith.index_cast %c6_i32 : i32 to index
    %c0_214 = arith.constant 0 : index
    %453 = vector.load %arg27[%c0_213, %452, %c0_214] : memref<4x8x32xf32, #tpu.memory_space<vmem>>, vector<1x1x32xf32>
    %454 = vector.shape_cast %453 : vector<1x1x32xf32> to vector<1x32xf32>
    %cst_215 = arith.constant dense<0.000000e+00> : vector<1x32xf32>
    %455 = tpu.matmul %449, %183, %cst_215 {dimension_numbers = #tpu.dot_dimension_numbers<[1], [0], [0], [1], [0, 0, 1, 1], [], []>} : vector<1x32xf32>, vector<32x32xf32>, vector<1x32xf32> -> vector<1x32xf32>
    %456 = arith.addf %454, %455 : vector<1x32xf32>
    %457 = arith.negf %456 : vector<1x32xf32>
    %458 = math.exp %457 : vector<1x32xf32>
    %cst_216 = arith.constant 1.000000e+00 : f32
    %459 = vector.broadcast %cst_216 : f32 to vector<1x32xf32>
    %460 = arith.addf %459, %458 : vector<1x32xf32>
    %461 = arith.divf %459, %460 : vector<1x32xf32>
    %c1_217 = arith.constant 1 : index
    %462 = arith.index_cast %c6_i32 : i32 to index
    %c0_218 = arith.constant 0 : index
    %463 = vector.load %arg27[%c1_217, %462, %c0_218] : memref<4x8x32xf32, #tpu.memory_space<vmem>>, vector<1x1x32xf32>
    %464 = vector.shape_cast %463 : vector<1x1x32xf32> to vector<1x32xf32>
    %cst_219 = arith.constant dense<0.000000e+00> : vector<1x32xf32>
    %465 = tpu.matmul %449, %185, %cst_219 {dimension_numbers = #tpu.dot_dimension_numbers<[1], [0], [0], [1], [0, 0, 1, 1], [], []>} : vector<1x32xf32>, vector<32x32xf32>, vector<1x32xf32> -> vector<1x32xf32>
    %466 = arith.addf %464, %465 : vector<1x32xf32>
    %467 = arith.negf %466 : vector<1x32xf32>
    %468 = math.exp %467 : vector<1x32xf32>
    %cst_220 = arith.constant 1.000000e+00 : f32
    %469 = vector.broadcast %cst_220 : f32 to vector<1x32xf32>
    %470 = arith.addf %469, %468 : vector<1x32xf32>
    %471 = arith.divf %469, %470 : vector<1x32xf32>
    %c2_221 = arith.constant 2 : index
    %472 = arith.index_cast %c6_i32 : i32 to index
    %c0_222 = arith.constant 0 : index
    %473 = vector.load %arg27[%c2_221, %472, %c0_222] : memref<4x8x32xf32, #tpu.memory_space<vmem>>, vector<1x1x32xf32>
    %474 = vector.shape_cast %473 : vector<1x1x32xf32> to vector<1x32xf32>
    %cst_223 = arith.constant dense<0.000000e+00> : vector<1x32xf32>
    %475 = tpu.matmul %449, %187, %cst_223 {dimension_numbers = #tpu.dot_dimension_numbers<[1], [0], [0], [1], [0, 0, 1, 1], [], []>} : vector<1x32xf32>, vector<32x32xf32>, vector<1x32xf32> -> vector<1x32xf32>
    %476 = arith.addf %474, %475 : vector<1x32xf32>
    %477 = math.tanh %476 : vector<1x32xf32>
    %c3_224 = arith.constant 3 : index
    %478 = arith.index_cast %c6_i32 : i32 to index
    %c0_225 = arith.constant 0 : index
    %479 = vector.load %arg27[%c3_224, %478, %c0_225] : memref<4x8x32xf32, #tpu.memory_space<vmem>>, vector<1x1x32xf32>
    %480 = vector.shape_cast %479 : vector<1x1x32xf32> to vector<1x32xf32>
    %cst_226 = arith.constant dense<0.000000e+00> : vector<1x32xf32>
    %481 = tpu.matmul %449, %189, %cst_226 {dimension_numbers = #tpu.dot_dimension_numbers<[1], [0], [0], [1], [0, 0, 1, 1], [], []>} : vector<1x32xf32>, vector<32x32xf32>, vector<1x32xf32> -> vector<1x32xf32>
    %482 = arith.addf %480, %481 : vector<1x32xf32>
    %483 = arith.negf %482 : vector<1x32xf32>
    %484 = math.exp %483 : vector<1x32xf32>
    %cst_227 = arith.constant 1.000000e+00 : f32
    %485 = vector.broadcast %cst_227 : f32 to vector<1x32xf32>
    %486 = arith.addf %485, %484 : vector<1x32xf32>
    %487 = arith.divf %485, %486 : vector<1x32xf32>
    %488 = arith.mulf %471, %447 : vector<1x32xf32>
    %489 = arith.mulf %461, %477 : vector<1x32xf32>
    %490 = arith.addf %488, %489 : vector<1x32xf32>
    %491 = math.tanh %490 : vector<1x32xf32>
    %492 = arith.mulf %487, %491 : vector<1x32xf32>
    %493 = arith.index_cast %c6_i32 : i32 to index
    %c0_228 = arith.constant 0 : index
    %494 = vector.load %arg28[%493, %c0_228] : memref<8x32xf32, #tpu.memory_space<vmem>>, vector<1x32xf32>
    tpu.vector_store %arg28[%493, %c0_228], %492 {strides = array<i32>} : memref<8x32xf32, #tpu.memory_space<vmem>>, vector<1x32xf32>,
    %c7_i32 = arith.constant 7 : i32
    %c0_229 = arith.constant 0 : index
    %495 = arith.index_cast %c7_i32 : i32 to index
    %c0_230 = arith.constant 0 : index
    %496 = vector.load %arg27[%c0_229, %495, %c0_230] : memref<4x8x32xf32, #tpu.memory_space<vmem>>, vector<1x1x32xf32>
    %497 = vector.shape_cast %496 : vector<1x1x32xf32> to vector<1x32xf32>
    %cst_231 = arith.constant dense<0.000000e+00> : vector<1x32xf32>
    %498 = tpu.matmul %492, %183, %cst_231 {dimension_numbers = #tpu.dot_dimension_numbers<[1], [0], [0], [1], [0, 0, 1, 1], [], []>} : vector<1x32xf32>, vector<32x32xf32>, vector<1x32xf32> -> vector<1x32xf32>
    %499 = arith.addf %497, %498 : vector<1x32xf32>
    %500 = arith.negf %499 : vector<1x32xf32>
    %501 = math.exp %500 : vector<1x32xf32>
    %cst_232 = arith.constant 1.000000e+00 : f32
    %502 = vector.broadcast %cst_232 : f32 to vector<1x32xf32>
    %503 = arith.addf %502, %501 : vector<1x32xf32>
    %504 = arith.divf %502, %503 : vector<1x32xf32>
    %c1_233 = arith.constant 1 : index
    %505 = arith.index_cast %c7_i32 : i32 to index
    %c0_234 = arith.constant 0 : index
    %506 = vector.load %arg27[%c1_233, %505, %c0_234] : memref<4x8x32xf32, #tpu.memory_space<vmem>>, vector<1x1x32xf32>
    %507 = vector.shape_cast %506 : vector<1x1x32xf32> to vector<1x32xf32>
    %cst_235 = arith.constant dense<0.000000e+00> : vector<1x32xf32>
    %508 = tpu.matmul %492, %185, %cst_235 {dimension_numbers = #tpu.dot_dimension_numbers<[1], [0], [0], [1], [0, 0, 1, 1], [], []>} : vector<1x32xf32>, vector<32x32xf32>, vector<1x32xf32> -> vector<1x32xf32>
    %509 = arith.addf %507, %508 : vector<1x32xf32>
    %510 = arith.negf %509 : vector<1x32xf32>
    %511 = math.exp %510 : vector<1x32xf32>
    %cst_236 = arith.constant 1.000000e+00 : f32
    %512 = vector.broadcast %cst_236 : f32 to vector<1x32xf32>
    %513 = arith.addf %512, %511 : vector<1x32xf32>
    %514 = arith.divf %512, %513 : vector<1x32xf32>
    %c2_237 = arith.constant 2 : index
    %515 = arith.index_cast %c7_i32 : i32 to index
    %c0_238 = arith.constant 0 : index
    %516 = vector.load %arg27[%c2_237, %515, %c0_238] : memref<4x8x32xf32, #tpu.memory_space<vmem>>, vector<1x1x32xf32>
    %517 = vector.shape_cast %516 : vector<1x1x32xf32> to vector<1x32xf32>
    %cst_239 = arith.constant dense<0.000000e+00> : vector<1x32xf32>
    %518 = tpu.matmul %492, %187, %cst_239 {dimension_numbers = #tpu.dot_dimension_numbers<[1], [0], [0], [1], [0, 0, 1, 1], [], []>} : vector<1x32xf32>, vector<32x32xf32>, vector<1x32xf32> -> vector<1x32xf32>
    %519 = arith.addf %517, %518 : vector<1x32xf32>
    %520 = math.tanh %519 : vector<1x32xf32>
    %c3_240 = arith.constant 3 : index
    %521 = arith.index_cast %c7_i32 : i32 to index
    %c0_241 = arith.constant 0 : index
    %522 = vector.load %arg27[%c3_240, %521, %c0_241] : memref<4x8x32xf32, #tpu.memory_space<vmem>>, vector<1x1x32xf32>
    %523 = vector.shape_cast %522 : vector<1x1x32xf32> to vector<1x32xf32>
    %cst_242 = arith.constant dense<0.000000e+00> : vector<1x32xf32>
    %524 = tpu.matmul %492, %189, %cst_242 {dimension_numbers = #tpu.dot_dimension_numbers<[1], [0], [0], [1], [0, 0, 1, 1], [], []>} : vector<1x32xf32>, vector<32x32xf32>, vector<1x32xf32> -> vector<1x32xf32>
    %525 = arith.addf %523, %524 : vector<1x32xf32>
    %526 = arith.negf %525 : vector<1x32xf32>
    %527 = math.exp %526 : vector<1x32xf32>
    %cst_243 = arith.constant 1.000000e+00 : f32
    %528 = vector.broadcast %cst_243 : f32 to vector<1x32xf32>
    %529 = arith.addf %528, %527 : vector<1x32xf32>
    %530 = arith.divf %528, %529 : vector<1x32xf32>
    %531 = arith.mulf %514, %490 : vector<1x32xf32>
    %532 = arith.mulf %504, %520 : vector<1x32xf32>
    %533 = arith.addf %531, %532 : vector<1x32xf32>
    %534 = math.tanh %533 : vector<1x32xf32>
    %535 = arith.mulf %530, %534 : vector<1x32xf32>
    %536 = arith.index_cast %c7_i32 : i32 to index
    %c0_244 = arith.constant 0 : index
    %537 = vector.load %arg28[%536, %c0_244] : memref<8x32xf32, #tpu.memory_space<vmem>>, vector<1x32xf32>
    tpu.vector_store %arg28[%536, %c0_244], %535 {strides = array<i32>} : memref<8x32xf32, #tpu.memory_space<vmem>>, vector<1x32xf32>,
    %c8_i32 = arith.constant 8 : i32
    %c0_245 = arith.constant 0 : index
    %c0_246 = arith.constant 0 : index
    %c0_247 = arith.constant 0 : index
    %538 = vector.load %arg25[%c0_245, %c0_246, %c0_247] : memref<1x1x32xf32, #tpu.memory_space<vmem>>, vector<1x1x32xf32>
    %539 = vector.shape_cast %538 : vector<1x1x32xf32> to vector<1x32xf32>
    %540 = vector.shape_cast %535 : vector<1x32xf32> to vector<1x1x32xf32>
    tpu.vector_store %arg25[%c0_245, %c0_246, %c0_247], %540 {strides = array<i32>} : memref<1x1x32xf32, #tpu.memory_space<vmem>>, vector<1x1x32xf32>,
    %c0_248 = arith.constant 0 : index
    %c0_249 = arith.constant 0 : index
    %c0_250 = arith.constant 0 : index
    %541 = vector.load %arg26[%c0_248, %c0_249, %c0_250] : memref<1x1x32xf32, #tpu.memory_space<vmem>>, vector<1x1x32xf32>
    %542 = vector.shape_cast %541 : vector<1x1x32xf32> to vector<1x32xf32>
    %543 = vector.shape_cast %533 : vector<1x32xf32> to vector<1x1x32xf32>
    tpu.vector_store %arg26[%c0_248, %c0_249, %c0_250], %543 {strides = array<i32>} : memref<1x1x32xf32, #tpu.memory_space<vmem>>, vector<1x1x32xf32>,
    %c0_251 = arith.constant 0 : index
    %c0_252 = arith.constant 0 : index
    %544 = vector.load %arg28[%c0_251, %c0_252] : memref<8x32xf32, #tpu.memory_space<vmem>>, vector<8x32xf32>
    %545 = arith.addf %544, %117 : vector<8x32xf32>
    %c0_253 = arith.constant 0 : index
    %c0_254 = arith.constant 0 : index
    %546 = vector.load %arg20[%c0_253, %c0_254] : memref<32x64xf32, #tpu.memory_space<vmem>>, vector<32x64xf32>
    %cst_255 = arith.constant dense<0.000000e+00> : vector<8x64xf32>
    %547 = tpu.matmul %545, %546, %cst_255 {dimension_numbers = #tpu.dot_dimension_numbers<[1], [0], [0], [1], [0, 0, 1, 1], [], []>} : vector<8x32xf32>, vector<32x64xf32>, vector<8x64xf32> -> vector<8x64xf32>
    %c0_256 = arith.constant 0 : index
    %c0_257 = arith.constant 0 : index
    %548 = vector.load %arg21[%c0_256, %c0_257] : memref<1x64xf32, #tpu.memory_space<vmem>>, vector<1x64xf32>
    %549 = vector.broadcast %548 : vector<1x64xf32> to vector<8x64xf32>
    %550 = arith.addf %547, %549 : vector<8x64xf32>
    %cst_258 = arith.constant 5.000000e-01 : f32
    %551 = vector.broadcast %cst_258 : f32 to vector<8x64xf32>
    %552 = arith.mulf %551, %550 : vector<8x64xf32>
    %cst_259 = arith.constant 0.707106769 : f32
    %553 = vector.broadcast %cst_259 : f32 to vector<8x64xf32>
    %554 = arith.mulf %550, %553 : vector<8x64xf32>
    %555 = math.erf %554 : vector<8x64xf32>
    %cst_260 = arith.constant 1.000000e+00 : f32
    %556 = vector.broadcast %cst_260 : f32 to vector<8x64xf32>
    %557 = arith.addf %556, %555 : vector<8x64xf32>
    %558 = arith.mulf %552, %557 : vector<8x64xf32>
    %c0_261 = arith.constant 0 : index
    %c0_262 = arith.constant 0 : index
    %559 = vector.load %arg22[%c0_261, %c0_262] : memref<64x32xf32, #tpu.memory_space<vmem>>, vector<64x32xf32>
    %cst_263 = arith.constant dense<0.000000e+00> : vector<8x32xf32>
    %560 = tpu.matmul %558, %559, %cst_263 {dimension_numbers = #tpu.dot_dimension_numbers<[1], [0], [0], [1], [0, 0, 1, 1], [], []>} : vector<8x64xf32>, vector<64x32xf32>, vector<8x32xf32> -> vector<8x32xf32>
    %c0_264 = arith.constant 0 : index
    %c0_265 = arith.constant 0 : index
    %561 = vector.load %arg23[%c0_264, %c0_265] : memref<1x32xf32, #tpu.memory_space<vmem>>, vector<1x32xf32>
    %562 = vector.broadcast %561 : vector<1x32xf32> to vector<8x32xf32>
    %563 = arith.addf %560, %562 : vector<8x32xf32>
    %564 = arith.addf %563, %545 : vector<8x32xf32>
    %c0_266 = arith.constant 0 : index
    %c0_267 = arith.constant 0 : index
    %c0_268 = arith.constant 0 : index
    %565 = vector.load %arg24[%c0_266, %c0_267, %c0_268] : memref<1x8x32xf32, #tpu.memory_space<vmem>>, vector<1x8x32xf32>
    %566 = vector.shape_cast %565 : vector<1x8x32xf32> to vector<8x32xf32>
    %567 = vector.shape_cast %564 : vector<8x32xf32> to vector<1x8x32xf32>
    tpu.vector_store %arg24[%c0_266, %c0_267, %c0_268], %567 {strides = array<i32>} : memref<1x8x32xf32, #tpu.memory_space<vmem>>, vector<1x8x32xf32>,
    return
  }
  func.func @transform_0(%arg0: i32) -> (i32, i32, i32) {
    %c0_i32 = arith.constant 0 : i32
    %c0_i32_0 = arith.constant 0 : i32
    %c0_i32_1 = arith.constant 0 : i32
    return %arg0, %c0_i32, %c0_i32_0 : i32, i32, i32
  }
  func.func @transform_1(%arg0: i32) -> (i32, i32, i32) {
    %c0_i32 = arith.constant 0 : i32
    %c0_i32_0 = arith.constant 0 : i32
    %c0_i32_1 = arith.constant 0 : i32
    return %arg0, %c0_i32, %c0_i32_0 : i32, i32, i32
  }
  func.func @transform_2(%arg0: i32) -> (i32, i32, i32) {
    %c0_i32 = arith.constant 0 : i32
    %c0_i32_0 = arith.constant 0 : i32
    %c0_i32_1 = arith.constant 0 : i32
    return %arg0, %c0_i32, %c0_i32_0 : i32, i32, i32
  }
  func.func @transform_3(%arg0: i32) -> (i32, i32, i32) {
    %c0_i32 = arith.constant 0 : i32
    %c0_i32_0 = arith.constant 0 : i32
    %c0_i32_1 = arith.constant 0 : i32
    return %arg0, %c0_i32, %c0_i32_0 : i32, i32, i32
  }
  func.func @transform_4(%arg0: i32) -> (i32, i32) {
    %c0_i32 = arith.constant 0 : i32
    %c0_i32_0 = arith.constant 0 : i32
    %c0_i32_1 = arith.constant 0 : i32
    return %c0_i32, %c0_i32_0 : i32, i32
  }
  func.func @transform_5(%arg0: i32) -> (i32, i32) {
    %c0_i32 = arith.constant 0 : i32
    %c0_i32_0 = arith.constant 0 : i32
    %c0_i32_1 = arith.constant 0 : i32
    return %c0_i32, %c0_i32_0 : i32, i32
  }
  func.func @transform_6(%arg0: i32) -> (i32, i32) {
    %c0_i32 = arith.constant 0 : i32
    %c0_i32_0 = arith.constant 0 : i32
    %c0_i32_1 = arith.constant 0 : i32
    return %c0_i32, %c0_i32_0 : i32, i32
  }
  func.func @transform_7(%arg0: i32) -> (i32, i32) {
    %c0_i32 = arith.constant 0 : i32
    %c0_i32_0 = arith.constant 0 : i32
    %c0_i32_1 = arith.constant 0 : i32
    return %c0_i32, %c0_i32_0 : i32, i32
  }
  func.func @transform_8(%arg0: i32) -> (i32, i32) {
    %c0_i32 = arith.constant 0 : i32
    %c0_i32_0 = arith.constant 0 : i32
    %c0_i32_1 = arith.constant 0 : i32
    return %c0_i32, %c0_i32_0 : i32, i32
  }
  func.func @transform_9(%arg0: i32) -> (i32, i32) {
    %c0_i32 = arith.constant 0 : i32
    %c0_i32_0 = arith.constant 0 : i32
    %c0_i32_1 = arith.constant 0 : i32
    return %c0_i32, %c0_i32_0 : i32, i32
  }
  func.func @transform_10(%arg0: i32) -> (i32, i32) {
    %c0_i32 = arith.constant 0 : i32
    %c0_i32_0 = arith.constant 0 : i32
    %c0_i32_1 = arith.constant 0 : i32
    return %c0_i32, %c0_i32_0 : i32, i32
  }
  func.func @transform_11(%arg0: i32) -> (i32, i32) {
    %c0_i32 = arith.constant 0 : i32
    %c0_i32_0 = arith.constant 0 : i32
    %c0_i32_1 = arith.constant 0 : i32
    return %c0_i32, %c0_i32_0 : i32, i32
  }
  func.func @transform_12(%arg0: i32) -> (i32, i32) {
    %c0_i32 = arith.constant 0 : i32
    %c0_i32_0 = arith.constant 0 : i32
    %c0_i32_1 = arith.constant 0 : i32
    return %c0_i32, %c0_i32_0 : i32, i32
  }
  func.func @transform_13(%arg0: i32) -> (i32, i32) {
    %c0_i32 = arith.constant 0 : i32
    %c0_i32_0 = arith.constant 0 : i32
    %c0_i32_1 = arith.constant 0 : i32
    return %c0_i32, %c0_i32_0 : i32, i32
  }
  func.func @transform_14(%arg0: i32) -> (i32, i32) {
    %c0_i32 = arith.constant 0 : i32
    %c0_i32_0 = arith.constant 0 : i32
    %c0_i32_1 = arith.constant 0 : i32
    return %c0_i32, %c0_i32_0 : i32, i32
  }
  func.func @transform_15(%arg0: i32) -> (i32, i32) {
    %c0_i32 = arith.constant 0 : i32
    %c0_i32_0 = arith.constant 0 : i32
    %c0_i32_1 = arith.constant 0 : i32
    return %c0_i32, %c0_i32_0 : i32, i32
  }
  func.func @transform_16(%arg0: i32) -> (i32, i32, i32) {
    %c0_i32 = arith.constant 0 : i32
    %c0_i32_0 = arith.constant 0 : i32
    %c0_i32_1 = arith.constant 0 : i32
    %c0_i32_2 = arith.constant 0 : i32
    return %c0_i32, %c0_i32_0, %c0_i32_1 : i32, i32, i32
  }
  func.func @transform_17(%arg0: i32) -> (i32, i32, i32) {
    %c0_i32 = arith.constant 0 : i32
    %c0_i32_0 = arith.constant 0 : i32
    %c0_i32_1 = arith.constant 0 : i32
    %c0_i32_2 = arith.constant 0 : i32
    return %c0_i32, %c0_i32_0, %c0_i32_1 : i32, i32, i32
  }
  func.func @transform_18(%arg0: i32) -> (i32, i32, i32) {
    %c0_i32 = arith.constant 0 : i32
    %c0_i32_0 = arith.constant 0 : i32
    %c0_i32_1 = arith.constant 0 : i32
    %c0_i32_2 = arith.constant 0 : i32
    return %c0_i32, %c0_i32_0, %c0_i32_1 : i32, i32, i32
  }
  func.func @transform_19(%arg0: i32) -> (i32, i32) {
    %c0_i32 = arith.constant 0 : i32
    %c0_i32_0 = arith.constant 0 : i32
    %c0_i32_1 = arith.constant 0 : i32
    return %c0_i32, %c0_i32_0 : i32, i32
  }
  func.func @transform_20(%arg0: i32) -> (i32, i32) {
    %c0_i32 = arith.constant 0 : i32
    %c0_i32_0 = arith.constant 0 : i32
    %c0_i32_1 = arith.constant 0 : i32
    return %c0_i32, %c0_i32_0 : i32, i32
  }
  func.func @transform_21(%arg0: i32) -> (i32, i32) {
    %c0_i32 = arith.constant 0 : i32
    %c0_i32_0 = arith.constant 0 : i32
    %c0_i32_1 = arith.constant 0 : i32
    return %c0_i32, %c0_i32_0 : i32, i32
  }
  func.func @transform_22(%arg0: i32) -> (i32, i32) {
    %c0_i32 = arith.constant 0 : i32
    %c0_i32_0 = arith.constant 0 : i32
    %c0_i32_1 = arith.constant 0 : i32
    return %c0_i32, %c0_i32_0 : i32, i32
  }
  func.func @transform_23(%arg0: i32) -> (i32, i32, i32) {
    %c0_i32 = arith.constant 0 : i32
    %c0_i32_0 = arith.constant 0 : i32
    %c0_i32_1 = arith.constant 0 : i32
    return %arg0, %c0_i32, %c0_i32_0 : i32, i32, i32
  }
  func.func @transform_24(%arg0: i32) -> (i32, i32, i32) {
    %c0_i32 = arith.constant 0 : i32
    %c0_i32_0 = arith.constant 0 : i32
    %c0_i32_1 = arith.constant 0 : i32
    return %arg0, %c0_i32, %c0_i32_0 : i32, i32, i32
  }
  func.func @transform_25(%arg0: i32) -> (i32, i32, i32) {
    %c0_i32 = arith.constant 0 : i32
    %c0_i32_0 = arith.constant 0 : i32
    %c0_i32_1 = arith.constant 0 : i32
    return %arg0, %c0_i32, %c0_i32_0 : i32, i32, i32
  }
}

</mosaic_0001>

<bundles_post_ra>
// kernel: decoder_forward.3
= control target key start
LH: loop header
LB: loop body
LE: loop exit
PB: predicated region body
PF: predicated region fallthrough
CT: control target
= control target key end

     0   :  { %s7526_s0 = inlined_call_operand.vmem [shape: f32[2,8,32], index: 0, kind: input, shape index: {}]   ;;  %s7527_s1 = inlined_call_operand.vmem [shape: f32[2,8,32], index: 1, kind: input, shape index: {}]   ;;  %s7528_s2 = inlined_call_operand.vmem [shape: f32[2,1,32], index: 2, kind: input, shape index: {}, may-alias: {2,3}]   ;;  %s7529_s3 = inlined_call_operand.vmem [shape: f32[2,1,32], index: 3, kind: input, shape index: {}, may-alias: {2,3}]   ;;  %s7530_s4 = inlined_call_operand.vmem [shape: f32[1,32], index: 4, kind: input, shape index: {}]   ;;  %s7531_s5 = inlined_call_operand.vmem [shape: f32[1,32], index: 5, kind: input, shape index: {}]   ;;  %s7532_s6 = inlined_call_operand.vmem [shape: f32[32,32], index: 6, kind: input, shape index: {}]   ;;  %s7533_s7 = inlined_call_operand.vmem [shape: f32[1,32], index: 7, kind: input, shape index: {}]   ;;  %s7534_s8 = inlined_call_operand.vmem [shape: f32[32,32], index: 8, kind: input, shape index: {}]   ;;  %s7535_s9 = inlined_call_operand.vmem [shape: f32[1,32], index: 9, kind: input, shape index: {}]   ;;  %s7536_s10 = inlined_call_operand.vmem [shape: f32[32,32], index: 10, kind: input, shape index: {}]   ;;  %s7537_s11 = inlined_call_operand.vmem [shape: f32[1,32], index: 11, kind: input, shape index: {}]   ;;  %s7538_s12 = inlined_call_operand.vmem [shape: f32[32,32], index: 12, kind: input, shape index: {}]   ;;  %s7539_s13 = inlined_call_operand.vmem [shape: f32[1,32], index: 13, kind: input, shape index: {}]   ;;  %s7540_s14 = inlined_call_operand.vmem [shape: f32[1,32], index: 14, kind: input, shape index: {}]   ;;  %s7541_s15 = inlined_call_operand.vmem [shape: f32[1,32], index: 15, kind: input, shape index: {}]   ;;  %s7542_s16 = inlined_call_operand.vmem [shape: f32[4,32,32], index: 16, kind: input, shape index: {}]   ;;  %s7543_s17 = inlined_call_operand.vmem [shape: f32[4,32,32], index: 17, kind: input, shape index: {}]   ;;  %s7544_s18 = inlined_call_operand.vmem [shape: f32[4,1,32], index: 18, kind: input, shape index: {}]   ;;  %s7545_s19 = inlined_call_operand.vmem [shape: f32[32,64], index: 19, kind: input, shape index: {}]   ;;  %s7546_s20 = inlined_call_operand.vmem [shape: f32[1,64], index: 20, kind: input, shape index: {}]   ;;  %s7547_s21 = inlined_call_operand.vmem [shape: f32[64,32], index: 21, kind: input, shape index: {}]   ;;  %s7548_s22 = inlined_call_operand.vmem [shape: f32[1,32], index: 22, kind: input, shape index: {}]   ;;  %s7549_s23 = inlined_call_operand.hbm [shape: f32[2,8,32], index: 23, kind: output, shape index: {0}]   ;;  %s7550_s24 = inlined_call_operand.hbm [shape: f32[2,1,32], index: 24, kind: output, shape index: {1}]   ;;  %s7551_s25 = inlined_call_operand.hbm [shape: f32[2,1,32], index: 25, kind: output, shape index: {2}]  }
   0x1   :  { %7566 = sst [smem:[#allocation17_spill]] %s7526_s0 }
   0x2   :  { %7567 = sst [smem:[#allocation18_spill]] %s7527_s1 }
   0x3   :  { %7568 = sst [smem:[#allocation19_spill]] %s7528_s2 }
   0x4   :  { %7569 = sst [smem:[#allocation20_spill]] %s7529_s3 }
   0x5   :  { %7570 = sst [smem:[#allocation21_spill]] %s7530_s4 }
   0x6   :  { %7571 = sst [smem:[#allocation22_spill]] %s7531_s5 }
   0x7   :  { %7572 = sst [smem:[#allocation23_spill]] %s7532_s6 }
   0x8   :  { %7573 = sst [smem:[#allocation24_spill]] %s7533_s7 }
   0x9   :  { %7574 = sst [smem:[#allocation25_spill]] %s7534_s8 }
   0xa   :  { %7575 = sst [smem:[#allocation26_spill]] %s7535_s9 }
   0xb   :  { %7576 = sst [smem:[#allocation27_spill]] %s7536_s10 }
   0xc   :  { %7577 = sst [smem:[#allocation28_spill]] %s7537_s11 }
   0xd   :  { %7578 = sst [smem:[#allocation29_spill]] %s7538_s12 }
   0xe   :  { %31 = vsyncpa [#allocation5], 0 }
   0xf   :  { %33 = vsyncpa [#allocation5 + $0x1], 0 }
  0x10   :  { %34 = vsyncpa [#allocation7], 0 }
  0x11   :  { %36 = vsyncpa [#allocation7 + $0x1], 0  ;;  %s6513_s29 = smov 0   ;;  %s6515_s2 = smov 0  }
  0x12   :  { %s6517_s6 = smov 0   ;;  %s6519_s30 = smov 0  }
  0x13 LB: > { %7579 = sst [smem:[#allocation11_spill]] %s6358_s29  ;;  %s6534_s7 = sadd.s32 4294967295, %s6370_s30   ;;  %s6370_s30 = sphi %s6519_s30, %s7607_s30   ;;  %s6366_s6 = sphi %s6517_s6, %s7609_s6   ;;  %s6362_s2 = sphi %s6515_s2, %s7611_s2   ;;  %s6358_s29 = sphi %s6513_s29, %s7610_s29  }
  0x14   : > { %7580 = sst [smem:[#allocation12_spill]] %s6366_s6  ;;  %s7554_s3 = sadd.s32 4294967294, %s6370_s30  }
  0x15   : > { %7581 = sst [smem:[#allocation13_spill]] %s6370_s30  ;;  %s6538_s26 = sadd.s32 1, %s6370_s30  }
  0x16   : > { %7582 = sst [smem:[#allocation14_spill]] %s6538_s26  ;;  %s552_s1 = sadd.s32 1, %s6366_s6 }
  0x17   : > { %s549_s8 = ssub.s32 %s6370_s30, %s6538_s26  ;;  %p562_p0 = scmp.ne.s32.totalorder %s6366_s6, %s6362_s2 }
  0x18   : > { %p550_p1 = scmp.eq.s32.totalorder %s549_s8, 0  ;;  %p563_p2 = scmp.eq.s32.totalorder %s6534_s7, 1 }
  0x19   : > { %p568_p3 = scmp.ne.s32.totalorder %s6362_s2, %s6358_s29  ;;  %p569_p4 = scmp.eq.s32.totalorder %s7554_s3, 1 }
  0x1a   : > { %s6551_s27 = scalar_select %p550_p1, %s6366_s6, %s552_s1  }
  0x1b   : > { %p6553_p5 = por %p563_p2, %p562_p0  ;;  %p6557_p6 = por %p569_p4, %p568_p3 }
  0x1c   : > { %7583 = sst [smem:[#allocation15_spill]] %s6551_s27  ;;  %p5162_p7 = scmp.ge.s32.totalorder %s6370_s30, 1 }
  0x1d   : > { %s7585_s28 = scalar_select %p6557_p6, 1, 0 }
  0x1e   : > { %p722_p8 = scmp.lt.s32.totalorder %s6370_s30, 3 }
  0x1f   : > { %7586 = sst [smem:[#allocation16_spill]] %s7585_s28 }
  0x20   : > { %p723_p9 = pnand %p5162_p7, %p722_p8 }
  0x21   : > { %p807_p10 = scmp.lt.s32.totalorder (!%p723_p9), %s6534_s7, 1  ;;  %s7587_s8 = sld [smem:[#allocation17_spill]] (!%p723_p9) }
  0x22   : > { %726 = sbr.rel (%p723_p9) target bundleno = 4485 (0x1185), region = 112  ;;  %s7588_s26 = sld [smem:[#allocation23_spill]] (!%p723_p9) }
  0x23   : > { %s7589_s1 = sld [smem:[#allocation21_spill]] (!%p723_p9)  ;;  %s6379_s30 = smov (!%p723_p9), 24  }
  0x24   : > { %s7590_s27 = sld [smem:[#allocation22_spill]] (!%p723_p9) }
  0x25   : > { %s7591_s28 = sld [smem:[#allocation25_spill]] (!%p723_p9) }
  0x26   : > { %s7594_s10 = sld [smem:[#allocation27_spill]] (!%p723_p9) }
  0x27   : > { %s6565_s9 = scalar_select %p807_p10, %s6534_s7, 1  ;;  %vm825_vm0 = vcmask 261120   ;;  %v6372_v8 = vmov 0.0   ;;  %vm6373_vm1 = vmmov 0   ;;  %vm1103_vm2 = vcmask 64512  }
  0x28   : > { %v857_v7 = vld [vmem:[%s7588_s26 + $0x18] sm:$0xff]  ;;  %5521 = vmatprep.subr.mxu1 %v6372_v8  ;;  %v856_v9 = vld [vmem:[%s7588_s26 + $0x10] sm:$0xff]  ;;  %5529 = vmatprep.mubr.msk.f32.mxu1 %vm6373_vm1, %v6372_v8  ;;  %v855_v10 = vld [vmem:[%s7588_s26 + $0x8] sm:$0xff]  ;;  %s7597_s11 = sld [smem:[#allocation28_spill]]  ;;  %vm1777_vm3 = vcmask 130048   ;;  %vm1779_vm4 = vcmask 195584  }
  0x29   : > { %s7558_s5 = sshll.u32 %s6565_s9, 3  ;;  %5522 = vmatpush3.msra.mxu1 %v857_v7  ;;  %5543 = vmatprep.subr.mxu0 %v6372_v8  ;;  %v854_v11 = vld [vmem:[%s7588_s26] sm:$0xff]  ;;  %s7598_s12 = sld [smem:[#allocation29_spill]]  ;;  %vm2571_vm5 = vcmask 253952   ;;  %vm4893_vm6 = vcmask 523264  }
  0x2a   : > { %s810_s3 = scalar_lea.vmem %s7587_s8, %s7558_s5  ;;  %5523 = vmatprep.subr.mxu1 %v6372_v8  ;;  %5551 = vmatprep.mubr.msk.f32.mxu0 %vm6373_vm1, %v6372_v8  ;;  %v5166_v16 = vld [vmem:[%s7589_s1] ss:$0 sm:$0xff]  ;;  %s7593_s8 = sld [smem:[#allocation18_spill]] }
  0x2b   : > { %v6573_v0 = vld [vmem:[%s810_s3] sm:$0xff]  ;;  %5524 = vmatpush3.msra.mxu1 %v856_v9  ;;  %v941_v21 = vld [vmem:[%s7591_s28 + $0x18] sm:$0xff]  ;;  %v940_v22 = vld [vmem:[%s7591_s28 + $0x10] sm:$0xff]  ;;  %s7592_s3 = sshll.u32 %s6565_s9, 3  ;;  %s7595_s5 = sld [smem:[#allocation24_spill]] }
  0x2c   : > { %v826_v1 = vsel %vm825_vm0, %v6573_v0, 0.0  ;;  %5525 = vmatprep.subr.mxu1 %v6372_v8  ;;  %v5167_v18 = vld [vmem:[%s7590_s27] ss:$0 sm:$0xff]  ;;  %v939_v23 = vld [vmem:[%s7591_s28 + $0x8] sm:$0xff]  ;;  %v1025_v26 = vld [vmem:[%s7594_s10 + $0x18] sm:$0xff]  ;;  %s6376_s27 = smov 104  }
  0x2d   : > { %827 = vadd.xlane.f32.xlu0 %v826_v1  ;;  %5526 = vmatpush3.msra.mxu1 %v855_v10  ;;  %v938_v24 = vld [vmem:[%s7591_s28] sm:$0xff]  ;;  %v1024_v27 = vld [vmem:[%s7594_s10 + $0x10] sm:$0xff]  ;;  %v1023_v28 = vld [vmem:[%s7594_s10 + $0x8] sm:$0xff]  ;;  %s7599_s0 = sld [smem:[#allocation19_spill]]  ;;  %s7565_s26 = sshll.u32 %s6534_s7, 4 }
  0x2e   : > { %5527 = vmatprep.subr.mxu1 %v6372_v8  ;;  %5544 = vmatpush3.msra.mxu0 %v1025_v26  ;;  %v1022_v29 = vld [vmem:[%s7594_s10] sm:$0xff] }
  0x2f   : > { %5528 = vmatpush3.msra.mxu1 %v854_v11  ;;  %5545 = vmatprep.subr.mxu0 %v6372_v8  ;;  %v5172_v44 = vld [vmem:[%s7597_s11] ss:$0 sm:$0xff] }
  0x30   : > { %5532 = vmatprep.subr.mxu1 %v6372_v8  ;;  %s814_s6 = scalar_lea.vmem %s7593_s8, %s7592_s3  ;;  %5546 = vmatpush3.msra.mxu0 %v1024_v27  ;;  %s6374_s3 = smov 120  }
  0x31   : > { %v822_v25 = vld [vmem:[%s814_s6] sm:$0xff]  ;;  %5547 = vmatprep.subr.mxu0 %v6372_v8  ;;  %s7596_s8 = sld [smem:[#allocation26_spill]]  ;;  %s6375_s6 = smov 112  }
  0x32   : > { %5548 = vmatpush3.msra.mxu0 %v1023_v28  ;;  %v5168_v30 = vld [vmem:[%s7595_s5] ss:$0 sm:$0xff]  ;;  %s5002_s5 = scalar_lea.hbm %s7550_s24, %s7565_s26 }
  0x33   : > { %5549 = vmatprep.subr.mxu0 %v6372_v8  ;;  %s817_s1 = scalar_lea.vmem %s7599_s0, %s6565_s9  ;;  %s7389_s0 = sand.u32 1, %s6362_s2  }
  0x34   : > { %5550 = vmatpush3.msra.mxu0 %v1022_v29 }
  0x35   : > { %5552 = vmatmul.mubr.msk.f32.vlgmr.msra.gmra.mxu0 %vm825_vm0, %v822_v25  ;;  %5564 = vmatprep.subr.mxu0 %v6372_v8 }
  0x36   : > { %5566 = vmatprep.mubr.msk.f32.mxu0 %vm6373_vm1, %v6372_v8 }
  0x37   : > { %v5170_v34 = vld [vmem:[%s7596_s8] ss:$0 sm:$0xff]  ;;  %s7600_s8 = sld [smem:[#allocation20_spill]] }
  0xb6   : > { %v828_v2 = vpop.xlane.xlu0 %827 }
  0xb7   : > { %v830_v3 = vmul.f32 0.03125, %v828_v2 }
  0xb9   : > { %v831_v4 = vsub.f32 %v6573_v0, %v830_v3 }
  0xbb   : > { %v832_v5 = vmul.f32 %v831_v4, %v831_v4 }
  0xbd   : > { %v833_v6 = vsel %vm825_vm0, %v832_v5, 0.0 }
  0xbe   : > { %834 = vadd.xlane.f32.xlu0 %v833_v6 }
  0xf5   : > { %v1099_v45 = vpop.f32.mrf.mxu0 }
  0xf6   : > { %v1100_v46 = vadd.f32 %v5172_v44, %v1099_v45 }
  0xf7   : > { %v5553_v47 = vpop.f32.mrf.mxu0 }
 0x147   : > { %v835_v12 = vpop.xlane.xlu0 %834 }
 0x148   : > { %v836_v13 = vmul.f32 0.03125, %v835_v12 }
 0x14a   : > { %v837_v14 = vadd.f32 1e-05, %v836_v13 }
 0x14c   : > { %6088 = vrsqrt.f32 %v837_v14 }
 0x159   : > { %v6089_v15 = vpop.eup %6088 }
 0x15a   : > { %v839_v17 = vmul.f32 %v6089_v15, %v831_v4 }
 0x15c   : > { %v846_v19 = vmul.f32 %v5166_v16, %v839_v17 }
 0x15e   : > { %v853_v20 = vadd.f32 %v5167_v18, %v846_v19 }
 0x160   : > { %5530 = vmatmul.mubr.msk.f32.vlgmr.msra.gmra.mxu1 %vm825_vm0, %v853_v20 }
 0x161   : > { %5533 = vmatpush3.msra.mxu1 %v941_v21  ;;  %5540 = vmatprep.mubr.msk.f32.mxu1 %vm6373_vm1, %v6372_v8 }
 0x162   : > { %5534 = vmatprep.subr.mxu1 %v6372_v8 }
 0x163   : > { %5535 = vmatpush3.msra.mxu1 %v940_v22 }
 0x164   : > { %5536 = vmatprep.subr.mxu1 %v6372_v8 }
 0x165   : > { %5537 = vmatpush3.msra.mxu1 %v939_v23 }
 0x166   : > { %5538 = vmatprep.subr.mxu1 %v6372_v8 }
 0x167   : > { %5539 = vmatpush3.msra.mxu1 %v938_v24 }
 0x168   : > { %5541 = vmatmul.mubr.msk.f32.vlgmr.msra.gmra.mxu1 %vm825_vm0, %v822_v25  ;;  %5554 = vmatprep.subr.mxu1 %v6372_v8 }
 0x169   : > { %5556 = vmatprep.mubr.msk.f32.mxu1 %vm6373_vm1, %v6372_v8 }
 0x220   : > { %v934_v31 = vpop.f32.mrf.mxu1 }
 0x221   : > { %v935_v32 = vadd.f32 %v5168_v30, %v934_v31 }
 0x222   : > { %v5531_v33 = vpop.f32.mrf.mxu1 }
 0x223   : > { %1265 = vrot.lane.b32.xlu1 %v935_v32, %s6374_s3 }
 0x228   : > { %v1018_v35 = vpop.f32.mrf.mxu1 }
 0x229   : > { %v1019_v36 = vadd.f32 %v5170_v34, %v1018_v35 }
 0x22a   : > { %v5542_v37 = vpop.f32.mrf.mxu1 }
 0x22b   : > { %1434 = vrot.lane.b32.xlu0 %v1019_v36, %s6375_s6  ;;  %1267 = vrot.lane.b32.xlu1 %v1019_v36, %s6374_s3 }
 0x22c   : > { %5555 = vmatpush3.xpose.msk.msra.mxu1 %vm1103_vm2, %v1019_v36 }
 0x22d   : > { %5559 = vmatprep.subr.mxu1 %v6372_v8 }
 0x22f   : > { %5557 = vmatmul.mubr.msk.f32.vlgmr.msra.gmra.mxu1 %vm1103_vm2, %v935_v32  ;;  %1432 = vrot.lane.b32.xlu1 %v935_v32, %s6375_s6 }
 0x230   : > { %5561 = vmatprep.mubr.msk.f32.mxu1 %vm6373_vm1, %v6372_v8  ;;  %5560 = vmatpush3.msra.mxu1 %v1100_v46 }
 0x231   : > { %5569 = vmatprep.subr.mxu1 %v6372_v8 }
 0x233   : > { %1600 = vrot.lane.b32.xlu1 %v1019_v36, %s6376_s27 }
 0x237   : > { %1598 = vrot.lane.b32.xlu1 %v935_v32, %s6376_s27 }
 0x295   : > { %v1266_v38 = vpop.permute.xlu1 %1265 }
 0x29d   : > { %v1268_v39 = vpop.permute.xlu1 %1267  ;;  %v1435_v40 = vpop.permute.xlu0 %1434 }
 0x29e   : > { %5565 = vmatpush3.xpose.msk.msra.mxu0 %vm1103_vm2, %v1268_v39  ;;  %v1784_v39 = vld [vmem:[%s7598_s12 + $0x18] sm:$0xff] }
 0x29f   : > { %5574 = vmatprep.subr.mxu0 %v6372_v8 }
 0x2a1   : > { %5567 = vmatmul.mubr.msk.f32.vlgmr.msra.gmra.mxu0 %vm1103_vm2, %v1266_v38  ;;  %v1433_v41 = vpop.permute.xlu1 %1432 }
 0x2a2   : > { %5575 = vmatpush3.xpose.msk.msra.mxu0 %vm1103_vm2, %v1435_v40  ;;  %5576 = vmatprep.mubr.msk.f32.mxu0 %vm6373_vm1, %v6372_v8  ;;  %v1783_v40 = vld [vmem:[%s7598_s12 + $0x10] sm:$0xff] }
 0x2a3   : > { %5584 = vmatprep.subr.mxu0 %v6372_v8 }
 0x2a5   : > { %5577 = vmatmul.mubr.msk.f32.vlgmr.msra.gmra.mxu0 %vm1103_vm2, %v1433_v41  ;;  %v1601_v42 = vpop.permute.xlu1 %1600  ;;  %v1782_v41 = vld [vmem:[%s7598_s12 + $0x8] sm:$0xff] }
 0x2a6   : > { %5585 = vmatpush3.xpose.msk.msra.mxu0 %vm1103_vm2, %v1601_v42  ;;  %5586 = vmatprep.mubr.msk.f32.mxu0 %vm6373_vm1, %v6372_v8 }
 0x2a7   : > { %5594 = vmatprep.subr.mxu0 %v6372_v8 }
 0x2a9   : > { %v1599_v43 = vpop.permute.xlu1 %1598 }
 0x2aa   : > { %5587 = vmatmul.mubr.msk.f32.vlgmr.msra.gmra.mxu0 %vm1103_vm2, %v1599_v43 }
 0x2ab   : > { %5602 = vmatprep.mubr.msk.f32.mxu0 %vm6373_vm1, %v6372_v8  ;;  %5595 = vmatpush3.msra.mxu0 %v1784_v39  ;;  %v6902_v39 = vld [vmem:[%s7543_s17 + $0x50] sm:$0xff] }
 0x2ac   : > { %5596 = vmatprep.subr.mxu0 %v6372_v8 }
 0x2ad   : > { %5597 = vmatpush3.msra.mxu0 %v1783_v40  ;;  %v6907_v40 = vld [vmem:[%s7543_s17 + $0x70] sm:$0xff] }
 0x2ae   : > { %5598 = vmatprep.subr.mxu0 %v6372_v8 }
 0x2af   : > { %5599 = vmatpush3.msra.mxu0 %v1782_v41  ;;  %v6916_v41 = vld [vmem:[%s7543_s17 + $0x48] sm:$0xff] }
 0x2b0   : > { %5600 = vmatprep.subr.mxu0 %v6372_v8 }
 0x2ef   : > { %v1176_v48 = vpop.f32.mrf.mxu1 }
 0x2f0   : > { %v1180_v49 = vmul.f32 0.35355338, %v1176_v48 }
 0x2f1   : > { %v5558_v50 = vpop.f32.mrf.mxu1 }
 0x2f2   : > { %v1181_v51 = vsel %vm1103_vm2, %v1180_v49, -inf }
 0x2f3   : > { %1182 = vmax.xlane.f32.xlu1 %v1181_v51 }
 0x361   : > { %v1339_v52 = vpop.f32.mrf.mxu0 }
 0x362   : > { %v1343_v53 = vmul.f32 0.35355338, %v1339_v52 }
 0x363   : > { %v5568_v54 = vpop.f32.mrf.mxu0 }
 0x364   : > { %v1344_v55 = vsel %vm1103_vm2, %v1343_v53, -inf }
 0x365   : > { %1345 = vmax.xlane.f32.xlu0 %v1344_v55  ;;  %v1506_v56 = vpop.f32.mrf.mxu0  ;;  %v5186_v55 = vld [vmem:[%s7539_s13] ss:$0 sm:$0xff] }
 0x366   : > { %v1510_v57 = vmul.f32 0.35355338, %v1506_v56 }
 0x367   : > { %v5578_v58 = vpop.f32.mrf.mxu0 }
 0x368   : > { %v1511_v59 = vsel %vm1103_vm2, %v1510_v57, -inf }
 0x369   : > { %1512 = vmax.xlane.f32.xlu1 %v1511_v59 }
 0x36a   : > { %v1672_v60 = vpop.f32.mrf.mxu0 }
 0x36b   : > { %v1676_v61 = vmul.f32 0.35355338, %v1672_v60 }
 0x36c   : > { %v5588_v62 = vpop.f32.mrf.mxu0 }
 0x36d   : > { %v1677_v63 = vsel %vm1103_vm2, %v1676_v61, -inf }
 0x36e   : > { %1678 = vmax.xlane.f32.xlu1 %v1677_v63 }
 0x37c   : > { %v1183_v1 = vpop.xlane.xlu1 %1182 }
 0x37d   : > { %v1184_v2 = vsub.f32 %v1180_v49, %v1183_v1 }
 0x37f   : > { %v1185_v3 = vmul.f32 1.442695, %v1184_v2 }
 0x381   : > { %6090 = vpow2.f32 %v1185_v3  ;;  %v1898_v3 = vld [vmem:[%s7542_s16 + $0x18] sm:$0xff] }
 0x38e   : > { %v6091_v4 = vpop.eup %6090 }
 0x38f   : > { %v1187_v5 = vsel %vm1103_vm2, %v6091_v4, 0.0 }
 0x390   : > { %1188 = vadd.xlane.f32.xlu0 %v1187_v5  ;;  %v5194_v5 = vld [vmem:[%s7542_s16 + $0x30] sm:$0xff] }
 0x3ee   : > { %v1346_v6 = vpop.xlane.xlu0 %1345 }
 0x3ef   : > { %v1347_v7 = vsub.f32 %v1343_v53, %v1346_v6  ;;  %v1896_v6 = vld [vmem:[%s7542_s16 + $0x8] sm:$0xff] }
 0x3f1   : > { %v1348_v9 = vmul.f32 1.442695, %v1347_v7  ;;  %v5193_v7 = vld [vmem:[%s7542_s16 + $0x28] sm:$0xff] }
 0x3f2   : > { %v1513_v10 = vpop.xlane.xlu1 %1512 }
 0x3f3   : > { %6092 = vpow2.f32 %v1348_v9  ;;  %v1514_v11 = vsub.f32 %v1510_v57, %v1513_v10  ;;  %v1895_v9 = vld [vmem:[%s7542_s16] sm:$0xff] }
 0x3f4   : > { %v5192_v10 = vld [vmem:[%s7542_s16 + $0x20] sm:$0xff] }
 0x3f5   : > { %v1515_v12 = vmul.f32 1.442695, %v1514_v11 }
 0x3f7   : > { %6094 = vpow2.f32 %v1515_v12  ;;  %v1679_v18 = vpop.xlane.xlu1 %1678 }
 0x3f8   : > { %v1680_v19 = vsub.f32 %v1676_v61, %v1679_v18 }
 0x3fa   : > { %v1681_v20 = vmul.f32 1.442695, %v1680_v19 }
 0x400   : > { %v6093_v13 = vpop.eup %6092 }
 0x401   : > { %v1350_v14 = vsel %vm1103_vm2, %v6093_v13, 0.0 }
 0x402   : > { %1351 = vadd.xlane.f32.xlu1 %v1350_v14 }
 0x404   : > { %v6095_v15 = vpop.eup %6094 }
 0x405   : > { %v1517_v16 = vsel %vm1103_vm2, %v6095_v15, 0.0 }
 0x406   : > { %1518 = vadd.xlane.f32.xlu0 %v1517_v16 }
 0x413   : > { %1522 = vrot.lane.b32.xlu1 %v1100_v46, %s6375_s6  ;;  %s6377_s6 = smov 8  }
 0x419   : > { %v1189_v17 = vpop.xlane.xlu0 %1188 }
 0x41a   : > { %6096 = vrcp.f32 %v1189_v17  ;;  %v5189_v17 = vld [vmem:[%s7541_s15] ss:$0 sm:$0xff] }
 0x41b   : > { %6098 = vpow2.f32 %v1681_v20  ;;  %v5202_v20 = vld [vmem:[%s7542_s16 + $0x58] sm:$0xff] }
 0x41c   : > { %1356 = vrot.lane.b32.xlu0 %v1100_v46, %s6374_s3 }
 0x427   : > { %v6097_v21 = vpop.eup %6096 }
 0x428   : > { %v1191_v22 = vmul.f32 %v6097_v21, %v6091_v4  ;;  %v6099_v23 = vpop.eup %6098  ;;  %v1897_v4 = vld [vmem:[%s7542_s16 + $0x10] sm:$0xff]  ;;  %v5209_v21 = vld [vmem:[%s7542_s16 + $0x78] sm:$0xff] }
 0x429   : > { %v1683_v24 = vsel %vm1103_vm2, %v6099_v23, 0.0 }
 0x42a   : > { %5562 = vmatmul.mubr.msk.f32.vlgmr.msra.gmra.mxu1 %vm1103_vm2, %v1191_v22  ;;  %v5201_v22 = vld [vmem:[%s7542_s16 + $0x50] sm:$0xff] }
 0x42b   : > { %5571 = vmatprep.mubr.msk.f32.mxu1 %vm6373_vm1, %v6372_v8 }
 0x437   : > { %1684 = vadd.xlane.f32.xlu1 %v1683_v24  ;;  %v5200_v24 = vld [vmem:[%s7542_s16 + $0x48] sm:$0xff] }
 0x448   : > { %1688 = vrot.lane.b32.xlu1 %v1100_v46, %s6376_s27  ;;  %s6378_s27 = smov 16   ;;  %v1781_v46 = vld [vmem:[%s7598_s12] sm:$0xff] }
 0x449   : > { %5601 = vmatpush3.msra.mxu0 %v1781_v46  ;;  %v5197_v46 = vld [vmem:[%s7544_s18 + $0x1] ss:$0 sm:$0xff] }
 0x44a   : > { %5616 = vmatprep.subr.mxu0 %v6372_v8 }
 0x48b   : > { %v1352_v25 = vpop.xlane.xlu1 %1351 }
 0x48c   : > { %6100 = vrcp.f32 %v1352_v25  ;;  %v5207_v25 = vld [vmem:[%s7542_s16 + $0x68] sm:$0xff] }
 0x48f   : > { %v1519_v26 = vpop.xlane.xlu0 %1518  ;;  %v1523_v30 = vpop.permute.xlu1 %1522 }
 0x490   : > { %6102 = vrcp.f32 %v1519_v26  ;;  %v5199_v26 = vld [vmem:[%s7542_s16 + $0x40] sm:$0xff] }
 0x493   : > { %v1357_v27 = vpop.permute.xlu0 %1356 }
 0x494   : > { %5570 = vmatpush3.msra.mxu1 %v1357_v27  ;;  %v5206_v27 = vld [vmem:[%s7542_s16 + $0x60] sm:$0xff] }
 0x495   : > { %5579 = vmatprep.subr.mxu1 %v6372_v8 }
 0x499   : > { %v6101_v28 = vpop.eup %6100 }
 0x49a   : > { %v1354_v29 = vmul.f32 %v6101_v28, %v6093_v13  ;;  %v6822_v28 = vld [vmem:[%s7543_s17 + $0x18] sm:$0xff] }
 0x49c   : > { %5572 = vmatmul.mubr.msk.f32.vlgmr.msra.gmra.mxu1 %vm1103_vm2, %v1354_v29  ;;  %v6827_v29 = vld [vmem:[%s7543_s17 + $0x38] sm:$0xff] }
 0x49d   : > { %v6103_v31 = vpop.eup %6102  ;;  %5580 = vmatpush3.msra.mxu1 %v1523_v30  ;;  %5581 = vmatprep.mubr.msk.f32.mxu1 %vm6373_vm1, %v6372_v8  ;;  %v6836_v30 = vld [vmem:[%s7543_s17 + $0x10] sm:$0xff] }
 0x49e   : > { %v1521_v32 = vmul.f32 %v6103_v31, %v6095_v15  ;;  %5589 = vmatprep.subr.mxu1 %v6372_v8  ;;  %v5188_v15 = vld [vmem:[%s7540_s14] ss:$0 sm:$0xff]  ;;  %v6841_v31 = vld [vmem:[%s7543_s17 + $0x30] sm:$0xff] }
 0x4a0   : > { %5582 = vmatmul.mubr.msk.f32.vlgmr.msra.gmra.mxu1 %vm1103_vm2, %v1521_v32  ;;  %v6850_v32 = vld [vmem:[%s7543_s17 + $0x8] sm:$0xff] }
 0x4a1   : > { %5591 = vmatprep.mubr.msk.f32.mxu1 %vm6373_vm1, %v6372_v8 }
 0x4c0   : > { %v1685_v33 = vpop.xlane.xlu1 %1684 }
 0x4c1   : > { %6104 = vrcp.f32 %v1685_v33  ;;  %v6855_v33 = vld [vmem:[%s7543_s17 + $0x28] sm:$0xff] }
 0x4c4   : > { %v1689_v34 = vpop.permute.xlu1 %1688 }
 0x4c5   : > { %5590 = vmatpush3.msra.mxu1 %v1689_v34  ;;  %v6868_v34 = vld [vmem:[%s7543_s17] sm:$0xff] }
 0x4c6   : > { %5605 = vmatprep.subr.mxu1 %v6372_v8 }
 0x4ce   : > { %v6105_v35 = vpop.eup %6104 }
 0x4cf   : > { %v1687_v36 = vmul.f32 %v6105_v35, %v6099_v23  ;;  %v5208_v23 = vld [vmem:[%s7542_s16 + $0x70] sm:$0xff]  ;;  %v6875_v35 = vld [vmem:[%s7543_s17 + $0x20] sm:$0xff] }
 0x4d1   : > { %5592 = vmatmul.mubr.msk.f32.vlgmr.msra.gmra.mxu1 %vm1103_vm2, %v1687_v36  ;;  %v2254_v36 = vld [vmem:[%s817_s1] sm:$0x1]  ;;  %s7564_s1 = scalar_lea.vmem [#allocation8], %s7389_s0 }
 0x4d2   : > { %5613 = vmatprep.mubr.msk.f32.mxu1 %vm6373_vm1, %v6372_v8  ;;  %5606 = vmatpush3.msra.mxu1 %v1898_v3 }
 0x4d3   : > { %5607 = vmatprep.subr.mxu1 %v6372_v8 }
 0x4d4   : > { %5608 = vmatpush3.msra.mxu1 %v1897_v4 }
 0x4d5   : > { %5609 = vmatprep.subr.mxu1 %v6372_v8 }
 0x4d6   : > { %5610 = vmatpush3.msra.mxu1 %v1896_v6 }
 0x4d7   : > { %5611 = vmatprep.subr.mxu1 %v6372_v8 }
 0x4d8   : > { %5612 = vmatpush3.msra.mxu1 %v1895_v9 }
 0x4d9   : > { %5627 = vmatprep.subr.mxu1 %v6372_v8 }
 0x4ea   : > { %v1261_v37 = vpop.f32.mrf.mxu1 }
 0x4ec   : > { %v5563_v38 = vpop.f32.mrf.mxu1 }
 0x4ed   : > { %v6893_v38 = vld [vmem:[%s7543_s17 + $0x78] sm:$0xff] }
 0x55c   : > { %v1428_v42 = vpop.f32.mrf.mxu1 }
 0x55d   : > { %1765 = vrot.lane.b32.xlu0 %v1428_v42, %s6377_s6  ;;  %v6921_v42 = vld [vmem:[%s7543_s17 + $0x68] sm:$0xff]  ;;  %s820_s6 = scalar_lea.vmem %s7600_s8, %s6565_s9  ;;  %s800_s8 = scalar_lea.vmem [#allocation6], %s7389_s0 }
 0x55e   : > { %v5573_v43 = vpop.f32.mrf.mxu1  ;;  %s5004_s3 = sshll.u32 %s800_s8, 4  ;;  %s5005_s3 = int_to_ptr.vmem [resolvable:$true] %s5004_s3 }
 0x55f   : > { %v6930_v43 = vld [vmem:[%s7543_s17 + $0x40] sm:$0xff]  ;;  %s6254_s9 = scalar_lea.vmem %s5005_s3, 16 }
 0x560   : > { %v1594_v44 = vpop.f32.mrf.mxu1  ;;  %p6255_p11 = scmp.ne.s32.totalorder %s5005_s3, %s6254_s9 }
 0x561   : > { %1769 = vrot.lane.b32.xlu1 %v1594_v44, %s6378_s27  ;;  %v6937_v44 = vld [vmem:[%s7543_s17 + $0x60] sm:$0xff]  ;;  %s4974_s27 = sand.u32 1, %s6534_s7  }
 0x562   : > { %v5583_v45 = vpop.f32.mrf.mxu1  ;;  %p6256_p12 = pnand %p6255_p11, %p6553_p5 }
 0x563   : > { %v5190_v45 = vld [vmem:[%s7544_s18] ss:$0 sm:$0xff] }
 0x564   : > { %p6257_p13 = pneg %p6256_p12 }
 0x591   : > { %v1760_v47 = vpop.f32.mrf.mxu1 }
 0x592   : > { %1773 = vrot.lane.b32.xlu0 %v1760_v47, %s6379_s30 }
 0x593   : > { %v5593_v48 = vpop.f32.mrf.mxu1 }
 0x5cf   : > { %v1766_v49 = vpop.permute.xlu0 %1765 }
 0x5d0   : > { %v1776_v51 = vsel %vm1103_vm2, %v1261_v37, %v1766_v49  ;;  %v6888_v37 = vld [vmem:[%s7543_s17 + $0x58] sm:$0xff] }
 0x5d3   : > { %v1770_v50 = vpop.permute.xlu1 %1769 }
 0x5d4   : > { %v1778_v52 = vsel %vm1777_vm3, %v1776_v51, %v1770_v50 }
 0x604   : > { %v1774_v53 = vpop.permute.xlu0 %1773 }
 0x605   : > { %v1780_v54 = vsel %vm1779_vm4, %v1778_v52, %v1774_v53  ;;  %v5204_v53 = vld [vmem:[%s7544_s18 + $0x2] ss:$0 sm:$0xff] }
 0x606   : > { %5603 = vmatmul.mubr.msk.f32.vlgmr.msra.gmra.mxu0 %vm825_vm0, %v1780_v54  ;;  %v5211_v54 = vld [vmem:[%s7544_s18 + $0x3] ss:$0 sm:$0xff] }
 0x607   : > { %5624 = vmatprep.mubr.msk.f32.mxu0 %vm6373_vm1, %v6372_v8 }
 0x6c6   : > { %v1861_v56 = vpop.f32.mrf.mxu0 }
 0x6c7   : > { %v1862_v57 = vadd.f32 %v5186_v55, %v1861_v56 }
 0x6c8   : > { %v5604_v58 = vpop.f32.mrf.mxu0 }
 0x6c9   : > { %v6739_v59 = vadd.f32 %v1862_v57, %v6573_v0  ;;  %v5195_v0 = vld [vmem:[%s7542_s16 + $0x38] sm:$0xff] }
 0x6ca   : > { %5617 = vmatpush3.msra.mxu0 %v5195_v0 }
 0x6cb   : > { %v1868_v60 = vsel %vm825_vm0, %v6739_v59, 0.0  ;;  %5618 = vmatprep.subr.mxu0 %v6372_v8 }
 0x6cc   : > { %1869 = vadd.xlane.f32.xlu1 %v1868_v60  ;;  %5619 = vmatpush3.msra.mxu0 %v5194_v5 }
 0x6cd   : > { %5620 = vmatprep.subr.mxu0 %v6372_v8 }
 0x6ce   : > { %5621 = vmatpush3.msra.mxu0 %v5193_v7 }
 0x6cf   : > { %5622 = vmatprep.subr.mxu0 %v6372_v8 }
 0x6d0   : > { %5623 = vmatpush3.msra.mxu0 %v5192_v10 }
 0x6d1   : > { %5638 = vmatprep.subr.mxu0 %v6372_v8 }
 0x755   : > { %v1870_v61 = vpop.xlane.xlu1 %1869 }
 0x756   : > { %v1871_v62 = vmul.f32 0.03125, %v1870_v61 }
 0x758   : > { %v1872_v63 = vsub.f32 %v6739_v59, %v1871_v62 }
 0x75a   : > { %v1873_v1 = vmul.f32 %v1872_v63, %v1872_v63 }
 0x75c   : > { %v1874_v2 = vsel %vm825_vm0, %v1873_v1, 0.0 }
 0x75d   : > { %1875 = vadd.xlane.f32.xlu0 %v1874_v2 }
 0x7e6   : > { %v1876_v11 = vpop.xlane.xlu0 %1875 }
 0x7e7   : > { %v1877_v12 = vmul.f32 0.03125, %v1876_v11 }
 0x7e9   : > { %v1878_v13 = vadd.f32 1e-05, %v1877_v12 }
 0x7eb   : > { %6106 = vrsqrt.f32 %v1878_v13 }
 0x7f8   : > { %v6107_v14 = vpop.eup %6106 }
 0x7f9   : > { %v1880_v16 = vmul.f32 %v6107_v14, %v1872_v63 }
 0x7fb   : > { %v1887_v18 = vmul.f32 %v5188_v15, %v1880_v16 }
 0x7fd   : > { %v1894_v19 = vadd.f32 %v5189_v17, %v1887_v18 }
 0x7ff   : > { %5614 = vmatmul.mubr.msk.f32.vlgmr.msra.gmra.mxu1 %vm825_vm0, %v1894_v19  ;;  %5625 = vmatmul.mubr.msk.f32.vlgmr.msra.gmra.mxu0 %vm825_vm0, %v1894_v19 }
 0x800   : > { %5628 = vmatpush3.msra.mxu1 %v5202_v20  ;;  %5639 = vmatpush3.msra.mxu0 %v5209_v21 }
 0x801   : > { %5629 = vmatprep.subr.mxu1 %v6372_v8  ;;  %5640 = vmatprep.subr.mxu0 %v6372_v8 }
 0x802   : > { %5630 = vmatpush3.msra.mxu1 %v5201_v22  ;;  %5641 = vmatpush3.msra.mxu0 %v5208_v23 }
 0x803   : > { %5631 = vmatprep.subr.mxu1 %v6372_v8  ;;  %5642 = vmatprep.subr.mxu0 %v6372_v8 }
 0x804   : > { %5632 = vmatpush3.msra.mxu1 %v5200_v24  ;;  %5643 = vmatpush3.msra.mxu0 %v5207_v25  ;;  %v2255_v24 = vld [vmem:[%s820_s6] sm:$0x1]  ;;  %s7449_s6 = scalar_lea.sflag [#allocation7], %s4974_s27 }
 0x805   : > { %5633 = vmatprep.subr.mxu1 %v6372_v8  ;;  %5644 = vmatprep.subr.mxu0 %v6372_v8 }
 0x806   : > { %5634 = vmatpush3.msra.mxu1 %v5199_v26  ;;  %5635 = vmatprep.mubr.msk.f32.mxu1 %vm6373_vm1, %v6372_v8 }
 0x807   : > { %5645 = vmatpush3.msra.mxu0 %v5206_v27  ;;  %5646 = vmatprep.mubr.msk.f32.mxu0 %vm6373_vm1, %v6372_v8 }
 0x808   : > { %5636 = vmatmul.mubr.msk.f32.vlgmr.msra.gmra.mxu1 %vm825_vm0, %v1894_v19  ;;  %5647 = vmatmul.mubr.msk.f32.vlgmr.msra.gmra.mxu0 %vm825_vm0, %v1894_v19 }
 0x809   : > { %5649 = vmatprep.subr.mxu1 %v6372_v8  ;;  %5660 = vmatprep.subr.mxu0 %v6372_v8 }
 0x80a   : > { %5650 = vmatpush3.msra.mxu1 %v6822_v28  ;;  %5661 = vmatpush3.msra.mxu0 %v6827_v29 }
 0x80b   : > { %5651 = vmatprep.subr.mxu1 %v6372_v8  ;;  %5662 = vmatprep.subr.mxu0 %v6372_v8 }
 0x80c   : > { %5652 = vmatpush3.msra.mxu1 %v6836_v30  ;;  %5663 = vmatpush3.msra.mxu0 %v6841_v31 }
 0x80d   : > { %5653 = vmatprep.subr.mxu1 %v6372_v8  ;;  %5664 = vmatprep.subr.mxu0 %v6372_v8 }
 0x80e   : > { %5654 = vmatpush3.msra.mxu1 %v6850_v32  ;;  %5665 = vmatpush3.msra.mxu0 %v6855_v33 }
 0x80f   : > { %5655 = vmatprep.subr.mxu1 %v6372_v8  ;;  %5666 = vmatprep.subr.mxu0 %v6372_v8 }
 0x810   : > { %5656 = vmatpush3.msra.mxu1 %v6868_v34  ;;  %5657 = vmatprep.mubr.msk.f32.mxu1 %vm6373_vm1, %v6372_v8 }
 0x811   : > { %5667 = vmatpush3.msra.mxu0 %v6875_v35  ;;  %5668 = vmatprep.mubr.msk.f32.mxu0 %vm6373_vm1, %v6372_v8 }
 0x812   : > { %5658 = vmatmul.mubr.msk.f32.vlgmr.msra.gmra.mxu1 %vm825_vm0, %v2254_v36  ;;  %5669 = vmatmul.mubr.msk.f32.vlgmr.msra.gmra.mxu0 %vm825_vm0, %v2254_v36 }
 0x813   : > { %5671 = vmatprep.subr.mxu1 %v6372_v8  ;;  %5682 = vmatprep.subr.mxu0 %v6372_v8 }
 0x814   : > { %5672 = vmatpush3.msra.mxu1 %v6888_v37  ;;  %5683 = vmatpush3.msra.mxu0 %v6893_v38 }
 0x815   : > { %5673 = vmatprep.subr.mxu1 %v6372_v8  ;;  %5684 = vmatprep.subr.mxu0 %v6372_v8 }
 0x816   : > { %5674 = vmatpush3.msra.mxu1 %v6902_v39  ;;  %5685 = vmatpush3.msra.mxu0 %v6907_v40 }
 0x817   : > { %5675 = vmatprep.subr.mxu1 %v6372_v8  ;;  %5686 = vmatprep.subr.mxu0 %v6372_v8 }
 0x818   : > { %5676 = vmatpush3.msra.mxu1 %v6916_v41  ;;  %5687 = vmatpush3.msra.mxu0 %v6921_v42 }
 0x819   : > { %5677 = vmatprep.subr.mxu1 %v6372_v8  ;;  %5688 = vmatprep.subr.mxu0 %v6372_v8 }
 0x81a   : > { %5678 = vmatpush3.msra.mxu1 %v6930_v43  ;;  %5679 = vmatprep.mubr.msk.f32.mxu1 %vm6373_vm1, %v6372_v8 }
 0x81b   : > { %5689 = vmatpush3.msra.mxu0 %v6937_v44  ;;  %5690 = vmatprep.mubr.msk.f32.mxu0 %vm6373_vm1, %v6372_v8 }
 0x81c   : > { %5680 = vmatmul.mubr.msk.f32.vlgmr.msra.gmra.mxu1 %vm825_vm0, %v2254_v36  ;;  %5691 = vmatmul.mubr.msk.f32.vlgmr.msra.gmra.mxu0 %vm825_vm0, %v2254_v36 }
 0x81d   : > { %5693 = vmatprep.subr.mxu1 %v6372_v8  ;;  %5704 = vmatprep.subr.mxu0 %v6372_v8 }
 0x81e   : > { %5694 = vmatpush3.msra.mxu1 %v6822_v28  ;;  %5705 = vmatpush3.msra.mxu0 %v6827_v29 }
 0x81f   : > { %5695 = vmatprep.subr.mxu1 %v6372_v8  ;;  %5706 = vmatprep.subr.mxu0 %v6372_v8 }
 0x820   : > { %5696 = vmatpush3.msra.mxu1 %v6836_v30  ;;  %5707 = vmatpush3.msra.mxu0 %v6841_v31 }
 0x821   : > { %5697 = vmatprep.subr.mxu1 %v6372_v8  ;;  %5708 = vmatprep.subr.mxu0 %v6372_v8 }
 0x822   : > { %5698 = vmatpush3.msra.mxu1 %v6850_v32  ;;  %5709 = vmatpush3.msra.mxu0 %v6855_v33 }
 0x823   : > { %5699 = vmatprep.subr.mxu1 %v6372_v8  ;;  %5710 = vmatprep.subr.mxu0 %v6372_v8 }
 0x824   : > { %5700 = vmatpush3.msra.mxu1 %v6868_v34  ;;  %5711 = vmatpush3.msra.mxu0 %v6875_v35 }
 0x825   : > { %5701 = vmatprep.mubr.msk.f32.mxu1 %vm6373_vm1, %v6372_v8  ;;  %5712 = vmatprep.mubr.msk.f32.mxu0 %vm6373_vm1, %v6372_v8 }
 0x826   : > { %5715 = vmatprep.subr.mxu1 %v6372_v8  ;;  %5726 = vmatprep.subr.mxu0 %v6372_v8 }
 0x8bf   : > { %v1975_v47 = vpop.f32.mrf.mxu1  ;;  %v2059_v48 = vpop.f32.mrf.mxu0 }
 0x8c0   : > { %v1976_v49 = vadd.f32 %v5190_v45, %v1975_v47  ;;  %v2060_v50 = vadd.f32 %v5197_v46, %v2059_v48 }
 0x8c1   : > { %v5615_v51 = vpop.f32.mrf.mxu1  ;;  %v5626_v52 = vpop.f32.mrf.mxu0 }
 0x8c2   : > { %1979 = vst.msk [vmem:[#allocation2] sm:$0xff] %vm825_vm0, %v1976_v49  ;;  %2064 = vst.msk [vmem:[#allocation2 + $0x8] sm:$0xff] %vm825_vm0, %v2060_v50 }
 0x8c8   : > { %v2144_v55 = vpop.f32.mrf.mxu1  ;;  %v2229_v56 = vpop.f32.mrf.mxu0 }
 0x8c9   : > { %v2145_v57 = vadd.f32 %v5204_v53, %v2144_v55  ;;  %v2230_v58 = vadd.f32 %v5211_v54, %v2229_v56  ;;  %v2256_v62 = vld [vmem:[#allocation2] sm:$0x1]  ;;  %v2337_v1 = vld [vmem:[#allocation2 + $0x8] sm:$0x1]  ;;  %v2573_v50 = vld [vmem:[#allocation2 + $0x1] sm:$0x1] }
 0x8ca   : > { %v5637_v60 = vpop.f32.mrf.mxu1  ;;  %v5648_v61 = vpop.f32.mrf.mxu0  ;;  %v2654_v52 = vld [vmem:[#allocation2 + $0x9] sm:$0x1] }
 0x8cb   : > { %2149 = vst.msk [vmem:[#allocation2 + $0x10] sm:$0xff] %vm825_vm0, %v2145_v57  ;;  %2234 = vst.msk [vmem:[#allocation2 + $0x18] sm:$0xff] %vm825_vm0, %v2230_v58 }
 0x8d2   : > { %v2326_v63 = vpop.f32.mrf.mxu1  ;;  %v2404_v2 = vpop.f32.mrf.mxu0  ;;  %v2488_v10 = vld [vmem:[#allocation2 + $0x18] sm:$0x1]  ;;  %v2415_v15 = vld [vmem:[#allocation2 + $0x10] sm:$0x1] }
 0x8d3   : > { %v2330_v3 = vadd.f32 %v2326_v63, %v2256_v62  ;;  %v2408_v0 = vadd.f32 %v2404_v2, %v2337_v1  ;;  %v2805_v63 = vld [vmem:[#allocation2 + $0x19] sm:$0x1] }
 0x8d4   : > { %v5659_v4 = vpop.f32.mrf.mxu1  ;;  %v5670_v5 = vpop.f32.mrf.mxu0 }
 0x8d5   : > { %v5226_v6 = vmul.f32 -1.442695, %v2330_v3  ;;  %v5228_v7 = vmul.f32 -1.442695, %v2408_v0  ;;  %v2732_v0 = vld [vmem:[#allocation2 + $0x11] sm:$0x1] }
 0x8d7   : > { %6108 = vpow2.f32 %v5226_v6 }
 0x8d8   : > { %6110 = vpow2.f32 %v5228_v7 }
 0x8dc   : > { %v2482_v9 = vpop.f32.mrf.mxu1  ;;  %v2555_v11 = vpop.f32.mrf.mxu0 }
 0x8dd   : > { %v2559_v12 = vadd.f32 %v2555_v11, %v2488_v10  ;;  %v2486_v17 = vadd.f32 %v2482_v9, %v2415_v15 }
 0x8de   : > { %v5681_v13 = vpop.f32.mrf.mxu1  ;;  %v5692_v14 = vpop.f32.mrf.mxu0 }
 0x8df   : > { %v5231_v16 = vmul.f32 -1.442695, %v2559_v12 }
 0x8e1   : > { %6112 = vpow2.f32 %v5231_v16 }
 0x8e2   : > { %6114 = vtanh.f32 %v2486_v17 }
 0x8e4   : > { %v6109_v18 = vpop.eup %6108 }
 0x8e5   : > { %v6111_v19 = vpop.eup %6110  ;;  %v2334_v20 = vadd.f32 1.0, %v6109_v18 }
 0x8e6   : > { %v2412_v21 = vadd.f32 1.0, %v6111_v19 }
 0x8e7   : > { %6116 = vrcp.f32 %v2334_v20 }
 0x8e8   : > { %6118 = vrcp.f32 %v2412_v21 }
 0x8ee   : > { %v6113_v22 = vpop.eup %6112 }
 0x8ef   : > { %v6115_v23 = vpop.eup %6114  ;;  %v2563_v36 = vadd.f32 1.0, %v6113_v22  ;;  %v2889_v22 = vld [vmem:[#allocation2 + $0x2] sm:$0x1] }
 0x8f1   : > { %6120 = vrcp.f32 %v2563_v36 }
 0x8f4   : > { %v6117_v25 = vpop.eup %6116 }
 0x8f5   : > { %v6119_v26 = vpop.eup %6118  ;;  %v2567_v27 = vmul.f32 %v6117_v25, %v6115_v23 }
 0x8f6   : > { %v2566_v45 = vmul.f32 %v6119_v26, %v2255_v24  ;;  %v2970_v24 = vld [vmem:[#allocation2 + $0xa] sm:$0x1] }
 0x8f8   : > { %v6991_v46 = vadd.f32 %v2567_v27, %v2566_v45 }
 0x8fa   : > { %6122 = vtanh.f32 %v6991_v46 }
 0x8fe   : > { %v6121_v47 = vpop.eup %6120 }
 0x907   : > { %v6123_v48 = vpop.eup %6122 }
 0x908   : > { %v2570_v49 = vmul.f32 %v6123_v48, %v6121_v47 }
 0x90a   : > { %2572 = vst.msk [vmem:[#allocation3] sm:$0x1] %vm2571_vm5, %v2570_v49  ;;  %5702 = vmatmul.mubr.msk.f32.vlgmr.msra.gmra.mxu1 %vm825_vm0, %v2570_v49  ;;  %5713 = vmatmul.mubr.msk.f32.vlgmr.msra.gmra.mxu0 %vm825_vm0, %v2570_v49 }
 0x90b   : > { %5716 = vmatpush3.msra.mxu1 %v6888_v37  ;;  %5727 = vmatpush3.msra.mxu0 %v6893_v38 }
 0x90c   : > { %5717 = vmatprep.subr.mxu1 %v6372_v8  ;;  %5728 = vmatprep.subr.mxu0 %v6372_v8 }
 0x90d   : > { %5718 = vmatpush3.msra.mxu1 %v6902_v39  ;;  %5729 = vmatpush3.msra.mxu0 %v6907_v40 }
 0x90e   : > { %5719 = vmatprep.subr.mxu1 %v6372_v8  ;;  %5730 = vmatprep.subr.mxu0 %v6372_v8 }
 0x90f   : > { %5720 = vmatpush3.msra.mxu1 %v6916_v41  ;;  %5731 = vmatpush3.msra.mxu0 %v6921_v42 }
 0x910   : > { %5721 = vmatprep.subr.mxu1 %v6372_v8  ;;  %5732 = vmatprep.subr.mxu0 %v6372_v8 }
 0x911   : > { %5722 = vmatpush3.msra.mxu1 %v6930_v43  ;;  %5723 = vmatprep.mubr.msk.f32.mxu1 %vm6373_vm1, %v6372_v8 }
 0x912   : > { %5733 = vmatpush3.msra.mxu0 %v6937_v44  ;;  %5734 = vmatprep.mubr.msk.f32.mxu0 %vm6373_vm1, %v6372_v8 }
 0x913   : > { %5724 = vmatmul.mubr.msk.f32.vlgmr.msra.gmra.mxu1 %vm825_vm0, %v2570_v49  ;;  %5735 = vmatmul.mubr.msk.f32.vlgmr.msra.gmra.mxu0 %vm825_vm0, %v2570_v49 }
 0x914   : > { %5737 = vmatprep.subr.mxu1 %v6372_v8  ;;  %5748 = vmatprep.subr.mxu0 %v6372_v8 }
 0x915   : > { %5738 = vmatpush3.msra.mxu1 %v6822_v28  ;;  %5749 = vmatpush3.msra.mxu0 %v6827_v29 }
 0x916   : > { %5739 = vmatprep.subr.mxu1 %v6372_v8  ;;  %5750 = vmatprep.subr.mxu0 %v6372_v8 }
 0x917   : > { %5740 = vmatpush3.msra.mxu1 %v6836_v30  ;;  %5751 = vmatpush3.msra.mxu0 %v6841_v31 }
 0x918   : > { %5741 = vmatprep.subr.mxu1 %v6372_v8  ;;  %5752 = vmatprep.subr.mxu0 %v6372_v8 }
 0x919   : > { %5742 = vmatpush3.msra.mxu1 %v6850_v32  ;;  %5753 = vmatpush3.msra.mxu0 %v6855_v33 }
 0x91a   : > { %5743 = vmatprep.subr.mxu1 %v6372_v8  ;;  %5754 = vmatprep.subr.mxu0 %v6372_v8 }
 0x91b   : > { %5744 = vmatpush3.msra.mxu1 %v6868_v34  ;;  %5755 = vmatpush3.msra.mxu0 %v6875_v35 }
 0x91c   : > { %5745 = vmatprep.mubr.msk.f32.mxu1 %vm6373_vm1, %v6372_v8  ;;  %5756 = vmatprep.mubr.msk.f32.mxu0 %vm6373_vm1, %v6372_v8 }
 0x91d   : > { %5759 = vmatprep.subr.mxu1 %v6372_v8  ;;  %5770 = vmatprep.subr.mxu0 %v6372_v8 }
 0x9ca   : > { %v2643_v51 = vpop.f32.mrf.mxu1  ;;  %v2721_v53 = vpop.f32.mrf.mxu0 }
 0x9cb   : > { %v2647_v54 = vadd.f32 %v2643_v51, %v2573_v50  ;;  %v2725_v55 = vadd.f32 %v2721_v53, %v2654_v52  ;;  %v3121_v50 = vld [vmem:[#allocation2 + $0x1a] sm:$0x1] }
 0x9cc   : > { %v5703_v56 = vpop.f32.mrf.mxu1  ;;  %v5714_v57 = vpop.f32.mrf.mxu0 }
 0x9cd   : > { %v5233_v58 = vmul.f32 -1.442695, %v2647_v54  ;;  %v5235_v60 = vmul.f32 -1.442695, %v2725_v55  ;;  %v3048_v54 = vld [vmem:[#allocation2 + $0x12] sm:$0x1] }
 0x9cf   : > { %6124 = vpow2.f32 %v5233_v58 }
 0x9d0   : > { %6126 = vpow2.f32 %v5235_v60 }
 0x9d3   : > { %v2799_v61 = vpop.f32.mrf.mxu1  ;;  %v2872_v62 = vpop.f32.mrf.mxu0 }
 0x9d4   : > { %v2876_v1 = vadd.f32 %v2872_v62, %v2805_v63  ;;  %v2803_v5 = vadd.f32 %v2799_v61, %v2732_v0 }
 0x9d5   : > { %v5725_v2 = vpop.f32.mrf.mxu1  ;;  %v5736_v3 = vpop.f32.mrf.mxu0 }
 0x9d6   : > { %v5238_v4 = vmul.f32 -1.442695, %v2876_v1 }
 0x9d8   : > { %6128 = vpow2.f32 %v5238_v4 }
 0x9d9   : > { %6130 = vtanh.f32 %v2803_v5 }
 0x9dc   : > { %v6125_v6 = vpop.eup %6124 }
 0x9dd   : > { %v6127_v7 = vpop.eup %6126  ;;  %v2651_v9 = vadd.f32 1.0, %v6125_v6 }
 0x9de   : > { %v2729_v10 = vadd.f32 1.0, %v6127_v7 }
 0x9df   : > { %6132 = vrcp.f32 %v2651_v9 }
 0x9e0   : > { %6134 = vrcp.f32 %v2729_v10  ;;  %v3205_v10 = vld [vmem:[#allocation2 + $0x3] sm:$0x1] }
 0x9e5   : > { %v6129_v11 = vpop.eup %6128 }
 0x9e6   : > { %v6131_v12 = vpop.eup %6130  ;;  %v2880_v16 = vadd.f32 1.0, %v6129_v11 }
 0x9e8   : > { %6136 = vrcp.f32 %v2880_v16 }
 0x9ec   : > { %v6133_v13 = vpop.eup %6132 }
 0x9ed   : > { %v6135_v14 = vpop.eup %6134  ;;  %v2884_v15 = vmul.f32 %v6133_v13, %v6131_v12  ;;  %v3286_v12 = vld [vmem:[#allocation2 + $0xb] sm:$0x1] }
 0x9ee   : > { %v2883_v17 = vmul.f32 %v6135_v14, %v6991_v46 }
 0x9f0   : > { %v7040_v18 = vadd.f32 %v2884_v15, %v2883_v17 }
 0x9f2   : > { %6138 = vtanh.f32 %v7040_v18 }
 0x9f5   : > { %v6137_v19 = vpop.eup %6136 }
 0x9ff   : > { %v6139_v20 = vpop.eup %6138 }
 0xa00   : > { %v2887_v21 = vmul.f32 %v6139_v20, %v6137_v19 }
 0xa02   : > { %2888 = vst.msk [vmem:[#allocation3 + $0x1] sm:$0x1] %vm2571_vm5, %v2887_v21  ;;  %5746 = vmatmul.mubr.msk.f32.vlgmr.msra.gmra.mxu1 %vm825_vm0, %v2887_v21  ;;  %5757 = vmatmul.mubr.msk.f32.vlgmr.msra.gmra.mxu0 %vm825_vm0, %v2887_v21 }
 0xa03   : > { %5760 = vmatpush3.msra.mxu1 %v6888_v37  ;;  %5771 = vmatpush3.msra.mxu0 %v6893_v38 }
 0xa04   : > { %5761 = vmatprep.subr.mxu1 %v6372_v8  ;;  %5772 = vmatprep.subr.mxu0 %v6372_v8 }
 0xa05   : > { %5762 = vmatpush3.msra.mxu1 %v6902_v39  ;;  %5773 = vmatpush3.msra.mxu0 %v6907_v40 }
 0xa06   : > { %5763 = vmatprep.subr.mxu1 %v6372_v8  ;;  %5774 = vmatprep.subr.mxu0 %v6372_v8 }
 0xa07   : > { %5764 = vmatpush3.msra.mxu1 %v6916_v41  ;;  %5775 = vmatpush3.msra.mxu0 %v6921_v42 }
 0xa08   : > { %5765 = vmatprep.subr.mxu1 %v6372_v8  ;;  %5776 = vmatprep.subr.mxu0 %v6372_v8 }
 0xa09   : > { %5766 = vmatpush3.msra.mxu1 %v6930_v43  ;;  %5767 = vmatprep.mubr.msk.f32.mxu1 %vm6373_vm1, %v6372_v8 }
 0xa0a   : > { %5777 = vmatpush3.msra.mxu0 %v6937_v44  ;;  %5778 = vmatprep.mubr.msk.f32.mxu0 %vm6373_vm1, %v6372_v8 }
 0xa0b   : > { %5768 = vmatmul.mubr.msk.f32.vlgmr.msra.gmra.mxu1 %vm825_vm0, %v2887_v21  ;;  %5779 = vmatmul.mubr.msk.f32.vlgmr.msra.gmra.mxu0 %vm825_vm0, %v2887_v21 }
 0xa0c   : > { %5781 = vmatprep.subr.mxu1 %v6372_v8  ;;  %5792 = vmatprep.subr.mxu0 %v6372_v8 }
 0xa0d   : > { %5782 = vmatpush3.msra.mxu1 %v6822_v28  ;;  %5793 = vmatpush3.msra.mxu0 %v6827_v29 }
 0xa0e   : > { %5783 = vmatprep.subr.mxu1 %v6372_v8  ;;  %5794 = vmatprep.subr.mxu0 %v6372_v8 }
 0xa0f   : > { %5784 = vmatpush3.msra.mxu1 %v6836_v30  ;;  %5795 = vmatpush3.msra.mxu0 %v6841_v31 }
 0xa10   : > { %5785 = vmatprep.subr.mxu1 %v6372_v8  ;;  %5796 = vmatprep.subr.mxu0 %v6372_v8 }
 0xa11   : > { %5786 = vmatpush3.msra.mxu1 %v6850_v32  ;;  %5797 = vmatpush3.msra.mxu0 %v6855_v33 }
 0xa12   : > { %5787 = vmatprep.subr.mxu1 %v6372_v8  ;;  %5798 = vmatprep.subr.mxu0 %v6372_v8 }
 0xa13   : > { %5788 = vmatpush3.msra.mxu1 %v6868_v34  ;;  %5799 = vmatpush3.msra.mxu0 %v6875_v35 }
 0xa14   : > { %5789 = vmatprep.mubr.msk.f32.mxu1 %vm6373_vm1, %v6372_v8  ;;  %5800 = vmatprep.mubr.msk.f32.mxu0 %vm6373_vm1, %v6372_v8 }
 0xa15   : > { %5803 = vmatprep.subr.mxu1 %v6372_v8  ;;  %5814 = vmatprep.subr.mxu0 %v6372_v8 }
 0xac2   : > { %v2959_v23 = vpop.f32.mrf.mxu1  ;;  %v3037_v25 = vpop.f32.mrf.mxu0 }
 0xac3   : > { %v2963_v26 = vadd.f32 %v2959_v23, %v2889_v22  ;;  %v3041_v27 = vadd.f32 %v3037_v25, %v2970_v24  ;;  %v3437_v22 = vld [vmem:[#allocation2 + $0x1b] sm:$0x1] }
 0xac4   : > { %v5747_v36 = vpop.f32.mrf.mxu1  ;;  %v5758_v45 = vpop.f32.mrf.mxu0 }
 0xac5   : > { %v5240_v46 = vmul.f32 -1.442695, %v2963_v26  ;;  %v5242_v47 = vmul.f32 -1.442695, %v3041_v27  ;;  %v3364_v26 = vld [vmem:[#allocation2 + $0x13] sm:$0x1] }
 0xac7   : > { %6140 = vpow2.f32 %v5240_v46 }
 0xac8   : > { %6142 = vpow2.f32 %v5242_v47 }
 0xacb   : > { %v3115_v48 = vpop.f32.mrf.mxu1  ;;  %v3188_v49 = vpop.f32.mrf.mxu0 }
 0xacc   : > { %v3192_v51 = vadd.f32 %v3188_v49, %v3121_v50  ;;  %v3119_v56 = vadd.f32 %v3115_v48, %v3048_v54 }
 0xacd   : > { %v5769_v52 = vpop.f32.mrf.mxu1  ;;  %v5780_v53 = vpop.f32.mrf.mxu0 }
 0xace   : > { %v5245_v55 = vmul.f32 -1.442695, %v3192_v51 }
 0xad0   : > { %6144 = vpow2.f32 %v5245_v55 }
 0xad1   : > { %6146 = vtanh.f32 %v3119_v56 }
 0xad4   : > { %v6141_v57 = vpop.eup %6140 }
 0xad5   : > { %v6143_v58 = vpop.eup %6142  ;;  %v2967_v60 = vadd.f32 1.0, %v6141_v57 }
 0xad6   : > { %v3045_v61 = vadd.f32 1.0, %v6143_v58 }
 0xad7   : > { %6148 = vrcp.f32 %v2967_v60 }
 0xad8   : > { %6150 = vrcp.f32 %v3045_v61  ;;  %v3521_v61 = vld [vmem:[#allocation2 + $0x4] sm:$0x1] }
 0xadd   : > { %v6145_v62 = vpop.eup %6144 }
 0xade   : > { %v6147_v63 = vpop.eup %6146  ;;  %v3196_v0 = vadd.f32 1.0, %v6145_v62 }
 0xae0   : > { %6152 = vrcp.f32 %v3196_v0 }
 0xae4   : > { %v6149_v1 = vpop.eup %6148 }
 0xae5   : > { %v6151_v2 = vpop.eup %6150  ;;  %v3200_v3 = vmul.f32 %v6149_v1, %v6147_v63  ;;  %v3602_v63 = vld [vmem:[#allocation2 + $0xc] sm:$0x1] }
 0xae6   : > { %v3199_v4 = vmul.f32 %v6151_v2, %v7040_v18 }
 0xae8   : > { %v7089_v5 = vadd.f32 %v3200_v3, %v3199_v4 }
 0xaea   : > { %6154 = vtanh.f32 %v7089_v5 }
 0xaed   : > { %v6153_v6 = vpop.eup %6152 }
 0xaf7   : > { %v6155_v7 = vpop.eup %6154 }
 0xaf8   : > { %v3203_v9 = vmul.f32 %v6155_v7, %v6153_v6 }
 0xafa   : > { %3204 = vst.msk [vmem:[#allocation3 + $0x2] sm:$0x1] %vm2571_vm5, %v3203_v9  ;;  %5790 = vmatmul.mubr.msk.f32.vlgmr.msra.gmra.mxu1 %vm825_vm0, %v3203_v9  ;;  %5801 = vmatmul.mubr.msk.f32.vlgmr.msra.gmra.mxu0 %vm825_vm0, %v3203_v9 }
 0xafb   : > { %5804 = vmatpush3.msra.mxu1 %v6888_v37  ;;  %5815 = vmatpush3.msra.mxu0 %v6893_v38 }
 0xafc   : > { %5805 = vmatprep.subr.mxu1 %v6372_v8  ;;  %5816 = vmatprep.subr.mxu0 %v6372_v8 }
 0xafd   : > { %5806 = vmatpush3.msra.mxu1 %v6902_v39  ;;  %5817 = vmatpush3.msra.mxu0 %v6907_v40 }
 0xafe   : > { %5807 = vmatprep.subr.mxu1 %v6372_v8  ;;  %5818 = vmatprep.subr.mxu0 %v6372_v8 }
 0xaff   : > { %5808 = vmatpush3.msra.mxu1 %v6916_v41  ;;  %5819 = vmatpush3.msra.mxu0 %v6921_v42 }
 0xb00   : > { %5809 = vmatprep.subr.mxu1 %v6372_v8  ;;  %5820 = vmatprep.subr.mxu0 %v6372_v8 }
 0xb01   : > { %5810 = vmatpush3.msra.mxu1 %v6930_v43  ;;  %5811 = vmatprep.mubr.msk.f32.mxu1 %vm6373_vm1, %v6372_v8 }
 0xb02   : > { %5821 = vmatpush3.msra.mxu0 %v6937_v44  ;;  %5822 = vmatprep.mubr.msk.f32.mxu0 %vm6373_vm1, %v6372_v8 }
 0xb03   : > { %5812 = vmatmul.mubr.msk.f32.vlgmr.msra.gmra.mxu1 %vm825_vm0, %v3203_v9  ;;  %5823 = vmatmul.mubr.msk.f32.vlgmr.msra.gmra.mxu0 %vm825_vm0, %v3203_v9 }
 0xb04   : > { %5825 = vmatprep.subr.mxu1 %v6372_v8  ;;  %5836 = vmatprep.subr.mxu0 %v6372_v8 }
 0xb05   : > { %5826 = vmatpush3.msra.mxu1 %v6822_v28  ;;  %5837 = vmatpush3.msra.mxu0 %v6827_v29 }
 0xb06   : > { %5827 = vmatprep.subr.mxu1 %v6372_v8  ;;  %5838 = vmatprep.subr.mxu0 %v6372_v8 }
 0xb07   : > { %5828 = vmatpush3.msra.mxu1 %v6836_v30  ;;  %5839 = vmatpush3.msra.mxu0 %v6841_v31 }
 0xb08   : > { %5829 = vmatprep.subr.mxu1 %v6372_v8  ;;  %5840 = vmatprep.subr.mxu0 %v6372_v8 }
 0xb09   : > { %5830 = vmatpush3.msra.mxu1 %v6850_v32  ;;  %5841 = vmatpush3.msra.mxu0 %v6855_v33 }
 0xb0a   : > { %5831 = vmatprep.subr.mxu1 %v6372_v8  ;;  %5842 = vmatprep.subr.mxu0 %v6372_v8 }
 0xb0b   : > { %5832 = vmatpush3.msra.mxu1 %v6868_v34  ;;  %5843 = vmatpush3.msra.mxu0 %v6875_v35 }
 0xb0c   : > { %5833 = vmatprep.mubr.msk.f32.mxu1 %vm6373_vm1, %v6372_v8  ;;  %5844 = vmatprep.mubr.msk.f32.mxu0 %vm6373_vm1, %v6372_v8 }
 0xb0d   : > { %5847 = vmatprep.subr.mxu1 %v6372_v8  ;;  %5858 = vmatprep.subr.mxu0 %v6372_v8 }
 0xbba   : > { %v3275_v11 = vpop.f32.mrf.mxu1  ;;  %v3353_v13 = vpop.f32.mrf.mxu0 }
 0xbbb   : > { %v3279_v14 = vadd.f32 %v3275_v11, %v3205_v10  ;;  %v3357_v15 = vadd.f32 %v3353_v13, %v3286_v12  ;;  %v3753_v10 = vld [vmem:[#allocation2 + $0x1c] sm:$0x1] }
 0xbbc   : > { %v5791_v16 = vpop.f32.mrf.mxu1  ;;  %v5802_v17 = vpop.f32.mrf.mxu0 }
 0xbbd   : > { %v5247_v18 = vmul.f32 -1.442695, %v3279_v14  ;;  %v5249_v19 = vmul.f32 -1.442695, %v3357_v15  ;;  %v3680_v14 = vld [vmem:[#allocation2 + $0x14] sm:$0x1] }
 0xbbf   : > { %6156 = vpow2.f32 %v5247_v18 }
 0xbc0   : > { %6158 = vpow2.f32 %v5249_v19 }
 0xbc3   : > { %v3431_v20 = vpop.f32.mrf.mxu1  ;;  %v3504_v21 = vpop.f32.mrf.mxu0 }
 0xbc4   : > { %v3508_v23 = vadd.f32 %v3504_v21, %v3437_v22  ;;  %v3435_v36 = vadd.f32 %v3431_v20, %v3364_v26 }
 0xbc5   : > { %v5813_v24 = vpop.f32.mrf.mxu1  ;;  %v5824_v25 = vpop.f32.mrf.mxu0 }
 0xbc6   : > { %v5252_v27 = vmul.f32 -1.442695, %v3508_v23 }
 0xbc8   : > { %6160 = vpow2.f32 %v5252_v27 }
 0xbc9   : > { %6162 = vtanh.f32 %v3435_v36 }
 0xbcc   : > { %v6157_v45 = vpop.eup %6156 }
 0xbcd   : > { %v6159_v46 = vpop.eup %6158  ;;  %v3283_v47 = vadd.f32 1.0, %v6157_v45 }
 0xbce   : > { %v3361_v48 = vadd.f32 1.0, %v6159_v46 }
 0xbcf   : > { %6164 = vrcp.f32 %v3283_v47 }
 0xbd0   : > { %6166 = vrcp.f32 %v3361_v48  ;;  %v3996_v48 = vld [vmem:[#allocation2 + $0x15] sm:$0x1] }
 0xbd5   : > { %v6161_v49 = vpop.eup %6160 }
 0xbd6   : > { %v6163_v50 = vpop.eup %6162  ;;  %v3512_v54 = vadd.f32 1.0, %v6161_v49 }
 0xbd8   : > { %6168 = vrcp.f32 %v3512_v54 }
 0xbdc   : > { %v6165_v51 = vpop.eup %6164 }
 0xbdd   : > { %v6167_v52 = vpop.eup %6166  ;;  %v3516_v53 = vmul.f32 %v6165_v51, %v6163_v50 }
 0xbde   : > { %v3515_v55 = vmul.f32 %v6167_v52, %v7089_v5 }
 0xbe0   : > { %v7138_v56 = vadd.f32 %v3516_v53, %v3515_v55 }
 0xbe2   : > { %6170 = vtanh.f32 %v7138_v56 }
 0xbe5   : > { %v6169_v57 = vpop.eup %6168 }
 0xbef   : > { %v6171_v58 = vpop.eup %6170 }
 0xbf0   : > { %v3519_v60 = vmul.f32 %v6171_v58, %v6169_v57 }
 0xbf2   : > { %3520 = vst.msk [vmem:[#allocation3 + $0x3] sm:$0x1] %vm2571_vm5, %v3519_v60  ;;  %5834 = vmatmul.mubr.msk.f32.vlgmr.msra.gmra.mxu1 %vm825_vm0, %v3519_v60  ;;  %5845 = vmatmul.mubr.msk.f32.vlgmr.msra.gmra.mxu0 %vm825_vm0, %v3519_v60 }
 0xbf3   : > { %5848 = vmatpush3.msra.mxu1 %v6888_v37  ;;  %5859 = vmatpush3.msra.mxu0 %v6893_v38 }
 0xbf4   : > { %5849 = vmatprep.subr.mxu1 %v6372_v8  ;;  %5860 = vmatprep.subr.mxu0 %v6372_v8 }
 0xbf5   : > { %5850 = vmatpush3.msra.mxu1 %v6902_v39  ;;  %5861 = vmatpush3.msra.mxu0 %v6907_v40 }
 0xbf6   : > { %5851 = vmatprep.subr.mxu1 %v6372_v8  ;;  %5862 = vmatprep.subr.mxu0 %v6372_v8 }
 0xbf7   : > { %5852 = vmatpush3.msra.mxu1 %v6916_v41  ;;  %5863 = vmatpush3.msra.mxu0 %v6921_v42 }
 0xbf8   : > { %5853 = vmatprep.subr.mxu1 %v6372_v8  ;;  %5864 = vmatprep.subr.mxu0 %v6372_v8 }
 0xbf9   : > { %5854 = vmatpush3.msra.mxu1 %v6930_v43  ;;  %5855 = vmatprep.mubr.msk.f32.mxu1 %vm6373_vm1, %v6372_v8 }
 0xbfa   : > { %5865 = vmatpush3.msra.mxu0 %v6937_v44  ;;  %5866 = vmatprep.mubr.msk.f32.mxu0 %vm6373_vm1, %v6372_v8 }
 0xbfb   : > { %5856 = vmatmul.mubr.msk.f32.vlgmr.msra.gmra.mxu1 %vm825_vm0, %v3519_v60  ;;  %5867 = vmatmul.mubr.msk.f32.vlgmr.msra.gmra.mxu0 %vm825_vm0, %v3519_v60 }
 0xbfc   : > { %5869 = vmatprep.subr.mxu1 %v6372_v8  ;;  %5880 = vmatprep.subr.mxu0 %v6372_v8 }
 0xbfd   : > { %5870 = vmatpush3.msra.mxu1 %v6822_v28  ;;  %5881 = vmatpush3.msra.mxu0 %v6827_v29 }
 0xbfe   : > { %5871 = vmatprep.subr.mxu1 %v6372_v8  ;;  %5882 = vmatprep.subr.mxu0 %v6372_v8 }
 0xbff   : > { %5872 = vmatpush3.msra.mxu1 %v6836_v30  ;;  %5883 = vmatpush3.msra.mxu0 %v6841_v31 }
 0xc00   : > { %5873 = vmatprep.subr.mxu1 %v6372_v8  ;;  %5884 = vmatprep.subr.mxu0 %v6372_v8 }
 0xc01   : > { %5874 = vmatpush3.msra.mxu1 %v6850_v32  ;;  %5885 = vmatpush3.msra.mxu0 %v6855_v33 }
 0xc02   : > { %5875 = vmatprep.subr.mxu1 %v6372_v8  ;;  %5886 = vmatprep.subr.mxu0 %v6372_v8 }
 0xc03   : > { %5876 = vmatpush3.msra.mxu1 %v6868_v34  ;;  %5887 = vmatpush3.msra.mxu0 %v6875_v35 }
 0xc04   : > { %5877 = vmatprep.mubr.msk.f32.mxu1 %vm6373_vm1, %v6372_v8  ;;  %5888 = vmatprep.mubr.msk.f32.mxu0 %vm6373_vm1, %v6372_v8 }
 0xc05   : > { %5891 = vmatprep.subr.mxu1 %v6372_v8  ;;  %5902 = vmatprep.subr.mxu0 %v6372_v8 }
 0xcb2   : > { %v3591_v62 = vpop.f32.mrf.mxu1  ;;  %v3669_v1 = vpop.f32.mrf.mxu0 }
 0xcb3   : > { %v3595_v2 = vadd.f32 %v3591_v62, %v3521_v61  ;;  %v3673_v3 = vadd.f32 %v3669_v1, %v3602_v63 }
 0xcb4   : > { %v5835_v0 = vpop.f32.mrf.mxu1  ;;  %v5846_v4 = vpop.f32.mrf.mxu0 }
 0xcb5   : > { %v5254_v5 = vmul.f32 -1.442695, %v3595_v2  ;;  %v5256_v6 = vmul.f32 -1.442695, %v3673_v3  ;;  %v7245_v0 = vld [vmem:[%s7543_s17 + $0x58] sm:$0xff] }
 0xcb6   : > { %v7251_v4 = vld [vmem:[%s7543_s17 + $0x78] sm:$0xff] }
 0xcb7   : > { %6172 = vpow2.f32 %v5254_v5  ;;  %v7259_v5 = vld [vmem:[%s7543_s17 + $0x50] sm:$0xff] }
 0xcb8   : > { %6174 = vpow2.f32 %v5256_v6  ;;  %v7265_v6 = vld [vmem:[%s7543_s17 + $0x70] sm:$0xff] }
 0xcbb   : > { %v3747_v7 = vpop.f32.mrf.mxu1  ;;  %v3820_v9 = vpop.f32.mrf.mxu0 }
 0xcbc   : > { %v3824_v11 = vadd.f32 %v3820_v9, %v3753_v10  ;;  %v3751_v16 = vadd.f32 %v3747_v7, %v3680_v14  ;;  %v7273_v7 = vld [vmem:[%s7543_s17 + $0x48] sm:$0xff]  ;;  %v7287_v10 = vld [vmem:[%s7543_s17 + $0x40] sm:$0xff]  ;;  %v6248_v14 = vld [vmem:[%s7543_s17 + $0x10] sm:$0xff] }
 0xcbd   : > { %v5857_v12 = vpop.f32.mrf.mxu1  ;;  %v5868_v13 = vpop.f32.mrf.mxu0  ;;  %v7279_v9 = vld [vmem:[%s7543_s17 + $0x68] sm:$0xff] }
 0xcbe   : > { %v5259_v15 = vmul.f32 -1.442695, %v3824_v11  ;;  %v7295_v11 = vld [vmem:[%s7543_s17 + $0x60] sm:$0xff]  ;;  %v6246_v12 = vld [vmem:[%s7543_s17 + $0x18] sm:$0xff] }
 0xcbf   : > { %v6247_v13 = vld [vmem:[%s7543_s17 + $0x38] sm:$0xff] }
 0xcc0   : > { %6176 = vpow2.f32 %v5259_v15  ;;  %v6249_v15 = vld [vmem:[%s7543_s17 + $0x30] sm:$0xff] }
 0xcc1   : > { %6178 = vtanh.f32 %v3751_v16  ;;  %v6250_v16 = vld [vmem:[%s7543_s17 + $0x8] sm:$0xff] }
 0xcc4   : > { %v6173_v17 = vpop.eup %6172 }
 0xcc5   : > { %v6175_v18 = vpop.eup %6174  ;;  %v3599_v19 = vadd.f32 1.0, %v6173_v17  ;;  %v6251_v17 = vld [vmem:[%s7543_s17 + $0x28] sm:$0xff] }
 0xcc6   : > { %v3677_v20 = vadd.f32 1.0, %v6175_v18  ;;  %v6252_v18 = vld [vmem:[%s7543_s17] sm:$0xff] }
 0xcc7   : > { %6180 = vrcp.f32 %v3599_v19  ;;  %v6253_v19 = vld [vmem:[%s7543_s17 + $0x20] sm:$0xff] }
 0xcc8   : > { %6182 = vrcp.f32 %v3677_v20  ;;  %v4153_v20 = vld [vmem:[#allocation2 + $0x6] sm:$0x1] }
 0xccd   : > { %v6177_v21 = vpop.eup %6176 }
 0xcce   : > { %v6179_v22 = vpop.eup %6178  ;;  %v3828_v26 = vadd.f32 1.0, %v6177_v21 }
 0xcd0   : > { %6184 = vrcp.f32 %v3828_v26 }
 0xcd4   : > { %v6181_v23 = vpop.eup %6180 }
 0xcd5   : > { %v6183_v24 = vpop.eup %6182  ;;  %v3832_v25 = vmul.f32 %v6181_v23, %v6179_v22  ;;  %v4234_v22 = vld [vmem:[#allocation2 + $0xe] sm:$0x1] }
 0xcd6   : > { %v3831_v27 = vmul.f32 %v6183_v24, %v7138_v56 }
 0xcd8   : > { %v7187_v36 = vadd.f32 %v3832_v25, %v3831_v27 }
 0xcda   : > { %6186 = vtanh.f32 %v7187_v36 }
 0xcdd   : > { %v6185_v45 = vpop.eup %6184 }
 0xce7   : > { %v6187_v46 = vpop.eup %6186 }
 0xce8   : > { %v3835_v47 = vmul.f32 %v6187_v46, %v6185_v45 }
 0xcea   : > { %3836 = vst.msk [vmem:[#allocation3 + $0x4] sm:$0x1] %vm2571_vm5, %v3835_v47  ;;  %5878 = vmatmul.mubr.msk.f32.vlgmr.msra.gmra.mxu1 %vm825_vm0, %v3835_v47  ;;  %5889 = vmatmul.mubr.msk.f32.vlgmr.msra.gmra.mxu0 %vm825_vm0, %v3835_v47 }
 0xceb   : > { %5892 = vmatpush3.msra.mxu1 %v6888_v37  ;;  %5903 = vmatpush3.msra.mxu0 %v6893_v38 }
 0xcec   : > { %5893 = vmatprep.subr.mxu1 %v6372_v8  ;;  %5904 = vmatprep.subr.mxu0 %v6372_v8 }
 0xced   : > { %5894 = vmatpush3.msra.mxu1 %v6902_v39  ;;  %5905 = vmatpush3.msra.mxu0 %v6907_v40 }
 0xcee   : > { %5895 = vmatprep.subr.mxu1 %v6372_v8  ;;  %5906 = vmatprep.subr.mxu0 %v6372_v8 }
 0xcef   : > { %5896 = vmatpush3.msra.mxu1 %v6916_v41  ;;  %5907 = vmatpush3.msra.mxu0 %v6921_v42  ;;  %v4069_v41 = vld [vmem:[#allocation2 + $0x1d] sm:$0x1] }
 0xcf0   : > { %5897 = vmatprep.subr.mxu1 %v6372_v8  ;;  %5908 = vmatprep.subr.mxu0 %v6372_v8 }
 0xcf1   : > { %5898 = vmatpush3.msra.mxu1 %v6930_v43  ;;  %5899 = vmatprep.mubr.msk.f32.mxu1 %vm6373_vm1, %v6372_v8 }
 0xcf2   : > { %5909 = vmatpush3.msra.mxu0 %v6937_v44  ;;  %5910 = vmatprep.mubr.msk.f32.mxu0 %vm6373_vm1, %v6372_v8 }
 0xcf3   : > { %5900 = vmatmul.mubr.msk.f32.vlgmr.msra.gmra.mxu1 %vm825_vm0, %v3835_v47  ;;  %5911 = vmatmul.mubr.msk.f32.vlgmr.msra.gmra.mxu0 %vm825_vm0, %v3835_v47 }
 0xcf4   : > { %5913 = vmatprep.subr.mxu1 %v6372_v8  ;;  %5924 = vmatprep.subr.mxu0 %v6372_v8 }
 0xcf5   : > { %5914 = vmatpush3.msra.mxu1 %v6822_v28  ;;  %5925 = vmatpush3.msra.mxu0 %v6827_v29  ;;  %v3837_v28 = vld [vmem:[#allocation2 + $0x5] sm:$0x1] }
 0xcf6   : > { %5915 = vmatprep.subr.mxu1 %v6372_v8  ;;  %5926 = vmatprep.subr.mxu0 %v6372_v8 }
 0xcf7   : > { %5916 = vmatpush3.msra.mxu1 %v6836_v30  ;;  %5927 = vmatpush3.msra.mxu0 %v6841_v31  ;;  %v3918_v30 = vld [vmem:[#allocation2 + $0xd] sm:$0x1] }
 0xcf8   : > { %5917 = vmatprep.subr.mxu1 %v6372_v8  ;;  %5928 = vmatprep.subr.mxu0 %v6372_v8 }
 0xcf9   : > { %5918 = vmatpush3.msra.mxu1 %v6850_v32  ;;  %5929 = vmatpush3.msra.mxu0 %v6855_v33 }
 0xcfa   : > { %5919 = vmatprep.subr.mxu1 %v6372_v8  ;;  %5930 = vmatprep.subr.mxu0 %v6372_v8 }
 0xcfb   : > { %5920 = vmatpush3.msra.mxu1 %v6868_v34  ;;  %5931 = vmatpush3.msra.mxu0 %v6875_v35 }
 0xcfc   : > { %5921 = vmatprep.mubr.msk.f32.mxu1 %vm6373_vm1, %v6372_v8  ;;  %5932 = vmatprep.mubr.msk.f32.mxu0 %vm6373_vm1, %v6372_v8 }
 0xcfd   : > { %5935 = vmatprep.subr.mxu1 %v6372_v8  ;;  %5946 = vmatprep.subr.mxu0 %v6372_v8 }
 0xdaa   : > { %v3907_v29 = vpop.f32.mrf.mxu1  ;;  %v3985_v31 = vpop.f32.mrf.mxu0 }
 0xdab   : > { %v3911_v32 = vadd.f32 %v3907_v29, %v3837_v28  ;;  %v3989_v33 = vadd.f32 %v3985_v31, %v3918_v30  ;;  %v4385_v28 = vld [vmem:[#allocation2 + $0x1e] sm:$0x1] }
 0xdac   : > { %v5879_v37 = vpop.f32.mrf.mxu1  ;;  %v5890_v34 = vpop.f32.mrf.mxu0 }
 0xdad   : > { %v5261_v38 = vmul.f32 -1.442695, %v3911_v32  ;;  %v5263_v35 = vmul.f32 -1.442695, %v3989_v33  ;;  %v4312_v32 = vld [vmem:[#allocation2 + $0x16] sm:$0x1] }
 0xdaf   : > { %6188 = vpow2.f32 %v5261_v38 }
 0xdb0   : > { %6190 = vpow2.f32 %v5263_v35 }
 0xdb3   : > { %v4063_v39 = vpop.f32.mrf.mxu1  ;;  %v4136_v40 = vpop.f32.mrf.mxu0 }
 0xdb4   : > { %v4140_v42 = vadd.f32 %v4136_v40, %v4069_v41  ;;  %v4067_v50 = vadd.f32 %v4063_v39, %v3996_v48 }
 0xdb5   : > { %v5901_v43 = vpop.f32.mrf.mxu1  ;;  %v5912_v44 = vpop.f32.mrf.mxu0 }
 0xdb6   : > { %v5266_v49 = vmul.f32 -1.442695, %v4140_v42 }
 0xdb8   : > { %6192 = vpow2.f32 %v5266_v49 }
 0xdb9   : > { %6194 = vtanh.f32 %v4067_v50 }
 0xdbc   : > { %v6189_v51 = vpop.eup %6188 }
 0xdbd   : > { %v6191_v52 = vpop.eup %6190  ;;  %v3915_v53 = vadd.f32 1.0, %v6189_v51 }
 0xdbe   : > { %v3993_v54 = vadd.f32 1.0, %v6191_v52 }
 0xdbf   : > { %6196 = vrcp.f32 %v3915_v53 }
 0xdc0   : > { %6198 = vrcp.f32 %v3993_v54  ;;  %v4792_v54 = vld [vmem:[%s7545_s19 + $0x18] sm:$0xff] }
 0xdc5   : > { %v6193_v55 = vpop.eup %6192 }
 0xdc6   : > { %v6195_v56 = vpop.eup %6194  ;;  %v4144_v61 = vadd.f32 1.0, %v6193_v55  ;;  %v4791_v55 = vld [vmem:[%s7545_s19 + $0x10] sm:$0xff] }
 0xdc8   : > { %6200 = vrcp.f32 %v4144_v61  ;;  %v4550_v61 = vld [vmem:[#allocation2 + $0xf] sm:$0x1] }
 0xdcc   : > { %v6197_v57 = vpop.eup %6196 }
 0xdcd   : > { %v6199_v58 = vpop.eup %6198  ;;  %v4148_v60 = vmul.f32 %v6197_v57, %v6195_v56  ;;  %v4790_v56 = vld [vmem:[%s7545_s19 + $0x8] sm:$0xff]  ;;  %v4789_v57 = vld [vmem:[%s7545_s19] sm:$0xff] }
 0xdce   : > { %v4147_v62 = vmul.f32 %v6199_v58, %v7187_v36  ;;  %v4469_v58 = vld [vmem:[#allocation2 + $0x7] sm:$0x1] }
 0xdd0   : > { %v7236_v63 = vadd.f32 %v4148_v60, %v4147_v62 }
 0xdd2   : > { %6202 = vtanh.f32 %v7236_v63 }
 0xdd5   : > { %v6201_v1 = vpop.eup %6200 }
 0xddf   : > { %v6203_v2 = vpop.eup %6202 }
 0xde0   : > { %v4151_v3 = vmul.f32 %v6203_v2, %v6201_v1 }
 0xde2   : > { %4152 = vst.msk [vmem:[#allocation3 + $0x5] sm:$0x1] %vm2571_vm5, %v4151_v3  ;;  %5922 = vmatmul.mubr.msk.f32.vlgmr.msra.gmra.mxu1 %vm825_vm0, %v4151_v3  ;;  %5933 = vmatmul.mubr.msk.f32.vlgmr.msra.gmra.mxu0 %vm825_vm0, %v4151_v3 }
 0xde3   : > { %5936 = vmatpush3.msra.mxu1 %v7245_v0  ;;  %5947 = vmatpush3.msra.mxu0 %v7251_v4 }
 0xde4   : > { %5937 = vmatprep.subr.mxu1 %v6372_v8  ;;  %5948 = vmatprep.subr.mxu0 %v6372_v8 }
 0xde5   : > { %5938 = vmatpush3.msra.mxu1 %v7259_v5  ;;  %5949 = vmatpush3.msra.mxu0 %v7265_v6 }
 0xde6   : > { %5939 = vmatprep.subr.mxu1 %v6372_v8  ;;  %5950 = vmatprep.subr.mxu0 %v6372_v8 }
 0xde7   : > { %5940 = vmatpush3.msra.mxu1 %v7273_v7  ;;  %5951 = vmatpush3.msra.mxu0 %v7279_v9 }
 0xde8   : > { %5941 = vmatprep.subr.mxu1 %v6372_v8  ;;  %5952 = vmatprep.subr.mxu0 %v6372_v8 }
 0xde9   : > { %5942 = vmatpush3.msra.mxu1 %v7287_v10  ;;  %5943 = vmatprep.mubr.msk.f32.mxu1 %vm6373_vm1, %v6372_v8 }
 0xdea   : > { %5953 = vmatpush3.msra.mxu0 %v7295_v11  ;;  %5954 = vmatprep.mubr.msk.f32.mxu0 %vm6373_vm1, %v6372_v8 }
 0xdeb   : > { %5944 = vmatmul.mubr.msk.f32.vlgmr.msra.gmra.mxu1 %vm825_vm0, %v4151_v3  ;;  %5955 = vmatmul.mubr.msk.f32.vlgmr.msra.gmra.mxu0 %vm825_vm0, %v4151_v3 }
 0xdec   : > { %5957 = vmatprep.subr.mxu1 %v6372_v8  ;;  %5968 = vmatprep.subr.mxu0 %v6372_v8 }
 0xded   : > { %5958 = vmatpush3.msra.mxu1 %v6246_v12  ;;  %5969 = vmatpush3.msra.mxu0 %v6247_v13  ;;  %v4628_v12 = vld [vmem:[#allocation2 + $0x17] sm:$0x1] }
 0xdee   : > { %5959 = vmatprep.subr.mxu1 %v6372_v8  ;;  %5970 = vmatprep.subr.mxu0 %v6372_v8 }
 0xdef   : > { %5960 = vmatpush3.msra.mxu1 %v6248_v14  ;;  %5971 = vmatpush3.msra.mxu0 %v6249_v15 }
 0xdf0   : > { %5961 = vmatprep.subr.mxu1 %v6372_v8  ;;  %5972 = vmatprep.subr.mxu0 %v6372_v8 }
 0xdf1   : > { %5962 = vmatpush3.msra.mxu1 %v6250_v16  ;;  %5973 = vmatpush3.msra.mxu0 %v6251_v17 }
 0xdf2   : > { %5963 = vmatprep.subr.mxu1 %v6372_v8  ;;  %5974 = vmatprep.subr.mxu0 %v6372_v8 }
 0xdf3   : > { %5964 = vmatpush3.msra.mxu1 %v6252_v18  ;;  %5975 = vmatpush3.msra.mxu0 %v6253_v19 }
 0xdf4   : > { %5965 = vmatprep.mubr.msk.f32.mxu1 %vm6373_vm1, %v6372_v8  ;;  %5976 = vmatprep.mubr.msk.f32.mxu0 %vm6373_vm1, %v6372_v8 }
 0xdf5   : > { %5979 = vmatprep.subr.mxu1 %v6372_v8  ;;  %5990 = vmatprep.subr.mxu0 %v6372_v8 }
 0xea2   : > { %v4223_v21 = vpop.f32.mrf.mxu1  ;;  %v4301_v23 = vpop.f32.mrf.mxu0 }
 0xea3   : > { %v4227_v24 = vadd.f32 %v4223_v21, %v4153_v20  ;;  %v4305_v25 = vadd.f32 %v4301_v23, %v4234_v22 }
 0xea4   : > { %v5923_v26 = vpop.f32.mrf.mxu1  ;;  %v5934_v27 = vpop.f32.mrf.mxu0 }
 0xea5   : > { %v5268_v36 = vmul.f32 -1.442695, %v4227_v24  ;;  %v5270_v45 = vmul.f32 -1.442695, %v4305_v25 }
 0xea7   : > { %6204 = vpow2.f32 %v5268_v36 }
 0xea8   : > { %6206 = vpow2.f32 %v5270_v45 }
 0xeab   : > { %v4379_v46 = vpop.f32.mrf.mxu1  ;;  %v4452_v47 = vpop.f32.mrf.mxu0 }
 0xeac   : > { %v4456_v29 = vadd.f32 %v4452_v47, %v4385_v28  ;;  %v4383_v37 = vadd.f32 %v4379_v46, %v4312_v32  ;;  %v4885_v28 = vld [vmem:[%s7547_s21 + $0x38] sm:$0xff]  ;;  %v4880_v32 = vld [vmem:[%s7547_s21 + $0x10] sm:$0xff] }
 0xead   : > { %v5945_v30 = vpop.f32.mrf.mxu1  ;;  %v5956_v31 = vpop.f32.mrf.mxu0 }
 0xeae   : > { %v5273_v33 = vmul.f32 -1.442695, %v4456_v29  ;;  %v4884_v29 = vld [vmem:[%s7547_s21 + $0x30] sm:$0xff]  ;;  %v4882_v30 = vld [vmem:[%s7547_s21 + $0x20] sm:$0xff]  ;;  %v4881_v31 = vld [vmem:[%s7547_s21 + $0x18] sm:$0xff] }
 0xeb0   : > { %6208 = vpow2.f32 %v5273_v33  ;;  %v4879_v33 = vld [vmem:[%s7547_s21 + $0x8] sm:$0xff] }
 0xeb1   : > { %6210 = vtanh.f32 %v4383_v37  ;;  %v4878_v37 = vld [vmem:[%s7547_s21] sm:$0xff] }
 0xeb4   : > { %v6205_v34 = vpop.eup %6204 }
 0xeb5   : > { %v6207_v38 = vpop.eup %6206  ;;  %v4231_v35 = vadd.f32 1.0, %v6205_v34  ;;  %v5281_v34 = vld [vmem:[%s7546_s20] ss:$0 sm:$0xff] }
 0xeb6   : > { %v4309_v39 = vadd.f32 1.0, %v6207_v38 }
 0xeb7   : > { %6212 = vrcp.f32 %v4231_v35 }
 0xeb8   : > { %6214 = vrcp.f32 %v4309_v39 }
 0xebd   : > { %v6209_v40 = vpop.eup %6208 }
 0xebe   : > { %v6211_v41 = vpop.eup %6210  ;;  %v4460_v48 = vadd.f32 1.0, %v6209_v40 }
 0xec0   : > { %6216 = vrcp.f32 %v4460_v48 }
 0xec4   : > { %v6213_v42 = vpop.eup %6212 }
 0xec5   : > { %v6215_v43 = vpop.eup %6214  ;;  %v4464_v44 = vmul.f32 %v6213_v42, %v6211_v41 }
 0xec6   : > { %v4463_v49 = vmul.f32 %v6215_v43, %v7236_v63 }
 0xec8   : > { %v7341_v50 = vadd.f32 %v4464_v44, %v4463_v49 }
 0xeca   : > { %6218 = vtanh.f32 %v7341_v50 }
 0xecd   : > { %v6217_v51 = vpop.eup %6216 }
 0xed7   : > { %v6219_v52 = vpop.eup %6218 }
 0xed8   : > { %v4467_v53 = vmul.f32 %v6219_v52, %v6217_v51 }
 0xeda   : > { %4468 = vst.msk [vmem:[#allocation3 + $0x6] sm:$0x1] %vm2571_vm5, %v4467_v53  ;;  %5966 = vmatmul.mubr.msk.f32.vlgmr.msra.gmra.mxu1 %vm825_vm0, %v4467_v53  ;;  %5977 = vmatmul.mubr.msk.f32.vlgmr.msra.gmra.mxu0 %vm825_vm0, %v4467_v53 }
 0xedb   : > { %5980 = vmatpush3.msra.mxu1 %v7245_v0  ;;  %5991 = vmatpush3.msra.mxu0 %v7251_v4 }
 0xedc   : > { %5981 = vmatprep.subr.mxu1 %v6372_v8  ;;  %5992 = vmatprep.subr.mxu0 %v6372_v8 }
 0xedd   : > { %5982 = vmatpush3.msra.mxu1 %v7259_v5  ;;  %5993 = vmatpush3.msra.mxu0 %v7265_v6 }
 0xede   : > { %5983 = vmatprep.subr.mxu1 %v6372_v8  ;;  %5994 = vmatprep.subr.mxu0 %v6372_v8 }
 0xedf   : > { %5984 = vmatpush3.msra.mxu1 %v7273_v7  ;;  %5995 = vmatpush3.msra.mxu0 %v7279_v9  ;;  %v4701_v7 = vld [vmem:[#allocation2 + $0x1f] sm:$0x1] }
 0xee0   : > { %5985 = vmatprep.subr.mxu1 %v6372_v8  ;;  %5996 = vmatprep.subr.mxu0 %v6372_v8 }
 0xee1   : > { %5986 = vmatpush3.msra.mxu1 %v7287_v10  ;;  %5987 = vmatprep.mubr.msk.f32.mxu1 %vm6373_vm1, %v6372_v8 }
 0xee2   : > { %5997 = vmatpush3.msra.mxu0 %v7295_v11  ;;  %5998 = vmatprep.mubr.msk.f32.mxu0 %vm6373_vm1, %v6372_v8 }
 0xee3   : > { %5988 = vmatmul.mubr.msk.f32.vlgmr.msra.gmra.mxu1 %vm825_vm0, %v4467_v53  ;;  %5999 = vmatmul.mubr.msk.f32.vlgmr.msra.gmra.mxu0 %vm825_vm0, %v4467_v53 }
 0xee4   : > { %6001 = vmatprep.subr.mxu1 %v6372_v8  ;;  %6009 = vmatprep.mubr.msk.f32.mxu1 %vm6373_vm1, %v6372_v8 }
 0xee5   : > { %6012 = vmatprep.subr.mxu0 %v6372_v8  ;;  %6028 = vmatprep.mubr.msk.f32.mxu0 %vm6373_vm1, %v6372_v8 }
 0xee6   : > { %6002 = vmatpush3.msra.mxu1 %v4792_v54  ;;  %6013 = vmatpush3.msra.mxu0 %v4885_v28 }
 0xee7   : > { %6003 = vmatprep.subr.mxu1 %v6372_v8  ;;  %6014 = vmatprep.subr.mxu0 %v6372_v8 }
 0xee8   : > { %6004 = vmatpush3.msra.mxu1 %v4791_v55  ;;  %6015 = vmatpush3.msra.mxu0 %v4884_v29 }
 0xee9   : > { %6005 = vmatprep.subr.mxu1 %v6372_v8  ;;  %6016 = vmatprep.subr.mxu0 %v6372_v8 }
 0xeea   : > { %6006 = vmatpush3.msra.mxu1 %v4790_v56 }
 0xeeb   : > { %6007 = vmatprep.subr.mxu1 %v6372_v8 }
 0xeec   : > { %6008 = vmatpush3.msra.mxu1 %v4789_v57 }
 0xf9a   : > { %v4539_v60 = vpop.f32.mrf.mxu1  ;;  %v4617_v62 = vpop.f32.mrf.mxu0 }
 0xf9b   : > { %v4543_v63 = vadd.f32 %v4539_v60, %v4469_v58  ;;  %v4621_v1 = vadd.f32 %v4617_v62, %v4550_v61 }
 0xf9c   : > { %v5967_v2 = vpop.f32.mrf.mxu1  ;;  %v5978_v3 = vpop.f32.mrf.mxu0 }
 0xf9d   : > { %v5275_v0 = vmul.f32 -1.442695, %v4543_v63  ;;  %v5277_v4 = vmul.f32 -1.442695, %v4621_v1 }
 0xf9f   : > { %6220 = vpow2.f32 %v5275_v0 }
 0xfa0   : > { %6222 = vpow2.f32 %v5277_v4 }
 0xfa3   : > { %v4695_v5 = vpop.f32.mrf.mxu1  ;;  %v4768_v6 = vpop.f32.mrf.mxu0 }
 0xfa4   : > { %v4772_v9 = vadd.f32 %v4768_v6, %v4701_v7  ;;  %v4699_v14 = vadd.f32 %v4695_v5, %v4628_v12 }
 0xfa5   : > { %v5989_v10 = vpop.f32.mrf.mxu1  ;;  %v6000_v11 = vpop.f32.mrf.mxu0 }
 0xfa6   : > { %v5280_v13 = vmul.f32 -1.442695, %v4772_v9 }
 0xfa8   : > { %6224 = vpow2.f32 %v5280_v13 }
 0xfa9   : > { %6226 = vtanh.f32 %v4699_v14 }
 0xfac   : > { %v6221_v15 = vpop.eup %6220 }
 0xfad   : > { %v6223_v16 = vpop.eup %6222  ;;  %v4547_v17 = vadd.f32 1.0, %v6221_v15 }
 0xfae   : > { %v4625_v18 = vadd.f32 1.0, %v6223_v16 }
 0xfaf   : > { %6228 = vrcp.f32 %v4547_v17 }
 0xfb0   : > { %6230 = vrcp.f32 %v4625_v18 }
 0xfb5   : > { %v6225_v19 = vpop.eup %6224 }
 0xfb6   : > { %v6227_v20 = vpop.eup %6226  ;;  %v4776_v24 = vadd.f32 1.0, %v6225_v19 }
 0xfb8   : > { %6232 = vrcp.f32 %v4776_v24 }
 0xfbc   : > { %v6229_v21 = vpop.eup %6228 }
 0xfbd   : > { %v6231_v22 = vpop.eup %6230  ;;  %v4780_v23 = vmul.f32 %v6229_v21, %v6227_v20 }
 0xfbe   : > { %v4779_v25 = vmul.f32 %v6231_v22, %v7341_v50 }
 0xfc0   : > { %v4781_v26 = vadd.f32 %v4780_v23, %v4779_v25 }
 0xfc2   : > { %6234 = vtanh.f32 %v4781_v26  ;;  %4786 = vst.msk [vmem:[%s7564_s1] sm:$0x1] %vm2571_vm5, %v4781_v26  ;;  %s6380_s1 = smov [#allocation6]  }
 0xfc3   : > { %s6258_s10 = sshll.u32 %s6380_s1, 4  ;;  %s6259_s10 = int_to_ptr.vmem [resolvable:$false] %s6258_s10 }
 0xfc4   : > { %s6260_s11 = scalar_lea.vmem %s6259_s10, 32  ;;  %p6261_p0 = scmp.lt.s32.totalorder %s5005_s3, %s6259_s10 }
 0xfc5   : > { %v6233_v27 = vpop.eup %6232  ;;  %p6262_p1 = scmp.lt.s32.totalorder %s6260_s11, %s6254_s9 }
 0xfc7   : > { %p6263_p2 = por %p6262_p1, %p6261_p0 }
 0xfc9   : > { %p6264_p3 = pnand %p6263_p2, %p6257_p13 }
 0xfcf   : > { %v6235_v36 = vpop.eup %6234 }
 0xfd0   : > { %v4783_v45 = vmul.f32 %v6235_v36, %v6233_v27 }
 0xfd2   : > { %4784 = vst.msk [vmem:[#allocation3 + $0x7] sm:$0x1] %vm2571_vm5, %v4783_v45  ;;  %4785 = vst.msk [vmem:[%s800_s8] sm:$0x1] %vm2571_vm5, %v4783_v45 }
 0xfd9   : > { %v4787_v46 = vld [vmem:[#allocation3] sm:$0xff] }
 0xfda   : > { %v7402_v47 = vadd.f32 %v4787_v46, %v6739_v59  ;;  %v4883_v59 = vld [vmem:[%s7547_s21 + $0x28] sm:$0xff] }
 0xfdb   : > { %6017 = vmatpush3.msra.mxu0 %v4883_v59 }
 0xfdc   : > { %6010 = vmatmul.mubr.msk.f32.vlgmr.msra.gmra.mxu1 %vm825_vm0, %v7402_v47  ;;  %6018 = vmatprep.subr.mxu0 %v6372_v8 }
 0xfdd   : > { %6019 = vmatpush3.msra.mxu0 %v4882_v30 }
 0xfde   : > { %6020 = vmatprep.subr.mxu0 %v6372_v8 }
 0xfdf   : > { %6021 = vmatpush3.msra.mxu0 %v4881_v31 }
 0xfe0   : > { %6022 = vmatprep.subr.mxu0 %v6372_v8 }
 0xfe1   : > { %6023 = vmatpush3.msra.mxu0 %v4880_v32 }
 0xfe2   : > { %6024 = vmatprep.subr.mxu0 %v6372_v8 }
 0xfe3   : > { %6025 = vmatpush3.msra.mxu0 %v4879_v33 }
 0xfe4   : > { %6026 = vmatprep.subr.mxu0 %v6372_v8 }
 0xfe5   : > { %6027 = vmatpush3.msra.mxu0 %v4878_v37 }
0x109c   : > { %v4869_v38 = vpop.f32.mrf.mxu1 }
0x109d   : > { %v4870_v35 = vadd.f32 %v5281_v34, %v4869_v38 }
0x109e   : > { %v6011_v39 = vpop.f32.mrf.mxu1 }
0x109f   : > { %v4874_v40 = vmul.f32 0.70710677, %v4870_v35  ;;  %v4873_v42 = vmul.f32 0.5, %v4870_v35 }
0x10a1   : > { %6236 = verf.f32 %v4874_v40 }
0x10ae   : > { %v6237_v41 = vpop.eup %6236 }
0x10af   : > { %v4876_v43 = vadd.f32 1.0, %v6237_v41 }
0x10b1   : > { %v4877_v44 = vmul.f32 %v4876_v43, %v4873_v42 }
0x10b3   : > { %6029 = vmatmul.mubr.msk.f32.vlgmr.msra.gmra.mxu0 %vm4893_vm6, %v4877_v44 }
0x10b4   : > { %6267 = shalt.err (!%p6264_p3)
}
0x10b5   : > { %s6268_s29 = scalar_lea.hbm %s5002_s5, 16  ;;  %s6272_s30 = scalar_lea.hbm %s7550_s24, 32 }
0x10b6   : > { %p6269_p4 = scmp.ne.s32.totalorder %s5002_s5, %s6268_s29  ;;  %p6273_p9 = scmp.lt.s32.totalorder %s5002_s5, %s7550_s24 }
0x10b7   : > { %p6274_p10 = scmp.lt.s32.totalorder %s6272_s30, %s6268_s29 }
0x10b8   : > { %p6270_p7 = pnand %p6269_p4, %p6553_p5 }
0x10b9   : > { %p6275_p11 = por %p6274_p10, %p6273_p9 }
0x10ba   : > { %p6271_p8 = pneg %p6270_p7 }
0x10bc   : > { %p6276_p12 = pnand %p6275_p11, %p6271_p8 }
0x10be   : > { %6279 = shalt.err (!%p6276_p12)
}
0x10bf   : > { %6032 = dma.vmem_to_hbm [thread:$0]  (%p6553_p5), %s5005_s3, 16, %s5002_s5, %s7449_s6  }
0x10c0   : > { %s7601_s10 = sshll.u32 %s6534_s7, 4  ;;  %s7602_s8 = scalar_lea.vmem [#allocation8], %s7389_s0 }
0x10c1   : > { %s5015_s9 = scalar_lea.hbm %s7551_s25, %s7601_s10  ;;  %s5017_s27 = sshll.u32 %s7602_s8, 4  ;;  %s5018_s27 = int_to_ptr.vmem [resolvable:$true] %s5017_s27 }
0x10c2   : > { %s6280_s12 = scalar_lea.vmem %s5018_s27, 16  ;;  %s6381_s26 = smov [#allocation8]  }
0x10c3   : > { %p6281_p13 = scmp.ne.s32.totalorder %s5018_s27, %s6280_s12  ;;  %s6284_s29 = sshll.u32 %s6381_s26, 4  ;;  %s6285_s29 = int_to_ptr.vmem [resolvable:$false] %s6284_s29 }
0x10c4   : > { %s6286_s30 = scalar_lea.vmem %s6285_s29, 32  ;;  %p6287_p2 = scmp.lt.s32.totalorder %s5018_s27, %s6285_s29 }
0x10c5   : > { %p6282_p0 = pnand %p6281_p13, %p6553_p5  ;;  %p6288_p3 = scmp.lt.s32.totalorder %s6286_s30, %s6280_s12 }
0x10c7   : > { %p6283_p1 = pneg %p6282_p0  ;;  %p6289_p4 = por %p6288_p3, %p6287_p2 }
0x10c9   : > { %p6290_p7 = pnand %p6289_p4, %p6283_p1 }
0x10cb   : > { %6293 = shalt.err (!%p6290_p7)
}
0x10cc   : > { %s6294_s5 = scalar_lea.hbm %s5015_s9, 16  ;;  %s6298_s11 = scalar_lea.hbm %s7551_s25, 32 }
0x10cd   : > { %p6295_p8 = scmp.ne.s32.totalorder %s5015_s9, %s6294_s5  ;;  %p6299_p11 = scmp.lt.s32.totalorder %s5015_s9, %s7551_s25 }
0x10ce   : > { %p6300_p12 = scmp.lt.s32.totalorder %s6298_s11, %s6294_s5 }
0x10cf   : > { %p6296_p9 = pnand %p6295_p8, %p6553_p5 }
0x10d0   : > { %p6301_p13 = por %p6300_p12, %p6299_p11 }
0x10d1   : > { %p6297_p10 = pneg %p6296_p9 }
0x10d3   : > { %p6302_p0 = pnand %p6301_p13, %p6297_p10 }
0x10d5   : > { %6305 = shalt.err (!%p6302_p0)
}
0x10d6   : > { %6033 = dma.vmem_to_hbm [thread:$0]  (%p6553_p5), %s5018_s27, 16, %s5015_s9, %s7449_s6   ;;  %v5283_v8 = vld [vmem:[%s7548_s22] ss:$0 sm:$0xff] }
0x10d7   : > { %s5163_s12 = sshll.u32 %s7389_s0, 3  ;;  %s5286_s30 = sshll.u32 %s6534_s7, 7 }
0x10d8   : > { %s794_s3 = scalar_lea.vmem [#allocation4], %s5163_s12  ;;  %s4989_s1 = scalar_lea.hbm %s7549_s23, %s5286_s30 }
0x10d9   : > { %s4991_s5 = sshll.u32 %s794_s3, 4  ;;  %s4970_s6 = scalar_lea.sflag [#allocation5], %s7389_s0  ;;  %s4992_s5 = int_to_ptr.vmem [resolvable:$true] %s4991_s5 }
0x10da   : > { %s6306_s9 = scalar_lea.vmem %s4992_s5, 128  ;;  %s6382_s7 = smov [#allocation4]  }
0x10db   : > { %p6307_p1 = scmp.ne.s32.totalorder %s4992_s5, %s6306_s9  ;;  %s6310_s27 = sshll.u32 %s6382_s7, 4  ;;  %s6311_s27 = int_to_ptr.vmem [resolvable:$false] %s6310_s27 }
0x10dc   : > { %s6312_s8 = scalar_lea.vmem %s6311_s27, 256  ;;  %p6313_p4 = scmp.lt.s32.totalorder %s4992_s5, %s6311_s27 }
0x10dd   : > { %p6308_p2 = pnand %p6307_p1, %p6553_p5  ;;  %p6314_p7 = scmp.lt.s32.totalorder %s6312_s8, %s6306_s9 }
0x10df   : > { %p6309_p3 = pneg %p6308_p2  ;;  %p6315_p8 = por %p6314_p7, %p6313_p4 }
0x10e1   : > { %p6316_p9 = pnand %p6315_p8, %p6309_p3 }
0x1173   : > { %v4963_v48 = vpop.f32.mrf.mxu0 }
0x1174   : > { %v4964_v49 = vadd.f32 %v5283_v8, %v4963_v48 }
0x1175   : > { %v6030_v50 = vpop.f32.mrf.mxu0 }
0x1176   : > { %v4967_v51 = vadd.f32 %v4964_v49, %v7402_v47 }
0x1178   : > { %4968 = vst.msk [vmem:[%s794_s3] sm:$0xff] %vm825_vm0, %v4967_v51 }
0x1179   : > { %6319 = shalt.err (!%p6316_p9)
}
0x117a   : > { %s6320_s12 = scalar_lea.hbm %s4989_s1, 128  ;;  %s6324_s29 = scalar_lea.hbm %s7549_s23, 256 }
0x117b   : > { %p6321_p10 = scmp.ne.s32.totalorder %s4989_s1, %s6320_s12  ;;  %p6325_p13 = scmp.lt.s32.totalorder %s4989_s1, %s7549_s23 }
0x117c   : > { %p6326_p0 = scmp.lt.s32.totalorder %s6324_s29, %s6320_s12 }
0x117d   : > { %p6322_p11 = pnand %p6321_p10, %p6553_p5 }
0x117e   : > { %p6327_p1 = por %p6326_p0, %p6325_p13 }
0x117f   : > { %p6323_p12 = pneg %p6322_p11 }
0x1181   : > { %p6328_p2 = pnand %p6327_p1, %p6323_p12 }
0x1183   : > { %6331 = shalt.err (!%p6328_p2)
}
0x1184   : > { %6031 = dma.vmem_to_hbm [thread:$0]  (%p6553_p5), %s4992_s5, 128, %s4989_s1, %s4970_s6  }
0x1185 PF: > { %s7603_s10 = sld [smem:[#allocation13_spill]] }
0x1186   : > { %s7604_s11 = sld [smem:[#allocation11_spill]] }
0x118b   : > { %p6047_p3 = scmp.ge.s32.totalorder %s7603_s10, 2 }
0x118c   : > { %s5029_s7 = sand.u32 1, %s7604_s11  }
0x118d   : > { %p6038_p4 = pnand %p6047_p3, %p6557_p6  ;;  %s5030_s27 = scalar_lea.sflag [#allocation5], %s5029_s7 }
0x118f   : > { %p6039_p7 = pneg %p6038_p4 }
0x1191   : > { %6349 = dma.done.wait (%p6039_p7), %s5030_s27, 128  }
0x1192   : > { %6351 = vsyncadd (%p6039_p7), %s5030_s27, 4294967168  ;;  %s7606_s8 = sadd.s32 4294967294, %s7603_s10  }
0x1193   : > { %s5038_s12 = sand.u32 1, %s7606_s8  }
0x1194   : > { %s5039_s0 = scalar_lea.sflag [#allocation7], %s5038_s12 }
0x1195   : > { %6353 = dma.done.wait (%p6039_p7), %s5039_s0, 32  }
0x1196   : > { %6355 = vsyncadd (%p6039_p7), %s5039_s0, 4294967264  ;;  %s7607_s30 = sld [smem:[#allocation14_spill]]  ;;  %s7610_s29 = smov %s6362_s2 }
0x1197   : > { %s7608_s4 = sld [smem:[#allocation12_spill]] }
0x1198   : > { %s7609_s6 = sld [smem:[#allocation15_spill]] }
0x119c   : > { %p39_p5 = scmp.ge.s32.totalorder %s7607_s30, 4  }
0x119d   : > { %s7611_s2 = smov %s7608_s4 }
0x119e   :  { %41 = sbr.rel (!%p39_p5) target bundleno = 19 (0x13), region = 200 }
0x11a3   :  { %5051 = vsyncpa [#allocation5], 1 }
0x11a4   :  { %5053 = vsyncpa [#allocation5 + $0x1], 1 }
0x11a5   :  { %5054 = vsyncpa [#allocation7], 1 }
0x11a6   :  { %5056 = vsyncpa [#allocation7 + $0x1], 1 }

// kernel: decoder_forward.2
= control target key start
LH: loop header
LB: loop body
LE: loop exit
PB: predicated region body
PF: predicated region fallthrough
CT: control target
= control target key end

     0   :  { %s8269_s0 = inlined_call_operand.hbm [shape: f32[2,8,32], index: 0, kind: input, shape index: {}]   ;;  %s8270_s1 = inlined_call_operand.vmem [shape: f32[2,8,32], index: 1, kind: input, shape index: {}]   ;;  %s8271_s2 = inlined_call_operand.vmem [shape: f32[2,1,32], index: 2, kind: input, shape index: {}, may-alias: {2,3}]   ;;  %s8272_s3 = inlined_call_operand.vmem [shape: f32[2,1,32], index: 3, kind: input, shape index: {}, may-alias: {2,3}]   ;;  %s8273_s4 = inlined_call_operand.vmem [shape: f32[1,32], index: 4, kind: input, shape index: {}]   ;;  %s8274_s5 = inlined_call_operand.hbm [shape: f32[1,32], index: 5, kind: input, shape index: {}]   ;;  %s8275_s6 = inlined_call_operand.vmem [shape: f32[32,32], index: 6, kind: input, shape index: {}]   ;;  %s8276_s7 = inlined_call_operand.hbm [shape: f32[1,32], index: 7, kind: input, shape index: {}]   ;;  %s8277_s8 = inlined_call_operand.vmem [shape: f32[32,32], index: 8, kind: input, shape index: {}]   ;;  %s8278_s9 = inlined_call_operand.hbm [shape: f32[1,32], index: 9, kind: input, shape index: {}]   ;;  %s8279_s10 = inlined_call_operand.vmem [shape: f32[32,32], index: 10, kind: input, shape index: {}]   ;;  %s8280_s11 = inlined_call_operand.hbm [shape: f32[1,32], index: 11, kind: input, shape index: {}]   ;;  %s8281_s12 = inlined_call_operand.hbm [shape: f32[32,32], index: 12, kind: input, shape index: {}]   ;;  %s8282_s13 = inlined_call_operand.hbm [shape: f32[1,32], index: 13, kind: input, shape index: {}]   ;;  %s8283_s14 = inlined_call_operand.vmem [shape: f32[1,32], index: 14, kind: input, shape index: {}]   ;;  %s8284_s15 = inlined_call_operand.vmem [shape: f32[1,32], index: 15, kind: input, shape index: {}]   ;;  %s8285_s16 = inlined_call_operand.hbm [shape: f32[4,32,32], index: 16, kind: input, shape index: {}]   ;;  %s8286_s17 = inlined_call_operand.hbm [shape: f32[4,32,32], index: 17, kind: input, shape index: {}]   ;;  %s8287_s18 = inlined_call_operand.hbm [shape: f32[4,1,32], index: 18, kind: input, shape index: {}]   ;;  %s8288_s19 = inlined_call_operand.hbm [shape: f32[32,64], index: 19, kind: input, shape index: {}]   ;;  %s8289_s20 = inlined_call_operand.hbm [shape: f32[1,64], index: 20, kind: input, shape index: {}]   ;;  %s8290_s21 = inlined_call_operand.vmem [shape: f32[64,32], index: 21, kind: input, shape index: {}]   ;;  %s8291_s22 = inlined_call_operand.hbm [shape: f32[1,32], index: 22, kind: input, shape index: {}]   ;;  %s8292_s23 = inlined_call_operand.vmem [shape: f32[2,8,32], index: 23, kind: output, shape index: {0}]   ;;  %s8293_s24 = inlined_call_operand.hbm [shape: f32[2,1,32], index: 24, kind: output, shape index: {1}]   ;;  %s8294_s25 = inlined_call_operand.hbm [shape: f32[2,1,32], index: 25, kind: output, shape index: {2}]  }
   0x1   :  { %8314 = sst [smem:[#allocation37_spill]] %s8269_s0 }
   0x2   :  { %8315 = sst [smem:[#allocation38_spill]] %s8270_s1 }
   0x3   :  { %8316 = sst [smem:[#allocation39_spill]] %s8271_s2 }
   0x4   :  { %8317 = sst [smem:[#allocation40_spill]] %s8272_s3 }
   0x5   :  { %8318 = sst [smem:[#allocation41_spill]] %s8273_s4 }
   0x6   :  { %8319 = sst [smem:[#allocation42_spill]] %s8274_s5 }
   0x7   :  { %8320 = sst [smem:[#allocation43_spill]] %s8275_s6 }
   0x8   :  { %8321 = sst [smem:[#allocation44_spill]] %s8276_s7 }
   0x9   :  { %8322 = sst [smem:[#allocation45_spill]] %s8277_s8 }
   0xa   :  { %8323 = sst [smem:[#allocation46_spill]] %s8278_s9 }
   0xb   :  { %8324 = sst [smem:[#allocation47_spill]] %s8279_s10 }
   0xc   :  { %8325 = sst [smem:[#allocation48_spill]] %s8280_s11 }
   0xd   :  { %8326 = sst [smem:[#allocation49_spill]] %s8281_s12 }
   0xe   :  { %8327 = sst [smem:[#allocation50_spill]] %s8282_s13 }
   0xf   :  { %8328 = sst [smem:[#allocation51_spill]] %s8283_s14 }
  0x10   :  { %8329 = sst [smem:[#allocation52_spill]] %s8284_s15 }
  0x11   :  { %8330 = sst [smem:[#allocation53_spill]] %s8285_s16 }
  0x12   :  { %8331 = sst [smem:[#allocation54_spill]] %s8286_s17 }
  0x13   :  { %8332 = sst [smem:[#allocation55_spill]] %s8287_s18 }
  0x14   :  { %8333 = sst [smem:[#allocation56_spill]] %s8288_s19 }
  0x15   :  { %8334 = sst [smem:[#allocation57_spill]] %s8290_s21 }
  0x16   :  { %8335 = sst [smem:[#allocation58_spill]] %s8292_s23 }
  0x17   :  { %8336 = sst [smem:[#allocation59_spill]] %s8293_s24 }
  0x18   :  { %8337 = sst [smem:[#allocation60_spill]] %s8294_s25 }
  0x19   :  { %31 = vsyncpa [#allocation5], 0 }
  0x1a   :  { %33 = vsyncpa [#allocation5 + $0x1], 0 }
  0x1b   :  { %34 = vsyncpa [#allocation8], 0 }
  0x1c   :  { %35 = vsyncpa [#allocation11], 0 }
  0x1d   :  { %36 = vsyncpa [#allocation14], 0 }
  0x1e   :  { %37 = vsyncpa [#allocation17], 0 }
  0x1f   :  { %38 = vsyncpa [#allocation20], 0 }
  0x20   :  { %39 = vsyncpa [#allocation23], 0 }
  0x21   :  { %40 = vsyncpa [#allocation6], 0 }
  0x22   :  { %42 = vsyncpa [#allocation6 + $0x1], 0 }
  0x23   :  { %43 = vsyncpa [#allocation27], 0 }
  0x24   :  { %45 = vsyncpa [#allocation27 + $0x1], 0  ;;  %s7287_s29 = smov 0   ;;  %s7289_s2 = smov 0  }
  0x25   :  { %s7291_s6 = smov 0   ;;  %s7293_s30 = smov 0  }
  0x26 LB: > { %s7130_s7 = smov [#allocation7]   ;;  %s7308_s26 = sadd.s32 4294967295, %s7128_s30   ;;  %s7128_s30 = sphi %s7293_s30, %s8396_s30   ;;  %s7124_s6 = sphi %s7291_s6, %s8395_s6   ;;  %s7120_s2 = sphi %s7289_s2, %s8394_s2   ;;  %s7116_s29 = sphi %s7287_s29, %s8393_s29  }
  0x27   : > { %s653_s3 = sshll.u32 %s7130_s7, 4  ;;  %p5452_p0 = scmp.ge.s32.totalorder %s7128_s30, 1  ;;  %s654_s3 = int_to_ptr.vmem [resolvable:$true] %s653_s3 }
  0x28   : > { %p8300_p1 = scmp.eq.s32.totalorder %s7308_s26, 0  ;;  %p637_p2 = scmp.lt.s32.totalorder %s7128_s30, 3 }
  0x29   : > { %s7131_s8 = smov [#allocation10]   ;;  %s7132_s4 = smov [#allocation13]  }
  0x2a   : > { %p7313_p3 = pnand %p5452_p0, %p637_p2  ;;  %s681_s27 = sshll.u32 %s7131_s8, 4  ;;  %s682_s27 = int_to_ptr.vmem [resolvable:$true] %s681_s27 }
  0x2b   : > { %s705_s28 = sshll.u32 %s7132_s4, 4  ;;  %s6681_s0 = scalar_lea.vmem %s654_s3, 16  ;;  %s7326_s28 = int_to_ptr.vmem [resolvable:$true] %s705_s28 }
  0x2c   : > { %s8338_s1 = scalar_select %p7313_p3, 1, 0 }
  0x2d   : > { %p6374_p5 = pneg %p7313_p3  ;;  %p6682_p8 = scmp.ne.s32.totalorder %s654_s3, %s6681_s0 }
  0x2e   : > { %s6688_s7 = scalar_lea.vmem %s654_s3, 32  ;;  %p6689_p11 = scmp.lt.s32.totalorder %s654_s3, %s654_s3 }
  0x2f   : > { %p7322_p6 = pnand %p6374_p5, %p8300_p1  ;;  %p6690_p12 = scmp.lt.s32.totalorder %s6688_s7, %s6681_s0 }
  0x31   : > { %p7330_p7 = pneg %p7322_p6  ;;  %p6691_p13 = por %p6690_p12, %p6689_p11 }
  0x33   : > { %p6684_p9 = pnand %p6682_p8, %p7330_p7 }
  0x35   : > { %p6685_p10 = pneg %p6684_p9 }
  0x37   : > { %p6692_p0 = pnand %p6691_p13, %p6685_p10 }
  0x39   : > { %6695 = shalt.err (!%p6692_p0)
}
  0x3a   : > { %s8341_s23 = sld [smem:[#allocation42_spill]]  ;;  %s6707_s25 = scalar_lea.vmem %s682_s27, 16 }
  0x3b   : > { %p6708_p2 = scmp.ne.s32.totalorder %s682_s27, %s6707_s25  ;;  %s6714_s24 = scalar_lea.vmem %s682_s27, 32 }
  0x3c   : > { %p6715_p8 = scmp.lt.s32.totalorder %s682_s27, %s682_s27  ;;  %p6716_p9 = scmp.lt.s32.totalorder %s6714_s24, %s6707_s25 }
  0x3d   : > { %p6710_p5 = pnand %p6708_p2, %p7330_p7 }
  0x3e   : > { %p6717_p1 = por %p6716_p9, %p6715_p8 }
  0x3f   : > { %p6711_p4 = pneg %p6710_p5 }
  0x40   : > { %6377 = dma.hbm_to_vmem [thread:$0]  (!%p7322_p6), %s8341_s23, 16, %s654_s3, [#allocation8]  }
  0x41   : > { %p6718_p3 = pnand %p6717_p1, %p6711_p4 }
  0x43   : > { %6721 = shalt.err (!%p6718_p3)
}
  0x44   : > { %s8342_s21 = sld [smem:[#allocation46_spill]]  ;;  %s6733_s23 = scalar_lea.vmem %s7326_s28, 512 }
  0x45   : > { %p6734_p10 = scmp.ne.s32.totalorder %s7326_s28, %s6733_s23  ;;  %p6741_p13 = scmp.lt.s32.totalorder %s7326_s28, %s7326_s28 }
  0x46   : > { %p6742_p0 = scmp.lt.s32.totalorder %s6733_s23, %s6733_s23 }
  0x47   : > { %p6736_p11 = pnand %p6734_p10, %p7330_p7 }
  0x48   : > { %p6743_p1 = por %p6742_p0, %p6741_p13 }
  0x49   : > { %p6737_p12 = pneg %p6736_p11 }
  0x4a   : > { %6383 = dma.hbm_to_vmem [thread:$0]  (!%p7322_p6), %s8342_s21, 16, %s682_s27, [#allocation11]  }
  0x4b   : > { %p6744_p3 = pnand %p6743_p1, %p6737_p12 }
  0x4d   : > { %6747 = shalt.err (!%p6744_p3)
}
  0x4e   : > { %s8303_s24 = smov 128   ;;  %s8305_s25 = smov 8  }
  0x4f   : > { %s8343_s12 = sld [smem:[#allocation49_spill]]  ;;  %s7135_s27 = smov [#allocation16]  }
  0x50   : > { %s735_s8 = sshll.u32 %s7135_s27, 4  ;;  %s7136_s4 = smov [#allocation19]   ;;  %s736_s8 = int_to_ptr.vmem [resolvable:$true] %s735_s8 }
  0x51   : > { %s761_s0 = sshll.u32 %s7136_s4, 4  ;;  %s6759_s7 = scalar_lea.vmem %s736_s8, 2048  ;;  %s762_s0 = int_to_ptr.vmem [resolvable:$true] %s761_s0 }
  0x52   : > { %p6760_p4 = scmp.ne.s32.totalorder %s736_s8, %s6759_s7  ;;  %p6767_p8 = scmp.lt.s32.totalorder %s736_s8, %s736_s8 }
  0x53   : > { %p6768_p9 = scmp.lt.s32.totalorder %s6759_s7, %s6759_s7 }
  0x54   : > { %p6762_p2 = pnand %p6760_p4, %p7330_p7 }
  0x55   : > { %6389 = dma.hbm_to_vmem [thread:$0]  (!%p7322_p6), %s8343_s12, 512, %s7326_s28, [#allocation14], %s8303_s24, %s8303_s24, %s8305_s25  }
  0x56   : > { %p6763_p5 = pneg %p6762_p2  ;;  %p6769_p10 = por %p6768_p9, %p6767_p8 }
  0x58   : > { %p6770_p11 = pnand %p6769_p10, %p6763_p5 }
  0x5a   : > { %6773 = shalt.err (!%p6770_p11)
}
  0x5b   : > { %s8344_s16 = sld [smem:[#allocation53_spill]]  ;;  %s6785_s21 = scalar_lea.vmem %s762_s0, 64 }
  0x5c   : > { %p6786_p12 = scmp.ne.s32.totalorder %s762_s0, %s6785_s21  ;;  %p6793_p1 = scmp.lt.s32.totalorder %s762_s0, %s762_s0 }
  0x5d   : > { %p6794_p3 = scmp.lt.s32.totalorder %s6785_s21, %s6785_s21 }
  0x5e   : > { %p6788_p13 = pnand %p6786_p12, %p7330_p7 }
  0x5f   : > { %p6795_p4 = por %p6794_p3, %p6793_p1 }
  0x60   : > { %p6789_p0 = pneg %p6788_p13 }
  0x61   : > { %6395 = dma.hbm_to_vmem [thread:$0]  (!%p7322_p6), %s8344_s16, 2048, %s736_s8, [#allocation17], %s8303_s24, %s8303_s24, %s8305_s25  }
  0x62   : > { %p6796_p2 = pnand %p6795_p4, %p6789_p0 }
  0x64   : > { %6799 = shalt.err (!%p6796_p2)
}
  0x65   : > { %s7137_s3 = smov 16   ;;  %s7138_s27 = smov 1  }
  0x66   : > { %s8345_s18 = sld [smem:[#allocation55_spill]]  ;;  %s7139_s8 = smov [#allocation22]  }
  0x67   : > { %s788_s28 = sshll.u32 %s7139_s8, 4  ;;  %s7140_s23 = smov [#allocation9]   ;;  %s789_s28 = int_to_ptr.vmem [resolvable:$true] %s788_s28 }
  0x68   : > { %s667_s24 = sshll.u32 %s7140_s23, 4  ;;  %s6811_s25 = scalar_lea.vmem %s789_s28, 16  ;;  %s668_s24 = int_to_ptr.vmem [resolvable:$true] %s667_s24 }
  0x69   : > { %p6812_p5 = scmp.ne.s32.totalorder %s789_s28, %s6811_s25  ;;  %s6818_s21 = scalar_lea.vmem %s789_s28, 32 }
  0x6a   : > { %p6819_p10 = scmp.lt.s32.totalorder %s789_s28, %s789_s28  ;;  %p6820_p11 = scmp.lt.s32.totalorder %s6818_s21, %s6811_s25 }
  0x6b   : > { %p6814_p8 = pnand %p6812_p5, %p7330_p7 }
  0x6c   : > { %6401 = dma.hbm_to_vmem [thread:$0]  (!%p7322_p6), %s8345_s18, 64, %s762_s0, [#allocation20], %s7137_s3, %s7137_s3, %s7138_s27  }
  0x6d   : > { %p6815_p9 = pneg %p6814_p8  ;;  %p6821_p12 = por %p6820_p11, %p6819_p10 }
  0x6f   : > { %p6822_p13 = pnand %p6821_p12, %p6815_p9 }
  0x71   : > { %6825 = shalt.err (!%p6822_p13)
}
  0x72   : > { %6407 = dma.hbm_to_vmem [thread:$0]  (!%p7322_p6), %s8289_s20, 16, %s789_s28, [#allocation23]  }
  0x73   : > { %s6837_s3 = scalar_lea.vmem %s668_s24, 16  ;;  %s6844_s27 = scalar_lea.vmem %s668_s24, 32 }
  0x74   : > { %p6838_p0 = scmp.ne.s32.totalorder %s668_s24, %s6837_s3  ;;  %p6845_p4 = scmp.lt.s32.totalorder %s668_s24, %s668_s24 }
  0x75   : > { %p6846_p2 = scmp.lt.s32.totalorder %s6844_s27, %s6837_s3 }
  0x76   : > { %p6840_p1 = pnand %p6838_p0, %p7330_p7 }
  0x77   : > { %p6847_p5 = por %p6846_p2, %p6845_p4 }
  0x78   : > { %p6841_p3 = pneg %p6840_p1 }
  0x7a   : > { %p6848_p8 = pnand %p6847_p5, %p6841_p3 }
  0x7c   : > { %6851 = shalt.err (!%p6848_p8)
}
  0x7d   : > { %s8346_s8 = sld [smem:[#allocation44_spill]]  ;;  %s7141_s28 = smov [#allocation12]  }
  0x7e   : > { %s695_s23 = sshll.u32 %s7141_s28, 4  ;;  %s7142_s21 = smov [#allocation15]   ;;  %s696_s23 = int_to_ptr.vmem [resolvable:$true] %s695_s23 }
  0x7f   : > { %s719_s4 = sshll.u32 %s7142_s21, 4  ;;  %s6863_s0 = scalar_lea.vmem %s696_s23, 16  ;;  %s720_s4 = int_to_ptr.vmem [resolvable:$true] %s719_s4 }
  0x80   : > { %p6864_p9 = scmp.ne.s32.totalorder %s696_s23, %s6863_s0  ;;  %s6870_s3 = scalar_lea.vmem %s696_s23, 32 }
  0x81   : > { %p6871_p12 = scmp.lt.s32.totalorder %s696_s23, %s696_s23  ;;  %p6872_p13 = scmp.lt.s32.totalorder %s6870_s3, %s6863_s0 }
  0x82   : > { %p6866_p10 = pnand %p6864_p9, %p7330_p7 }
  0x83   : > { %6380 = dma.hbm_to_vmem [thread:$0]  (!%p7322_p6), %s8346_s8, 16, %s668_s24, [#allocation8]  }
  0x84   : > { %p6867_p11 = pneg %p6866_p10  ;;  %p6873_p0 = por %p6872_p13, %p6871_p12 }
  0x86   : > { %p6874_p1 = pnand %p6873_p0, %p6867_p11 }
  0x88   : > { %6877 = shalt.err (!%p6874_p1)
}
  0x89   : > { %s8347_s11 = sld [smem:[#allocation48_spill]]  ;;  %s6889_s25 = scalar_lea.vmem %s720_s4, 16 }
  0x8a   : > { %p6890_p3 = scmp.ne.s32.totalorder %s720_s4, %s6889_s25  ;;  %s6896_s7 = scalar_lea.vmem %s720_s4, 32 }
  0x8b   : > { %p6897_p5 = scmp.lt.s32.totalorder %s720_s4, %s720_s4  ;;  %p6898_p8 = scmp.lt.s32.totalorder %s6896_s7, %s6889_s25 }
  0x8c   : > { %p6892_p4 = pnand %p6890_p3, %p7330_p7 }
  0x8d   : > { %p6899_p9 = por %p6898_p8, %p6897_p5 }
  0x8e   : > { %p6893_p2 = pneg %p6892_p4 }
  0x8f   : > { %6386 = dma.hbm_to_vmem [thread:$0]  (!%p7322_p6), %s8347_s11, 16, %s696_s23, [#allocation11]  }
  0x90   : > { %p6900_p10 = pnand %p6899_p9, %p6893_p2 }
  0x92   : > { %6903 = shalt.err (!%p6900_p10)
}
  0x93   : > { %s8348_s13 = sld [smem:[#allocation50_spill]]  ;;  %s7143_s23 = smov [#allocation18]  }
  0x94   : > { %s748_s21 = sshll.u32 %s7143_s23, 4  ;;  %s7144_s0 = smov [#allocation21]   ;;  %s749_s21 = int_to_ptr.vmem [resolvable:$true] %s748_s21 }
  0x95   : > { %s774_s3 = sshll.u32 %s7144_s0, 4  ;;  %s6915_s27 = scalar_lea.vmem %s749_s21, 2048  ;;  %s775_s3 = int_to_ptr.vmem [resolvable:$true] %s774_s3 }
  0x96   : > { %p6916_p11 = scmp.ne.s32.totalorder %s749_s21, %s6915_s27  ;;  %p6923_p0 = scmp.lt.s32.totalorder %s749_s21, %s749_s21 }
  0x97   : > { %p6924_p1 = scmp.lt.s32.totalorder %s6915_s27, %s6915_s27 }
  0x98   : > { %p6918_p12 = pnand %p6916_p11, %p7330_p7 }
  0x99   : > { %6392 = dma.hbm_to_vmem [thread:$0]  (!%p7322_p6), %s8348_s13, 16, %s720_s4, [#allocation14]  }
  0x9a   : > { %p6919_p13 = pneg %p6918_p12  ;;  %p6925_p3 = por %p6924_p1, %p6923_p0 }
  0x9c   : > { %p6926_p4 = pnand %p6925_p3, %p6919_p13 }
  0x9e   : > { %6929 = shalt.err (!%p6926_p4)
}
  0x9f   : > { %s8349_s24 = smov 8   ;;  %s8350_s25 = smov 128  }
  0xa0   : > { %s8351_s17 = sld [smem:[#allocation54_spill]]  ;;  %s6941_s8 = scalar_lea.vmem %s775_s3, 512 }
  0xa1   : > { %p6942_p2 = scmp.ne.s32.totalorder %s775_s3, %s6941_s8  ;;  %p6949_p9 = scmp.lt.s32.totalorder %s775_s3, %s775_s3 }
  0xa2   : > { %p6950_p10 = scmp.lt.s32.totalorder %s6941_s8, %s6941_s8 }
  0xa3   : > { %p6944_p5 = pnand %p6942_p2, %p7330_p7 }
  0xa4   : > { %p6951_p11 = por %p6950_p10, %p6949_p9 }
  0xa5   : > { %p6945_p8 = pneg %p6944_p5 }
  0xa6   : > { %6398 = dma.hbm_to_vmem [thread:$0]  (!%p7322_p6), %s8351_s17, 2048, %s749_s21, [#allocation17], %s8350_s25, %s8350_s25, %s8349_s24  }
  0xa7   : > { %p6952_p12 = pnand %p6951_p11, %p6945_p8 }
  0xa9   : > { %6955 = shalt.err (!%p6952_p12)
}
  0xaa   : > { %s8352_s19 = sld [smem:[#allocation56_spill]]  ;;  %s7145_s21 = smov [#allocation24]  }
  0xab   : > { %s802_s0 = sshll.u32 %s7145_s21, 4  ;;  %s803_s0 = int_to_ptr.vmem [resolvable:$true] %s802_s0 }
  0xac   : > { %s6967_s27 = scalar_lea.vmem %s803_s0, 16  ;;  %s6974_s4 = scalar_lea.vmem %s803_s0, 32 }
  0xad   : > { %p6968_p13 = scmp.ne.s32.totalorder %s803_s0, %s6967_s27  ;;  %p6975_p3 = scmp.lt.s32.totalorder %s803_s0, %s803_s0 }
  0xae   : > { %p6976_p4 = scmp.lt.s32.totalorder %s6974_s4, %s6967_s27 }
  0xaf   : > { %p6970_p0 = pnand %p6968_p13, %p7330_p7 }
  0xb0   : > { %6404 = dma.hbm_to_vmem [thread:$0]  (!%p7322_p6), %s8352_s19, 512, %s775_s3, [#allocation20], %s8350_s25, %s8350_s25, %s8349_s24  }
  0xb1   : > { %p6971_p1 = pneg %p6970_p0  ;;  %p6977_p2 = por %p6976_p4, %p6975_p3 }
  0xb3   : > { %p6978_p5 = pnand %p6977_p2, %p6971_p1 }
  0xb5   : > { %6981 = shalt.err (!%p6978_p5)
}
  0xb6   : > { %6410 = dma.hbm_to_vmem [thread:$0]  (!%p7322_p6), %s8291_s22, 16, %s803_s0, [#allocation23]  }
  0xb7   : > { %s5451_s5 = sadd.s32 4294967294, %s7128_s30   ;;  %s7437_s9 = sadd.s32 1, %s7128_s30  }
  0xb8   : > { %s55_s3 = ssub.s32 %s7128_s30, %s7437_s9  ;;  %s58_s24 = sadd.s32 1, %s7124_s6 }
  0xb9   : > { %p56_p7 = scmp.eq.s32.totalorder %s55_s3, 0  ;;  %p65_p8 = scmp.ne.s32.totalorder %s7124_s6, %s7120_s2 }
  0xba   : > { %p66_p9 = scmp.eq.s32.totalorder %s7128_s30, 0  ;;  %p71_p10 = scmp.ne.s32.totalorder %s7120_s2, %s7116_s29 }
  0xbb   : > { %s7448_s25 = scalar_select %p56_p7, %s7124_s6, %s58_s24  }
  0xbc   : > { %p7450_p11 = por %p66_p9, %p65_p8  ;;  %p8354_p12 = scmp.eq.s32.totalorder %s7308_s26, 0 }
  0xbd   : > { %p598_p13 = scmp.eq.s32.totalorder %s7308_s26, 1  ;;  %p604_p0 = scmp.eq.s32.totalorder %s5451_s5, 1 }
  0xbe   : > { %p7456_p6 = por %p8354_p12, %p71_p10  ;;  %p6434_p1 = scmp.lt.s32.totalorder %s7128_s30, 2 }
  0xbf   : > { %s813_s21 = sand.u32 1, %s7124_s6   ;;  %p7463_p3 = por %p598_p13, %p65_p8 }
  0xc0   : > { %s8355_s23 = scalar_select %p7456_p6, 1, 0 }
  0xc1   : > { %s8356_s0 = scalar_select %p7463_p3, 1, 0 }
  0xc2   : > { %p7467_p4 = por %p604_p0, %p71_p10  ;;  %s5466_s4 = sshll.u32 %s813_s21, 3 }
  0xc3   : > { %s5467_s7 = sshll.u32 %s7128_s30, 7  ;;  %s8358_s24 = sld [smem:[#allocation37_spill]] }
  0xc4   : > { %s8357_s27 = scalar_select %p7467_p4, 1, 0 }
  0xc5   : > { %s817_s5 = scalar_lea.vmem [#allocation4], %s5466_s4  ;;  %p7479_p2 = pnand %p6434_p1, %p7450_p11 }
  0xc6   : > { %s824_s12 = sshll.u32 %s817_s5, 4  ;;  %s814_s16 = scalar_lea.sflag [#allocation5], %s813_s21  ;;  %s825_s12 = int_to_ptr.vmem [resolvable:$true] %s824_s12 }
  0xc7   : > { %p6984_p7 = pneg %p7479_p2 }
  0xc9   : > { %s7475_s11 = scalar_lea.hbm %s8358_s24, %s5467_s7  ;;  %s6987_s3 = scalar_lea.hbm %s8358_s24, 256 }
  0xca   : > { %s6982_s17 = scalar_lea.hbm %s7475_s11, 128  ;;  %p6988_p10 = scmp.lt.s32.totalorder %s7475_s11, %s8358_s24 }
  0xcb   : > { %p6983_p5 = scmp.ne.s32.totalorder %s7475_s11, %s6982_s17  ;;  %p6989_p11 = scmp.lt.s32.totalorder %s6987_s3, %s6982_s17 }
  0xcd   : > { %p6985_p8 = pnand %p6984_p7, %p6983_p5  ;;  %p6990_p12 = por %p6989_p11, %p6988_p10 }
  0xcf   : > { %p6986_p9 = pneg %p6985_p8 }
  0xd1   : > { %p6991_p13 = pnand %p6990_p12, %p6986_p9 }
  0xd3   : > { %6994 = shalt.err (!%p6991_p13)
}
  0xd4   : > { %s6995_s28 = scalar_lea.vmem %s825_s12, 128  ;;  %s7146_s21 = smov [#allocation4]  }
  0xd5   : > { %p6996_p0 = scmp.ne.s32.totalorder %s825_s12, %s6995_s28  ;;  %s7000_s18 = sshll.u32 %s7146_s21, 4  ;;  %s7001_s18 = int_to_ptr.vmem [resolvable:$false] %s7000_s18 }
  0xd6   : > { %s7002_s19 = scalar_lea.vmem %s7001_s18, 256  ;;  %p7003_p5 = scmp.lt.s32.totalorder %s825_s12, %s7001_s18 }
  0xd7   : > { %p6998_p1 = pnand %p6996_p0, %p6984_p7  ;;  %p7004_p8 = scmp.lt.s32.totalorder %s7002_s19, %s6995_s28 }
  0xd9   : > { %p6999_p4 = pneg %p6998_p1  ;;  %p7005_p3 = por %p7004_p8, %p7003_p5 }
  0xdb   : > { %p7006_p6 = pnand %p7005_p3, %p6999_p4 }
  0xdd   : > { %7009 = shalt.err (!%p7006_p6)
}
  0xde   : > { %6414 = dma.hbm_to_vmem [thread:$0]  (!%p7479_p2), %s7475_s11, 128, %s825_s12, %s814_s16  }
  0xdf   : > { %p8360_p9 = scmp.ne.s32.totalorder %s8338_s1, 0 }
  0xe0   : > { %s7500_s17 = sand.u32 (!%p8360_p9), 1, %s7120_s2   ;;  %p8361_p7 = scmp.ne.s32.totalorder (!%p8360_p9), %s8355_s23, 0 }
  0xe1   : > { %852 = sbr.rel (%p8360_p9) target bundleno = 4680 (0x1248), region = 112  ;;  %s5469_s7 = sshll.u32 (!%p8360_p9), %s7500_s17, 3 }
  0xe2   : > { %s855_s8 = scalar_lea.sflag (!%p8360_p9), [#allocation5], %s7500_s17  ;;  %s858_s18 = scalar_lea.vmem (!%p8360_p9), [#allocation4], %s5469_s7 }
  0xe6   : > { %7079 = dma.done.wait (%p8361_p7), %s855_s8, 128  }
  0xe7   : > { %7081 = vsyncadd (%p8361_p7), %s855_s8, 4294967168  ;;  %p8362_p6 = scmp.eq.s32.totalorder %s7308_s26, 0 }
  0xe9   : > { %7083 = dma.done.wait (%p8362_p6), [#allocation8], 32   ;;  %p8363_p3 = pmov %p8362_p6 }
  0xeb   : > { %7085 = vsyncadd (%p8363_p3), [#allocation8], 4294967264  ;;  %p8364_p4 = pmov %p8363_p3 }
  0xec   : > { %p8365_p2 = pmov %p8363_p3 }
  0xed   : > { %7087 = dma.done.wait (%p8364_p4), [#allocation11], 32  }
  0xee   : > { %7089 = vsyncadd (%p8365_p2), [#allocation11], 4294967264  ;;  %p8366_p10 = pmov %p8365_p2 }
  0xef   : > { %p8367_p11 = pmov %p8365_p2 }
  0xf0   : > { %7091 = dma.done.wait (%p8366_p10), [#allocation14], 528  }
  0xf1   : > { %7093 = vsyncadd (%p8367_p11), [#allocation14], 4294966768  ;;  %p8368_p12 = pmov %p8365_p2 }
  0xf2   : > { %p8369_p13 = pmov %p8365_p2 }
  0xf3   : > { %7095 = dma.done.wait (%p8368_p12), [#allocation17], 4096  }
  0xf4   : > { %7097 = vsyncadd (%p8369_p13), [#allocation17], 4294963200  ;;  %p8370_p0 = pmov %p8365_p2 }
  0xf6   : > { %7099 = dma.done.wait (%p8370_p0), [#allocation20], 576   ;;  %p8371_p1 = pmov %p8370_p0 }
  0xf7   : > { %p8372_p5 = pmov %p8370_p0 }
  0xf8   : > { %7101 = vsyncadd (%p8371_p1), [#allocation20], 4294966720 }
  0xf9   : > { %7103 = dma.done.wait (%p8372_p5), [#allocation23], 32   ;;  %p8373_p8 = pmov %p8370_p0 }
  0xfa   : > { %vm1008_vm0 = vcmask 261120   ;;  %v7532_v0 = vld [vmem:[%s858_s18] sm:$0xff]  ;;  %s8374_s13 = sld [smem:[#allocation43_spill]]  ;;  %v7147_v8 = vmov 0.0   ;;  %vm7148_vm1 = vmmov 0   ;;  %p990_p9 = scmp.lt.s32.totalorder %s7308_s26, 1 }
  0xfb   : > { %7105 = vsyncadd (%p8373_p8), [#allocation23], 4294967264  ;;  %v1009_v1 = vsel %vm1008_vm0, %v7532_v0, 0.0  ;;  %5810 = vmatprep.subr.mxu1 %v7147_v8  ;;  %5818 = vmatprep.mubr.msk.f32.mxu1 %vm7148_vm1, %v7147_v8  ;;  %s8375_s21 = sld [smem:[#allocation41_spill]]  ;;  %v5485_v18 = vld [vmem:[#allocation7] ss:$0 sm:$0xff] }
  0xfc   : > { %1010 = vadd.xlane.f32.xlu0 %v1009_v1  ;;  %5832 = vmatprep.subr.mxu0 %v7147_v8  ;;  %s7565_s7 = scalar_select %p990_p9, %s7308_s26, 1  ;;  %v5486_v30 = vld [vmem:[#allocation9] ss:$0 sm:$0xff]  ;;  %v5488_v34 = vld [vmem:[#allocation10] ss:$0 sm:$0xff]  ;;  %vm1286_vm2 = vcmask 64512  }
  0xfd   : > { %5840 = vmatprep.mubr.msk.f32.mxu0 %vm7148_vm1, %v7147_v8  ;;  %s8376_s11 = sld [smem:[#allocation45_spill]]  ;;  %s7151_s8 = smov 104   ;;  %v5490_v44 = vld [vmem:[#allocation12] ss:$0 sm:$0xff]  ;;  %vm1960_vm3 = vcmask 130048   ;;  %vm1962_vm4 = vcmask 195584  }
  0xfe   : > { %s8309_s12 = sshll.u32 %s7565_s7, 3  ;;  %s8377_s5 = sld [smem:[#allocation38_spill]]  ;;  %vm2754_vm5 = vcmask 253952   ;;  %vm5076_vm6 = vcmask 523264  }
  0xff   : > { %s8378_s10 = sld [smem:[#allocation47_spill]]  ;;  %s7152_s18 = smov 8  }
 0x100   : > { %v1040_v7 = vld [vmem:[%s8374_s13 + $0x18] sm:$0xff]  ;;  %v1039_v9 = vld [vmem:[%s8374_s13 + $0x10] sm:$0xff]  ;;  %v1038_v10 = vld [vmem:[%s8374_s13 + $0x8] sm:$0xff]  ;;  %s7153_s16 = smov 16   ;;  %s7154_s19 = smov 24  }
 0x101   : > { %5811 = vmatpush3.msra.mxu1 %v1040_v7  ;;  %v1037_v11 = vld [vmem:[%s8374_s13] sm:$0xff]  ;;  %s8379_s14 = sld [smem:[#allocation51_spill]]  ;;  %s8310_s23 = scalar_lea.vmem [#allocation26], %s7500_s17 }
 0x102   : > { %5812 = vmatprep.subr.mxu1 %v7147_v8  ;;  %v5484_v16 = vld [vmem:[%s8375_s21] ss:$0 sm:$0xff]  ;;  %s7150_s21 = smov 112   ;;  %s8380_s15 = sld [smem:[#allocation52_spill]] }
 0x103   : > { %5813 = vmatpush3.msra.mxu1 %v1039_v9  ;;  %v1124_v21 = vld [vmem:[%s8376_s11 + $0x18] sm:$0xff]  ;;  %v1123_v22 = vld [vmem:[%s8376_s11 + $0x10] sm:$0xff]  ;;  %v1122_v23 = vld [vmem:[%s8376_s11 + $0x8] sm:$0xff]  ;;  %s983_s3 = scalar_lea.vmem [#allocation25], %s7500_s17  ;;  %s8311_s4 = sshll.u32 %s7308_s26, 4 }
 0x104   : > { %5814 = vmatprep.subr.mxu1 %v7147_v8  ;;  %s993_s28 = scalar_lea.vmem %s8377_s5, %s8309_s12  ;;  %v1121_v24 = vld [vmem:[%s8376_s11] sm:$0xff]  ;;  %s5176_s5 = sshll.u32 %s983_s3, 4  ;;  %s5177_s5 = int_to_ptr.vmem [resolvable:$true] %s5176_s5 }
 0x105   : > { %5815 = vmatpush3.msra.mxu1 %v1038_v10  ;;  %v1005_v25 = vld [vmem:[%s993_s28] sm:$0xff]  ;;  %v1208_v26 = vld [vmem:[%s8378_s10 + $0x18] sm:$0xff]  ;;  %v1207_v27 = vld [vmem:[%s8378_s10 + $0x10] sm:$0xff]  ;;  %s7149_s28 = smov 120   ;;  %p8385_p6 = scmp.ne.s32.totalorder %s8356_s0, 0 }
 0x106   : > { %5816 = vmatprep.subr.mxu1 %v7147_v8  ;;  %5833 = vmatpush3.msra.mxu0 %v1208_v26  ;;  %v1206_v28 = vld [vmem:[%s8378_s10 + $0x8] sm:$0xff]  ;;  %v1205_v29 = vld [vmem:[%s8378_s10] sm:$0xff]  ;;  %s7155_s12 = smov [#allocation25]  }
 0x107   : > { %5817 = vmatpush3.msra.mxu1 %v1037_v11  ;;  %5834 = vmatprep.subr.mxu0 %v7147_v8 }
 0x108   : > { %5821 = vmatprep.subr.mxu1 %v7147_v8  ;;  %5835 = vmatpush3.msra.mxu0 %v1207_v27 }
 0x109   : > { %5836 = vmatprep.subr.mxu0 %v7147_v8 }
 0x10a   : > { %5837 = vmatpush3.msra.mxu0 %v1206_v28 }
 0x10b   : > { %5838 = vmatprep.subr.mxu0 %v7147_v8 }
 0x10c   : > { %5839 = vmatpush3.msra.mxu0 %v1205_v29 }
 0x10d   : > { %5841 = vmatmul.mubr.msk.f32.vlgmr.msra.gmra.mxu0 %vm1008_vm0, %v1005_v25  ;;  %5853 = vmatprep.subr.mxu0 %v7147_v8 }
 0x10e   : > { %5855 = vmatprep.mubr.msk.f32.mxu0 %vm7148_vm1, %v7147_v8 }
 0x185   : > { %v1011_v2 = vpop.xlane.xlu0 %1010 }
 0x186   : > { %v1013_v3 = vmul.f32 0.03125, %v1011_v2 }
 0x188   : > { %v1014_v4 = vsub.f32 %v7532_v0, %v1013_v3 }
 0x18a   : > { %v1015_v5 = vmul.f32 %v1014_v4, %v1014_v4 }
 0x18c   : > { %v1016_v6 = vsel %vm1008_vm0, %v1015_v5, 0.0 }
 0x18d   : > { %1017 = vadd.xlane.f32.xlu0 %v1016_v6 }
 0x1cd   : > { %v1282_v45 = vpop.f32.mrf.mxu0 }
 0x1ce   : > { %v1283_v46 = vadd.f32 %v5490_v44, %v1282_v45 }
 0x1cf   : > { %v5842_v47 = vpop.f32.mrf.mxu0 }
 0x216   : > { %v1018_v12 = vpop.xlane.xlu0 %1017 }
 0x217   : > { %v1019_v13 = vmul.f32 0.03125, %v1018_v12 }
 0x219   : > { %v1020_v14 = vadd.f32 1e-05, %v1019_v13 }
 0x21b   : > { %6504 = vrsqrt.f32 %v1020_v14 }
 0x228   : > { %v6505_v15 = vpop.eup %6504 }
 0x229   : > { %v1022_v17 = vmul.f32 %v6505_v15, %v1014_v4 }
 0x22b   : > { %v1029_v19 = vmul.f32 %v5484_v16, %v1022_v17 }
 0x22d   : > { %v1036_v20 = vadd.f32 %v5485_v18, %v1029_v19 }
 0x22f   : > { %5819 = vmatmul.mubr.msk.f32.vlgmr.msra.gmra.mxu1 %vm1008_vm0, %v1036_v20 }
 0x230   : > { %5822 = vmatpush3.msra.mxu1 %v1124_v21  ;;  %5829 = vmatprep.mubr.msk.f32.mxu1 %vm7148_vm1, %v7147_v8 }
 0x231   : > { %5823 = vmatprep.subr.mxu1 %v7147_v8 }
 0x232   : > { %5824 = vmatpush3.msra.mxu1 %v1123_v22 }
 0x233   : > { %5825 = vmatprep.subr.mxu1 %v7147_v8 }
 0x234   : > { %5826 = vmatpush3.msra.mxu1 %v1122_v23 }
 0x235   : > { %5827 = vmatprep.subr.mxu1 %v7147_v8 }
 0x236   : > { %5828 = vmatpush3.msra.mxu1 %v1121_v24 }
 0x237   : > { %5830 = vmatmul.mubr.msk.f32.vlgmr.msra.gmra.mxu1 %vm1008_vm0, %v1005_v25  ;;  %5843 = vmatprep.subr.mxu1 %v7147_v8 }
 0x238   : > { %5845 = vmatprep.mubr.msk.f32.mxu1 %vm7148_vm1, %v7147_v8 }
 0x2ef   : > { %v1117_v31 = vpop.f32.mrf.mxu1 }
 0x2f0   : > { %v1118_v32 = vadd.f32 %v5486_v30, %v1117_v31 }
 0x2f1   : > { %v5820_v33 = vpop.f32.mrf.mxu1 }
 0x2f2   : > { %1448 = vrot.lane.b32.xlu1 %v1118_v32, %s7149_s28 }
 0x2f7   : > { %v1201_v35 = vpop.f32.mrf.mxu1 }
 0x2f8   : > { %v1202_v36 = vadd.f32 %v5488_v34, %v1201_v35 }
 0x2f9   : > { %v5831_v37 = vpop.f32.mrf.mxu1 }
 0x2fa   : > { %1617 = vrot.lane.b32.xlu0 %v1202_v36, %s7150_s21  ;;  %1450 = vrot.lane.b32.xlu1 %v1202_v36, %s7149_s28 }
 0x2fb   : > { %5844 = vmatpush3.xpose.msk.msra.mxu1 %vm1286_vm2, %v1202_v36 }
 0x2fc   : > { %5848 = vmatprep.subr.mxu1 %v7147_v8 }
 0x2fe   : > { %5846 = vmatmul.mubr.msk.f32.vlgmr.msra.gmra.mxu1 %vm1286_vm2, %v1118_v32  ;;  %1615 = vrot.lane.b32.xlu1 %v1118_v32, %s7150_s21 }
 0x2ff   : > { %5850 = vmatprep.mubr.msk.f32.mxu1 %vm7148_vm1, %v7147_v8  ;;  %5849 = vmatpush3.msra.mxu1 %v1283_v46 }
 0x300   : > { %5858 = vmatprep.subr.mxu1 %v7147_v8 }
 0x302   : > { %1783 = vrot.lane.b32.xlu1 %v1202_v36, %s7151_s8 }
 0x306   : > { %1781 = vrot.lane.b32.xlu1 %v1118_v32, %s7151_s8 }
 0x364   : > { %v1449_v38 = vpop.permute.xlu1 %1448 }
 0x36c   : > { %v1451_v39 = vpop.permute.xlu1 %1450  ;;  %v1618_v40 = vpop.permute.xlu0 %1617 }
 0x36d   : > { %5854 = vmatpush3.xpose.msk.msra.mxu0 %vm1286_vm2, %v1451_v39  ;;  %v1967_v39 = vld [vmem:[#allocation13 + $0x18] sm:$0xff] }
 0x36e   : > { %5863 = vmatprep.subr.mxu0 %v7147_v8 }
 0x370   : > { %5856 = vmatmul.mubr.msk.f32.vlgmr.msra.gmra.mxu0 %vm1286_vm2, %v1449_v38  ;;  %v1616_v41 = vpop.permute.xlu1 %1615 }
 0x371   : > { %5864 = vmatpush3.xpose.msk.msra.mxu0 %vm1286_vm2, %v1618_v40  ;;  %5865 = vmatprep.mubr.msk.f32.mxu0 %vm7148_vm1, %v7147_v8  ;;  %v1966_v40 = vld [vmem:[#allocation13 + $0x10] sm:$0xff] }
 0x372   : > { %5873 = vmatprep.subr.mxu0 %v7147_v8 }
 0x374   : > { %5866 = vmatmul.mubr.msk.f32.vlgmr.msra.gmra.mxu0 %vm1286_vm2, %v1616_v41  ;;  %v1784_v42 = vpop.permute.xlu1 %1783  ;;  %v1965_v41 = vld [vmem:[#allocation13 + $0x8] sm:$0xff] }
 0x375   : > { %5874 = vmatpush3.xpose.msk.msra.mxu0 %vm1286_vm2, %v1784_v42  ;;  %5875 = vmatprep.mubr.msk.f32.mxu0 %vm7148_vm1, %v7147_v8 }
 0x376   : > { %5883 = vmatprep.subr.mxu0 %v7147_v8 }
 0x378   : > { %v1782_v43 = vpop.permute.xlu1 %1781 }
 0x379   : > { %5876 = vmatmul.mubr.msk.f32.vlgmr.msra.gmra.mxu0 %vm1286_vm2, %v1782_v43 }
 0x37a   : > { %5891 = vmatprep.mubr.msk.f32.mxu0 %vm7148_vm1, %v7147_v8  ;;  %5884 = vmatpush3.msra.mxu0 %v1967_v39  ;;  %v7758_v39 = vld [vmem:[#allocation18 + $0x50] sm:$0xff] }
 0x37b   : > { %5885 = vmatprep.subr.mxu0 %v7147_v8 }
 0x37c   : > { %5886 = vmatpush3.msra.mxu0 %v1966_v40  ;;  %v7760_v40 = vld [vmem:[#allocation18 + $0x70] sm:$0xff] }
 0x37d   : > { %5887 = vmatprep.subr.mxu0 %v7147_v8 }
 0x37e   : > { %5888 = vmatpush3.msra.mxu0 %v1965_v41  ;;  %v7766_v41 = vld [vmem:[#allocation18 + $0x48] sm:$0xff] }
 0x37f   : > { %5889 = vmatprep.subr.mxu0 %v7147_v8 }
 0x3be   : > { %v1359_v48 = vpop.f32.mrf.mxu1 }
 0x3bf   : > { %v1363_v49 = vmul.f32 0.35355338, %v1359_v48 }
 0x3c0   : > { %v5847_v50 = vpop.f32.mrf.mxu1 }
 0x3c1   : > { %v1364_v51 = vsel %vm1286_vm2, %v1363_v49, -inf }
 0x3c2   : > { %1365 = vmax.xlane.f32.xlu1 %v1364_v51 }
 0x430   : > { %v1522_v52 = vpop.f32.mrf.mxu0 }
 0x431   : > { %v1526_v53 = vmul.f32 0.35355338, %v1522_v52 }
 0x432   : > { %v5857_v54 = vpop.f32.mrf.mxu0 }
 0x433   : > { %v1527_v55 = vsel %vm1286_vm2, %v1526_v53, -inf }
 0x434   : > { %1528 = vmax.xlane.f32.xlu0 %v1527_v55  ;;  %v1689_v56 = vpop.f32.mrf.mxu0  ;;  %v5504_v55 = vld [vmem:[#allocation15] ss:$0 sm:$0xff] }
 0x435   : > { %v1693_v57 = vmul.f32 0.35355338, %v1689_v56 }
 0x436   : > { %v5867_v58 = vpop.f32.mrf.mxu0 }
 0x437   : > { %v1694_v59 = vsel %vm1286_vm2, %v1693_v57, -inf }
 0x438   : > { %1695 = vmax.xlane.f32.xlu1 %v1694_v59 }
 0x439   : > { %v1855_v60 = vpop.f32.mrf.mxu0 }
 0x43a   : > { %v1859_v61 = vmul.f32 0.35355338, %v1855_v60 }
 0x43b   : > { %v5877_v62 = vpop.f32.mrf.mxu0 }
 0x43c   : > { %v1860_v63 = vsel %vm1286_vm2, %v1859_v61, -inf }
 0x43d   : > { %1861 = vmax.xlane.f32.xlu1 %v1860_v63 }
 0x44b   : > { %v1366_v1 = vpop.xlane.xlu1 %1365 }
 0x44c   : > { %v1367_v2 = vsub.f32 %v1363_v49, %v1366_v1 }
 0x44e   : > { %v1368_v3 = vmul.f32 1.442695, %v1367_v2 }
 0x450   : > { %6506 = vpow2.f32 %v1368_v3  ;;  %v2081_v3 = vld [vmem:[#allocation16 + $0x18] sm:$0xff] }
 0x45d   : > { %v6507_v4 = vpop.eup %6506 }
 0x45e   : > { %v1370_v5 = vsel %vm1286_vm2, %v6507_v4, 0.0 }
 0x45f   : > { %1371 = vadd.xlane.f32.xlu0 %v1370_v5  ;;  %v2166_v5 = vld [vmem:[#allocation16 + $0x30] sm:$0xff] }
 0x4bd   : > { %v1529_v6 = vpop.xlane.xlu0 %1528 }
 0x4be   : > { %v1530_v7 = vsub.f32 %v1526_v53, %v1529_v6  ;;  %v2079_v6 = vld [vmem:[#allocation16 + $0x8] sm:$0xff] }
 0x4c0   : > { %v1531_v9 = vmul.f32 1.442695, %v1530_v7  ;;  %v2165_v7 = vld [vmem:[#allocation16 + $0x28] sm:$0xff] }
 0x4c1   : > { %v1696_v10 = vpop.xlane.xlu1 %1695 }
 0x4c2   : > { %6508 = vpow2.f32 %v1531_v9  ;;  %v1697_v11 = vsub.f32 %v1693_v57, %v1696_v10  ;;  %v2078_v9 = vld [vmem:[#allocation16] sm:$0xff] }
 0x4c3   : > { %v2164_v10 = vld [vmem:[#allocation16 + $0x20] sm:$0xff] }
 0x4c4   : > { %v1698_v12 = vmul.f32 1.442695, %v1697_v11 }
 0x4c6   : > { %6510 = vpow2.f32 %v1698_v12  ;;  %v1862_v18 = vpop.xlane.xlu1 %1861 }
 0x4c7   : > { %v1863_v19 = vsub.f32 %v1859_v61, %v1862_v18 }
 0x4c9   : > { %v1864_v20 = vmul.f32 1.442695, %v1863_v19 }
 0x4cf   : > { %v6509_v13 = vpop.eup %6508 }
 0x4d0   : > { %v1533_v14 = vsel %vm1286_vm2, %v6509_v13, 0.0 }
 0x4d1   : > { %1534 = vadd.xlane.f32.xlu1 %v1533_v14 }
 0x4d3   : > { %v6511_v15 = vpop.eup %6510 }
 0x4d4   : > { %v1700_v16 = vsel %vm1286_vm2, %v6511_v15, 0.0 }
 0x4d5   : > { %1701 = vadd.xlane.f32.xlu0 %v1700_v16 }
 0x4e2   : > { %1705 = vrot.lane.b32.xlu1 %v1283_v46, %s7150_s21  ;;  %s8381_s21 = sld [smem:[#allocation39_spill]] }
 0x4e8   : > { %v1372_v17 = vpop.xlane.xlu0 %1371 }
 0x4e9   : > { %6512 = vrcp.f32 %v1372_v17  ;;  %v5507_v17 = vld [vmem:[%s8380_s15] ss:$0 sm:$0xff] }
 0x4ea   : > { %6514 = vpow2.f32 %v1864_v20  ;;  %v2252_v20 = vld [vmem:[#allocation16 + $0x58] sm:$0xff] }
 0x4eb   : > { %1539 = vrot.lane.b32.xlu0 %v1283_v46, %s7149_s28  ;;  %s8383_s28 = sld [smem:[#allocation57_spill]] }
 0x4f6   : > { %v6513_v21 = vpop.eup %6512 }
 0x4f7   : > { %v1374_v22 = vmul.f32 %v6513_v21, %v6507_v4  ;;  %v6515_v23 = vpop.eup %6514  ;;  %v2167_v4 = vld [vmem:[#allocation16 + $0x38] sm:$0xff] }
 0x4f8   : > { %v1866_v24 = vsel %vm1286_vm2, %v6515_v23, 0.0  ;;  %v2337_v21 = vld [vmem:[#allocation16 + $0x78] sm:$0xff] }
 0x4f9   : > { %5851 = vmatmul.mubr.msk.f32.vlgmr.msra.gmra.mxu1 %vm1286_vm2, %v1374_v22  ;;  %v2251_v22 = vld [vmem:[#allocation16 + $0x50] sm:$0xff] }
 0x4fa   : > { %5860 = vmatprep.mubr.msk.f32.mxu1 %vm7148_vm1, %v7147_v8 }
 0x506   : > { %1867 = vadd.xlane.f32.xlu1 %v1866_v24  ;;  %v2250_v24 = vld [vmem:[#allocation16 + $0x48] sm:$0xff] }
 0x517   : > { %1871 = vrot.lane.b32.xlu1 %v1283_v46, %s7151_s8  ;;  %v1964_v46 = vld [vmem:[#allocation13] sm:$0xff]  ;;  %s996_s8 = scalar_lea.vmem %s8381_s21, %s7565_s7 }
 0x518   : > { %5890 = vmatpush3.msra.mxu0 %v1964_v46  ;;  %v5510_v46 = vld [vmem:[#allocation19 + $0x1] ss:$0 sm:$0xff] }
 0x519   : > { %5905 = vmatprep.subr.mxu0 %v7147_v8 }
 0x55a   : > { %v1535_v25 = vpop.xlane.xlu1 %1534 }
 0x55b   : > { %6516 = vrcp.f32 %v1535_v25  ;;  %v2335_v25 = vld [vmem:[#allocation16 + $0x68] sm:$0xff] }
 0x55e   : > { %v1702_v26 = vpop.xlane.xlu0 %1701  ;;  %v1706_v30 = vpop.permute.xlu1 %1705 }
 0x55f   : > { %6518 = vrcp.f32 %v1702_v26  ;;  %v2249_v26 = vld [vmem:[#allocation16 + $0x40] sm:$0xff] }
 0x562   : > { %v1540_v27 = vpop.permute.xlu0 %1539 }
 0x563   : > { %5859 = vmatpush3.msra.mxu1 %v1540_v27  ;;  %v2334_v27 = vld [vmem:[#allocation16 + $0x60] sm:$0xff] }
 0x564   : > { %5868 = vmatprep.subr.mxu1 %v7147_v8 }
 0x568   : > { %v6517_v28 = vpop.eup %6516 }
 0x569   : > { %v1537_v29 = vmul.f32 %v6517_v28, %v6509_v13  ;;  %v7708_v28 = vld [vmem:[#allocation18 + $0x18] sm:$0xff] }
 0x56b   : > { %5861 = vmatmul.mubr.msk.f32.vlgmr.msra.gmra.mxu1 %vm1286_vm2, %v1537_v29  ;;  %v7710_v29 = vld [vmem:[#allocation18 + $0x38] sm:$0xff] }
 0x56c   : > { %v6519_v31 = vpop.eup %6518  ;;  %5869 = vmatpush3.msra.mxu1 %v1706_v30  ;;  %5870 = vmatprep.mubr.msk.f32.mxu1 %vm7148_vm1, %v7147_v8  ;;  %v7716_v30 = vld [vmem:[#allocation18 + $0x10] sm:$0xff] }
 0x56d   : > { %v1704_v32 = vmul.f32 %v6519_v31, %v6511_v15  ;;  %5878 = vmatprep.subr.mxu1 %v7147_v8  ;;  %v5506_v15 = vld [vmem:[%s8379_s14] ss:$0 sm:$0xff]  ;;  %v7718_v31 = vld [vmem:[#allocation18 + $0x30] sm:$0xff] }
 0x56f   : > { %5871 = vmatmul.mubr.msk.f32.vlgmr.msra.gmra.mxu1 %vm1286_vm2, %v1704_v32  ;;  %v7724_v32 = vld [vmem:[#allocation18 + $0x8] sm:$0xff] }
 0x570   : > { %5880 = vmatprep.mubr.msk.f32.mxu1 %vm7148_vm1, %v7147_v8 }
 0x58f   : > { %v1868_v33 = vpop.xlane.xlu1 %1867 }
 0x590   : > { %6520 = vrcp.f32 %v1868_v33  ;;  %v7726_v33 = vld [vmem:[#allocation18 + $0x28] sm:$0xff] }
 0x593   : > { %v1872_v34 = vpop.permute.xlu1 %1871 }
 0x594   : > { %5879 = vmatpush3.msra.mxu1 %v1872_v34  ;;  %v7736_v34 = vld [vmem:[#allocation18] sm:$0xff] }
 0x595   : > { %5894 = vmatprep.subr.mxu1 %v7147_v8 }
 0x59d   : > { %v6521_v35 = vpop.eup %6520 }
 0x59e   : > { %v1870_v36 = vmul.f32 %v6521_v35, %v6515_v23  ;;  %v2336_v23 = vld [vmem:[#allocation16 + $0x70] sm:$0xff]  ;;  %v7740_v35 = vld [vmem:[#allocation18 + $0x20] sm:$0xff] }
 0x5a0   : > { %5881 = vmatmul.mubr.msk.f32.vlgmr.msra.gmra.mxu1 %vm1286_vm2, %v1870_v36  ;;  %v2437_v36 = vld [vmem:[%s996_s8] sm:$0x1] }
 0x5a1   : > { %5902 = vmatprep.mubr.msk.f32.mxu1 %vm7148_vm1, %v7147_v8  ;;  %5895 = vmatpush3.msra.mxu1 %v2081_v3 }
 0x5a2   : > { %5896 = vmatprep.subr.mxu1 %v7147_v8 }
 0x5b9   : > { %v1444_v37 = vpop.f32.mrf.mxu1 }
 0x5bb   : > { %v5852_v38 = vpop.f32.mrf.mxu1 }
 0x5bc   : > { %v7752_v38 = vld [vmem:[#allocation18 + $0x78] sm:$0xff] }
 0x62b   : > { %v1611_v42 = vpop.f32.mrf.mxu1 }
 0x62c   : > { %1948 = vrot.lane.b32.xlu0 %v1611_v42, %s7152_s18  ;;  %v7768_v42 = vld [vmem:[#allocation18 + $0x68] sm:$0xff]  ;;  %s8384_s18 = sld [smem:[#allocation59_spill]] }
 0x62d   : > { %v5862_v43 = vpop.f32.mrf.mxu1 }
 0x62e   : > { %v7774_v43 = vld [vmem:[#allocation18 + $0x40] sm:$0xff] }
 0x62f   : > { %v1777_v44 = vpop.f32.mrf.mxu1 }
 0x630   : > { %1952 = vrot.lane.b32.xlu1 %v1777_v44, %s7153_s16  ;;  %v7778_v44 = vld [vmem:[#allocation18 + $0x60] sm:$0xff] }
 0x631   : > { %v5872_v45 = vpop.f32.mrf.mxu1 }
 0x632   : > { %v5508_v45 = vld [vmem:[#allocation19] ss:$0 sm:$0xff]  ;;  %s5174_s16 = scalar_lea.hbm %s8384_s18, %s8311_s4 }
 0x660   : > { %v1943_v47 = vpop.f32.mrf.mxu1 }
 0x661   : > { %1956 = vrot.lane.b32.xlu0 %v1943_v47, %s7154_s19  ;;  %s8382_s19 = sld [smem:[#allocation40_spill]] }
 0x662   : > { %v5882_v48 = vpop.f32.mrf.mxu1 }
 0x667   : > { %s999_s1 = scalar_lea.vmem %s8382_s19, %s7565_s7  ;;  %s5157_s19 = scalar_lea.sflag [#allocation6], %s7500_s17 }
 0x69e   : > { %v1949_v49 = vpop.permute.xlu0 %1948 }
 0x69f   : > { %v1959_v51 = vsel %vm1286_vm2, %v1444_v37, %v1949_v49  ;;  %v7750_v37 = vld [vmem:[#allocation18 + $0x58] sm:$0xff] }
 0x6a2   : > { %v1953_v50 = vpop.permute.xlu1 %1952 }
 0x6a3   : > { %v1961_v52 = vsel %vm1960_vm3, %v1959_v51, %v1953_v50 }
 0x6d3   : > { %v1957_v53 = vpop.permute.xlu0 %1956 }
 0x6d4   : > { %v1963_v54 = vsel %vm1962_vm4, %v1961_v52, %v1957_v53  ;;  %v5512_v53 = vld [vmem:[#allocation19 + $0x2] ss:$0 sm:$0xff] }
 0x6d5   : > { %5892 = vmatmul.mubr.msk.f32.vlgmr.msra.gmra.mxu0 %vm1008_vm0, %v1963_v54  ;;  %v5514_v54 = vld [vmem:[#allocation19 + $0x3] ss:$0 sm:$0xff] }
 0x6d6   : > { %5913 = vmatprep.mubr.msk.f32.mxu0 %vm7148_vm1, %v7147_v8  ;;  %5906 = vmatpush3.msra.mxu0 %v2167_v4 }
 0x6d7   : > { %5907 = vmatprep.subr.mxu0 %v7147_v8 }
 0x6d8   : > { %5908 = vmatpush3.msra.mxu0 %v2166_v5 }
 0x6d9   : > { %5909 = vmatprep.subr.mxu0 %v7147_v8 }
 0x6da   : > { %5910 = vmatpush3.msra.mxu0 %v2165_v7 }
 0x6db   : > { %5911 = vmatprep.subr.mxu0 %v7147_v8 }
 0x6dc   : > { %5912 = vmatpush3.msra.mxu0 %v2164_v10 }
 0x6dd   : > { %5927 = vmatprep.subr.mxu0 %v7147_v8 }
 0x795   : > { %v2044_v56 = vpop.f32.mrf.mxu0 }
 0x796   : > { %v2045_v57 = vadd.f32 %v5504_v55, %v2044_v56 }
 0x797   : > { %v5893_v58 = vpop.f32.mrf.mxu0 }
 0x798   : > { %v7676_v59 = vadd.f32 %v2045_v57, %v7532_v0  ;;  %v2080_v0 = vld [vmem:[#allocation16 + $0x10] sm:$0xff] }
 0x799   : > { %5897 = vmatpush3.msra.mxu1 %v2080_v0 }
 0x79a   : > { %v2051_v60 = vsel %vm1008_vm0, %v7676_v59, 0.0  ;;  %5898 = vmatprep.subr.mxu1 %v7147_v8 }
 0x79b   : > { %2052 = vadd.xlane.f32.xlu1 %v2051_v60  ;;  %5899 = vmatpush3.msra.mxu1 %v2079_v6 }
 0x79c   : > { %5900 = vmatprep.subr.mxu1 %v7147_v8 }
 0x79d   : > { %5901 = vmatpush3.msra.mxu1 %v2078_v9 }
 0x79e   : > { %5916 = vmatprep.subr.mxu1 %v7147_v8 }
 0x824   : > { %v2053_v61 = vpop.xlane.xlu1 %2052 }
 0x825   : > { %v2054_v62 = vmul.f32 0.03125, %v2053_v61 }
 0x827   : > { %v2055_v63 = vsub.f32 %v7676_v59, %v2054_v62 }
 0x829   : > { %v2056_v1 = vmul.f32 %v2055_v63, %v2055_v63 }
 0x82b   : > { %v2057_v2 = vsel %vm1008_vm0, %v2056_v1, 0.0 }
 0x82c   : > { %2058 = vadd.xlane.f32.xlu0 %v2057_v2 }
 0x8b5   : > { %v2059_v11 = vpop.xlane.xlu0 %2058 }
 0x8b6   : > { %v2060_v12 = vmul.f32 0.03125, %v2059_v11 }
 0x8b8   : > { %v2061_v13 = vadd.f32 1e-05, %v2060_v12 }
 0x8ba   : > { %6522 = vrsqrt.f32 %v2061_v13 }
 0x8c7   : > { %v6523_v14 = vpop.eup %6522 }
 0x8c8   : > { %v2063_v16 = vmul.f32 %v6523_v14, %v2055_v63 }
 0x8ca   : > { %v2070_v18 = vmul.f32 %v5506_v15, %v2063_v16 }
 0x8cc   : > { %v2077_v19 = vadd.f32 %v5507_v17, %v2070_v18 }
 0x8ce   : > { %5903 = vmatmul.mubr.msk.f32.vlgmr.msra.gmra.mxu1 %vm1008_vm0, %v2077_v19  ;;  %5914 = vmatmul.mubr.msk.f32.vlgmr.msra.gmra.mxu0 %vm1008_vm0, %v2077_v19 }
 0x8cf   : > { %5917 = vmatpush3.msra.mxu1 %v2252_v20  ;;  %5928 = vmatpush3.msra.mxu0 %v2337_v21 }
 0x8d0   : > { %5918 = vmatprep.subr.mxu1 %v7147_v8  ;;  %5929 = vmatprep.subr.mxu0 %v7147_v8 }
 0x8d1   : > { %5919 = vmatpush3.msra.mxu1 %v2251_v22  ;;  %5930 = vmatpush3.msra.mxu0 %v2336_v23 }
 0x8d2   : > { %5920 = vmatprep.subr.mxu1 %v7147_v8  ;;  %5931 = vmatprep.subr.mxu0 %v7147_v8 }
 0x8d3   : > { %5921 = vmatpush3.msra.mxu1 %v2250_v24  ;;  %5932 = vmatpush3.msra.mxu0 %v2335_v25  ;;  %v2438_v24 = vld [vmem:[%s999_s1] sm:$0x1]  ;;  %s7010_s1 = scalar_lea.vmem %s5177_s5, 16 }
 0x8d4   : > { %5922 = vmatprep.subr.mxu1 %v7147_v8  ;;  %5933 = vmatprep.subr.mxu0 %v7147_v8  ;;  %p7011_p7 = scmp.ne.s32.totalorder %s5177_s5, %s7010_s1 }
 0x8d5   : > { %5923 = vmatpush3.msra.mxu1 %v2249_v26  ;;  %5924 = vmatprep.mubr.msk.f32.mxu1 %vm7148_vm1, %v7147_v8 }
 0x8d6   : > { %5934 = vmatpush3.msra.mxu0 %v2334_v27  ;;  %5935 = vmatprep.mubr.msk.f32.mxu0 %vm7148_vm1, %v7147_v8  ;;  %p7012_p3 = pnand %p7011_p7, %p8385_p6 }
 0x8d7   : > { %5925 = vmatmul.mubr.msk.f32.vlgmr.msra.gmra.mxu1 %vm1008_vm0, %v2077_v19  ;;  %5936 = vmatmul.mubr.msk.f32.vlgmr.msra.gmra.mxu0 %vm1008_vm0, %v2077_v19 }
 0x8d8   : > { %5938 = vmatprep.subr.mxu1 %v7147_v8  ;;  %5949 = vmatprep.subr.mxu0 %v7147_v8  ;;  %p7013_p4 = pneg %p7012_p3 }
 0x8d9   : > { %5939 = vmatpush3.msra.mxu1 %v7708_v28  ;;  %5950 = vmatpush3.msra.mxu0 %v7710_v29 }
 0x8da   : > { %5940 = vmatprep.subr.mxu1 %v7147_v8  ;;  %5951 = vmatprep.subr.mxu0 %v7147_v8 }
 0x8db   : > { %5941 = vmatpush3.msra.mxu1 %v7716_v30  ;;  %5952 = vmatpush3.msra.mxu0 %v7718_v31 }
 0x8dc   : > { %5942 = vmatprep.subr.mxu1 %v7147_v8  ;;  %5953 = vmatprep.subr.mxu0 %v7147_v8 }
 0x8dd   : > { %5943 = vmatpush3.msra.mxu1 %v7724_v32  ;;  %5954 = vmatpush3.msra.mxu0 %v7726_v33 }
 0x8de   : > { %5944 = vmatprep.subr.mxu1 %v7147_v8  ;;  %5955 = vmatprep.subr.mxu0 %v7147_v8 }
 0x8df   : > { %5945 = vmatpush3.msra.mxu1 %v7736_v34  ;;  %5946 = vmatprep.mubr.msk.f32.mxu1 %vm7148_vm1, %v7147_v8 }
 0x8e0   : > { %5956 = vmatpush3.msra.mxu0 %v7740_v35  ;;  %5957 = vmatprep.mubr.msk.f32.mxu0 %vm7148_vm1, %v7147_v8 }
 0x8e1   : > { %5947 = vmatmul.mubr.msk.f32.vlgmr.msra.gmra.mxu1 %vm1008_vm0, %v2437_v36  ;;  %5958 = vmatmul.mubr.msk.f32.vlgmr.msra.gmra.mxu0 %vm1008_vm0, %v2437_v36 }
 0x8e2   : > { %5960 = vmatprep.subr.mxu1 %v7147_v8  ;;  %5971 = vmatprep.subr.mxu0 %v7147_v8 }
 0x8e3   : > { %5961 = vmatpush3.msra.mxu1 %v7750_v37  ;;  %5972 = vmatpush3.msra.mxu0 %v7752_v38 }
 0x8e4   : > { %5962 = vmatprep.subr.mxu1 %v7147_v8  ;;  %5973 = vmatprep.subr.mxu0 %v7147_v8 }
 0x8e5   : > { %5963 = vmatpush3.msra.mxu1 %v7758_v39  ;;  %5974 = vmatpush3.msra.mxu0 %v7760_v40 }
 0x8e6   : > { %5964 = vmatprep.subr.mxu1 %v7147_v8  ;;  %5975 = vmatprep.subr.mxu0 %v7147_v8 }
 0x8e7   : > { %5965 = vmatpush3.msra.mxu1 %v7766_v41  ;;  %5976 = vmatpush3.msra.mxu0 %v7768_v42 }
 0x8e8   : > { %5966 = vmatprep.subr.mxu1 %v7147_v8  ;;  %5977 = vmatprep.subr.mxu0 %v7147_v8 }
 0x8e9   : > { %5967 = vmatpush3.msra.mxu1 %v7774_v43  ;;  %5968 = vmatprep.mubr.msk.f32.mxu1 %vm7148_vm1, %v7147_v8 }
 0x8ea   : > { %5978 = vmatpush3.msra.mxu0 %v7778_v44  ;;  %5979 = vmatprep.mubr.msk.f32.mxu0 %vm7148_vm1, %v7147_v8 }
 0x8eb   : > { %5969 = vmatmul.mubr.msk.f32.vlgmr.msra.gmra.mxu1 %vm1008_vm0, %v2437_v36  ;;  %5980 = vmatmul.mubr.msk.f32.vlgmr.msra.gmra.mxu0 %vm1008_vm0, %v2437_v36 }
 0x8ec   : > { %5982 = vmatprep.subr.mxu1 %v7147_v8  ;;  %5993 = vmatprep.subr.mxu0 %v7147_v8 }
 0x8ed   : > { %5983 = vmatpush3.msra.mxu1 %v7708_v28  ;;  %5994 = vmatpush3.msra.mxu0 %v7710_v29 }
 0x8ee   : > { %5984 = vmatprep.subr.mxu1 %v7147_v8  ;;  %5995 = vmatprep.subr.mxu0 %v7147_v8 }
 0x8ef   : > { %5985 = vmatpush3.msra.mxu1 %v7716_v30  ;;  %5996 = vmatpush3.msra.mxu0 %v7718_v31 }
 0x8f0   : > { %5986 = vmatprep.subr.mxu1 %v7147_v8  ;;  %5997 = vmatprep.subr.mxu0 %v7147_v8 }
 0x8f1   : > { %5987 = vmatpush3.msra.mxu1 %v7724_v32  ;;  %5998 = vmatpush3.msra.mxu0 %v7726_v33 }
 0x8f2   : > { %5988 = vmatprep.subr.mxu1 %v7147_v8  ;;  %5999 = vmatprep.subr.mxu0 %v7147_v8 }
 0x8f3   : > { %5989 = vmatpush3.msra.mxu1 %v7736_v34  ;;  %6000 = vmatpush3.msra.mxu0 %v7740_v35 }
 0x8f4   : > { %5990 = vmatprep.mubr.msk.f32.mxu1 %vm7148_vm1, %v7147_v8  ;;  %6001 = vmatprep.mubr.msk.f32.mxu0 %vm7148_vm1, %v7147_v8 }
 0x8f5   : > { %6004 = vmatprep.subr.mxu1 %v7147_v8  ;;  %6015 = vmatprep.subr.mxu0 %v7147_v8 }
 0x98e   : > { %v2158_v47 = vpop.f32.mrf.mxu1  ;;  %v2242_v48 = vpop.f32.mrf.mxu0 }
 0x98f   : > { %v2159_v49 = vadd.f32 %v5508_v45, %v2158_v47  ;;  %v2243_v50 = vadd.f32 %v5510_v46, %v2242_v48 }
 0x990   : > { %v5904_v51 = vpop.f32.mrf.mxu1  ;;  %v5915_v52 = vpop.f32.mrf.mxu0 }
 0x991   : > { %2162 = vst.msk [vmem:[#allocation2] sm:$0xff] %vm1008_vm0, %v2159_v49  ;;  %2247 = vst.msk [vmem:[#allocation2 + $0x8] sm:$0xff] %vm1008_vm0, %v2243_v50 }
 0x997   : > { %v2327_v55 = vpop.f32.mrf.mxu1  ;;  %v2412_v56 = vpop.f32.mrf.mxu0 }
 0x998   : > { %v2328_v57 = vadd.f32 %v5512_v53, %v2327_v55  ;;  %v2413_v58 = vadd.f32 %v5514_v54, %v2412_v56  ;;  %v2439_v62 = vld [vmem:[#allocation2] sm:$0x1]  ;;  %v2520_v1 = vld [vmem:[#allocation2 + $0x8] sm:$0x1]  ;;  %v2756_v50 = vld [vmem:[#allocation2 + $0x1] sm:$0x1] }
 0x999   : > { %v5926_v60 = vpop.f32.mrf.mxu1  ;;  %v5937_v61 = vpop.f32.mrf.mxu0  ;;  %v2837_v52 = vld [vmem:[#allocation2 + $0x9] sm:$0x1] }
 0x99a   : > { %2332 = vst.msk [vmem:[#allocation2 + $0x10] sm:$0xff] %vm1008_vm0, %v2328_v57  ;;  %2417 = vst.msk [vmem:[#allocation2 + $0x18] sm:$0xff] %vm1008_vm0, %v2413_v58 }
 0x9a1   : > { %v2509_v63 = vpop.f32.mrf.mxu1  ;;  %v2587_v2 = vpop.f32.mrf.mxu0  ;;  %v2671_v10 = vld [vmem:[#allocation2 + $0x18] sm:$0x1]  ;;  %v2598_v15 = vld [vmem:[#allocation2 + $0x10] sm:$0x1] }
 0x9a2   : > { %v2513_v3 = vadd.f32 %v2509_v63, %v2439_v62  ;;  %v2591_v4 = vadd.f32 %v2587_v2, %v2520_v1  ;;  %v2988_v63 = vld [vmem:[#allocation2 + $0x19] sm:$0x1] }
 0x9a3   : > { %v5948_v0 = vpop.f32.mrf.mxu1  ;;  %v5959_v5 = vpop.f32.mrf.mxu0 }
 0x9a4   : > { %v5517_v6 = vmul.f32 -1.442695, %v2513_v3  ;;  %v5519_v7 = vmul.f32 -1.442695, %v2591_v4  ;;  %v2915_v4 = vld [vmem:[#allocation2 + $0x11] sm:$0x1] }
 0x9a6   : > { %6524 = vpow2.f32 %v5517_v6 }
 0x9a7   : > { %6526 = vpow2.f32 %v5519_v7 }
 0x9ab   : > { %v2665_v9 = vpop.f32.mrf.mxu1  ;;  %v2738_v11 = vpop.f32.mrf.mxu0 }
 0x9ac   : > { %v2742_v12 = vadd.f32 %v2738_v11, %v2671_v10  ;;  %v2669_v17 = vadd.f32 %v2665_v9, %v2598_v15 }
 0x9ad   : > { %v5970_v13 = vpop.f32.mrf.mxu1  ;;  %v5981_v14 = vpop.f32.mrf.mxu0 }
 0x9ae   : > { %v5522_v16 = vmul.f32 -1.442695, %v2742_v12 }
 0x9b0   : > { %6528 = vpow2.f32 %v5522_v16 }
 0x9b1   : > { %6530 = vtanh.f32 %v2669_v17 }
 0x9b3   : > { %v6525_v18 = vpop.eup %6524 }
 0x9b4   : > { %v6527_v19 = vpop.eup %6526  ;;  %v2517_v20 = vadd.f32 1.0, %v6525_v18 }
 0x9b5   : > { %v2595_v21 = vadd.f32 1.0, %v6527_v19 }
 0x9b6   : > { %6532 = vrcp.f32 %v2517_v20 }
 0x9b7   : > { %6534 = vrcp.f32 %v2595_v21 }
 0x9bd   : > { %v6529_v22 = vpop.eup %6528 }
 0x9be   : > { %v6531_v23 = vpop.eup %6530  ;;  %v2746_v36 = vadd.f32 1.0, %v6529_v22  ;;  %v3072_v22 = vld [vmem:[#allocation2 + $0x2] sm:$0x1] }
 0x9c0   : > { %6536 = vrcp.f32 %v2746_v36 }
 0x9c3   : > { %v6533_v25 = vpop.eup %6532 }
 0x9c4   : > { %v6535_v26 = vpop.eup %6534  ;;  %v2750_v27 = vmul.f32 %v6533_v25, %v6531_v23 }
 0x9c5   : > { %v2749_v45 = vmul.f32 %v6535_v26, %v2438_v24  ;;  %v3153_v24 = vld [vmem:[#allocation2 + $0xa] sm:$0x1] }
 0x9c7   : > { %v7820_v46 = vadd.f32 %v2750_v27, %v2749_v45 }
 0x9c9   : > { %6538 = vtanh.f32 %v7820_v46 }
 0x9cd   : > { %v6537_v47 = vpop.eup %6536 }
 0x9d6   : > { %v6539_v48 = vpop.eup %6538 }
 0x9d7   : > { %v2753_v49 = vmul.f32 %v6539_v48, %v6537_v47 }
 0x9d9   : > { %2755 = vst.msk [vmem:[#allocation3] sm:$0x1] %vm2754_vm5, %v2753_v49  ;;  %5991 = vmatmul.mubr.msk.f32.vlgmr.msra.gmra.mxu1 %vm1008_vm0, %v2753_v49  ;;  %6002 = vmatmul.mubr.msk.f32.vlgmr.msra.gmra.mxu0 %vm1008_vm0, %v2753_v49 }
 0x9da   : > { %6005 = vmatpush3.msra.mxu1 %v7750_v37  ;;  %6016 = vmatpush3.msra.mxu0 %v7752_v38 }
 0x9db   : > { %6006 = vmatprep.subr.mxu1 %v7147_v8  ;;  %6017 = vmatprep.subr.mxu0 %v7147_v8 }
 0x9dc   : > { %6007 = vmatpush3.msra.mxu1 %v7758_v39  ;;  %6018 = vmatpush3.msra.mxu0 %v7760_v40 }
 0x9dd   : > { %6008 = vmatprep.subr.mxu1 %v7147_v8  ;;  %6019 = vmatprep.subr.mxu0 %v7147_v8 }
 0x9de   : > { %6009 = vmatpush3.msra.mxu1 %v7766_v41  ;;  %6020 = vmatpush3.msra.mxu0 %v7768_v42 }
 0x9df   : > { %6010 = vmatprep.subr.mxu1 %v7147_v8  ;;  %6021 = vmatprep.subr.mxu0 %v7147_v8 }
 0x9e0   : > { %6011 = vmatpush3.msra.mxu1 %v7774_v43  ;;  %6012 = vmatprep.mubr.msk.f32.mxu1 %vm7148_vm1, %v7147_v8 }
 0x9e1   : > { %6022 = vmatpush3.msra.mxu0 %v7778_v44  ;;  %6023 = vmatprep.mubr.msk.f32.mxu0 %vm7148_vm1, %v7147_v8 }
 0x9e2   : > { %6013 = vmatmul.mubr.msk.f32.vlgmr.msra.gmra.mxu1 %vm1008_vm0, %v2753_v49  ;;  %6024 = vmatmul.mubr.msk.f32.vlgmr.msra.gmra.mxu0 %vm1008_vm0, %v2753_v49 }
 0x9e3   : > { %6026 = vmatprep.subr.mxu1 %v7147_v8  ;;  %6037 = vmatprep.subr.mxu0 %v7147_v8 }
 0x9e4   : > { %6027 = vmatpush3.msra.mxu1 %v7708_v28  ;;  %6038 = vmatpush3.msra.mxu0 %v7710_v29 }
 0x9e5   : > { %6028 = vmatprep.subr.mxu1 %v7147_v8  ;;  %6039 = vmatprep.subr.mxu0 %v7147_v8 }
 0x9e6   : > { %6029 = vmatpush3.msra.mxu1 %v7716_v30  ;;  %6040 = vmatpush3.msra.mxu0 %v7718_v31 }
 0x9e7   : > { %6030 = vmatprep.subr.mxu1 %v7147_v8  ;;  %6041 = vmatprep.subr.mxu0 %v7147_v8 }
 0x9e8   : > { %6031 = vmatpush3.msra.mxu1 %v7724_v32  ;;  %6042 = vmatpush3.msra.mxu0 %v7726_v33 }
 0x9e9   : > { %6032 = vmatprep.subr.mxu1 %v7147_v8  ;;  %6043 = vmatprep.subr.mxu0 %v7147_v8 }
 0x9ea   : > { %6033 = vmatpush3.msra.mxu1 %v7736_v34  ;;  %6044 = vmatpush3.msra.mxu0 %v7740_v35 }
 0x9eb   : > { %6034 = vmatprep.mubr.msk.f32.mxu1 %vm7148_vm1, %v7147_v8  ;;  %6045 = vmatprep.mubr.msk.f32.mxu0 %vm7148_vm1, %v7147_v8 }
 0x9ec   : > { %6048 = vmatprep.subr.mxu1 %v7147_v8  ;;  %6059 = vmatprep.subr.mxu0 %v7147_v8 }
 0xa99   : > { %v2826_v51 = vpop.f32.mrf.mxu1  ;;  %v2904_v53 = vpop.f32.mrf.mxu0 }
 0xa9a   : > { %v2830_v54 = vadd.f32 %v2826_v51, %v2756_v50  ;;  %v2908_v55 = vadd.f32 %v2904_v53, %v2837_v52  ;;  %v3304_v50 = vld [vmem:[#allocation2 + $0x1a] sm:$0x1] }
 0xa9b   : > { %v5992_v56 = vpop.f32.mrf.mxu1  ;;  %v6003_v57 = vpop.f32.mrf.mxu0 }
 0xa9c   : > { %v5524_v58 = vmul.f32 -1.442695, %v2830_v54  ;;  %v5526_v60 = vmul.f32 -1.442695, %v2908_v55  ;;  %v3231_v54 = vld [vmem:[#allocation2 + $0x12] sm:$0x1] }
 0xa9e   : > { %6540 = vpow2.f32 %v5524_v58 }
 0xa9f   : > { %6542 = vpow2.f32 %v5526_v60 }
 0xaa2   : > { %v2982_v61 = vpop.f32.mrf.mxu1  ;;  %v3055_v62 = vpop.f32.mrf.mxu0 }
 0xaa3   : > { %v3059_v1 = vadd.f32 %v3055_v62, %v2988_v63  ;;  %v2986_v5 = vadd.f32 %v2982_v61, %v2915_v4 }
 0xaa4   : > { %v6014_v2 = vpop.f32.mrf.mxu1  ;;  %v6025_v3 = vpop.f32.mrf.mxu0 }
 0xaa5   : > { %v5529_v0 = vmul.f32 -1.442695, %v3059_v1 }
 0xaa7   : > { %6544 = vpow2.f32 %v5529_v0 }
 0xaa8   : > { %6546 = vtanh.f32 %v2986_v5 }
 0xaab   : > { %v6541_v6 = vpop.eup %6540 }
 0xaac   : > { %v6543_v7 = vpop.eup %6542  ;;  %v2834_v9 = vadd.f32 1.0, %v6541_v6 }
 0xaad   : > { %v2912_v10 = vadd.f32 1.0, %v6543_v7 }
 0xaae   : > { %6548 = vrcp.f32 %v2834_v9 }
 0xaaf   : > { %6550 = vrcp.f32 %v2912_v10  ;;  %v3388_v10 = vld [vmem:[#allocation2 + $0x3] sm:$0x1] }
 0xab4   : > { %v6545_v11 = vpop.eup %6544 }
 0xab5   : > { %v6547_v12 = vpop.eup %6546  ;;  %v3063_v16 = vadd.f32 1.0, %v6545_v11 }
 0xab7   : > { %6552 = vrcp.f32 %v3063_v16 }
 0xabb   : > { %v6549_v13 = vpop.eup %6548 }
 0xabc   : > { %v6551_v14 = vpop.eup %6550  ;;  %v3067_v15 = vmul.f32 %v6549_v13, %v6547_v12  ;;  %v3469_v12 = vld [vmem:[#allocation2 + $0xb] sm:$0x1] }
 0xabd   : > { %v3066_v17 = vmul.f32 %v6551_v14, %v7820_v46 }
 0xabf   : > { %v7869_v18 = vadd.f32 %v3067_v15, %v3066_v17 }
 0xac1   : > { %6554 = vtanh.f32 %v7869_v18 }
 0xac4   : > { %v6553_v19 = vpop.eup %6552 }
 0xace   : > { %v6555_v20 = vpop.eup %6554 }
 0xacf   : > { %v3070_v21 = vmul.f32 %v6555_v20, %v6553_v19 }
 0xad1   : > { %3071 = vst.msk [vmem:[#allocation3 + $0x1] sm:$0x1] %vm2754_vm5, %v3070_v21  ;;  %6035 = vmatmul.mubr.msk.f32.vlgmr.msra.gmra.mxu1 %vm1008_vm0, %v3070_v21  ;;  %6046 = vmatmul.mubr.msk.f32.vlgmr.msra.gmra.mxu0 %vm1008_vm0, %v3070_v21 }
 0xad2   : > { %6049 = vmatpush3.msra.mxu1 %v7750_v37  ;;  %6060 = vmatpush3.msra.mxu0 %v7752_v38 }
 0xad3   : > { %6050 = vmatprep.subr.mxu1 %v7147_v8  ;;  %6061 = vmatprep.subr.mxu0 %v7147_v8 }
 0xad4   : > { %6051 = vmatpush3.msra.mxu1 %v7758_v39  ;;  %6062 = vmatpush3.msra.mxu0 %v7760_v40 }
 0xad5   : > { %6052 = vmatprep.subr.mxu1 %v7147_v8  ;;  %6063 = vmatprep.subr.mxu0 %v7147_v8 }
 0xad6   : > { %6053 = vmatpush3.msra.mxu1 %v7766_v41  ;;  %6064 = vmatpush3.msra.mxu0 %v7768_v42 }
 0xad7   : > { %6054 = vmatprep.subr.mxu1 %v7147_v8  ;;  %6065 = vmatprep.subr.mxu0 %v7147_v8 }
 0xad8   : > { %6055 = vmatpush3.msra.mxu1 %v7774_v43  ;;  %6056 = vmatprep.mubr.msk.f32.mxu1 %vm7148_vm1, %v7147_v8 }
 0xad9   : > { %6066 = vmatpush3.msra.mxu0 %v7778_v44  ;;  %6067 = vmatprep.mubr.msk.f32.mxu0 %vm7148_vm1, %v7147_v8 }
 0xada   : > { %6057 = vmatmul.mubr.msk.f32.vlgmr.msra.gmra.mxu1 %vm1008_vm0, %v3070_v21  ;;  %6068 = vmatmul.mubr.msk.f32.vlgmr.msra.gmra.mxu0 %vm1008_vm0, %v3070_v21 }
 0xadb   : > { %6070 = vmatprep.subr.mxu1 %v7147_v8  ;;  %6081 = vmatprep.subr.mxu0 %v7147_v8 }
 0xadc   : > { %6071 = vmatpush3.msra.mxu1 %v7708_v28  ;;  %6082 = vmatpush3.msra.mxu0 %v7710_v29 }
 0xadd   : > { %6072 = vmatprep.subr.mxu1 %v7147_v8  ;;  %6083 = vmatprep.subr.mxu0 %v7147_v8 }
 0xade   : > { %6073 = vmatpush3.msra.mxu1 %v7716_v30  ;;  %6084 = vmatpush3.msra.mxu0 %v7718_v31 }
 0xadf   : > { %6074 = vmatprep.subr.mxu1 %v7147_v8  ;;  %6085 = vmatprep.subr.mxu0 %v7147_v8 }
 0xae0   : > { %6075 = vmatpush3.msra.mxu1 %v7724_v32  ;;  %6086 = vmatpush3.msra.mxu0 %v7726_v33 }
 0xae1   : > { %6076 = vmatprep.subr.mxu1 %v7147_v8  ;;  %6087 = vmatprep.subr.mxu0 %v7147_v8 }
 0xae2   : > { %6077 = vmatpush3.msra.mxu1 %v7736_v34  ;;  %6088 = vmatpush3.msra.mxu0 %v7740_v35 }
 0xae3   : > { %6078 = vmatprep.mubr.msk.f32.mxu1 %vm7148_vm1, %v7147_v8  ;;  %6089 = vmatprep.mubr.msk.f32.mxu0 %vm7148_vm1, %v7147_v8 }
 0xae4   : > { %6092 = vmatprep.subr.mxu1 %v7147_v8  ;;  %6103 = vmatprep.subr.mxu0 %v7147_v8 }
 0xb91   : > { %v3142_v23 = vpop.f32.mrf.mxu1  ;;  %v3220_v25 = vpop.f32.mrf.mxu0 }
 0xb92   : > { %v3146_v26 = vadd.f32 %v3142_v23, %v3072_v22  ;;  %v3224_v27 = vadd.f32 %v3220_v25, %v3153_v24  ;;  %v3620_v22 = vld [vmem:[#allocation2 + $0x1b] sm:$0x1] }
 0xb93   : > { %v6036_v36 = vpop.f32.mrf.mxu1  ;;  %v6047_v45 = vpop.f32.mrf.mxu0 }
 0xb94   : > { %v5531_v46 = vmul.f32 -1.442695, %v3146_v26  ;;  %v5533_v47 = vmul.f32 -1.442695, %v3224_v27  ;;  %v3547_v26 = vld [vmem:[#allocation2 + $0x13] sm:$0x1] }
 0xb96   : > { %6556 = vpow2.f32 %v5531_v46 }
 0xb97   : > { %6558 = vpow2.f32 %v5533_v47 }
 0xb9a   : > { %v3298_v48 = vpop.f32.mrf.mxu1  ;;  %v3371_v49 = vpop.f32.mrf.mxu0 }
 0xb9b   : > { %v3375_v51 = vadd.f32 %v3371_v49, %v3304_v50  ;;  %v3302_v56 = vadd.f32 %v3298_v48, %v3231_v54 }
 0xb9c   : > { %v6058_v52 = vpop.f32.mrf.mxu1  ;;  %v6069_v53 = vpop.f32.mrf.mxu0 }
 0xb9d   : > { %v5536_v55 = vmul.f32 -1.442695, %v3375_v51 }
 0xb9f   : > { %6560 = vpow2.f32 %v5536_v55 }
 0xba0   : > { %6562 = vtanh.f32 %v3302_v56 }
 0xba3   : > { %v6557_v57 = vpop.eup %6556 }
 0xba4   : > { %v6559_v58 = vpop.eup %6558  ;;  %v3150_v60 = vadd.f32 1.0, %v6557_v57 }
 0xba5   : > { %v3228_v61 = vadd.f32 1.0, %v6559_v58 }
 0xba6   : > { %6564 = vrcp.f32 %v3150_v60 }
 0xba7   : > { %6566 = vrcp.f32 %v3228_v61  ;;  %v3704_v61 = vld [vmem:[#allocation2 + $0x4] sm:$0x1] }
 0xbac   : > { %v6561_v62 = vpop.eup %6560 }
 0xbad   : > { %v6563_v63 = vpop.eup %6562  ;;  %v3379_v4 = vadd.f32 1.0, %v6561_v62 }
 0xbaf   : > { %6568 = vrcp.f32 %v3379_v4 }
 0xbb3   : > { %v6565_v1 = vpop.eup %6564 }
 0xbb4   : > { %v6567_v2 = vpop.eup %6566  ;;  %v3383_v3 = vmul.f32 %v6565_v1, %v6563_v63  ;;  %v3785_v63 = vld [vmem:[#allocation2 + $0xc] sm:$0x1] }
 0xbb5   : > { %v3382_v0 = vmul.f32 %v6567_v2, %v7869_v18 }
 0xbb7   : > { %v7918_v5 = vadd.f32 %v3383_v3, %v3382_v0 }
 0xbb9   : > { %6570 = vtanh.f32 %v7918_v5 }
 0xbbc   : > { %v6569_v6 = vpop.eup %6568 }
 0xbc6   : > { %v6571_v7 = vpop.eup %6570 }
 0xbc7   : > { %v3386_v9 = vmul.f32 %v6571_v7, %v6569_v6 }
 0xbc9   : > { %3387 = vst.msk [vmem:[#allocation3 + $0x2] sm:$0x1] %vm2754_vm5, %v3386_v9  ;;  %6079 = vmatmul.mubr.msk.f32.vlgmr.msra.gmra.mxu1 %vm1008_vm0, %v3386_v9  ;;  %6090 = vmatmul.mubr.msk.f32.vlgmr.msra.gmra.mxu0 %vm1008_vm0, %v3386_v9 }
 0xbca   : > { %6093 = vmatpush3.msra.mxu1 %v7750_v37  ;;  %6104 = vmatpush3.msra.mxu0 %v7752_v38 }
 0xbcb   : > { %6094 = vmatprep.subr.mxu1 %v7147_v8  ;;  %6105 = vmatprep.subr.mxu0 %v7147_v8 }
 0xbcc   : > { %6095 = vmatpush3.msra.mxu1 %v7758_v39  ;;  %6106 = vmatpush3.msra.mxu0 %v7760_v40 }
 0xbcd   : > { %6096 = vmatprep.subr.mxu1 %v7147_v8  ;;  %6107 = vmatprep.subr.mxu0 %v7147_v8 }
 0xbce   : > { %6097 = vmatpush3.msra.mxu1 %v7766_v41  ;;  %6108 = vmatpush3.msra.mxu0 %v7768_v42 }
 0xbcf   : > { %6098 = vmatprep.subr.mxu1 %v7147_v8  ;;  %6109 = vmatprep.subr.mxu0 %v7147_v8 }
 0xbd0   : > { %6099 = vmatpush3.msra.mxu1 %v7774_v43  ;;  %6100 = vmatprep.mubr.msk.f32.mxu1 %vm7148_vm1, %v7147_v8 }
 0xbd1   : > { %6110 = vmatpush3.msra.mxu0 %v7778_v44  ;;  %6111 = vmatprep.mubr.msk.f32.mxu0 %vm7148_vm1, %v7147_v8 }
 0xbd2   : > { %6101 = vmatmul.mubr.msk.f32.vlgmr.msra.gmra.mxu1 %vm1008_vm0, %v3386_v9  ;;  %6112 = vmatmul.mubr.msk.f32.vlgmr.msra.gmra.mxu0 %vm1008_vm0, %v3386_v9 }
 0xbd3   : > { %6114 = vmatprep.subr.mxu1 %v7147_v8  ;;  %6125 = vmatprep.subr.mxu0 %v7147_v8 }
 0xbd4   : > { %6115 = vmatpush3.msra.mxu1 %v7708_v28  ;;  %6126 = vmatpush3.msra.mxu0 %v7710_v29 }
 0xbd5   : > { %6116 = vmatprep.subr.mxu1 %v7147_v8  ;;  %6127 = vmatprep.subr.mxu0 %v7147_v8 }
 0xbd6   : > { %6117 = vmatpush3.msra.mxu1 %v7716_v30  ;;  %6128 = vmatpush3.msra.mxu0 %v7718_v31 }
 0xbd7   : > { %6118 = vmatprep.subr.mxu1 %v7147_v8  ;;  %6129 = vmatprep.subr.mxu0 %v7147_v8 }
 0xbd8   : > { %6119 = vmatpush3.msra.mxu1 %v7724_v32  ;;  %6130 = vmatpush3.msra.mxu0 %v7726_v33 }
 0xbd9   : > { %6120 = vmatprep.subr.mxu1 %v7147_v8  ;;  %6131 = vmatprep.subr.mxu0 %v7147_v8 }
 0xbda   : > { %6121 = vmatpush3.msra.mxu1 %v7736_v34  ;;  %6132 = vmatpush3.msra.mxu0 %v7740_v35 }
 0xbdb   : > { %6122 = vmatprep.mubr.msk.f32.mxu1 %vm7148_vm1, %v7147_v8  ;;  %6133 = vmatprep.mubr.msk.f32.mxu0 %vm7148_vm1, %v7147_v8 }
 0xbdc   : > { %6136 = vmatprep.subr.mxu1 %v7147_v8  ;;  %6147 = vmatprep.subr.mxu0 %v7147_v8 }
 0xc89   : > { %v3458_v11 = vpop.f32.mrf.mxu1  ;;  %v3536_v13 = vpop.f32.mrf.mxu0 }
 0xc8a   : > { %v3462_v14 = vadd.f32 %v3458_v11, %v3388_v10  ;;  %v3540_v15 = vadd.f32 %v3536_v13, %v3469_v12  ;;  %v3936_v10 = vld [vmem:[#allocation2 + $0x1c] sm:$0x1] }
 0xc8b   : > { %v6080_v16 = vpop.f32.mrf.mxu1  ;;  %v6091_v17 = vpop.f32.mrf.mxu0 }
 0xc8c   : > { %v5538_v18 = vmul.f32 -1.442695, %v3462_v14  ;;  %v5540_v19 = vmul.f32 -1.442695, %v3540_v15  ;;  %v3863_v14 = vld [vmem:[#allocation2 + $0x14] sm:$0x1] }
 0xc8e   : > { %6572 = vpow2.f32 %v5538_v18 }
 0xc8f   : > { %6574 = vpow2.f32 %v5540_v19 }
 0xc92   : > { %v3614_v20 = vpop.f32.mrf.mxu1  ;;  %v3687_v21 = vpop.f32.mrf.mxu0 }
 0xc93   : > { %v3691_v23 = vadd.f32 %v3687_v21, %v3620_v22  ;;  %v3618_v36 = vadd.f32 %v3614_v20, %v3547_v26 }
 0xc94   : > { %v6102_v24 = vpop.f32.mrf.mxu1  ;;  %v6113_v25 = vpop.f32.mrf.mxu0 }
 0xc95   : > { %v5543_v27 = vmul.f32 -1.442695, %v3691_v23 }
 0xc97   : > { %6576 = vpow2.f32 %v5543_v27 }
 0xc98   : > { %6578 = vtanh.f32 %v3618_v36 }
 0xc9b   : > { %v6573_v45 = vpop.eup %6572 }
 0xc9c   : > { %v6575_v46 = vpop.eup %6574  ;;  %v3466_v47 = vadd.f32 1.0, %v6573_v45 }
 0xc9d   : > { %v3544_v48 = vadd.f32 1.0, %v6575_v46 }
 0xc9e   : > { %6580 = vrcp.f32 %v3466_v47 }
 0xc9f   : > { %6582 = vrcp.f32 %v3544_v48  ;;  %v4179_v48 = vld [vmem:[#allocation2 + $0x15] sm:$0x1] }
 0xca4   : > { %v6577_v49 = vpop.eup %6576 }
 0xca5   : > { %v6579_v50 = vpop.eup %6578  ;;  %v3695_v54 = vadd.f32 1.0, %v6577_v49 }
 0xca7   : > { %6584 = vrcp.f32 %v3695_v54 }
 0xcab   : > { %v6581_v51 = vpop.eup %6580 }
 0xcac   : > { %v6583_v52 = vpop.eup %6582  ;;  %v3699_v53 = vmul.f32 %v6581_v51, %v6579_v50 }
 0xcad   : > { %v3698_v55 = vmul.f32 %v6583_v52, %v7918_v5 }
 0xcaf   : > { %v7967_v56 = vadd.f32 %v3699_v53, %v3698_v55 }
 0xcb1   : > { %6586 = vtanh.f32 %v7967_v56 }
 0xcb4   : > { %v6585_v57 = vpop.eup %6584 }
 0xcbe   : > { %v6587_v58 = vpop.eup %6586 }
 0xcbf   : > { %v3702_v60 = vmul.f32 %v6587_v58, %v6585_v57 }
 0xcc1   : > { %3703 = vst.msk [vmem:[#allocation3 + $0x3] sm:$0x1] %vm2754_vm5, %v3702_v60  ;;  %6123 = vmatmul.mubr.msk.f32.vlgmr.msra.gmra.mxu1 %vm1008_vm0, %v3702_v60  ;;  %6134 = vmatmul.mubr.msk.f32.vlgmr.msra.gmra.mxu0 %vm1008_vm0, %v3702_v60 }
 0xcc2   : > { %6137 = vmatpush3.msra.mxu1 %v7750_v37  ;;  %6148 = vmatpush3.msra.mxu0 %v7752_v38 }
 0xcc3   : > { %6138 = vmatprep.subr.mxu1 %v7147_v8  ;;  %6149 = vmatprep.subr.mxu0 %v7147_v8 }
 0xcc4   : > { %6139 = vmatpush3.msra.mxu1 %v7758_v39  ;;  %6150 = vmatpush3.msra.mxu0 %v7760_v40 }
 0xcc5   : > { %6140 = vmatprep.subr.mxu1 %v7147_v8  ;;  %6151 = vmatprep.subr.mxu0 %v7147_v8 }
 0xcc6   : > { %6141 = vmatpush3.msra.mxu1 %v7766_v41  ;;  %6152 = vmatpush3.msra.mxu0 %v7768_v42 }
 0xcc7   : > { %6142 = vmatprep.subr.mxu1 %v7147_v8  ;;  %6153 = vmatprep.subr.mxu0 %v7147_v8 }
 0xcc8   : > { %6143 = vmatpush3.msra.mxu1 %v7774_v43  ;;  %6144 = vmatprep.mubr.msk.f32.mxu1 %vm7148_vm1, %v7147_v8 }
 0xcc9   : > { %6154 = vmatpush3.msra.mxu0 %v7778_v44  ;;  %6155 = vmatprep.mubr.msk.f32.mxu0 %vm7148_vm1, %v7147_v8 }
 0xcca   : > { %6145 = vmatmul.mubr.msk.f32.vlgmr.msra.gmra.mxu1 %vm1008_vm0, %v3702_v60  ;;  %6156 = vmatmul.mubr.msk.f32.vlgmr.msra.gmra.mxu0 %vm1008_vm0, %v3702_v60 }
 0xccb   : > { %6158 = vmatprep.subr.mxu1 %v7147_v8  ;;  %6169 = vmatprep.subr.mxu0 %v7147_v8 }
 0xccc   : > { %6159 = vmatpush3.msra.mxu1 %v7708_v28  ;;  %6170 = vmatpush3.msra.mxu0 %v7710_v29 }
 0xccd   : > { %6160 = vmatprep.subr.mxu1 %v7147_v8  ;;  %6171 = vmatprep.subr.mxu0 %v7147_v8 }
 0xcce   : > { %6161 = vmatpush3.msra.mxu1 %v7716_v30  ;;  %6172 = vmatpush3.msra.mxu0 %v7718_v31 }
 0xccf   : > { %6162 = vmatprep.subr.mxu1 %v7147_v8  ;;  %6173 = vmatprep.subr.mxu0 %v7147_v8 }
 0xcd0   : > { %6163 = vmatpush3.msra.mxu1 %v7724_v32  ;;  %6174 = vmatpush3.msra.mxu0 %v7726_v33 }
 0xcd1   : > { %6164 = vmatprep.subr.mxu1 %v7147_v8  ;;  %6175 = vmatprep.subr.mxu0 %v7147_v8 }
 0xcd2   : > { %6165 = vmatpush3.msra.mxu1 %v7736_v34  ;;  %6176 = vmatpush3.msra.mxu0 %v7740_v35 }
 0xcd3   : > { %6166 = vmatprep.mubr.msk.f32.mxu1 %vm7148_vm1, %v7147_v8  ;;  %6177 = vmatprep.mubr.msk.f32.mxu0 %vm7148_vm1, %v7147_v8 }
 0xcd4   : > { %6180 = vmatprep.subr.mxu1 %v7147_v8  ;;  %6191 = vmatprep.subr.mxu0 %v7147_v8 }
 0xd81   : > { %v3774_v62 = vpop.f32.mrf.mxu1  ;;  %v3852_v1 = vpop.f32.mrf.mxu0 }
 0xd82   : > { %v3778_v2 = vadd.f32 %v3774_v62, %v3704_v61  ;;  %v3856_v3 = vadd.f32 %v3852_v1, %v3785_v63 }
 0xd83   : > { %v6124_v4 = vpop.f32.mrf.mxu1  ;;  %v6135_v0 = vpop.f32.mrf.mxu0 }
 0xd84   : > { %v5545_v5 = vmul.f32 -1.442695, %v3778_v2  ;;  %v5547_v6 = vmul.f32 -1.442695, %v3856_v3  ;;  %v8071_v4 = vld [vmem:[#allocation18 + $0x58] sm:$0xff] }
 0xd85   : > { %v8074_v0 = vld [vmem:[#allocation18 + $0x78] sm:$0xff] }
 0xd86   : > { %6588 = vpow2.f32 %v5545_v5  ;;  %v8079_v5 = vld [vmem:[#allocation18 + $0x50] sm:$0xff] }
 0xd87   : > { %6590 = vpow2.f32 %v5547_v6  ;;  %v8082_v6 = vld [vmem:[#allocation18 + $0x70] sm:$0xff] }
 0xd8a   : > { %v3930_v7 = vpop.f32.mrf.mxu1  ;;  %v4003_v9 = vpop.f32.mrf.mxu0 }
 0xd8b   : > { %v4007_v11 = vadd.f32 %v4003_v9, %v3936_v10  ;;  %v3934_v16 = vadd.f32 %v3930_v7, %v3863_v14  ;;  %v8087_v7 = vld [vmem:[#allocation18 + $0x48] sm:$0xff]  ;;  %v8095_v10 = vld [vmem:[#allocation18 + $0x40] sm:$0xff]  ;;  %v6664_v14 = vld [vmem:[#allocation18 + $0x10] sm:$0xff] }
 0xd8c   : > { %v6146_v12 = vpop.f32.mrf.mxu1  ;;  %v6157_v13 = vpop.f32.mrf.mxu0  ;;  %v8090_v9 = vld [vmem:[#allocation18 + $0x68] sm:$0xff] }
 0xd8d   : > { %v5550_v15 = vmul.f32 -1.442695, %v4007_v11  ;;  %v8100_v11 = vld [vmem:[#allocation18 + $0x60] sm:$0xff]  ;;  %v6662_v12 = vld [vmem:[#allocation18 + $0x18] sm:$0xff] }
 0xd8e   : > { %v6663_v13 = vld [vmem:[#allocation18 + $0x38] sm:$0xff] }
 0xd8f   : > { %6592 = vpow2.f32 %v5550_v15  ;;  %v6665_v15 = vld [vmem:[#allocation18 + $0x30] sm:$0xff] }
 0xd90   : > { %6594 = vtanh.f32 %v3934_v16  ;;  %v6666_v16 = vld [vmem:[#allocation18 + $0x8] sm:$0xff] }
 0xd93   : > { %v6589_v17 = vpop.eup %6588 }
 0xd94   : > { %v6591_v18 = vpop.eup %6590  ;;  %v3782_v19 = vadd.f32 1.0, %v6589_v17  ;;  %v6667_v17 = vld [vmem:[#allocation18 + $0x28] sm:$0xff] }
 0xd95   : > { %v3860_v20 = vadd.f32 1.0, %v6591_v18  ;;  %v6668_v18 = vld [vmem:[#allocation18] sm:$0xff] }
 0xd96   : > { %6596 = vrcp.f32 %v3782_v19  ;;  %v6669_v19 = vld [vmem:[#allocation18 + $0x20] sm:$0xff] }
 0xd97   : > { %6598 = vrcp.f32 %v3860_v20  ;;  %v4336_v20 = vld [vmem:[#allocation2 + $0x6] sm:$0x1] }
 0xd9c   : > { %v6593_v21 = vpop.eup %6592 }
 0xd9d   : > { %v6595_v22 = vpop.eup %6594  ;;  %v4011_v26 = vadd.f32 1.0, %v6593_v21 }
 0xd9f   : > { %6600 = vrcp.f32 %v4011_v26 }
 0xda3   : > { %v6597_v23 = vpop.eup %6596 }
 0xda4   : > { %v6599_v24 = vpop.eup %6598  ;;  %v4015_v25 = vmul.f32 %v6597_v23, %v6595_v22  ;;  %v4417_v22 = vld [vmem:[#allocation2 + $0xe] sm:$0x1] }
 0xda5   : > { %v4014_v27 = vmul.f32 %v6599_v24, %v7967_v56 }
 0xda7   : > { %v8016_v36 = vadd.f32 %v4015_v25, %v4014_v27 }
 0xda9   : > { %6602 = vtanh.f32 %v8016_v36 }
 0xdac   : > { %v6601_v45 = vpop.eup %6600 }
 0xdb6   : > { %v6603_v46 = vpop.eup %6602 }
 0xdb7   : > { %v4018_v47 = vmul.f32 %v6603_v46, %v6601_v45 }
 0xdb9   : > { %4019 = vst.msk [vmem:[#allocation3 + $0x4] sm:$0x1] %vm2754_vm5, %v4018_v47  ;;  %6167 = vmatmul.mubr.msk.f32.vlgmr.msra.gmra.mxu1 %vm1008_vm0, %v4018_v47  ;;  %6178 = vmatmul.mubr.msk.f32.vlgmr.msra.gmra.mxu0 %vm1008_vm0, %v4018_v47 }
 0xdba   : > { %6181 = vmatpush3.msra.mxu1 %v7750_v37  ;;  %6192 = vmatpush3.msra.mxu0 %v7752_v38 }
 0xdbb   : > { %6182 = vmatprep.subr.mxu1 %v7147_v8  ;;  %6193 = vmatprep.subr.mxu0 %v7147_v8 }
 0xdbc   : > { %6183 = vmatpush3.msra.mxu1 %v7758_v39  ;;  %6194 = vmatpush3.msra.mxu0 %v7760_v40 }
 0xdbd   : > { %6184 = vmatprep.subr.mxu1 %v7147_v8  ;;  %6195 = vmatprep.subr.mxu0 %v7147_v8 }
 0xdbe   : > { %6185 = vmatpush3.msra.mxu1 %v7766_v41  ;;  %6196 = vmatpush3.msra.mxu0 %v7768_v42  ;;  %v4252_v41 = vld [vmem:[#allocation2 + $0x1d] sm:$0x1] }
 0xdbf   : > { %6186 = vmatprep.subr.mxu1 %v7147_v8  ;;  %6197 = vmatprep.subr.mxu0 %v7147_v8 }
 0xdc0   : > { %6187 = vmatpush3.msra.mxu1 %v7774_v43  ;;  %6188 = vmatprep.mubr.msk.f32.mxu1 %vm7148_vm1, %v7147_v8 }
 0xdc1   : > { %6198 = vmatpush3.msra.mxu0 %v7778_v44  ;;  %6199 = vmatprep.mubr.msk.f32.mxu0 %vm7148_vm1, %v7147_v8 }
 0xdc2   : > { %6189 = vmatmul.mubr.msk.f32.vlgmr.msra.gmra.mxu1 %vm1008_vm0, %v4018_v47  ;;  %6200 = vmatmul.mubr.msk.f32.vlgmr.msra.gmra.mxu0 %vm1008_vm0, %v4018_v47 }
 0xdc3   : > { %6202 = vmatprep.subr.mxu1 %v7147_v8  ;;  %6213 = vmatprep.subr.mxu0 %v7147_v8 }
 0xdc4   : > { %6203 = vmatpush3.msra.mxu1 %v7708_v28  ;;  %6214 = vmatpush3.msra.mxu0 %v7710_v29  ;;  %v4020_v28 = vld [vmem:[#allocation2 + $0x5] sm:$0x1] }
 0xdc5   : > { %6204 = vmatprep.subr.mxu1 %v7147_v8  ;;  %6215 = vmatprep.subr.mxu0 %v7147_v8 }
 0xdc6   : > { %6205 = vmatpush3.msra.mxu1 %v7716_v30  ;;  %6216 = vmatpush3.msra.mxu0 %v7718_v31  ;;  %v4101_v30 = vld [vmem:[#allocation2 + $0xd] sm:$0x1] }
 0xdc7   : > { %6206 = vmatprep.subr.mxu1 %v7147_v8  ;;  %6217 = vmatprep.subr.mxu0 %v7147_v8 }
 0xdc8   : > { %6207 = vmatpush3.msra.mxu1 %v7724_v32  ;;  %6218 = vmatpush3.msra.mxu0 %v7726_v33 }
 0xdc9   : > { %6208 = vmatprep.subr.mxu1 %v7147_v8  ;;  %6219 = vmatprep.subr.mxu0 %v7147_v8 }
 0xdca   : > { %6209 = vmatpush3.msra.mxu1 %v7736_v34  ;;  %6220 = vmatpush3.msra.mxu0 %v7740_v35 }
 0xdcb   : > { %6210 = vmatprep.mubr.msk.f32.mxu1 %vm7148_vm1, %v7147_v8  ;;  %6221 = vmatprep.mubr.msk.f32.mxu0 %vm7148_vm1, %v7147_v8 }
 0xdcc   : > { %6224 = vmatprep.subr.mxu1 %v7147_v8  ;;  %6235 = vmatprep.subr.mxu0 %v7147_v8 }
 0xe79   : > { %v4090_v29 = vpop.f32.mrf.mxu1  ;;  %v4168_v31 = vpop.f32.mrf.mxu0 }
 0xe7a   : > { %v4094_v32 = vadd.f32 %v4090_v29, %v4020_v28  ;;  %v4172_v33 = vadd.f32 %v4168_v31, %v4101_v30  ;;  %v4568_v28 = vld [vmem:[#allocation2 + $0x1e] sm:$0x1] }
 0xe7b   : > { %v6168_v37 = vpop.f32.mrf.mxu1  ;;  %v6179_v34 = vpop.f32.mrf.mxu0 }
 0xe7c   : > { %v5552_v38 = vmul.f32 -1.442695, %v4094_v32  ;;  %v5554_v35 = vmul.f32 -1.442695, %v4172_v33  ;;  %v4495_v32 = vld [vmem:[#allocation2 + $0x16] sm:$0x1] }
 0xe7e   : > { %6604 = vpow2.f32 %v5552_v38 }
 0xe7f   : > { %6606 = vpow2.f32 %v5554_v35 }
 0xe82   : > { %v4246_v39 = vpop.f32.mrf.mxu1  ;;  %v4319_v40 = vpop.f32.mrf.mxu0 }
 0xe83   : > { %v4323_v42 = vadd.f32 %v4319_v40, %v4252_v41  ;;  %v4250_v50 = vadd.f32 %v4246_v39, %v4179_v48 }
 0xe84   : > { %v6190_v43 = vpop.f32.mrf.mxu1  ;;  %v6201_v44 = vpop.f32.mrf.mxu0 }
 0xe85   : > { %v5557_v49 = vmul.f32 -1.442695, %v4323_v42 }
 0xe87   : > { %6608 = vpow2.f32 %v5557_v49 }
 0xe88   : > { %6610 = vtanh.f32 %v4250_v50 }
 0xe8b   : > { %v6605_v51 = vpop.eup %6604 }
 0xe8c   : > { %v6607_v52 = vpop.eup %6606  ;;  %v4098_v53 = vadd.f32 1.0, %v6605_v51 }
 0xe8d   : > { %v4176_v54 = vadd.f32 1.0, %v6607_v52 }
 0xe8e   : > { %6612 = vrcp.f32 %v4098_v53 }
 0xe8f   : > { %6614 = vrcp.f32 %v4176_v54  ;;  %v4975_v54 = vld [vmem:[#allocation21 + $0x18] sm:$0xff] }
 0xe94   : > { %v6609_v55 = vpop.eup %6608 }
 0xe95   : > { %v6611_v56 = vpop.eup %6610  ;;  %v4327_v61 = vadd.f32 1.0, %v6609_v55  ;;  %v4974_v55 = vld [vmem:[#allocation21 + $0x10] sm:$0xff] }
 0xe97   : > { %6616 = vrcp.f32 %v4327_v61  ;;  %v4733_v61 = vld [vmem:[#allocation2 + $0xf] sm:$0x1] }
 0xe9b   : > { %v6613_v57 = vpop.eup %6612 }
 0xe9c   : > { %v6615_v58 = vpop.eup %6614  ;;  %v4331_v60 = vmul.f32 %v6613_v57, %v6611_v56  ;;  %v4973_v56 = vld [vmem:[#allocation21 + $0x8] sm:$0xff]  ;;  %v4972_v57 = vld [vmem:[#allocation21] sm:$0xff] }
 0xe9d   : > { %v4330_v62 = vmul.f32 %v6615_v58, %v8016_v36  ;;  %v4652_v58 = vld [vmem:[#allocation2 + $0x7] sm:$0x1] }
 0xe9f   : > { %v8065_v63 = vadd.f32 %v4331_v60, %v4330_v62 }
 0xea1   : > { %6618 = vtanh.f32 %v8065_v63 }
 0xea4   : > { %v6617_v1 = vpop.eup %6616 }
 0xeae   : > { %v6619_v2 = vpop.eup %6618 }
 0xeaf   : > { %v4334_v3 = vmul.f32 %v6619_v2, %v6617_v1 }
 0xeb1   : > { %4335 = vst.msk [vmem:[#allocation3 + $0x5] sm:$0x1] %vm2754_vm5, %v4334_v3  ;;  %6211 = vmatmul.mubr.msk.f32.vlgmr.msra.gmra.mxu1 %vm1008_vm0, %v4334_v3  ;;  %6222 = vmatmul.mubr.msk.f32.vlgmr.msra.gmra.mxu0 %vm1008_vm0, %v4334_v3 }
 0xeb2   : > { %6225 = vmatpush3.msra.mxu1 %v8071_v4  ;;  %6236 = vmatpush3.msra.mxu0 %v8074_v0 }
 0xeb3   : > { %6226 = vmatprep.subr.mxu1 %v7147_v8  ;;  %6237 = vmatprep.subr.mxu0 %v7147_v8 }
 0xeb4   : > { %6227 = vmatpush3.msra.mxu1 %v8079_v5  ;;  %6238 = vmatpush3.msra.mxu0 %v8082_v6 }
 0xeb5   : > { %6228 = vmatprep.subr.mxu1 %v7147_v8  ;;  %6239 = vmatprep.subr.mxu0 %v7147_v8 }
 0xeb6   : > { %6229 = vmatpush3.msra.mxu1 %v8087_v7  ;;  %6240 = vmatpush3.msra.mxu0 %v8090_v9 }
 0xeb7   : > { %6230 = vmatprep.subr.mxu1 %v7147_v8  ;;  %6241 = vmatprep.subr.mxu0 %v7147_v8 }
 0xeb8   : > { %6231 = vmatpush3.msra.mxu1 %v8095_v10  ;;  %6232 = vmatprep.mubr.msk.f32.mxu1 %vm7148_vm1, %v7147_v8 }
 0xeb9   : > { %6242 = vmatpush3.msra.mxu0 %v8100_v11  ;;  %6243 = vmatprep.mubr.msk.f32.mxu0 %vm7148_vm1, %v7147_v8 }
 0xeba   : > { %6233 = vmatmul.mubr.msk.f32.vlgmr.msra.gmra.mxu1 %vm1008_vm0, %v4334_v3  ;;  %6244 = vmatmul.mubr.msk.f32.vlgmr.msra.gmra.mxu0 %vm1008_vm0, %v4334_v3 }
 0xebb   : > { %6246 = vmatprep.subr.mxu1 %v7147_v8  ;;  %6257 = vmatprep.subr.mxu0 %v7147_v8 }
 0xebc   : > { %6247 = vmatpush3.msra.mxu1 %v6662_v12  ;;  %6258 = vmatpush3.msra.mxu0 %v6663_v13  ;;  %v4811_v12 = vld [vmem:[#allocation2 + $0x17] sm:$0x1] }
 0xebd   : > { %6248 = vmatprep.subr.mxu1 %v7147_v8  ;;  %6259 = vmatprep.subr.mxu0 %v7147_v8 }
 0xebe   : > { %6249 = vmatpush3.msra.mxu1 %v6664_v14  ;;  %6260 = vmatpush3.msra.mxu0 %v6665_v15 }
 0xebf   : > { %6250 = vmatprep.subr.mxu1 %v7147_v8  ;;  %6261 = vmatprep.subr.mxu0 %v7147_v8 }
 0xec0   : > { %6251 = vmatpush3.msra.mxu1 %v6666_v16  ;;  %6262 = vmatpush3.msra.mxu0 %v6667_v17 }
 0xec1   : > { %6252 = vmatprep.subr.mxu1 %v7147_v8  ;;  %6263 = vmatprep.subr.mxu0 %v7147_v8 }
 0xec2   : > { %6253 = vmatpush3.msra.mxu1 %v6668_v18  ;;  %6264 = vmatpush3.msra.mxu0 %v6669_v19 }
 0xec3   : > { %6254 = vmatprep.mubr.msk.f32.mxu1 %vm7148_vm1, %v7147_v8  ;;  %6265 = vmatprep.mubr.msk.f32.mxu0 %vm7148_vm1, %v7147_v8 }
 0xec4   : > { %6268 = vmatprep.subr.mxu1 %v7147_v8  ;;  %6279 = vmatprep.subr.mxu0 %v7147_v8 }
 0xf71   : > { %v4406_v21 = vpop.f32.mrf.mxu1  ;;  %v4484_v23 = vpop.f32.mrf.mxu0 }
 0xf72   : > { %v4410_v24 = vadd.f32 %v4406_v21, %v4336_v20  ;;  %v4488_v25 = vadd.f32 %v4484_v23, %v4417_v22 }
 0xf73   : > { %v6212_v26 = vpop.f32.mrf.mxu1  ;;  %v6223_v27 = vpop.f32.mrf.mxu0 }
 0xf74   : > { %v5559_v36 = vmul.f32 -1.442695, %v4410_v24  ;;  %v5561_v45 = vmul.f32 -1.442695, %v4488_v25 }
 0xf76   : > { %6620 = vpow2.f32 %v5559_v36 }
 0xf77   : > { %6622 = vpow2.f32 %v5561_v45 }
 0xf7a   : > { %v4562_v46 = vpop.f32.mrf.mxu1  ;;  %v4635_v47 = vpop.f32.mrf.mxu0 }
 0xf7b   : > { %v4639_v29 = vadd.f32 %v4635_v47, %v4568_v28  ;;  %v4566_v37 = vadd.f32 %v4562_v46, %v4495_v32  ;;  %v5068_v28 = vld [vmem:[%s8383_s28 + $0x38] sm:$0xff]  ;;  %v5063_v32 = vld [vmem:[%s8383_s28 + $0x10] sm:$0xff] }
 0xf7c   : > { %v6234_v30 = vpop.f32.mrf.mxu1  ;;  %v6245_v31 = vpop.f32.mrf.mxu0 }
 0xf7d   : > { %v5564_v33 = vmul.f32 -1.442695, %v4639_v29  ;;  %v5067_v29 = vld [vmem:[%s8383_s28 + $0x30] sm:$0xff]  ;;  %v5065_v30 = vld [vmem:[%s8383_s28 + $0x20] sm:$0xff]  ;;  %v5064_v31 = vld [vmem:[%s8383_s28 + $0x18] sm:$0xff] }
 0xf7f   : > { %6624 = vpow2.f32 %v5564_v33  ;;  %v5062_v33 = vld [vmem:[%s8383_s28 + $0x8] sm:$0xff] }
 0xf80   : > { %6626 = vtanh.f32 %v4566_v37  ;;  %v5061_v37 = vld [vmem:[%s8383_s28] sm:$0xff] }
 0xf83   : > { %v6621_v34 = vpop.eup %6620 }
 0xf84   : > { %v6623_v38 = vpop.eup %6622  ;;  %v4414_v35 = vadd.f32 1.0, %v6621_v34  ;;  %v5572_v34 = vld [vmem:[#allocation22] ss:$0 sm:$0xff] }
 0xf85   : > { %v4492_v39 = vadd.f32 1.0, %v6623_v38 }
 0xf86   : > { %6628 = vrcp.f32 %v4414_v35 }
 0xf87   : > { %6630 = vrcp.f32 %v4492_v39 }
 0xf8c   : > { %v6625_v40 = vpop.eup %6624 }
 0xf8d   : > { %v6627_v41 = vpop.eup %6626  ;;  %v4643_v48 = vadd.f32 1.0, %v6625_v40 }
 0xf8f   : > { %6632 = vrcp.f32 %v4643_v48 }
 0xf93   : > { %v6629_v42 = vpop.eup %6628 }
 0xf94   : > { %v6631_v43 = vpop.eup %6630  ;;  %v4647_v44 = vmul.f32 %v6629_v42, %v6627_v41 }
 0xf95   : > { %v4646_v49 = vmul.f32 %v6631_v43, %v8065_v63 }
 0xf97   : > { %v8122_v50 = vadd.f32 %v4647_v44, %v4646_v49 }
 0xf99   : > { %6634 = vtanh.f32 %v8122_v50 }
 0xf9c   : > { %v6633_v51 = vpop.eup %6632 }
 0xfa6   : > { %v6635_v52 = vpop.eup %6634 }
 0xfa7   : > { %v4650_v53 = vmul.f32 %v6635_v52, %v6633_v51 }
 0xfa9   : > { %4651 = vst.msk [vmem:[#allocation3 + $0x6] sm:$0x1] %vm2754_vm5, %v4650_v53  ;;  %6255 = vmatmul.mubr.msk.f32.vlgmr.msra.gmra.mxu1 %vm1008_vm0, %v4650_v53  ;;  %6266 = vmatmul.mubr.msk.f32.vlgmr.msra.gmra.mxu0 %vm1008_vm0, %v4650_v53 }
 0xfaa   : > { %6269 = vmatpush3.msra.mxu1 %v8071_v4  ;;  %6280 = vmatpush3.msra.mxu0 %v8074_v0 }
 0xfab   : > { %6270 = vmatprep.subr.mxu1 %v7147_v8  ;;  %6281 = vmatprep.subr.mxu0 %v7147_v8 }
 0xfac   : > { %6271 = vmatpush3.msra.mxu1 %v8079_v5  ;;  %6282 = vmatpush3.msra.mxu0 %v8082_v6 }
 0xfad   : > { %6272 = vmatprep.subr.mxu1 %v7147_v8  ;;  %6283 = vmatprep.subr.mxu0 %v7147_v8 }
 0xfae   : > { %6273 = vmatpush3.msra.mxu1 %v8087_v7  ;;  %6284 = vmatpush3.msra.mxu0 %v8090_v9  ;;  %v4884_v7 = vld [vmem:[#allocation2 + $0x1f] sm:$0x1] }
 0xfaf   : > { %6274 = vmatprep.subr.mxu1 %v7147_v8  ;;  %6285 = vmatprep.subr.mxu0 %v7147_v8 }
 0xfb0   : > { %6275 = vmatpush3.msra.mxu1 %v8095_v10  ;;  %6276 = vmatprep.mubr.msk.f32.mxu1 %vm7148_vm1, %v7147_v8 }
 0xfb1   : > { %6286 = vmatpush3.msra.mxu0 %v8100_v11  ;;  %6287 = vmatprep.mubr.msk.f32.mxu0 %vm7148_vm1, %v7147_v8 }
 0xfb2   : > { %6277 = vmatmul.mubr.msk.f32.vlgmr.msra.gmra.mxu1 %vm1008_vm0, %v4650_v53  ;;  %6288 = vmatmul.mubr.msk.f32.vlgmr.msra.gmra.mxu0 %vm1008_vm0, %v4650_v53 }
 0xfb3   : > { %6290 = vmatprep.subr.mxu1 %v7147_v8  ;;  %6298 = vmatprep.mubr.msk.f32.mxu1 %vm7148_vm1, %v7147_v8 }
 0xfb4   : > { %6301 = vmatprep.subr.mxu0 %v7147_v8  ;;  %6317 = vmatprep.mubr.msk.f32.mxu0 %vm7148_vm1, %v7147_v8 }
 0xfb5   : > { %6291 = vmatpush3.msra.mxu1 %v4975_v54  ;;  %6302 = vmatpush3.msra.mxu0 %v5068_v28 }
 0xfb6   : > { %6292 = vmatprep.subr.mxu1 %v7147_v8  ;;  %6303 = vmatprep.subr.mxu0 %v7147_v8 }
 0xfb7   : > { %6293 = vmatpush3.msra.mxu1 %v4974_v55  ;;  %6304 = vmatpush3.msra.mxu0 %v5067_v29 }
 0xfb8   : > { %6294 = vmatprep.subr.mxu1 %v7147_v8  ;;  %6305 = vmatprep.subr.mxu0 %v7147_v8 }
 0xfb9   : > { %6295 = vmatpush3.msra.mxu1 %v4973_v56 }
 0xfba   : > { %6296 = vmatprep.subr.mxu1 %v7147_v8 }
 0xfbb   : > { %6297 = vmatpush3.msra.mxu1 %v4972_v57 }
0x1069   : > { %v4722_v60 = vpop.f32.mrf.mxu1  ;;  %v4800_v62 = vpop.f32.mrf.mxu0 }
0x106a   : > { %v4726_v63 = vadd.f32 %v4722_v60, %v4652_v58  ;;  %v4804_v1 = vadd.f32 %v4800_v62, %v4733_v61 }
0x106b   : > { %v6256_v2 = vpop.f32.mrf.mxu1  ;;  %v6267_v3 = vpop.f32.mrf.mxu0 }
0x106c   : > { %v5566_v4 = vmul.f32 -1.442695, %v4726_v63  ;;  %v5568_v0 = vmul.f32 -1.442695, %v4804_v1 }
0x106e   : > { %6636 = vpow2.f32 %v5566_v4 }
0x106f   : > { %6638 = vpow2.f32 %v5568_v0 }
0x1072   : > { %v4878_v5 = vpop.f32.mrf.mxu1  ;;  %v4951_v6 = vpop.f32.mrf.mxu0 }
0x1073   : > { %v4955_v9 = vadd.f32 %v4951_v6, %v4884_v7  ;;  %v4882_v14 = vadd.f32 %v4878_v5, %v4811_v12 }
0x1074   : > { %v6278_v10 = vpop.f32.mrf.mxu1  ;;  %v6289_v11 = vpop.f32.mrf.mxu0 }
0x1075   : > { %v5571_v13 = vmul.f32 -1.442695, %v4955_v9 }
0x1077   : > { %6640 = vpow2.f32 %v5571_v13 }
0x1078   : > { %6642 = vtanh.f32 %v4882_v14 }
0x107b   : > { %v6637_v15 = vpop.eup %6636 }
0x107c   : > { %v6639_v16 = vpop.eup %6638  ;;  %v4730_v17 = vadd.f32 1.0, %v6637_v15 }
0x107d   : > { %v4808_v18 = vadd.f32 1.0, %v6639_v16 }
0x107e   : > { %6644 = vrcp.f32 %v4730_v17 }
0x107f   : > { %6646 = vrcp.f32 %v4808_v18 }
0x1084   : > { %v6641_v19 = vpop.eup %6640 }
0x1085   : > { %v6643_v20 = vpop.eup %6642  ;;  %v4959_v24 = vadd.f32 1.0, %v6641_v19 }
0x1087   : > { %6648 = vrcp.f32 %v4959_v24 }
0x108b   : > { %v6645_v21 = vpop.eup %6644 }
0x108c   : > { %v6647_v22 = vpop.eup %6646  ;;  %v4963_v23 = vmul.f32 %v6645_v21, %v6643_v20 }
0x108d   : > { %v4962_v25 = vmul.f32 %v6647_v22, %v8122_v50 }
0x108f   : > { %v4964_v26 = vadd.f32 %v4963_v23, %v4962_v25 }
0x1091   : > { %6650 = vtanh.f32 %v4964_v26  ;;  %4969 = vst.msk [vmem:[%s8310_s23] sm:$0x1] %vm2754_vm5, %v4964_v26  ;;  %s7014_s23 = sshll.u32 %s7155_s12, 4  ;;  %s7015_s23 = int_to_ptr.vmem [resolvable:$false] %s7014_s23 }
0x1092   : > { %s7016_s10 = scalar_lea.vmem %s7015_s23, 32  ;;  %p7017_p2 = scmp.lt.s32.totalorder %s5177_s5, %s7015_s23 }
0x1093   : > { %p7018_p10 = scmp.lt.s32.totalorder %s7016_s10, %s7010_s1 }
0x1094   : > { %v6649_v27 = vpop.eup %6648 }
0x1095   : > { %p7019_p11 = por %p7018_p10, %p7017_p2 }
0x1097   : > { %p7020_p12 = pnand %p7019_p11, %p7013_p4 }
0x109e   : > { %v6651_v36 = vpop.eup %6650 }
0x109f   : > { %v4966_v45 = vmul.f32 %v6651_v36, %v6649_v27 }
0x10a1   : > { %4967 = vst.msk [vmem:[#allocation3 + $0x7] sm:$0x1] %vm2754_vm5, %v4966_v45  ;;  %4968 = vst.msk [vmem:[%s983_s3] sm:$0x1] %vm2754_vm5, %v4966_v45 }
0x10a8   : > { %v4970_v46 = vld [vmem:[#allocation3] sm:$0xff] }
0x10a9   : > { %v8168_v47 = vadd.f32 %v4970_v46, %v7676_v59  ;;  %v5066_v59 = vld [vmem:[%s8383_s28 + $0x28] sm:$0xff] }
0x10aa   : > { %6306 = vmatpush3.msra.mxu0 %v5066_v59 }
0x10ab   : > { %6299 = vmatmul.mubr.msk.f32.vlgmr.msra.gmra.mxu1 %vm1008_vm0, %v8168_v47  ;;  %6307 = vmatprep.subr.mxu0 %v7147_v8 }
0x10ac   : > { %6308 = vmatpush3.msra.mxu0 %v5065_v30 }
0x10ad   : > { %6309 = vmatprep.subr.mxu0 %v7147_v8 }
0x10ae   : > { %6310 = vmatpush3.msra.mxu0 %v5064_v31 }
0x10af   : > { %6311 = vmatprep.subr.mxu0 %v7147_v8 }
0x10b0   : > { %6312 = vmatpush3.msra.mxu0 %v5063_v32 }
0x10b1   : > { %6313 = vmatprep.subr.mxu0 %v7147_v8 }
0x10b2   : > { %6314 = vmatpush3.msra.mxu0 %v5062_v33 }
0x10b3   : > { %6315 = vmatprep.subr.mxu0 %v7147_v8 }
0x10b4   : > { %6316 = vmatpush3.msra.mxu0 %v5061_v37 }
0x116b   : > { %v5052_v38 = vpop.f32.mrf.mxu1 }
0x116c   : > { %v5053_v35 = vadd.f32 %v5572_v34, %v5052_v38 }
0x116d   : > { %v6300_v39 = vpop.f32.mrf.mxu1 }
0x116e   : > { %v5057_v40 = vmul.f32 0.70710677, %v5053_v35  ;;  %v5056_v42 = vmul.f32 0.5, %v5053_v35 }
0x1170   : > { %6652 = verf.f32 %v5057_v40 }
0x117d   : > { %v6653_v41 = vpop.eup %6652 }
0x117e   : > { %v5059_v43 = vadd.f32 1.0, %v6653_v41 }
0x1180   : > { %v5060_v44 = vmul.f32 %v5059_v43, %v5056_v42 }
0x1182   : > { %6318 = vmatmul.mubr.msk.f32.vlgmr.msra.gmra.mxu0 %vm5076_vm6, %v5060_v44 }
0x1183   : > { %7023 = shalt.err (!%p7020_p12)
}
0x1184   : > { %s7024_s3 = scalar_lea.hbm %s5174_s16, 16  ;;  %s7028_s4 = scalar_lea.hbm %s8384_s18, 32 }
0x1185   : > { %p7025_p13 = scmp.ne.s32.totalorder %s5174_s16, %s7024_s3  ;;  %p7029_p5 = scmp.lt.s32.totalorder %s5174_s16, %s8384_s18 }
0x1186   : > { %p7030_p8 = scmp.lt.s32.totalorder %s7028_s4, %s7024_s3 }
0x1187   : > { %p7026_p0 = pnand %p7025_p13, %p8385_p6 }
0x1188   : > { %p7031_p9 = por %p7030_p8, %p7029_p5 }
0x1189   : > { %p7027_p1 = pneg %p7026_p0 }
0x118b   : > { %p7032_p7 = pnand %p7031_p9, %p7027_p1 }
0x118d   : > { %7035 = shalt.err (!%p7032_p7)
}
0x118e   : > { %6370 = dma.vmem_to_hbm [thread:$0]  (%p8385_p6), %s5177_s5, 16, %s5174_s16, %s5157_s19  }
0x118f   : > { %s8386_s10 = sshll.u32 %s7308_s26, 4  ;;  %s8387_s1 = sld [smem:[#allocation60_spill]] }
0x1190   : > { %s8388_s8 = scalar_lea.vmem [#allocation26], %s7500_s17  ;;  %s5161_s13 = scalar_lea.sflag [#allocation27], %s7500_s17 }
0x1191   : > { %s5189_s14 = sshll.u32 %s8388_s8, 4  ;;  %s7156_s4 = smov [#allocation26]   ;;  %s5190_s14 = int_to_ptr.vmem [resolvable:$true] %s5189_s14 }
0x1192   : > { %s7036_s11 = scalar_lea.vmem %s5190_s14, 16  ;;  %s7040_s3 = sshll.u32 %s7156_s4, 4  ;;  %s7041_s3 = int_to_ptr.vmem [resolvable:$false] %s7040_s3 }
0x1193   : > { %p7037_p3 = scmp.ne.s32.totalorder %s5190_s14, %s7036_s11  ;;  %s7042_s15 = scalar_lea.vmem %s7041_s3, 32 }
0x1194   : > { %p7043_p10 = scmp.lt.s32.totalorder %s5190_s14, %s7041_s3  ;;  %p7044_p11 = scmp.lt.s32.totalorder %s7042_s15, %s7036_s11 }
0x1195   : > { %s5187_s21 = scalar_lea.hbm %s8387_s1, %s8386_s10  ;;  %p7038_p4 = pnand %p7037_p3, %p8385_p6 }
0x1196   : > { %p7045_p12 = por %p7044_p11, %p7043_p10 }
0x1197   : > { %p7039_p2 = pneg %p7038_p4 }
0x1199   : > { %p7046_p13 = pnand %p7045_p12, %p7039_p2 }
0x119b   : > { %7049 = shalt.err (!%p7046_p13)
}
0x119c   : > { %s7050_s26 = scalar_lea.hbm %s5187_s21, 16  ;;  %s7054_s16 = scalar_lea.hbm %s8387_s1, 32 }
0x119d   : > { %p7051_p0 = scmp.ne.s32.totalorder %s5187_s21, %s7050_s26  ;;  %p7055_p8 = scmp.lt.s32.totalorder %s5187_s21, %s8387_s1 }
0x119e   : > { %p7056_p9 = scmp.lt.s32.totalorder %s7054_s16, %s7050_s26 }
0x119f   : > { %p7052_p1 = pnand %p7051_p0, %p8385_p6 }
0x11a0   : > { %p7057_p7 = por %p7056_p9, %p7055_p8 }
0x11a1   : > { %p7053_p5 = pneg %p7052_p1 }
0x11a3   : > { %p7058_p3 = pnand %p7057_p7, %p7053_p5 }
0x11a5   : > { %7061 = shalt.err (!%p7058_p3)
}
0x11a6   : > { %6371 = dma.vmem_to_hbm [thread:$0]  (%p8385_p6), %s5190_s14, 16, %s5187_s21, %s5161_s13   ;;  %v5574_v8 = vld [vmem:[#allocation24] ss:$0 sm:$0xff] }
0x11a7   : > { %s8389_s15 = sshll.u32 %s7565_s7, 3  ;;  %s8390_s8 = sld [smem:[#allocation58_spill]] }
0x11ad   : > { %s1003_s11 = scalar_lea.vmem %s8390_s8, %s8389_s15 }
0x1242   : > { %v5146_v48 = vpop.f32.mrf.mxu0 }
0x1243   : > { %v5147_v49 = vadd.f32 %v5574_v8, %v5146_v48 }
0x1244   : > { %v6319_v50 = vpop.f32.mrf.mxu0 }
0x1245   : > { %v5150_v51 = vadd.f32 %v5147_v49, %v8168_v47 }
0x1247   : > { %5151 = vst.msk [vmem:[%s1003_s11] sm:$0xff] %vm1008_vm0, %v5150_v51 }
0x1248 PF: > { %s5208_s0 = sand.u32 1, %s7116_s29   ;;  %p8391_p4 = scmp.ne.s32.totalorder %s8357_s27, 0 }
0x1249   : > { %p8392_p6 = scmp.ge.s32.totalorder %s7128_s30, 2  ;;  %s5209_s14 = scalar_lea.sflag [#allocation6], %s5208_s0 }
0x124b   : > { %p6416_p2 = pnand %p8392_p6, %p8391_p4 }
0x124d   : > { %p6417_p10 = pneg %p6416_p2 }
0x124f   : > { %7107 = dma.done.wait (%p6417_p10), %s5209_s14, 16  }
0x1250   : > { %7109 = vsyncadd (%p6417_p10), %s5209_s14, 4294967280  ;;  %s5217_s7 = scalar_lea.sflag [#allocation27], %s5208_s0 }
0x1251   : > { %7111 = dma.done.wait (%p6417_p10), %s5217_s7, 16  }
0x1252   : > { %7113 = vsyncadd (%p6417_p10), %s5217_s7, 4294967280  ;;  %p48_p11 = scmp.ge.s32.totalorder %s7437_s9, 4   ;;  %s8393_s29 = smov %s7120_s2 }
0x1253   : > { %s8394_s2 = smov %s7124_s6  ;;  %s8395_s6 = smov %s7448_s25 }
0x1254   : > { %s8396_s30 = smov %s7437_s9  ;;  %50 = sbr.rel (!%p48_p11) target bundleno = 38 (0x26), region = 255 }
0x1259   :  { %5221 = vsyncpa [#allocation5], 1 }
0x125a   :  { %5223 = vsyncpa [#allocation5 + $0x1], 1 }
0x125b   :  { %5224 = vsyncpa [#allocation8], 1 }
0x125c   :  { %5225 = vsyncpa [#allocation11], 1 }
0x125d   :  { %5226 = vsyncpa [#allocation14], 1 }
0x125e   :  { %5227 = vsyncpa [#allocation17], 1 }
0x125f   :  { %5228 = vsyncpa [#allocation20], 1 }
0x1260   :  { %5229 = vsyncpa [#allocation23], 1 }
0x1261   :  { %5230 = vsyncpa [#allocation6], 1 }
0x1262   :  { %5232 = vsyncpa [#allocation6 + $0x1], 1 }
0x1263   :  { %5233 = vsyncpa [#allocation27], 1 }
0x1264   :  { %5235 = vsyncpa [#allocation27 + $0x1], 1 }

</bundles_post_ra>
